<compile_context>
chip_gen: v5e
topology: v5e:2x2
jax: 0.10.0
libtpu: 0.0.40
codegen_flags: <defaults>
</compile_context>

<pallas_src>
import functools

import jax
import jax.numpy as jnp
from jax.experimental import pallas as pl
from jax.experimental.pallas import tpu as pltpu


# ----------------------------------------------------------------------------
# Hardware introspection (generation-aware budgets / TensorCore count).
# ----------------------------------------------------------------------------
@functools.lru_cache(maxsize=None)
def _vmem_capacity_bytes() -> int:
    try:
        return int(pltpu.get_tpu_info().vmem_capacity_bytes)
    except Exception:
        return 64 * 2 ** 20  # conservative (v7x-sized) default


@functools.lru_cache(maxsize=None)
def _num_tensorcores() -> int:
    try:
        info = pltpu.get_tpu_info()
        for attr in ("num_cores", "tensorcore_count", "num_tensorcores",
                     "core_count"):
            v = getattr(info, attr, None)
            if v:
                return int(v)
    except Exception:
        pass
    try:
        return int(getattr(jax.devices()[0], "num_cores", 1) or 1)
    except Exception:
        return 1


# ----------------------------------------------------------------------------
# Fused whole-MLP kernel (main path).
# ----------------------------------------------------------------------------
def _mlp_fused_kernel(*refs, num_layers: int):
    """refs = (x_ref, w0, b0, w1, b1, ..., w_{L-1}, b_{L-1}, o_ref)."""
    x_ref = refs[0]
    o_ref = refs[-1]
    h = x_ref[...].astype(jnp.float32)
    for i in range(num_layers):                 # static unroll over layers
        w = refs[1 + 2 * i][...]
        b = refs[2 + 2 * i][...]                # f32 bias
        lhs = h if w.dtype == jnp.float32 else h.astype(w.dtype)
        h = jnp.dot(lhs, w, preferred_element_type=jnp.float32) + b
        if i < num_layers - 1:                  # ReLU after all but last layer
            h = jnp.maximum(h, 0.0)
    o_ref[...] = h.astype(o_ref.dtype)


def mlp_fused_pallas(x, params):
    """Runs the entire MLP in one pallas_call.  x: (B, K0).  Requires that all
    weights/biases (+ activations) fit in VMEM -- caller checks the budget."""
    num_layers = len(params)
    flat = []
    for w, b in params:
        flat.append(w)
        flat.append(b.reshape(1, -1).astype(jnp.float32))  # lane-friendly bias
    B = x.shape[0]
    n_out = params[-1][0].shape[1]

    total_bytes = x.size * x.dtype.itemsize
    total_bytes += sum(a.size * a.dtype.itemsize for a in flat)
    total_bytes += B * n_out * 4
    cap = _vmem_capacity_bytes()
    # Headroom for compiler temporaries; clamp at 75% of physical VMEM so the
    # same request is valid on 128 MiB (v5e/v6e) and 64 MiB (v7x) parts.
    vmem_limit = int(min(max(int(total_bytes * 1.5) + (4 << 20), 32 << 20),
                         int(cap * 0.75)))

    flops = 2 * B * sum(w.shape[0] * w.shape[1] for w, _ in params)
    kernel = functools.partial(_mlp_fused_kernel, num_layers=num_layers)
    return pl.pallas_call(
        kernel,
        out_shape=jax.ShapeDtypeStruct((B, n_out), jnp.float32),
        compiler_params=pltpu.CompilerParams(vmem_limit_bytes=vmem_limit),
        cost_estimate=pl.CostEstimate(
            flops=flops, transcendentals=0, bytes_accessed=total_bytes),
    )(x, *flat)


# ----------------------------------------------------------------------------
# Per-layer fallback kernel (large models): y = x @ w + b (+ optional ReLU).
# ----------------------------------------------------------------------------
def _linear_kernel(x_ref, w_ref, b_ref, o_ref, *, apply_relu: bool):
    # Partial sums accumulate directly in the f32 output block.
    assert o_ref.dtype == jnp.float32
    k = pl.program_id(1)

    lhs = x_ref[...]
    if w_ref.dtype != jnp.float32:
        lhs = lhs.astype(w_ref.dtype)
    part = jnp.dot(lhs, w_ref[...], preferred_element_type=jnp.float32)

    @pl.when(k == 0)
    def _():
        o_ref[...] = part                       # zero-init fused with 1st acc

    @pl.when(k > 0)
    def _():
        o_ref[...] += part

    @pl.when(k == pl.num_programs(1) - 1)
    def _():
        y = o_ref[...] + b_ref[...]
        if apply_relu:
            y = jnp.maximum(y, 0.0)
        o_ref[...] = y


def _largest_tile(dim, cap):
    """Largest multiple-of-128 divisor of `dim` that is <= cap."""
    cap = max(128, min(cap, dim))
    for t in range(cap - cap % 128, 0, -128):
        if dim % t == 0:
            return t
    return 128


def linear_pallas(x, w, b, *, apply_relu: bool):
    """y = x @ w + b (+ optional ReLU).  x: (B, K) f32, w: (K, N), b: (N,)."""
    B, K = x.shape
    K2, N = w.shape
    assert K == K2 and b.shape == (N,)

    # Graceful handling of feature dims that are not multiples of 128:
    # zero-pad K (padded terms contribute 0) and N (extra columns sliced off).
    Kp = K + (-K) % 128
    Np = N + (-N) % 128
    if Kp != K:
        x = jnp.pad(x, ((0, 0), (0, Kp - K)))
        w = jnp.pad(w, ((0, Kp - K), (0, 0)))
    if Np != N:
        w = jnp.pad(w, ((0, 0), (0, Np - N)))
        b = jnp.pad(b, (0, Np - N))

    cap = _vmem_capacity_bytes()
    w_isz = w.dtype.itemsize
    x_isz = x.dtype.itemsize

    # N tile: full width on single-TC chips (v5e/v6e); split >= 2 ways on
    # multi-TC chips (v7x megacore) so both cores stream weights in parallel.
    if _num_tensorcores() >= 2 and Np >= 256:
        cap_n = min(max(Np // 2, 128), 2048)
    else:
        cap_n = Np
    tn = _largest_tile(Np, cap_n)

    # K tile: full reduction in one grid step when the double-buffered weight
    # block + activation block fit the generation-aware budget (~35% of VMEM).
    weight_budget = int(cap * 0.35)
    tk_cap = weight_budget // (2 * (w_isz * tn + x_isz * B))
    tk = _largest_tile(Kp, tk_cap)

    est = (2 * tk * tn * w_isz + 2 * B * tk * x_isz
           + 2 * B * tn * 4 + 2 * tn * 4 + (2 << 20))
    vmem_limit = int(min(max(int(est * 1.5), 32 << 20), int(cap * 0.625)))

    b2 = b.reshape(1, Np).astype(jnp.float32)
    kernel = functools.partial(_linear_kernel, apply_relu=apply_relu)

    # NOTE: the full batch (B=2) is kept in one block -- right shape while the
    # workload is HBM-streaming bound.  Once B grows to ~128-256+ the kernel
    # becomes MXU-bound and an M grid axis (tm multiple of 8, ideally 256)
    # should be added instead of a single full-batch block.
    out = pl.pallas_call(
        kernel,
        out_shape=jax.ShapeDtypeStruct((B, Np), jnp.float32),
        grid_spec=pltpu.PrefetchScalarGridSpec(
            num_scalar_prefetch=0,
            grid=(Np // tn, Kp // tk),
            in_specs=[
                pl.BlockSpec((B, tk), lambda j, k: (0, k)),    # activations
                pl.BlockSpec((tk, tn), lambda j, k: (k, j)),   # weights
                pl.BlockSpec((1, tn), lambda j, k: (0, j)),    # bias
            ],
            out_specs=pl.BlockSpec((B, tn), lambda j, k: (0, j)),
        ),
        compiler_params=pltpu.CompilerParams(
            dimension_semantics=("parallel", "arbitrary"),
            vmem_limit_bytes=vmem_limit,
        ),
        cost_estimate=pl.CostEstimate(
            flops=2 * B * Kp * Np, transcendentals=0,
            bytes_accessed=(B * Kp * x_isz + Kp * Np * w_isz
                            + Np * 4 + B * Np * 4)),
    )(x, w, b2)
    return out[:, :N] if Np != N else out


# ----------------------------------------------------------------------------
# Module wrapper.
# ----------------------------------------------------------------------------
class MLPPallas:
    """Pallas re-implementation of the PyTorch MLP module's forward pass.

    weight_dtype=jnp.bfloat16 (default) halves the HBM weight stream -- the
    dominant cost at small batch -- while all matmul accumulation stays f32
    and biases stay f32.  Pass jnp.float32 for bit-faithful f32 weights.
    """

    def __init__(self, in_features, hidden_features, num_hidden_blocks,
                 out_features, key, *, weight_dtype=jnp.bfloat16):
        self.params = []
        dims = ([in_features] + [hidden_features] * (num_hidden_blocks + 1)
                + [out_features])
        for i in range(len(dims) - 1):
            fan_in, fan_out = dims[i], dims[i + 1]
            key, kw, kb = jax.random.split(key, 3)
            # Deterministic init mimicking nn.Linear's U(-1/sqrt(fan_in), ...)
            bound = 1.0 / (fan_in ** 0.5)
            w = jax.random.uniform(kw, (fan_in, fan_out), jnp.float32,
                                   -bound, bound)
            b = jax.random.uniform(kb, (fan_out,), jnp.float32, -bound, bound)
            # Cast weights once at construction (not per call); biases stay f32.
            self.params.append((w.astype(weight_dtype), b))

    def _fits_fused(self, x2d):
        total = x2d.size * x2d.dtype.itemsize
        for w, b in self.params:
            total += w.size * w.dtype.itemsize + b.size * b.dtype.itemsize
        max_feat = max(w.shape[1] for w, _ in self.params)
        total += 2 * x2d.shape[0] * max_feat * 4   # activations + output (f32)
        return total <= int(_vmem_capacity_bytes() * 0.70)

    def __call__(self, x, *, fuse=True):
        batch, channel, height, width = x.shape
        h = x.reshape(batch, channel * height * width)  # torch.flatten(x, 1)

        weight_bytes = sum(w.size * w.dtype.itemsize for w, _ in self.params)
        # Multi-TC chips (v7x megacore): route big weight streams to the tiled
        # per-layer path whose "parallel" N axis engages both cores' HBM
        # bandwidth; tiny models stay fused (launch overhead dominates).
        multi_tc_stream = (_num_tensorcores() >= 2
                           and weight_bytes > 16 * 2 ** 20)

        if fuse and self._fits_fused(h) and not multi_tc_stream:
            h = mlp_fused_pallas(h, self.params)
        else:
            n_layers = len(self.params)
            for i, (w, b) in enumerate(self.params):
                h = linear_pallas(h, w, b, apply_relu=i < n_layers - 1)
        # final reshape: x.view(batch, 1, height, width)
        return h.reshape(batch, 1, height, width)


if __name__ == "__main__":
    # Small shapes consistent with the module's contract:
    #   in_features = C*H*W, out_features = H*W
    B, C, H, W = 2, 2, 16, 16
    in_features = C * H * W          # 512
    hidden_features = 1024
    out_features = H * W             # 256
    num_hidden_blocks = 2

    key = jax.random.PRNGKey(0)
    key, kx = jax.random.split(key)
    x = jax.random.normal(kx, (B, C, H, W), jnp.float32)

    model = MLPPallas(in_features, hidden_features, num_hidden_blocks,
                      out_features, key)            # bf16 weights by default

    # Main (fused) path.
    y_fused = jax.block_until_ready(model(x))
    assert y_fused.shape == (B, 1, H, W), y_fused.shape

    # Per-layer fallback path (exercised explicitly for correctness coverage).
    y_layer = jax.block_until_ready(model(x, fuse=False))
    assert y_layer.shape == (B, 1, H, W), y_layer.shape

    # --- references -----------------------------------------------------
    def ref_matching(x4d, params):
        """Plain-JAX reference with the exact same per-layer numerics
        (bf16 weights / bf16 lhs, f32 accumulation)."""
        h = x4d.reshape(x4d.shape[0], -1).astype(jnp.float32)
        n = len(params)
        for i, (w, b) in enumerate(params):
            lhs = h if w.dtype == jnp.float32 else h.astype(w.dtype)
            h = jnp.dot(lhs, w, preferred_element_type=jnp.float32) + b
            if i < n - 1:
                h = jnp.maximum(h, 0.0)
        return h.reshape(x4d.shape[0], 1, x4d.shape[2], x4d.shape[3])

    def ref_f32(x4d, params):
        """Loose f32 reference of the same linear+ReLU chain (upcast weights)."""
        h = x4d.reshape(x4d.shape[0], -1).astype(jnp.float32)
        n = len(params)
        for i, (w, b) in enumerate(params):
            h = h @ w.astype(jnp.float32) + b
            if i < n - 1:
                h = jnp.maximum(h, 0.0)
        return h.reshape(x4d.shape[0], 1, x4d.shape[2], x4d.shape[3])

    ref_strict = jax.block_until_ready(ref_matching(x, model.params))
    ref_loose = jax.block_until_ready(ref_f32(x, model.params))

    # Strict: same numerics as the kernel (bf16 weights, f32 accumulation).
    assert jnp.allclose(y_fused, ref_strict, atol=2e-3, rtol=2e-3)
    assert jnp.allclose(y_layer, ref_strict, atol=2e-3, rtol=2e-3)
    assert jnp.allclose(y_fused, y_layer, atol=2e-3, rtol=2e-3)
    # Loose: overall semantics (linear + ReLU MLP) vs f32 math.
    assert jnp.allclose(y_fused, ref_loose, atol=5e-2, rtol=5e-2)

    print("KERNEL_OK")
</pallas_src>

<mosaic_0001>
module attributes {stable_mosaic.version = 11 : i64} {
  func.func @_mlp_fused_kernel(%arg0: memref<2x512xf32, #tpu.memory_space<vmem>>, %arg1: memref<512x1024xbf16, #tpu.memory_space<vmem>>, %arg2: memref<1x1024xf32, #tpu.memory_space<vmem>>, %arg3: memref<1024x1024xbf16, #tpu.memory_space<vmem>>, %arg4: memref<1x1024xf32, #tpu.memory_space<vmem>>, %arg5: memref<1024x1024xbf16, #tpu.memory_space<vmem>>, %arg6: memref<1x1024xf32, #tpu.memory_space<vmem>>, %arg7: memref<1024x256xbf16, #tpu.memory_space<vmem>>, %arg8: memref<1x256xf32, #tpu.memory_space<vmem>>, %arg9: memref<2x256xf32, #tpu.memory_space<vmem>>) attributes {dimension_semantics = [], scalar_prefetch = 0 : i64, scratch_operands = 0 : i64, tpu.core_type = #tpu.core_type<tc>} {
    %c0 = arith.constant 0 : index
    %c0_0 = arith.constant 0 : index
    %0 = vector.load %arg0[%c0, %c0_0] : memref<2x512xf32, #tpu.memory_space<vmem>>, vector<2x512xf32>
    %c0_1 = arith.constant 0 : index
    %c0_2 = arith.constant 0 : index
    %1 = vector.load %arg1[%c0_1, %c0_2] : memref<512x1024xbf16, #tpu.memory_space<vmem>>, vector<512x1024xbf16>
    %c0_3 = arith.constant 0 : index
    %c0_4 = arith.constant 0 : index
    %2 = vector.load %arg2[%c0_3, %c0_4] : memref<1x1024xf32, #tpu.memory_space<vmem>>, vector<1x1024xf32>
    %3 = arith.truncf %0 : vector<2x512xf32> to vector<2x512xbf16>
    %cst = arith.constant dense<0.000000e+00> : vector<2x1024xf32>
    %4 = tpu.matmul %3, %1, %cst {dimension_numbers = #tpu.dot_dimension_numbers<[1], [0], [0], [1], [0, 0, 1, 1], [], []>} : vector<2x512xbf16>, vector<512x1024xbf16>, vector<2x1024xf32> -> vector<2x1024xf32>
    %5 = vector.broadcast %2 : vector<1x1024xf32> to vector<2x1024xf32>
    %6 = arith.addf %4, %5 : vector<2x1024xf32>
    %cst_5 = arith.constant 0.000000e+00 : f32
    %7 = vector.broadcast %cst_5 : f32 to vector<2x1024xf32>
    %8 = arith.maximumf %6, %7 : vector<2x1024xf32>
    %c0_6 = arith.constant 0 : index
    %c0_7 = arith.constant 0 : index
    %9 = vector.load %arg3[%c0_6, %c0_7] : memref<1024x1024xbf16, #tpu.memory_space<vmem>>, vector<1024x1024xbf16>
    %c0_8 = arith.constant 0 : index
    %c0_9 = arith.constant 0 : index
    %10 = vector.load %arg4[%c0_8, %c0_9] : memref<1x1024xf32, #tpu.memory_space<vmem>>, vector<1x1024xf32>
    %11 = arith.truncf %8 : vector<2x1024xf32> to vector<2x1024xbf16>
    %cst_10 = arith.constant dense<0.000000e+00> : vector<2x1024xf32>
    %12 = tpu.matmul %11, %9, %cst_10 {dimension_numbers = #tpu.dot_dimension_numbers<[1], [0], [0], [1], [0, 0, 1, 1], [], []>} : vector<2x1024xbf16>, vector<1024x1024xbf16>, vector<2x1024xf32> -> vector<2x1024xf32>
    %13 = vector.broadcast %10 : vector<1x1024xf32> to vector<2x1024xf32>
    %14 = arith.addf %12, %13 : vector<2x1024xf32>
    %cst_11 = arith.constant 0.000000e+00 : f32
    %15 = vector.broadcast %cst_11 : f32 to vector<2x1024xf32>
    %16 = arith.maximumf %14, %15 : vector<2x1024xf32>
    %c0_12 = arith.constant 0 : index
    %c0_13 = arith.constant 0 : index
    %17 = vector.load %arg5[%c0_12, %c0_13] : memref<1024x1024xbf16, #tpu.memory_space<vmem>>, vector<1024x1024xbf16>
    %c0_14 = arith.constant 0 : index
    %c0_15 = arith.constant 0 : index
    %18 = vector.load %arg6[%c0_14, %c0_15] : memref<1x1024xf32, #tpu.memory_space<vmem>>, vector<1x1024xf32>
    %19 = arith.truncf %16 : vector<2x1024xf32> to vector<2x1024xbf16>
    %cst_16 = arith.constant dense<0.000000e+00> : vector<2x1024xf32>
    %20 = tpu.matmul %19, %17, %cst_16 {dimension_numbers = #tpu.dot_dimension_numbers<[1], [0], [0], [1], [0, 0, 1, 1], [], []>} : vector<2x1024xbf16>, vector<1024x1024xbf16>, vector<2x1024xf32> -> vector<2x1024xf32>
    %21 = vector.broadcast %18 : vector<1x1024xf32> to vector<2x1024xf32>
    %22 = arith.addf %20, %21 : vector<2x1024xf32>
    %cst_17 = arith.constant 0.000000e+00 : f32
    %23 = vector.broadcast %cst_17 : f32 to vector<2x1024xf32>
    %24 = arith.maximumf %22, %23 : vector<2x1024xf32>
    %c0_18 = arith.constant 0 : index
    %c0_19 = arith.constant 0 : index
    %25 = vector.load %arg7[%c0_18, %c0_19] : memref<1024x256xbf16, #tpu.memory_space<vmem>>, vector<1024x256xbf16>
    %c0_20 = arith.constant 0 : index
    %c0_21 = arith.constant 0 : index
    %26 = vector.load %arg8[%c0_20, %c0_21] : memref<1x256xf32, #tpu.memory_space<vmem>>, vector<1x256xf32>
    %27 = arith.truncf %24 : vector<2x1024xf32> to vector<2x1024xbf16>
    %cst_22 = arith.constant dense<0.000000e+00> : vector<2x256xf32>
    %28 = tpu.matmul %27, %25, %cst_22 {dimension_numbers = #tpu.dot_dimension_numbers<[1], [0], [0], [1], [0, 0, 1, 1], [], []>} : vector<2x1024xbf16>, vector<1024x256xbf16>, vector<2x256xf32> -> vector<2x256xf32>
    %29 = vector.broadcast %26 : vector<1x256xf32> to vector<2x256xf32>
    %30 = arith.addf %28, %29 : vector<2x256xf32>
    %c0_23 = arith.constant 0 : index
    %c0_24 = arith.constant 0 : index
    %31 = vector.load %arg9[%c0_23, %c0_24] : memref<2x256xf32, #tpu.memory_space<vmem>>, vector<2x256xf32>
    tpu.vector_store %arg9[%c0_23, %c0_24], %30 {strides = array<i32>} : memref<2x256xf32, #tpu.memory_space<vmem>>, vector<2x256xf32>,
    return
  }
}

</mosaic_0001>

<bundles_post_ra>
// kernel: tpu_custom_call.1
= control target key start
LH: loop header
LB: loop body
LE: loop exit
PB: predicated region body
PF: predicated region fallthrough
CT: control target
= control target key end

     0   :  { %14 = vsyncpa [#allocation3], 0  ;;  %s19051_s0 = inlined_call_operand.hbm [shape: f32[2,512], index: 0, kind: input, shape index: {}]   ;;  %s19052_s1 = inlined_call_operand.hbm [shape: bf16[512,1024], index: 1, kind: input, shape index: {}]   ;;  %s19053_s2 = inlined_call_operand.hbm [shape: f32[1,1024], index: 2, kind: input, shape index: {}]   ;;  %s19054_s3 = inlined_call_operand.hbm [shape: bf16[1024,1024], index: 3, kind: input, shape index: {}]   ;;  %s19055_s4 = inlined_call_operand.hbm [shape: f32[1,1024], index: 4, kind: input, shape index: {}]   ;;  %s19056_s5 = inlined_call_operand.hbm [shape: bf16[1024,1024], index: 5, kind: input, shape index: {}]   ;;  %s19057_s6 = inlined_call_operand.hbm [shape: f32[1,1024], index: 6, kind: input, shape index: {}]   ;;  %s19058_s7 = inlined_call_operand.hbm [shape: bf16[1024,256], index: 7, kind: input, shape index: {}]   ;;  %s19059_s8 = inlined_call_operand.hbm [shape: f32[1,256], index: 8, kind: input, shape index: {}]   ;;  %s19060_s9 = inlined_call_operand.hbm [shape: f32[2,256], index: 9, kind: output, shape index: {}]  }
   0x1   :  { %15 = vsyncpa [#allocation6], 0 }
   0x2   :  { %16 = vsyncpa [#allocation9], 0 }
   0x3   :  { %17 = vsyncpa [#allocation12], 0 }
   0x4   :  { %18 = vsyncpa [#allocation15], 0  ;;  %s35_s11 = sshll.u32 %s19052_s1, 4  ;;  %s36_s11 = int_to_ptr.hbm [resolvable:$true] %s35_s11 }
   0x5   :  { %19 = vsyncpa [#allocation4], 0  ;;  %s18363_s12 = smov [#allocation5]   ;;  %s59_s16 = sshll.u32 %s19054_s3, 4  ;;  %s60_s16 = int_to_ptr.hbm [resolvable:$true] %s59_s16 }
   0x6   :  { %s37_s13 = sshll.u32 %s18363_s12, 4  ;;  %s18364_s17 = smov 512   ;;  %s38_s13 = int_to_ptr.vmem [resolvable:$true] %s37_s13 }
   0x7   :  { %s18365_s18 = smov 32   ;;  %s18366_s19 = smov [#allocation8]  }
   0x8   :  { %43 = dma.hbm_to_vmem [thread:$0]  %s36_s11, 32768, %s38_s13, [#allocation6], %s18364_s17, %s18364_s17, %s18365_s18  }
   0x9   :  { %s61_s20 = sshll.u32 %s18366_s19, 4  ;;  %s83_s23 = sshll.u32 %s19056_s5, 4  ;;  %s62_s20 = int_to_ptr.vmem [resolvable:$true] %s61_s20  ;;  %s84_s23 = int_to_ptr.hbm [resolvable:$true] %s83_s23 }
   0xa   :  { %67 = dma.hbm_to_vmem [thread:$0]  %s60_s16, 65536, %s62_s20, [#allocation9], %s18364_s17, %s18364_s17, %s18365_s18  }
   0xb   :  { %s107_s25 = sshll.u32 %s19058_s7, 4  ;;  %s18367_s26 = smov [#allocation11]   ;;  %s108_s25 = int_to_ptr.hbm [resolvable:$true] %s107_s25 }
   0xc   :  { %s85_s27 = sshll.u32 %s18367_s26, 4  ;;  %s18368_s3 = smov [#allocation14]   ;;  %s86_s27 = int_to_ptr.vmem [resolvable:$true] %s85_s27 }
   0xd   :  { %91 = dma.hbm_to_vmem [thread:$0]  %s84_s23, 65536, %s86_s27, [#allocation12], %s18364_s17, %s18364_s17, %s18365_s18  }
   0xe   :  { %s109_s28 = sshll.u32 %s18368_s3, 4  ;;  %s18369_s29 = smov 128   ;;  %s110_s28 = int_to_ptr.vmem [resolvable:$true] %s109_s28 }
   0xf   :  { %s18370_s30 = smov 8   ;;  %s25_s11 = sshll.u32 %s19051_s0, 4  ;;  %s26_s11 = int_to_ptr.hbm [resolvable:$true] %s25_s11 }
  0x10   :  { %115 = dma.hbm_to_vmem [thread:$0]  %s108_s25, 16384, %s110_s28, [#allocation15], %s18369_s29, %s18369_s29, %s18370_s30  }
  0x11   :  { %s18371_s12 = smov [#allocation2]   ;;  %s49_s15 = sshll.u32 %s19053_s2, 4  ;;  %s50_s15 = int_to_ptr.hbm [resolvable:$true] %s49_s15 }
  0x12   :  { %s27_s13 = sshll.u32 %s18371_s12, 4  ;;  %s18372_s16 = smov [#allocation7]   ;;  %s28_s13 = int_to_ptr.vmem [resolvable:$true] %s27_s13 }
  0x13   :  { %30 = dma.hbm_to_vmem [thread:$0]  %s26_s11, 128, %s28_s13, [#allocation3]  }
  0x14   :  { %s51_s17 = sshll.u32 %s18372_s16, 4  ;;  %s73_s20 = sshll.u32 %s19055_s4, 4  ;;  %s52_s17 = int_to_ptr.vmem [resolvable:$true] %s51_s17  ;;  %s74_s20 = int_to_ptr.hbm [resolvable:$true] %s73_s20 }
  0x15   :  { %54 = dma.hbm_to_vmem [thread:$0]  %s50_s15, 128, %s52_s17, [#allocation6]  }
  0x16   :  { %s97_s22 = sshll.u32 %s19057_s6, 4  ;;  %s18373_s23 = smov [#allocation10]   ;;  %s98_s22 = int_to_ptr.hbm [resolvable:$true] %s97_s22 }
  0x17   :  { %s75_s1 = sshll.u32 %s18373_s23, 4  ;;  %s18374_s2 = smov [#allocation13]   ;;  %s76_s1 = int_to_ptr.vmem [resolvable:$true] %s75_s1 }
  0x18   :  { %78 = dma.hbm_to_vmem [thread:$0]  %s74_s20, 128, %s76_s1, [#allocation9]  }
  0x19   :  { %s99_s24 = sshll.u32 %s18374_s2, 4  ;;  %s121_s27 = sshll.u32 %s19059_s8, 4  ;;  %s100_s24 = int_to_ptr.vmem [resolvable:$true] %s99_s24  ;;  %s122_s27 = int_to_ptr.hbm [resolvable:$true] %s121_s27 }
  0x1a   :  { %102 = dma.hbm_to_vmem [thread:$0]  %s98_s22, 128, %s100_s24, [#allocation12]  }
  0x1b   :  { %s18375_s4 = smov [#allocation16]  }
  0x1c   :  { %s123_s3 = sshll.u32 %s18375_s4, 4  ;;  %s124_s3 = int_to_ptr.vmem [resolvable:$true] %s123_s3 }
  0x1d   :  { %126 = dma.hbm_to_vmem [thread:$0]  %s122_s27, 32, %s124_s3, [#allocation15]  }
  0x1e   :  { %18351 = dma.done.wait [#allocation3], 128  }
  0x1f   :  { %18352 = vsyncadd [#allocation3], 4294967168 }
  0x20   :  { %18353 = dma.done.wait [#allocation6], 32896  }
  0x21   :  { %18354 = vsyncadd [#allocation6], 4294934400 }
  0x22   :  { %18355 = dma.done.wait [#allocation9], 65664  }
  0x23   :  { %18356 = vsyncadd [#allocation9], 4294901632 }
  0x24   :  { %18357 = dma.done.wait [#allocation12], 65664  }
  0x25   :  { %18358 = vsyncadd [#allocation12], 4294901632 }
  0x26   :  { %18359 = dma.done.wait [#allocation15], 16416  }
  0x27   :  { %18360 = vsyncadd [#allocation15], 4294950880  ;;  %v11276_v0 = vld [vmem:[#allocation5 + $0x1c0] sm:$0xf]  ;;  %s18376_s6 = smov [#allocation17]   ;;  %s11036_s30 = sshll.u32 %s19060_s9, 4  ;;  %s11037_s30 = int_to_ptr.hbm [resolvable:$true] %s11036_s30 }
  0x28   :  { %v16742_v1 = vld [vmem:[#allocation5 + $0x1dc] sm:$0xf0]  ;;  %s11034_s8 = sshll.u32 %s18376_s6, 4  ;;  %vm11025_vm0 = vcmask 1041408   ;;  %s11035_s8 = int_to_ptr.vmem [resolvable:$true] %s11034_s8 }
  0x29   :  { %v11532_v2 = vld [vmem:[#allocation5 + $0x3c0] sm:$0xf]  ;;  %v11277_v3 = vor.u32 %v16742_v1, %v11276_v0 }
  0x2a   :  { %v16806_v4 = vld [vmem:[#allocation5 + $0x3dc] sm:$0xf0] }
  0x2b   :  { %v11788_v5 = vld [vmem:[#allocation5 + $0x5c0] sm:$0xf]  ;;  %v11533_v7 = vor.u32 %v16806_v4, %v11532_v2  ;;  %1732 = vmatpush.bf16.msra.mxu0 %v11277_v3 }
  0x2c   :  { %v16870_v6 = vld [vmem:[#allocation5 + $0x5dc] sm:$0xf0] }
  0x2d   :  { %v11789_v8 = vor.u32 %v16870_v6, %v11788_v5  ;;  %v12044_v9 = vld [vmem:[#allocation5 + $0x7c0] sm:$0xf]  ;;  %1745 = vmatpush.bf16.msra.mxu1 %v11533_v7 }
  0x2e   :  { %v16934_v10 = vld [vmem:[#allocation5 + $0x7dc] sm:$0xf0] }
  0x2f   :  { %v11244_v11 = vld [vmem:[#allocation5 + $0x180] sm:$0xf]  ;;  %v12045_v12 = vor.u32 %v16934_v10, %v12044_v9  ;;  %1758 = vmatpush.bf16.msra.mxu2 %v11789_v8 }
  0x30   :  { %v16734_v13 = vld [vmem:[#allocation5 + $0x19c] sm:$0xf0] }
  0x31   :  { %v11500_v14 = vld [vmem:[#allocation5 + $0x380] sm:$0xf]  ;;  %v11245_v16 = vor.u32 %v16734_v13, %v11244_v11  ;;  %1771 = vmatpush.bf16.msra.mxu3 %v12045_v12 }
  0x32   :  { %v16798_v15 = vld [vmem:[#allocation5 + $0x39c] sm:$0xf0] }
  0x33   :  { %v11501_v17 = vor.u32 %v16798_v15, %v11500_v14  ;;  %v11756_v18 = vld [vmem:[#allocation5 + $0x580] sm:$0xf]  ;;  %1733 = vmatpush.bf16.msra.mxu0 %v11245_v16 }
  0x34   :  { %v16862_v19 = vld [vmem:[#allocation5 + $0x59c] sm:$0xf0] }
  0x35   :  { %v12012_v20 = vld [vmem:[#allocation5 + $0x780] sm:$0xf]  ;;  %v11757_v21 = vor.u32 %v16862_v19, %v11756_v18  ;;  %1746 = vmatpush.bf16.msra.mxu1 %v11501_v17 }
  0x36   :  { %v16926_v22 = vld [vmem:[#allocation5 + $0x79c] sm:$0xf0] }
  0x37   :  { %v11212_v23 = vld [vmem:[#allocation5 + $0x140] sm:$0xf]  ;;  %v12013_v25 = vor.u32 %v16926_v22, %v12012_v20  ;;  %1759 = vmatpush.bf16.msra.mxu2 %v11757_v21 }
  0x38   :  { %v16726_v24 = vld [vmem:[#allocation5 + $0x15c] sm:$0xf0] }
  0x39   :  { %v11468_v26 = vld [vmem:[#allocation5 + $0x340] sm:$0xf]  ;;  %v11213_v29 = vor.u32 %v16726_v24, %v11212_v23  ;;  %1772 = vmatpush.bf16.msra.mxu3 %v12013_v25 }
  0x3a   :  { %v16790_v27 = vld [vmem:[#allocation5 + $0x35c] sm:$0xf0] }
  0x3b   :  { %v11724_v28 = vld [vmem:[#allocation5 + $0x540] sm:$0xf]  ;;  %v11469_v33 = vor.u32 %v16790_v27, %v11468_v26  ;;  %1734 = vmatpush.bf16.msra.mxu0 %v11213_v29  ;;  %v11278_v29 = vld [vmem:[#allocation5 + $0x1e0] sm:$0xf0] }
  0x3c   :  { %v16854_v30 = vld [vmem:[#allocation5 + $0x55c] sm:$0xf0] }
  0x3d   :  { %v11980_v31 = vld [vmem:[#allocation5 + $0x740] sm:$0xf]  ;;  %v11725_v34 = vor.u32 %v16854_v30, %v11724_v28  ;;  %1747 = vmatpush.bf16.msra.mxu1 %v11469_v33  ;;  %v16738_v28 = vld [vmem:[#allocation5 + $0x1c4] sm:$0xf] }
  0x3e   :  { %v16918_v32 = vld [vmem:[#allocation5 + $0x75c] sm:$0xf0]  ;;  %v16802_v30 = vld [vmem:[#allocation5 + $0x3c4] sm:$0xf] }
  0x3f   :  { %v11180_v35 = vld [vmem:[#allocation5 + $0x100] sm:$0xf]  ;;  %v11981_v38 = vor.u32 %v16918_v32, %v11980_v31  ;;  %1760 = vmatpush.bf16.msra.mxu2 %v11725_v34  ;;  %v11534_v32 = vld [vmem:[#allocation5 + $0x3e0] sm:$0xf0] }
  0x40   :  { %v16718_v36 = vld [vmem:[#allocation5 + $0x11c] sm:$0xf0]  ;;  %v16866_v33 = vld [vmem:[#allocation5 + $0x5c4] sm:$0xf] }
  0x41   :  { %v11436_v37 = vld [vmem:[#allocation5 + $0x300] sm:$0xf]  ;;  %v11181_v44 = vor.u32 %v16718_v36, %v11180_v35  ;;  %1773 = vmatpush.bf16.msra.mxu3 %v11981_v38  ;;  %v11790_v34 = vld [vmem:[#allocation5 + $0x5e0] sm:$0xf0] }
  0x42   :  { %v16782_v39 = vld [vmem:[#allocation5 + $0x31c] sm:$0xf0]  ;;  %v12046_v38 = vld [vmem:[#allocation5 + $0x7e0] sm:$0xf0] }
  0x43   :  { %v11692_v40 = vld [vmem:[#allocation5 + $0x500] sm:$0xf]  ;;  %v11437_v45 = vor.u32 %v16782_v39, %v11436_v37  ;;  %1735 = vmatpush.bf16.msra.mxu0 %v11181_v44  ;;  %v16930_v37 = vld [vmem:[#allocation5 + $0x7c4] sm:$0xf] }
  0x44   :  { %v16846_v41 = vld [vmem:[#allocation5 + $0x51c] sm:$0xf0]  ;;  %v11246_v44 = vld [vmem:[#allocation5 + $0x1a0] sm:$0xf0] }
  0x45   :  { %v11948_v42 = vld [vmem:[#allocation5 + $0x700] sm:$0xf]  ;;  %v11693_v46 = vor.u32 %v16846_v41, %v11692_v40  ;;  %1748 = vmatpush.bf16.msra.mxu1 %v11437_v45  ;;  %v11281_v40 = vor.u32 %v16738_v28, %v11278_v29  ;;  %v11537_v41 = vor.u32 %v16802_v30, %v11534_v32  ;;  %v16794_v45 = vld [vmem:[#allocation5 + $0x384] sm:$0xf] }
  0x46   :  { %v16910_v43 = vld [vmem:[#allocation5 + $0x71c] sm:$0xf0]  ;;  %v16762_v29 = vld [vmem:[#allocation5 + $0x284] sm:$0xf] }
  0x47   :  { %v11148_v47 = vld [vmem:[#allocation5 + $0xc0] sm:$0xf]  ;;  %v11949_v50 = vor.u32 %v16910_v43, %v11948_v42  ;;  %1761 = vmatpush.bf16.msra.mxu2 %v11693_v46  ;;  %v11793_v42 = vor.u32 %v16866_v33, %v11790_v34  ;;  %v16730_v43 = vld [vmem:[#allocation5 + $0x184] sm:$0xf]  ;;  %v12049_v46 = vor.u32 %v16930_v37, %v12046_v38 }
  0x48   :  { %v16710_v48 = vld [vmem:[#allocation5 + $0xdc] sm:$0xf0]  ;;  %v11374_v38 = vld [vmem:[#allocation5 + $0x2a0] sm:$0xf0] }
  0x49   :  { %v11404_v49 = vld [vmem:[#allocation5 + $0x2c0] sm:$0xf]  ;;  %v11149_v56 = vor.u32 %v16710_v48, %v11148_v47  ;;  %1774 = vmatpush.bf16.msra.mxu3 %v11949_v50  ;;  %v11502_v47 = vld [vmem:[#allocation5 + $0x3a0] sm:$0xf0] }
  0x4a   :  { %v16774_v51 = vld [vmem:[#allocation5 + $0x2dc] sm:$0xf0]  ;;  %v16858_v48 = vld [vmem:[#allocation5 + $0x584] sm:$0xf] }
  0x4b   :  { %v11660_v52 = vld [vmem:[#allocation5 + $0x4c0] sm:$0xf]  ;;  %v11405_v57 = vor.u32 %v16774_v51, %v11404_v49  ;;  %1736 = vmatpush.bf16.msra.mxu0 %v11149_v56  ;;  %v11758_v49 = vld [vmem:[#allocation5 + $0x5a0] sm:$0xf0] }
  0x4c   :  { %v16838_v53 = vld [vmem:[#allocation5 + $0x4dc] sm:$0xf0]  ;;  %v16922_v50 = vld [vmem:[#allocation5 + $0x784] sm:$0xf] }
  0x4d   :  { %v11916_v54 = vld [vmem:[#allocation5 + $0x6c0] sm:$0xf]  ;;  %v11661_v58 = vor.u32 %v16838_v53, %v11660_v52  ;;  %1749 = vmatpush.bf16.msra.mxu1 %v11405_v57  ;;  %v12014_v51 = vld [vmem:[#allocation5 + $0x7a0] sm:$0xf0]  ;;  %v11249_v52 = vor.u32 %v16730_v43, %v11246_v44  ;;  %v11505_v53 = vor.u32 %v16794_v45, %v11502_v47 }
  0x4e   :  { %v16902_v55 = vld [vmem:[#allocation5 + $0x6dc] sm:$0xf0]  ;;  %v11214_v56 = vld [vmem:[#allocation5 + $0x160] sm:$0xf0] }
  0x4f   :  { %v11116_v59 = vld [vmem:[#allocation5 + $0x80] sm:$0xf]  ;;  %v11917_v62 = vor.u32 %v16902_v55, %v11916_v54  ;;  %1762 = vmatpush.bf16.msra.mxu2 %v11661_v58  ;;  %v11761_v54 = vor.u32 %v16858_v48, %v11758_v49  ;;  %v16722_v55 = vld [vmem:[#allocation5 + $0x144] sm:$0xf]  ;;  %v12017_v58 = vor.u32 %v16922_v50, %v12014_v51 }
  0x50   :  { %v16702_v60 = vld [vmem:[#allocation5 + $0x9c] sm:$0xf0]  ;;  %v16786_v57 = vld [vmem:[#allocation5 + $0x344] sm:$0xf] }
  0x51   :  { %v11372_v61 = vld [vmem:[#allocation5 + $0x280] sm:$0xf]  ;;  %v11117_v4 = vor.u32 %v16702_v60, %v11116_v59  ;;  %1775 = vmatpush.bf16.msra.mxu3 %v11917_v62  ;;  %v11470_v59 = vld [vmem:[#allocation5 + $0x360] sm:$0xf0] }
  0x52   :  { %v16766_v63 = vld [vmem:[#allocation5 + $0x29c] sm:$0xf0]  ;;  %v16850_v60 = vld [vmem:[#allocation5 + $0x544] sm:$0xf] }
  0x53   :  { %v11628_v0 = vld [vmem:[#allocation5 + $0x480] sm:$0xf]  ;;  %v11373_v5 = vor.u32 %v16766_v63, %v11372_v61  ;;  %1737 = vmatpush.bf16.msra.mxu0 %v11117_v4  ;;  %v11726_v61 = vld [vmem:[#allocation5 + $0x560] sm:$0xf0] }
  0x54   :  { %v16830_v1 = vld [vmem:[#allocation5 + $0x49c] sm:$0xf0]  ;;  %v16914_v62 = vld [vmem:[#allocation5 + $0x744] sm:$0xf]  ;;  %v11729_v4 = vor.u32 %v16850_v60, %v11726_v61 }
  0x55   :  { %v11884_v2 = vld [vmem:[#allocation5 + $0x680] sm:$0xf]  ;;  %v11629_v6 = vor.u32 %v16830_v1, %v11628_v0  ;;  %1750 = vmatpush.bf16.msra.mxu1 %v11373_v5  ;;  %v11982_v63 = vld [vmem:[#allocation5 + $0x760] sm:$0xf0]  ;;  %v11217_v0 = vor.u32 %v16722_v55, %v11214_v56 }
  0x56   :  { %v16894_v3 = vld [vmem:[#allocation5 + $0x69c] sm:$0xf0]  ;;  %v16714_v1 = vld [vmem:[#allocation5 + $0x104] sm:$0xf] }
  0x57   :  { %v11084_v7 = vld [vmem:[#allocation5 + $0x40] sm:$0xf]  ;;  %v11885_v10 = vor.u32 %v16894_v3, %v11884_v2  ;;  %1763 = vmatpush.bf16.msra.mxu2 %v11629_v6  ;;  %v163_v2 = vld [vmem:[#allocation2] sm:$0xff]  ;;  %v11473_v3 = vor.u32 %v16786_v57, %v11470_v59  ;;  %v11182_v5 = vld [vmem:[#allocation5 + $0x120] sm:$0xf0] }
  0x58   :  { %v16694_v8 = vld [vmem:[#allocation5 + $0x5c] sm:$0xf0]  ;;  %v16778_v6 = vld [vmem:[#allocation5 + $0x304] sm:$0xf]  ;;  %422 = vst [vmem:[#allocation1] ss:$4 sm:$0xff] %v163_v2 }
  0x59   :  { %v11340_v9 = vld [vmem:[#allocation5 + $0x240] sm:$0xf]  ;;  %v11085_v16 = vor.u32 %v16694_v8, %v11084_v7  ;;  %1776 = vmatpush.bf16.msra.mxu3 %v11885_v10  ;;  %v11985_v7 = vor.u32 %v16914_v62, %v11982_v63  ;;  %v11438_v8 = vld [vmem:[#allocation5 + $0x320] sm:$0xf0] }
  0x5a   :  { %v16758_v11 = vld [vmem:[#allocation5 + $0x25c] sm:$0xf0]  ;;  %v11694_v10 = vld [vmem:[#allocation5 + $0x520] sm:$0xf0] }
  0x5b   :  { %v11596_v12 = vld [vmem:[#allocation5 + $0x440] sm:$0xf]  ;;  %v11341_v19 = vor.u32 %v16758_v11, %v11340_v9  ;;  %1738 = vmatpush.bf16.msra.mxu0 %v11085_v16  ;;  %v16842_v9 = vld [vmem:[#allocation5 + $0x504] sm:$0xf] }
  0x5c   :  { %v16822_v13 = vld [vmem:[#allocation5 + $0x45c] sm:$0xf0]  ;;  %v16906_v11 = vld [vmem:[#allocation5 + $0x704] sm:$0xf]  ;;  %v11697_v16 = vor.u32 %v16842_v9, %v11694_v10  ;;  %v16807_v9 = vld [vmem:[#allocation5 + $0x3e4] sm:$0xf0] }
  0x5d   :  { %v11852_v14 = vld [vmem:[#allocation5 + $0x640] sm:$0xf]  ;;  %v11597_v20 = vor.u32 %v16822_v13, %v11596_v12  ;;  %1751 = vmatpush.bf16.msra.mxu1 %v11341_v19  ;;  %v11950_v12 = vld [vmem:[#allocation5 + $0x720] sm:$0xf0]  ;;  %v11185_v13 = vor.u32 %v16714_v1, %v11182_v5  ;;  %v11284_v5 = vld [vmem:[#allocation5 + $0x1c8] sm:$0xf] }
  0x5e   :  { %v16886_v15 = vld [vmem:[#allocation5 + $0x65c] sm:$0xf0]  ;;  %v11406_v19 = vld [vmem:[#allocation5 + $0x2e0] sm:$0xf0]  ;;  %v11796_v10 = vld [vmem:[#allocation5 + $0x5c8] sm:$0xf] }
  0x5f   :  { %v11052_v17 = vld [vmem:[#allocation5] sm:$0xf]  ;;  %v11853_v24 = vor.u32 %v16886_v15, %v11852_v14  ;;  %1764 = vmatpush.bf16.msra.mxu2 %v11597_v20  ;;  %v16706_v14 = vld [vmem:[#allocation5 + $0xc4] sm:$0xf]  ;;  %v11441_v15 = vor.u32 %v16778_v6, %v11438_v8  ;;  %v11953_v20 = vor.u32 %v16906_v11, %v11950_v12  ;;  %v16743_v6 = vld [vmem:[#allocation5 + $0x1e4] sm:$0xf0] }
  0x60   :  { %v16686_v18 = vld [vmem:[#allocation5 + $0x1c] sm:$0xf0]  ;;  %v16890_v43 = vld [vmem:[#allocation5 + $0x684] sm:$0xf]  ;;  %v16871_v11 = vld [vmem:[#allocation5 + $0x5e4] sm:$0xf0] }
  0x61   :  { %v11308_v21 = vld [vmem:[#allocation5 + $0x200] sm:$0xf]  ;;  %v11053_v31 = vor.u32 %v16686_v18, %v11052_v17  ;;  %1777 = vmatpush.bf16.msra.mxu3 %v11853_v24  ;;  %v11150_v17 = vld [vmem:[#allocation5 + $0xe0] sm:$0xf0] }
  0x62   :  { %v16750_v22 = vld [vmem:[#allocation5 + $0x21c] sm:$0xf0]  ;;  %v16770_v18 = vld [vmem:[#allocation5 + $0x2c4] sm:$0xf] }
  0x63   :  { %v11564_v23 = vld [vmem:[#allocation5 + $0x400] sm:$0xf]  ;;  %v11309_v35 = vor.u32 %v16750_v22, %v11308_v21  ;;  %1739 = vmatpush.bf16.msra.mxu0 %v11053_v31  ;;  %v16834_v21 = vld [vmem:[#allocation5 + $0x4c4] sm:$0xf]  ;;  %v11409_v28 = vor.u32 %v16770_v18, %v11406_v19  ;;  %v11797_v19 = vor.u32 %v16871_v11, %v11796_v10  ;;  %v11380_v10 = vld [vmem:[#allocation5 + $0x288] sm:$0xf] }
  0x64   :  { %v16814_v25 = vld [vmem:[#allocation5 + $0x41c] sm:$0xf0]  ;;  %v11662_v22 = vld [vmem:[#allocation5 + $0x4e0] sm:$0xf0] }
  0x65   :  { %v11820_v26 = vld [vmem:[#allocation5 + $0x600] sm:$0xf]  ;;  %v11565_v36 = vor.u32 %v16814_v25, %v11564_v23  ;;  %1752 = vmatpush.bf16.msra.mxu1 %v11309_v35  ;;  %v16898_v23 = vld [vmem:[#allocation5 + $0x6c4] sm:$0xf]  ;;  %v11665_v32 = vor.u32 %v16834_v21, %v11662_v22  ;;  %v16735_v21 = vld [vmem:[#allocation5 + $0x1a4] sm:$0xf0] }
  0x66   :  { %v16878_v27 = vld [vmem:[#allocation5 + $0x61c] sm:$0xf0]  ;;  %v11918_v24 = vld [vmem:[#allocation5 + $0x6e0] sm:$0xf0]  ;;  %v11508_v22 = vld [vmem:[#allocation5 + $0x388] sm:$0xf] }
  0x67   :  { %v11821_v39 = vor.u32 %v16878_v27, %v11820_v26  ;;  %1765 = vmatpush.bf16.msra.mxu2 %v11565_v36  ;;  %1784 = vmatpush.bf16.msrb.mxu0 %v11281_v40  ;;  %v16698_v25 = vld [vmem:[#allocation5 + $0x84] sm:$0xf]  ;;  %v11153_v27 = vor.u32 %v16706_v14, %v11150_v17  ;;  %v423_v31 = vld.sshfl [vmem:[#allocation1] sm:$0xff pattern:$0x73625140]  ;;  %v11921_v37 = vor.u32 %v16898_v23, %v11918_v24 }
  0x68   :  { %v11118_v26 = vld [vmem:[#allocation5 + $0xa0] sm:$0xf0]  ;;  %v18456_v34 = vpack.c.bf16 %v423_v31, %v423_v31  ;;  %v426_v35 = vld.sshfl [vmem:[#allocation1 + $0x18] sm:$0xff pattern:$0x73625140]  ;;  %v11285_v17 = vor.u32 %v16743_v6, %v11284_v5 }
  0x69   :  { %1778 = vmatpush.bf16.msra.mxu3 %v11821_v39  ;;  %1797 = vmatpush.bf16.msrb.mxu1 %v11537_v41  ;;  %v425_v30 = vld.sshfl [vmem:[#allocation1 + $0x10] sm:$0xff pattern:$0x73625140]  ;;  %v424_v36 = vld.sshfl [vmem:[#allocation1 + $0x8] sm:$0xff pattern:$0x73625140]  ;;  %v18458_v41 = vpack.c.bf16 %v426_v35, %v426_v35  ;;  %v11121_v45 = vor.u32 %v16698_v25, %v11118_v26 }
  0x6a   :  { %v18454_v33 = vpack.c.bf16 %v425_v30, %v425_v30  ;;  %v16826_v39 = vld [vmem:[#allocation5 + $0x484] sm:$0xf]  ;;  %1740 = vmatmul.bf16.vlgmr.msra.gmra.mxu0 %v18456_v34  ;;  %v12052_v14 = vld [vmem:[#allocation5 + $0x7c8] sm:$0xf] }
  0x6b   :  { %1810 = vmatpush.bf16.msrb.mxu2 %v11793_v42  ;;  %1785 = vmatpush.bf16.msrb.mxu0 %v11249_v52  ;;  %v11630_v40 = vld [vmem:[#allocation5 + $0x4a0] sm:$0xf0]  ;;  %v18460_v42 = vpack.c.bf16 %v424_v36, %v424_v36  ;;  %v16799_v24 = vld [vmem:[#allocation5 + $0x3a4] sm:$0xf0] }
  0x6c   :  { %v11886_v44 = vld [vmem:[#allocation5 + $0x6a0] sm:$0xf0]  ;;  %1766 = vmatmul.bf16.vlgmr.msra.gmra.mxu2 %v18454_v33  ;;  %1779 = vmatmul.bf16.vlgmr.msra.gmra.mxu3 %v18458_v41  ;;  %v11633_v47 = vor.u32 %v16826_v39, %v11630_v40  ;;  %v11764_v25 = vld [vmem:[#allocation5 + $0x588] sm:$0xf]  ;;  %v11509_v30 = vor.u32 %v16799_v24, %v11508_v22 }
  0x6d   :  { %1823 = vmatpush.bf16.msrb.mxu3 %v12049_v46  ;;  %1798 = vmatpush.bf16.msrb.mxu1 %v11505_v53  ;;  %v11377_v46 = vor.u32 %v16762_v29, %v11374_v38  ;;  %v16690_v48 = vld [vmem:[#allocation5 + $0x44] sm:$0xf]  ;;  %v11889_v51 = vor.u32 %v16890_v43, %v11886_v44  ;;  %v16863_v26 = vld [vmem:[#allocation5 + $0x5a4] sm:$0xf0] }
  0x6e   :  { %v11086_v49 = vld [vmem:[#allocation5 + $0x60] sm:$0xf0]  ;;  %1753 = vmatmul.bf16.vlgmr.msra.gmra.mxu1 %v18460_v42  ;;  %v11765_v31 = vor.u32 %v16863_v26, %v11764_v25  ;;  %v16727_v35 = vld [vmem:[#allocation5 + $0x164] sm:$0xf0] }
  0x6f   :  { %1811 = vmatpush.bf16.msrb.mxu2 %v11761_v54  ;;  %1786 = vmatpush.bf16.msrb.mxu0 %v11217_v0  ;;  %v16754_v50 = vld [vmem:[#allocation5 + $0x244] sm:$0xf]  ;;  %v11089_v57 = vor.u32 %v16690_v48, %v11086_v49  ;;  %v11476_v36 = vld [vmem:[#allocation5 + $0x348] sm:$0xf] }
  0x70   :  { %v11342_v52 = vld [vmem:[#allocation5 + $0x260] sm:$0xf0]  ;;  %v16791_v38 = vld [vmem:[#allocation5 + $0x364] sm:$0xf0] }
  0x71   :  { %1824 = vmatpush.bf16.msrb.mxu3 %v12017_v58  ;;  %1799 = vmatpush.bf16.msrb.mxu1 %v11473_v3  ;;  %v16818_v53 = vld [vmem:[#allocation5 + $0x444] sm:$0xf]  ;;  %v11345_v60 = vor.u32 %v16754_v50, %v11342_v52  ;;  %v11732_v39 = vld [vmem:[#allocation5 + $0x548] sm:$0xf] }
  0x72   :  { %v11598_v54 = vld [vmem:[#allocation5 + $0x460] sm:$0xf0]  ;;  %v16855_v40 = vld [vmem:[#allocation5 + $0x564] sm:$0xf0] }
  0x73   :  { %1812 = vmatpush.bf16.msrb.mxu2 %v11729_v4  ;;  %1787 = vmatpush.bf16.msrb.mxu0 %v11185_v13  ;;  %v16882_v55 = vld [vmem:[#allocation5 + $0x644] sm:$0xf]  ;;  %v11601_v61 = vor.u32 %v16818_v53, %v11598_v54  ;;  %v11988_v43 = vld [vmem:[#allocation5 + $0x748] sm:$0xf] }
  0x74   :  { %v11854_v56 = vld [vmem:[#allocation5 + $0x660] sm:$0xf0]  ;;  %v16919_v44 = vld [vmem:[#allocation5 + $0x764] sm:$0xf0] }
  0x75   :  { %1825 = vmatpush.bf16.msrb.mxu3 %v11985_v7  ;;  %1800 = vmatpush.bf16.msrb.mxu1 %v11441_v15  ;;  %v16682_v58 = vld [vmem:[#allocation5 + $0x4] sm:$0xf]  ;;  %v11857_v1 = vor.u32 %v16882_v55, %v11854_v56  ;;  %v11540_v7 = vld [vmem:[#allocation5 + $0x3c8] sm:$0xf] }
  0x76   :  { %v11054_v59 = vld [vmem:[#allocation5 + $0x20] sm:$0xf0]  ;;  %v16935_v15 = vld [vmem:[#allocation5 + $0x7e4] sm:$0xf0]  ;;  %v11541_v18 = vor.u32 %v16807_v9, %v11540_v7 }
  0x77   :  { %1813 = vmatpush.bf16.msrb.mxu2 %v11697_v16  ;;  %1788 = vmatpush.bf16.msrb.mxu0 %v11153_v27  ;;  %v16746_v62 = vld [vmem:[#allocation5 + $0x204] sm:$0xf]  ;;  %v11057_v8 = vor.u32 %v16682_v58, %v11054_v59  ;;  %v12053_v23 = vor.u32 %v16935_v15, %v12052_v14  ;;  %v12020_v27 = vld [vmem:[#allocation5 + $0x788] sm:$0xf] }
  0x78   :  { %v11310_v63 = vld [vmem:[#allocation5 + $0x220] sm:$0xf0]  ;;  %v11188_v48 = vld [vmem:[#allocation5 + $0x108] sm:$0xf] }
  0x79   :  { %1826 = vmatpush.bf16.msrb.mxu3 %v11953_v20  ;;  %1801 = vmatpush.bf16.msrb.mxu1 %v11409_v28  ;;  %v16810_v0 = vld [vmem:[#allocation5 + $0x404] sm:$0xf]  ;;  %v11313_v12 = vor.u32 %v16746_v62, %v11310_v63  ;;  %v11252_v20 = vld [vmem:[#allocation5 + $0x188] sm:$0xf] }
  0x7a   :  { %v11566_v2 = vld [vmem:[#allocation5 + $0x420] sm:$0xf0]  ;;  %v16927_v28 = vld [vmem:[#allocation5 + $0x7a4] sm:$0xf0]  ;;  %v11253_v29 = vor.u32 %v16735_v21, %v11252_v20 }
  0x7b   :  { %1814 = vmatpush.bf16.msrb.mxu2 %v11665_v32  ;;  %1789 = vmatpush.bf16.msrb.mxu0 %v11121_v45  ;;  %v16874_v3 = vld [vmem:[#allocation5 + $0x604] sm:$0xf]  ;;  %v11569_v13 = vor.u32 %v16810_v0, %v11566_v2  ;;  %v11220_v32 = vld [vmem:[#allocation5 + $0x148] sm:$0xf] }
  0x7c   :  { %v11822_v4 = vld [vmem:[#allocation5 + $0x620] sm:$0xf0]  ;;  %v11221_v45 = vor.u32 %v16727_v35, %v11220_v32  ;;  %v16719_v49 = vld [vmem:[#allocation5 + $0x124] sm:$0xf0] }
  0x7d   :  { %1827 = vmatpush.bf16.msrb.mxu3 %v11921_v37  ;;  %1802 = vmatpush.bf16.msrb.mxu1 %v11377_v46  ;;  %v11825_v16 = vor.u32 %v16874_v3, %v11822_v4  ;;  %v12021_v37 = vor.u32 %v16927_v28, %v12020_v27  ;;  %v11477_v46 = vor.u32 %v16791_v38, %v11476_v36  ;;  %v11444_v50 = vld [vmem:[#allocation5 + $0x308] sm:$0xf] }
  0x7e   :  { %v16783_v52 = vld [vmem:[#allocation5 + $0x324] sm:$0xf0] }
  0x7f   :  { %1815 = vmatpush.bf16.msrb.mxu2 %v11633_v47  ;;  %1790 = vmatpush.bf16.msrb.mxu0 %v11089_v57  ;;  %v11733_v47 = vor.u32 %v16855_v40, %v11732_v39  ;;  %v11700_v53 = vld [vmem:[#allocation5 + $0x508] sm:$0xf]  ;;  %v11189_v57 = vor.u32 %v16719_v49, %v11188_v48  ;;  %v11445_v58 = vor.u32 %v16783_v52, %v11444_v50  ;;  %v11542_v49 = vld [vmem:[#allocation5 + $0x3e8] sm:$0xf0] }
  0x80   :  { %v16847_v54 = vld [vmem:[#allocation5 + $0x524] sm:$0xf0]  ;;  %v16867_v50 = vld [vmem:[#allocation5 + $0x5cc] sm:$0xf] }
  0x81   :  { %1828 = vmatpush.bf16.msrb.mxu3 %v11889_v51  ;;  %1803 = vmatpush.bf16.msrb.mxu1 %v11345_v60  ;;  %v11989_v51 = vor.u32 %v16919_v44, %v11988_v43  ;;  %v11956_v55 = vld [vmem:[#allocation5 + $0x708] sm:$0xf]  ;;  %v11701_v59 = vor.u32 %v16847_v54, %v11700_v53  ;;  %v16931_v54 = vld [vmem:[#allocation5 + $0x7cc] sm:$0xf] }
  0x82   :  { %v16911_v56 = vld [vmem:[#allocation5 + $0x724] sm:$0xf0] }
  0x83   :  { %1816 = vmatpush.bf16.msrb.mxu2 %v11601_v61  ;;  %1791 = vmatpush.bf16.msrb.mxu0 %v11057_v8  ;;  %v11156_v60 = vld [vmem:[#allocation5 + $0xc8] sm:$0xf]  ;;  %v11957_v63 = vor.u32 %v16911_v56, %v11956_v55  ;;  %v12054_v55 = vld [vmem:[#allocation5 + $0x7e8] sm:$0xf0] }
  0x84   :  { %v16711_v61 = vld [vmem:[#allocation5 + $0xe4] sm:$0xf0] }
  0x85   :  { %1829 = vmatpush.bf16.msrb.mxu3 %v11857_v1  ;;  %1804 = vmatpush.bf16.msrb.mxu1 %v11313_v12  ;;  %v11412_v62 = vld [vmem:[#allocation5 + $0x2c8] sm:$0xf]  ;;  %v11157_v5 = vor.u32 %v16711_v61, %v11156_v60  ;;  %v16731_v60 = vld [vmem:[#allocation5 + $0x18c] sm:$0xf] }
  0x86   :  { %1792 = vmatmul.bf16.vlgmr.msrb.gmra.mxu0 %v18456_v34  ;;  %v16775_v0 = vld [vmem:[#allocation5 + $0x2e4] sm:$0xf0]  ;;  %v11254_v61 = vld [vmem:[#allocation5 + $0x1a8] sm:$0xf0] }
  0x87   :  { %1817 = vmatpush.bf16.msrb.mxu2 %v11569_v13  ;;  %1836 = vmatpush.bf16.msra.mxu0 %v11285_v17  ;;  %v11668_v1 = vld [vmem:[#allocation5 + $0x4c8] sm:$0xf]  ;;  %v11413_v6 = vor.u32 %v16775_v0, %v11412_v62  ;;  %v16795_v62 = vld [vmem:[#allocation5 + $0x38c] sm:$0xf] }
  0x88   :  { %1805 = vmatmul.bf16.vlgmr.msrb.gmra.mxu1 %v18460_v42  ;;  %v16839_v2 = vld [vmem:[#allocation5 + $0x4e4] sm:$0xf0]  ;;  %v11510_v0 = vld [vmem:[#allocation5 + $0x3a8] sm:$0xf0] }
  0x89   :  { %1830 = vmatpush.bf16.msrb.mxu3 %v11825_v16  ;;  %1849 = vmatpush.bf16.msra.mxu1 %v11541_v18  ;;  %v11924_v3 = vld [vmem:[#allocation5 + $0x6c8] sm:$0xf]  ;;  %v11669_v7 = vor.u32 %v16839_v2, %v11668_v1  ;;  %v16859_v1 = vld [vmem:[#allocation5 + $0x58c] sm:$0xf] }
  0x8a   :  { %1818 = vmatmul.bf16.vlgmr.msrb.gmra.mxu2 %v18454_v33  ;;  %v16903_v4 = vld [vmem:[#allocation5 + $0x6e4] sm:$0xf0]  ;;  %v11766_v2 = vld [vmem:[#allocation5 + $0x5a8] sm:$0xf0] }
  0x8b   :  { %1862 = vmatpush.bf16.msra.mxu2 %v11797_v19  ;;  %1837 = vmatpush.bf16.msra.mxu0 %v11253_v29  ;;  %v11124_v8 = vld [vmem:[#allocation5 + $0x88] sm:$0xf]  ;;  %v11925_v11 = vor.u32 %v16903_v4, %v11924_v3  ;;  %v16923_v3 = vld [vmem:[#allocation5 + $0x78c] sm:$0xf] }
  0x8c   :  { %1831 = vmatmul.bf16.vlgmr.msrb.gmra.mxu3 %v18458_v41  ;;  %v16703_v9 = vld [vmem:[#allocation5 + $0xa4] sm:$0xf0]  ;;  %v12022_v4 = vld [vmem:[#allocation5 + $0x7a8] sm:$0xf0] }
  0x8d   :  { %1875 = vmatpush.bf16.msra.mxu3 %v12053_v23  ;;  %1850 = vmatpush.bf16.msra.mxu1 %v11509_v30  ;;  %v16767_v12 = vld [vmem:[#allocation5 + $0x2a4] sm:$0xf0]  ;;  %v11125_v17 = vor.u32 %v16703_v9, %v11124_v8  ;;  %v16723_v8 = vld [vmem:[#allocation5 + $0x14c] sm:$0xf] }
  0x8e   :  { %v11636_v13 = vld [vmem:[#allocation5 + $0x488] sm:$0xf]  ;;  %v11381_v18 = vor.u32 %v16767_v12, %v11380_v10  ;;  %v11222_v9 = vld [vmem:[#allocation5 + $0x168] sm:$0xf0] }
  0x8f   :  { %1863 = vmatpush.bf16.msra.mxu2 %v11765_v31  ;;  %1838 = vmatpush.bf16.msra.mxu0 %v11221_v45  ;;  %v16831_v14 = vld [vmem:[#allocation5 + $0x4a4] sm:$0xf0]  ;;  %v16739_v45 = vld [vmem:[#allocation5 + $0x1cc] sm:$0xf] }
  0x90   :  { %v11892_v15 = vld [vmem:[#allocation5 + $0x688] sm:$0xf]  ;;  %v11637_v19 = vor.u32 %v16831_v14, %v11636_v13  ;;  %v16787_v10 = vld [vmem:[#allocation5 + $0x34c] sm:$0xf] }
  0x91   :  { %1876 = vmatpush.bf16.msra.mxu3 %v12021_v37  ;;  %1851 = vmatpush.bf16.msra.mxu1 %v11477_v46  ;;  %v16895_v16 = vld [vmem:[#allocation5 + $0x6a4] sm:$0xf0]  ;;  %v11286_v46 = vld [vmem:[#allocation5 + $0x1e8] sm:$0xf0] }
  0x92   :  { %v11092_v20 = vld [vmem:[#allocation5 + $0x48] sm:$0xf]  ;;  %v11893_v23 = vor.u32 %v16895_v16, %v11892_v15  ;;  %v11478_v12 = vld [vmem:[#allocation5 + $0x368] sm:$0xf0] }
  0x93   :  { %1864 = vmatpush.bf16.msra.mxu2 %v11733_v47  ;;  %1839 = vmatpush.bf16.msra.mxu0 %v11189_v57  ;;  %v16695_v21 = vld [vmem:[#allocation5 + $0x64] sm:$0xf0]  ;;  %v16803_v47 = vld [vmem:[#allocation5 + $0x3cc] sm:$0xf]  ;;  %v11289_v57 = vor.u32 %v16739_v45, %v11286_v46 }
  0x94   :  { %v11348_v22 = vld [vmem:[#allocation5 + $0x248] sm:$0xf]  ;;  %v11093_v29 = vor.u32 %v16695_v21, %v11092_v20  ;;  %v16851_v13 = vld [vmem:[#allocation5 + $0x54c] sm:$0xf] }
  0x95   :  { %1877 = vmatpush.bf16.msra.mxu3 %v11989_v51  ;;  %1852 = vmatpush.bf16.msra.mxu1 %v11445_v58  ;;  %v16759_v24 = vld [vmem:[#allocation5 + $0x264] sm:$0xf0]  ;;  %v11798_v51 = vld [vmem:[#allocation5 + $0x5e8] sm:$0xf0]  ;;  %v11545_v58 = vor.u32 %v16803_v47, %v11542_v49 }
  0x96   :  { %v11604_v25 = vld [vmem:[#allocation5 + $0x448] sm:$0xf]  ;;  %v11349_v32 = vor.u32 %v16759_v24, %v11348_v22  ;;  %v11734_v14 = vld [vmem:[#allocation5 + $0x568] sm:$0xf0] }
  0x97   :  { %1865 = vmatpush.bf16.msra.mxu2 %v11701_v59  ;;  %1840 = vmatpush.bf16.msra.mxu0 %v11157_v5  ;;  %v16823_v26 = vld [vmem:[#allocation5 + $0x464] sm:$0xf0]  ;;  %v11801_v59 = vor.u32 %v16867_v50, %v11798_v51  ;;  %v11257_v5 = vor.u32 %v16731_v60, %v11254_v61  ;;  %v16915_v15 = vld [vmem:[#allocation5 + $0x74c] sm:$0xf] }
  0x98   :  { %v11860_v27 = vld [vmem:[#allocation5 + $0x648] sm:$0xf]  ;;  %v11605_v35 = vor.u32 %v16823_v26, %v11604_v25  ;;  %v11990_v16 = vld [vmem:[#allocation5 + $0x768] sm:$0xf0] }
  0x99   :  { %1878 = vmatpush.bf16.msra.mxu3 %v11957_v63  ;;  %1853 = vmatpush.bf16.msra.mxu1 %v11413_v6  ;;  %v16887_v28 = vld [vmem:[#allocation5 + $0x664] sm:$0xf0]  ;;  %v12057_v63 = vor.u32 %v16931_v54, %v12054_v55  ;;  %v11513_v6 = vor.u32 %v16795_v62, %v11510_v0  ;;  %v16715_v20 = vld [vmem:[#allocation5 + $0x10c] sm:$0xf] }
  0x9a   :  { %v11060_v30 = vld [vmem:[#allocation5 + $0x8] sm:$0xf]  ;;  %v11861_v39 = vor.u32 %v16887_v28, %v11860_v27  ;;  %v11190_v21 = vld [vmem:[#allocation5 + $0x128] sm:$0xf0] }
  0x9b   :  { %1866 = vmatpush.bf16.msra.mxu2 %v11669_v7  ;;  %1841 = vmatpush.bf16.msra.mxu0 %v11125_v17  ;;  %v16687_v31 = vld [vmem:[#allocation5 + $0x24] sm:$0xf0]  ;;  %v11769_v7 = vor.u32 %v16859_v1, %v11766_v2  ;;  %v11225_v17 = vor.u32 %v16723_v8, %v11222_v9  ;;  %v16779_v22 = vld [vmem:[#allocation5 + $0x30c] sm:$0xf] }
  0x9c   :  { %v11316_v36 = vld [vmem:[#allocation5 + $0x208] sm:$0xf]  ;;  %v11061_v48 = vor.u32 %v16687_v31, %v11060_v30  ;;  %v11446_v24 = vld [vmem:[#allocation5 + $0x328] sm:$0xf0] }
  0x9d   :  { %1879 = vmatpush.bf16.msra.mxu3 %v11925_v11  ;;  %1854 = vmatpush.bf16.msra.mxu1 %v11381_v18  ;;  %v16751_v37 = vld [vmem:[#allocation5 + $0x224] sm:$0xf0]  ;;  %v12025_v11 = vor.u32 %v16923_v3, %v12022_v4  ;;  %v11481_v18 = vor.u32 %v16787_v10, %v11478_v12  ;;  %v16843_v25 = vld [vmem:[#allocation5 + $0x50c] sm:$0xf]  ;;  %v11449_v30 = vor.u32 %v16779_v22, %v11446_v24  ;;  %v11804_v22 = vld [vmem:[#allocation5 + $0x5d0] sm:$0xf] }
  0x9e   :  { %v11572_v38 = vld [vmem:[#allocation5 + $0x408] sm:$0xf]  ;;  %v11317_v52 = vor.u32 %v16751_v37, %v11316_v36  ;;  %v11702_v26 = vld [vmem:[#allocation5 + $0x528] sm:$0xf0] }
  0x9f   :  { %1867 = vmatpush.bf16.msra.mxu2 %v11637_v19  ;;  %v16815_v40 = vld [vmem:[#allocation5 + $0x424] sm:$0xf0]  ;;  %1842 = vmatpush.bf16.msra.mxu0 %v11093_v29  ;;  %v11737_v19 = vor.u32 %v16851_v13, %v11734_v14  ;;  %v16907_v27 = vld [vmem:[#allocation5 + $0x70c] sm:$0xf]  ;;  %v11193_v29 = vor.u32 %v16715_v20, %v11190_v21  ;;  %v11705_v31 = vor.u32 %v16843_v25, %v11702_v26  ;;  %v16808_v21 = vld [vmem:[#allocation5 + $0x3ec] sm:$0xf0] }
  0xa0   :  { %v11828_v43 = vld [vmem:[#allocation5 + $0x608] sm:$0xf]  ;;  %v11573_v53 = vor.u32 %v16815_v40, %v11572_v38  ;;  %v11958_v28 = vld [vmem:[#allocation5 + $0x728] sm:$0xf0]  ;;  %v12060_v26 = vld [vmem:[#allocation5 + $0x7d0] sm:$0xf] }
  0xa1   :  { %1880 = vmatpush.bf16.msra.mxu3 %v11893_v23  ;;  %v16879_v44 = vld [vmem:[#allocation5 + $0x624] sm:$0xf0]  ;;  %1855 = vmatpush.bf16.msra.mxu1 %v11349_v32  ;;  %v11993_v23 = vor.u32 %v16915_v15, %v11990_v16  ;;  %v16707_v32 = vld [vmem:[#allocation5 + $0xcc] sm:$0xf]  ;;  %v11961_v37 = vor.u32 %v16907_v27, %v11958_v28  ;;  %v16936_v27 = vld [vmem:[#allocation5 + $0x7ec] sm:$0xf0] }
  0xa2   :  { %v11829_v56 = vor.u32 %v16879_v44, %v11828_v43  ;;  %v16771_v36 = vld [vmem:[#allocation5 + $0x2cc] sm:$0xf] }
  0xa3   :  { %1868 = vmatpush.bf16.msra.mxu2 %v11605_v35  ;;  %1843 = vmatpush.bf16.msra.mxu0 %v11061_v48  ;;  %v11158_v35 = vld [vmem:[#allocation5 + $0xe8] sm:$0xf0] }
  0xa4   :  { %v11414_v38 = vld [vmem:[#allocation5 + $0x2e8] sm:$0xf0]  ;;  %v11161_v45 = vor.u32 %v16707_v32, %v11158_v35  ;;  %v11260_v32 = vld [vmem:[#allocation5 + $0x190] sm:$0xf] }
  0xa5   :  { %1881 = vmatpush.bf16.msra.mxu3 %v11861_v39  ;;  %1856 = vmatpush.bf16.msra.mxu1 %v11317_v52  ;;  %v16835_v39 = vld [vmem:[#allocation5 + $0x4cc] sm:$0xf]  ;;  %v11417_v46 = vor.u32 %v16771_v36, %v11414_v38  ;;  %v16736_v35 = vld [vmem:[#allocation5 + $0x1ac] sm:$0xf0] }
  0xa6   :  { %1844 = vmatmul.bf16.vlgmr.msra.gmra.mxu0 %v18456_v34  ;;  %v11670_v40 = vld [vmem:[#allocation5 + $0x4e8] sm:$0xf0]  ;;  %v11516_v36 = vld [vmem:[#allocation5 + $0x390] sm:$0xf] }
  0xa7   :  { %1869 = vmatpush.bf16.msra.mxu2 %v11573_v53  ;;  %1888 = vmatpush.bf16.msrb.mxu0 %v11289_v57  ;;  %v16899_v43 = vld [vmem:[#allocation5 + $0x6cc] sm:$0xf]  ;;  %v11673_v47 = vor.u32 %v16835_v39, %v11670_v40  ;;  %v16800_v38 = vld [vmem:[#allocation5 + $0x3ac] sm:$0xf0] }
  0xa8   :  { %1857 = vmatmul.bf16.vlgmr.msra.gmra.mxu1 %v18460_v42  ;;  %v11926_v44 = vld [vmem:[#allocation5 + $0x6e8] sm:$0xf0]  ;;  %v11772_v39 = vld [vmem:[#allocation5 + $0x590] sm:$0xf] }
  0xa9   :  { %1882 = vmatpush.bf16.msra.mxu3 %v11829_v56  ;;  %1901 = vmatpush.bf16.msrb.mxu1 %v11545_v58  ;;  %v16699_v48 = vld [vmem:[#allocation5 + $0x8c] sm:$0xf]  ;;  %v11929_v51 = vor.u32 %v16899_v43, %v11926_v44  ;;  %v16864_v40 = vld [vmem:[#allocation5 + $0x5ac] sm:$0xf0] }
  0xaa   :  { %1870 = vmatmul.bf16.vlgmr.msra.gmra.mxu2 %v18454_v33  ;;  %v11126_v49 = vld [vmem:[#allocation5 + $0xa8] sm:$0xf0]  ;;  %v12028_v43 = vld [vmem:[#allocation5 + $0x790] sm:$0xf] }
  0xab   :  { %1914 = vmatpush.bf16.msrb.mxu2 %v11801_v59  ;;  %1889 = vmatpush.bf16.msrb.mxu0 %v11257_v5  ;;  %v16763_v50 = vld [vmem:[#allocation5 + $0x28c] sm:$0xf]  ;;  %v11129_v57 = vor.u32 %v16699_v48, %v11126_v49  ;;  %v16928_v44 = vld [vmem:[#allocation5 + $0x7ac] sm:$0xf0] }
  0xac   :  { %1883 = vmatmul.bf16.vlgmr.msra.gmra.mxu3 %v18458_v41  ;;  %v11382_v52 = vld [vmem:[#allocation5 + $0x2a8] sm:$0xf0]  ;;  %v11228_v48 = vld [vmem:[#allocation5 + $0x150] sm:$0xf] }
  0xad   :  { %1927 = vmatpush.bf16.msrb.mxu3 %v12057_v63  ;;  %1902 = vmatpush.bf16.msrb.mxu1 %v11513_v6  ;;  %v16827_v53 = vld [vmem:[#allocation5 + $0x48c] sm:$0xf]  ;;  %v11385_v58 = vor.u32 %v16763_v50, %v11382_v52  ;;  %v16728_v49 = vld [vmem:[#allocation5 + $0x16c] sm:$0xf0] }
  0xae   :  { %v11638_v54 = vld [vmem:[#allocation5 + $0x4a8] sm:$0xf0]  ;;  %v11484_v50 = vld [vmem:[#allocation5 + $0x350] sm:$0xf] }
  0xaf   :  { %1915 = vmatpush.bf16.msrb.mxu2 %v11769_v7  ;;  %1890 = vmatpush.bf16.msrb.mxu0 %v11225_v17  ;;  %v16891_v55 = vld [vmem:[#allocation5 + $0x68c] sm:$0xf]  ;;  %v11641_v59 = vor.u32 %v16827_v53, %v11638_v54  ;;  %v11292_v17 = vld [vmem:[#allocation5 + $0x1d0] sm:$0xf] }
  0xb0   :  { %v11894_v56 = vld [vmem:[#allocation5 + $0x6a8] sm:$0xf0]  ;;  %v16792_v52 = vld [vmem:[#allocation5 + $0x36c] sm:$0xf0] }
  0xb1   :  { %1928 = vmatpush.bf16.msrb.mxu3 %v12025_v11  ;;  %1903 = vmatpush.bf16.msrb.mxu1 %v11481_v18  ;;  %v16691_v60 = vld [vmem:[#allocation5 + $0x4c] sm:$0xf]  ;;  %v11897_v63 = vor.u32 %v16891_v55, %v11894_v56  ;;  %v16744_v18 = vld [vmem:[#allocation5 + $0x1ec] sm:$0xf0] }
  0xb2   :  { %v11094_v61 = vld [vmem:[#allocation5 + $0x68] sm:$0xf0]  ;;  %v11740_v53 = vld [vmem:[#allocation5 + $0x550] sm:$0xf] }
  0xb3   :  { %1916 = vmatpush.bf16.msrb.mxu2 %v11737_v19  ;;  %1891 = vmatpush.bf16.msrb.mxu0 %v11193_v29  ;;  %v16755_v62 = vld [vmem:[#allocation5 + $0x24c] sm:$0xf]  ;;  %v11097_v5 = vor.u32 %v16691_v60, %v11094_v61  ;;  %v11548_v19 = vld [vmem:[#allocation5 + $0x3d0] sm:$0xf]  ;;  %v11293_v29 = vor.u32 %v16744_v18, %v11292_v17 }
  0xb4   :  { %v11350_v0 = vld [vmem:[#allocation5 + $0x268] sm:$0xf0]  ;;  %v16856_v54 = vld [vmem:[#allocation5 + $0x56c] sm:$0xf0] }
  0xb5   :  { %1929 = vmatpush.bf16.msrb.mxu3 %v11993_v23  ;;  %1904 = vmatpush.bf16.msrb.mxu1 %v11449_v30  ;;  %v16819_v1 = vld [vmem:[#allocation5 + $0x44c] sm:$0xf]  ;;  %v11353_v8 = vor.u32 %v16755_v62, %v11350_v0  ;;  %v16872_v23 = vld [vmem:[#allocation5 + $0x5ec] sm:$0xf0]  ;;  %v11549_v30 = vor.u32 %v16808_v21, %v11548_v19 }
  0xb6   :  { %v11606_v2 = vld [vmem:[#allocation5 + $0x468] sm:$0xf0]  ;;  %v11996_v55 = vld [vmem:[#allocation5 + $0x750] sm:$0xf] }
  0xb7   :  { %1917 = vmatpush.bf16.msrb.mxu2 %v11705_v31  ;;  %1892 = vmatpush.bf16.msrb.mxu0 %v11161_v45  ;;  %v16883_v3 = vld [vmem:[#allocation5 + $0x64c] sm:$0xf]  ;;  %v11609_v9 = vor.u32 %v16819_v1, %v11606_v2  ;;  %v11805_v31 = vor.u32 %v16872_v23, %v11804_v22  ;;  %v11261_v45 = vor.u32 %v16736_v35, %v11260_v32  ;;  %v16920_v56 = vld [vmem:[#allocation5 + $0x76c] sm:$0xf0] }
  0xb8   :  { %v11862_v4 = vld [vmem:[#allocation5 + $0x668] sm:$0xf0]  ;;  %v11196_v60 = vld [vmem:[#allocation5 + $0x110] sm:$0xf] }
  0xb9   :  { %1930 = vmatpush.bf16.msrb.mxu3 %v11961_v37  ;;  %1905 = vmatpush.bf16.msrb.mxu1 %v11417_v46  ;;  %v16683_v6 = vld [vmem:[#allocation5 + $0xc] sm:$0xf]  ;;  %v11865_v13 = vor.u32 %v16883_v3, %v11862_v4  ;;  %v12061_v37 = vor.u32 %v16936_v27, %v12060_v26  ;;  %v11517_v46 = vor.u32 %v16800_v38, %v11516_v36  ;;  %v16720_v61 = vld [vmem:[#allocation5 + $0x12c] sm:$0xf0] }
  0xba   :  { %v11062_v7 = vld [vmem:[#allocation5 + $0x28] sm:$0xf0]  ;;  %v11452_v62 = vld [vmem:[#allocation5 + $0x310] sm:$0xf] }
  0xbb   :  { %1918 = vmatpush.bf16.msrb.mxu2 %v11673_v47  ;;  %1893 = vmatpush.bf16.msrb.mxu0 %v11129_v57  ;;  %v16747_v10 = vld [vmem:[#allocation5 + $0x20c] sm:$0xf]  ;;  %v11065_v20 = vor.u32 %v16683_v6, %v11062_v7  ;;  %v11773_v47 = vor.u32 %v16864_v40, %v11772_v39  ;;  %v11229_v57 = vor.u32 %v16728_v49, %v11228_v48  ;;  %v16784_v0 = vld [vmem:[#allocation5 + $0x32c] sm:$0xf0] }
  0xbc   :  { %v11318_v11 = vld [vmem:[#allocation5 + $0x228] sm:$0xf0]  ;;  %v11708_v1 = vld [vmem:[#allocation5 + $0x510] sm:$0xf]  ;;  %v11453_v6 = vor.u32 %v16784_v0, %v11452_v62  ;;  %v16868_v62 = vld [vmem:[#allocation5 + $0x5d4] sm:$0xf] }
  0xbd   :  { %1931 = vmatpush.bf16.msrb.mxu3 %v11929_v51  ;;  %1906 = vmatpush.bf16.msrb.mxu1 %v11385_v58  ;;  %v16811_v12 = vld [vmem:[#allocation5 + $0x40c] sm:$0xf]  ;;  %v11321_v24 = vor.u32 %v16747_v10, %v11318_v11  ;;  %v12029_v51 = vor.u32 %v16928_v44, %v12028_v43  ;;  %v11485_v58 = vor.u32 %v16792_v52, %v11484_v50  ;;  %v16848_v2 = vld [vmem:[#allocation5 + $0x52c] sm:$0xf0] }
  0xbe   :  { %v11574_v14 = vld [vmem:[#allocation5 + $0x428] sm:$0xf0]  ;;  %v11964_v3 = vld [vmem:[#allocation5 + $0x710] sm:$0xf]  ;;  %v11709_v7 = vor.u32 %v16848_v2, %v11708_v1  ;;  %v16932_v2 = vld [vmem:[#allocation5 + $0x7d4] sm:$0xf] }
  0xbf   :  { %1919 = vmatpush.bf16.msrb.mxu2 %v11641_v59  ;;  %v16875_v15 = vld [vmem:[#allocation5 + $0x60c] sm:$0xf]  ;;  %1894 = vmatpush.bf16.msrb.mxu0 %v11097_v5  ;;  %v11577_v25 = vor.u32 %v16811_v12, %v11574_v14  ;;  %v11741_v59 = vor.u32 %v16856_v54, %v11740_v53  ;;  %v16912_v4 = vld [vmem:[#allocation5 + $0x72c] sm:$0xf0]  ;;  %v11197_v5 = vor.u32 %v16720_v61, %v11196_v60  ;;  %v11550_v61 = vld [vmem:[#allocation5 + $0x3f0] sm:$0xf0] }
  0xc0   :  { %v11830_v16 = vld [vmem:[#allocation5 + $0x628] sm:$0xf0]  ;;  %v11420_v10 = vld [vmem:[#allocation5 + $0x2d0] sm:$0xf]  ;;  %v11965_v11 = vor.u32 %v16912_v4, %v11964_v3  ;;  %v12062_v3 = vld [vmem:[#allocation5 + $0x7f0] sm:$0xf0] }
  0xc1   :  { %1932 = vmatpush.bf16.msrb.mxu3 %v11897_v63  ;;  %1907 = vmatpush.bf16.msrb.mxu1 %v11353_v8  ;;  %v11833_v28 = vor.u32 %v16875_v15, %v11830_v16  ;;  %v11997_v63 = vor.u32 %v16920_v56, %v11996_v55  ;;  %v11164_v8 = vld [vmem:[#allocation5 + $0xd0] sm:$0xf] }
  0xc2   :  { %v16776_v12 = vld [vmem:[#allocation5 + $0x2ec] sm:$0xf0] }
  0xc3   :  { %1920 = vmatpush.bf16.msrb.mxu2 %v11609_v9  ;;  %1895 = vmatpush.bf16.msrb.mxu0 %v11065_v20  ;;  %v16712_v9 = vld [vmem:[#allocation5 + $0xec] sm:$0xf0]  ;;  %v11421_v18 = vor.u32 %v16776_v12, %v11420_v10  ;;  %v16796_v10 = vld [vmem:[#allocation5 + $0x394] sm:$0xf] }
  0xc4   :  { %v16840_v14 = vld [vmem:[#allocation5 + $0x4ec] sm:$0xf0]  ;;  %v11165_v17 = vor.u32 %v16712_v9, %v11164_v8  ;;  %v16732_v8 = vld [vmem:[#allocation5 + $0x194] sm:$0xf] }
  0xc5   :  { %1933 = vmatpush.bf16.msrb.mxu3 %v11865_v13  ;;  %1908 = vmatpush.bf16.msrb.mxu1 %v11321_v24  ;;  %v11676_v13 = vld [vmem:[#allocation5 + $0x4d0] sm:$0xf]  ;;  %v11262_v9 = vld [vmem:[#allocation5 + $0x1b0] sm:$0xf0] }
  0xc6   :  { %1896 = vmatmul.bf16.vlgmr.msrb.gmra.mxu0 %v18456_v34  ;;  %v11932_v15 = vld [vmem:[#allocation5 + $0x6d0] sm:$0xf]  ;;  %v11677_v19 = vor.u32 %v16840_v14, %v11676_v13  ;;  %v11518_v12 = vld [vmem:[#allocation5 + $0x3b0] sm:$0xf0] }
  0xc7   :  { %1921 = vmatpush.bf16.msrb.mxu2 %v11577_v25  ;;  %1940 = vmatpush.bf16.msra.mxu0 %v11293_v29  ;;  %v16904_v16 = vld [vmem:[#allocation5 + $0x6ec] sm:$0xf0]  ;;  %v16860_v13 = vld [vmem:[#allocation5 + $0x594] sm:$0xf] }
  0xc8   :  { %1909 = vmatmul.bf16.vlgmr.msrb.gmra.mxu1 %v18460_v42  ;;  %v11132_v20 = vld [vmem:[#allocation5 + $0x90] sm:$0xf]  ;;  %v11933_v23 = vor.u32 %v16904_v16, %v11932_v15  ;;  %v11774_v14 = vld [vmem:[#allocation5 + $0x5b0] sm:$0xf0] }
  0xc9   :  { %1934 = vmatpush.bf16.msrb.mxu3 %v11833_v28  ;;  %1953 = vmatpush.bf16.msra.mxu1 %v11549_v30  ;;  %v16704_v21 = vld [vmem:[#allocation5 + $0xac] sm:$0xf0]  ;;  %v16924_v15 = vld [vmem:[#allocation5 + $0x794] sm:$0xf] }
  0xca   :  { %1922 = vmatmul.bf16.vlgmr.msrb.gmra.mxu2 %v18454_v33  ;;  %v11388_v22 = vld [vmem:[#allocation5 + $0x290] sm:$0xf]  ;;  %v11133_v29 = vor.u32 %v16704_v21, %v11132_v20  ;;  %v12030_v16 = vld [vmem:[#allocation5 + $0x7b0] sm:$0xf0] }
  0xcb   :  { %1966 = vmatpush.bf16.msra.mxu2 %v11805_v31  ;;  %1941 = vmatpush.bf16.msra.mxu0 %v11261_v45  ;;  %v16768_v24 = vld [vmem:[#allocation5 + $0x2ac] sm:$0xf0]  ;;  %v16724_v20 = vld [vmem:[#allocation5 + $0x154] sm:$0xf] }
  0xcc   :  { %1935 = vmatmul.bf16.vlgmr.msrb.gmra.mxu3 %v18458_v41  ;;  %v11644_v25 = vld [vmem:[#allocation5 + $0x490] sm:$0xf]  ;;  %v11389_v30 = vor.u32 %v16768_v24, %v11388_v22  ;;  %v11230_v21 = vld [vmem:[#allocation5 + $0x170] sm:$0xf0] }
  0xcd   :  { %1979 = vmatpush.bf16.msra.mxu3 %v12061_v37  ;;  %1954 = vmatpush.bf16.msra.mxu1 %v11517_v46  ;;  %v16832_v26 = vld [vmem:[#allocation5 + $0x4ac] sm:$0xf0]  ;;  %v16788_v22 = vld [vmem:[#allocation5 + $0x354] sm:$0xf] }
  0xce   :  { %v11900_v27 = vld [vmem:[#allocation5 + $0x690] sm:$0xf]  ;;  %v11645_v31 = vor.u32 %v16832_v26, %v11644_v25  ;;  %v11486_v24 = vld [vmem:[#allocation5 + $0x370] sm:$0xf0] }
  0xcf   :  { %1967 = vmatpush.bf16.msra.mxu2 %v11773_v47  ;;  %1942 = vmatpush.bf16.msra.mxu0 %v11229_v57  ;;  %v16896_v28 = vld [vmem:[#allocation5 + $0x6ac] sm:$0xf0]  ;;  %v16740_v57 = vld [vmem:[#allocation5 + $0x1d4] sm:$0xf] }
  0xd0   :  { %v11100_v32 = vld [vmem:[#allocation5 + $0x50] sm:$0xf]  ;;  %v11901_v37 = vor.u32 %v16896_v28, %v11900_v27  ;;  %v16852_v25 = vld [vmem:[#allocation5 + $0x554] sm:$0xf] }
  0xd1   :  { %1980 = vmatpush.bf16.msra.mxu3 %v12029_v51  ;;  %1955 = vmatpush.bf16.msra.mxu1 %v11485_v58  ;;  %v16696_v35 = vld [vmem:[#allocation5 + $0x6c] sm:$0xf0]  ;;  %v11294_v58 = vld [vmem:[#allocation5 + $0x1f0] sm:$0xf0] }
  0xd2   :  { %v11356_v36 = vld [vmem:[#allocation5 + $0x250] sm:$0xf]  ;;  %v11101_v45 = vor.u32 %v16696_v35, %v11100_v32  ;;  %v11742_v26 = vld [vmem:[#allocation5 + $0x570] sm:$0xf0] }
  0xd3   :  { %1968 = vmatpush.bf16.msra.mxu2 %v11741_v59  ;;  %1943 = vmatpush.bf16.msra.mxu0 %v11197_v5  ;;  %v16760_v38 = vld [vmem:[#allocation5 + $0x26c] sm:$0xf0]  ;;  %v16804_v59 = vld [vmem:[#allocation5 + $0x3d4] sm:$0xf]  ;;  %v11297_v5 = vor.u32 %v16740_v57, %v11294_v58 }
  0xd4   :  { %v11612_v39 = vld [vmem:[#allocation5 + $0x450] sm:$0xf]  ;;  %v11357_v48 = vor.u32 %v16760_v38, %v11356_v36  ;;  %v16916_v27 = vld [vmem:[#allocation5 + $0x754] sm:$0xf] }
  0xd5   :  { %1981 = vmatpush.bf16.msra.mxu3 %v11997_v63  ;;  %1956 = vmatpush.bf16.msra.mxu1 %v11453_v6  ;;  %v16824_v40 = vld [vmem:[#allocation5 + $0x46c] sm:$0xf0]  ;;  %v11806_v63 = vld [vmem:[#allocation5 + $0x5f0] sm:$0xf0]  ;;  %v11553_v6 = vor.u32 %v16804_v59, %v11550_v61 }
  0xd6   :  { %v11868_v43 = vld [vmem:[#allocation5 + $0x650] sm:$0xf]  ;;  %v11613_v49 = vor.u32 %v16824_v40, %v11612_v39  ;;  %v11998_v28 = vld [vmem:[#allocation5 + $0x770] sm:$0xf0] }
  0xd7   :  { %1969 = vmatpush.bf16.msra.mxu2 %v11709_v7  ;;  %1944 = vmatpush.bf16.msra.mxu0 %v11165_v17  ;;  %v16888_v44 = vld [vmem:[#allocation5 + $0x66c] sm:$0xf0]  ;;  %v11809_v7 = vor.u32 %v16868_v62, %v11806_v63  ;;  %v11265_v17 = vor.u32 %v16732_v8, %v11262_v9  ;;  %v16716_v32 = vld [vmem:[#allocation5 + $0x114] sm:$0xf] }
  0xd8   :  { %v11068_v46 = vld [vmem:[#allocation5 + $0x10] sm:$0xf]  ;;  %v11869_v53 = vor.u32 %v16888_v44, %v11868_v43  ;;  %v11198_v35 = vld [vmem:[#allocation5 + $0x130] sm:$0xf0] }
  0xd9   :  { %1982 = vmatpush.bf16.msra.mxu3 %v11965_v11  ;;  %1957 = vmatpush.bf16.msra.mxu1 %v11421_v18  ;;  %v16688_v47 = vld [vmem:[#allocation5 + $0x2c] sm:$0xf0]  ;;  %v12065_v11 = vor.u32 %v16932_v2, %v12062_v3  ;;  %v11521_v18 = vor.u32 %v16796_v10, %v11518_v12  ;;  %v16780_v36 = vld [vmem:[#allocation5 + $0x314] sm:$0xf]  ;;  %v18482_v3 = vld [vmem:[#allocation7] sm:$0xff] }
  0xda   :  { %v11324_v50 = vld [vmem:[#allocation5 + $0x210] sm:$0xf]  ;;  %v11069_v60 = vor.u32 %v16688_v47, %v11068_v46  ;;  %v11454_v38 = vld [vmem:[#allocation5 + $0x330] sm:$0xf0]  ;;  %v436_v12 = vperm.slane %v18482_v3, 0 }
  0xdb   :  { %1970 = vmatpush.bf16.msra.mxu2 %v11677_v19  ;;  %1945 = vmatpush.bf16.msra.mxu0 %v11133_v29  ;;  %v16752_v51 = vld [vmem:[#allocation5 + $0x22c] sm:$0xf0]  ;;  %v11777_v19 = vor.u32 %v16860_v13, %v11774_v14  ;;  %v11233_v29 = vor.u32 %v16724_v20, %v11230_v21  ;;  %v16844_v39 = vld [vmem:[#allocation5 + $0x514] sm:$0xf]  ;;  %v11457_v46 = vor.u32 %v16780_v36, %v11454_v38  ;;  %v16745_v36 = vld [vmem:[#allocation5 + $0x1f4] sm:$0xf0] }
  0xdc   :  { %v11580_v52 = vld [vmem:[#allocation5 + $0x410] sm:$0xf]  ;;  %v11325_v0 = vor.u32 %v16752_v51, %v11324_v50  ;;  %v11710_v40 = vld [vmem:[#allocation5 + $0x530] sm:$0xf0] }
  0xdd   :  { %1983 = vmatpush.bf16.msra.mxu3 %v11933_v23  ;;  %1958 = vmatpush.bf16.msra.mxu1 %v11389_v30  ;;  %v16816_v54 = vld [vmem:[#allocation5 + $0x42c] sm:$0xf0]  ;;  %v12033_v23 = vor.u32 %v16924_v15, %v12030_v16  ;;  %v11489_v30 = vor.u32 %v16788_v22, %v11486_v24  ;;  %v16908_v43 = vld [vmem:[#allocation5 + $0x714] sm:$0xf]  ;;  %v11713_v47 = vor.u32 %v16844_v39, %v11710_v40  ;;  %v16809_v40 = vld [vmem:[#allocation5 + $0x3f4] sm:$0xf0] }
  0xde   :  { %v11836_v55 = vld [vmem:[#allocation5 + $0x610] sm:$0xf]  ;;  %v11581_v1 = vor.u32 %v16816_v54, %v11580_v52  ;;  %v11966_v44 = vld [vmem:[#allocation5 + $0x730] sm:$0xf0] }
  0xdf   :  { %1971 = vmatpush.bf16.msra.mxu2 %v11645_v31  ;;  %v16880_v56 = vld [vmem:[#allocation5 + $0x62c] sm:$0xf0]  ;;  %1946 = vmatpush.bf16.msra.mxu0 %v11101_v45  ;;  %v11745_v31 = vor.u32 %v16852_v25, %v11742_v26  ;;  %v11201_v45 = vor.u32 %v16716_v32, %v11198_v35  ;;  %v16772_v50 = vld [vmem:[#allocation5 + $0x2d4] sm:$0xf]  ;;  %v11969_v51 = vor.u32 %v16908_v43, %v11966_v44  ;;  %v11300_v35 = vld [vmem:[#allocation5 + $0x1d8] sm:$0xf] }
  0xe0   :  { %v11837_v4 = vor.u32 %v16880_v56, %v11836_v55  ;;  %v11422_v52 = vld [vmem:[#allocation5 + $0x2f0] sm:$0xf0]  ;;  %v11812_v43 = vld [vmem:[#allocation5 + $0x5d8] sm:$0xf] }
  0xe1   :  { %1984 = vmatpush.bf16.msra.mxu3 %v11901_v37  ;;  %1959 = vmatpush.bf16.msra.mxu1 %v11357_v48  ;;  %v12001_v37 = vor.u32 %v16916_v27, %v11998_v28  ;;  %v16708_v48 = vld [vmem:[#allocation5 + $0xd4] sm:$0xf]  ;;  %v11425_v59 = vor.u32 %v16772_v50, %v11422_v52  ;;  %v16873_v44 = vld [vmem:[#allocation5 + $0x5f4] sm:$0xf0] }
  0xe2   :  { %v11678_v54 = vld [vmem:[#allocation5 + $0x4f0] sm:$0xf0] }
  0xe3   :  { %1972 = vmatpush.bf16.msra.mxu2 %v11613_v49  ;;  %1947 = vmatpush.bf16.msra.mxu0 %v11069_v60  ;;  %v11166_v49 = vld [vmem:[#allocation5 + $0xf0] sm:$0xf0] }
  0xe4   :  { %v16900_v55 = vld [vmem:[#allocation5 + $0x6d4] sm:$0xf]  ;;  %v11169_v57 = vor.u32 %v16708_v48, %v11166_v49  ;;  %v12068_v48 = vld [vmem:[#allocation5 + $0x7d8] sm:$0xf] }
  0xe5   :  { %1985 = vmatpush.bf16.msra.mxu3 %v11869_v53  ;;  %1960 = vmatpush.bf16.msra.mxu1 %v11325_v0  ;;  %v16836_v53 = vld [vmem:[#allocation5 + $0x4d4] sm:$0xf]  ;;  %v16937_v49 = vld [vmem:[#allocation5 + $0x7f4] sm:$0xf0] }
  0xe6   :  { %1948 = vmatmul.bf16.vlgmr.msra.gmra.mxu0 %v18456_v34  ;;  %v11934_v56 = vld [vmem:[#allocation5 + $0x6f0] sm:$0xf0]  ;;  %v11681_v60 = vor.u32 %v16836_v53, %v11678_v54  ;;  %v11813_v54 = vor.u32 %v16873_v44, %v11812_v43  ;;  %v11428_v43 = vld [vmem:[#allocation5 + $0x2d8] sm:$0xf] }
  0xe7   :  { %1973 = vmatpush.bf16.msra.mxu2 %v11581_v1  ;;  %1992 = vmatpush.bf16.msrb.mxu0 %v11297_v5  ;;  %v16700_v58 = vld [vmem:[#allocation5 + $0x94] sm:$0xf]  ;;  %v11937_v0 = vor.u32 %v16900_v55, %v11934_v56  ;;  %v1741_v22 = vpop.f32.mrf.mxu0  ;;  %v11268_v55 = vld [vmem:[#allocation5 + $0x198] sm:$0xf] }
  0xe8   :  { %1961 = vmatmul.bf16.vlgmr.msra.gmra.mxu1 %v18460_v42  ;;  %v11134_v61 = vld [vmem:[#allocation5 + $0xb0] sm:$0xf0]  ;;  %v1742_v28 = vadd.f32 %v1741_v22, %v436_v12  ;;  %v16737_v56 = vld [vmem:[#allocation5 + $0x1b4] sm:$0xf0] }
  0xe9   :  { %1986 = vmatpush.bf16.msra.mxu3 %v11837_v4  ;;  %2005 = vmatpush.bf16.msrb.mxu1 %v11553_v6  ;;  %v16764_v62 = vld [vmem:[#allocation5 + $0x294] sm:$0xf]  ;;  %v11137_v6 = vor.u32 %v16700_v58, %v11134_v61  ;;  %v16801_v61 = vld [vmem:[#allocation5 + $0x3b4] sm:$0xf0] }
  0xea   :  { %1974 = vmatmul.bf16.vlgmr.msra.gmra.mxu2 %v18454_v33  ;;  %v11390_v63 = vld [vmem:[#allocation5 + $0x2b0] sm:$0xf0] }
  0xeb   :  { %2018 = vmatpush.bf16.msrb.mxu2 %v11809_v7  ;;  %1993 = vmatpush.bf16.msrb.mxu0 %v11265_v17  ;;  %v16828_v1 = vld [vmem:[#allocation5 + $0x494] sm:$0xf]  ;;  %v11393_v8 = vor.u32 %v16764_v62, %v11390_v63  ;;  %v1754_v38 = vpop.f32.mrf.mxu1  ;;  %v11780_v62 = vld [vmem:[#allocation5 + $0x598] sm:$0xf] }
  0xec   :  { %1987 = vmatmul.bf16.vlgmr.msra.gmra.mxu3 %v18458_v41  ;;  %v11646_v2 = vld [vmem:[#allocation5 + $0x4b0] sm:$0xf0]  ;;  %v16865_v63 = vld [vmem:[#allocation5 + $0x5b4] sm:$0xf0] }
  0xed   :  { %2031 = vmatpush.bf16.msrb.mxu3 %v12065_v11  ;;  %2006 = vmatpush.bf16.msrb.mxu1 %v11521_v18  ;;  %v16892_v4 = vld [vmem:[#allocation5 + $0x694] sm:$0xf]  ;;  %v11649_v9 = vor.u32 %v16828_v1, %v11646_v2  ;;  %v12036_v1 = vld [vmem:[#allocation5 + $0x798] sm:$0xf] }
  0xee   :  { %v11902_v5 = vld [vmem:[#allocation5 + $0x6b0] sm:$0xf0]  ;;  %v16929_v2 = vld [vmem:[#allocation5 + $0x7b4] sm:$0xf0] }
  0xef   :  { %2019 = vmatpush.bf16.msrb.mxu2 %v11777_v19  ;;  %1994 = vmatpush.bf16.msrb.mxu0 %v11233_v29  ;;  %v16692_v7 = vld [vmem:[#allocation5 + $0x54] sm:$0xf]  ;;  %v11905_v13 = vor.u32 %v16892_v4, %v11902_v5  ;;  %v1767_v52 = vpop.f32.mrf.mxu2  ;;  %v11269_v5 = vor.u32 %v16737_v56, %v11268_v55  ;;  %v12037_v12 = vor.u32 %v16929_v2, %v12036_v1  ;;  %v11140_v56 = vld [vmem:[#allocation5 + $0x98] sm:$0xf] }
  0xf0   :  { %v11102_v10 = vld [vmem:[#allocation5 + $0x70] sm:$0xf0]  ;;  %v11908_v2 = vld [vmem:[#allocation5 + $0x698] sm:$0xf] }
  0xf1   :  { %2032 = vmatpush.bf16.msrb.mxu3 %v12033_v23  ;;  %2007 = vmatpush.bf16.msrb.mxu1 %v11489_v30  ;;  %v16756_v11 = vld [vmem:[#allocation5 + $0x254] sm:$0xf]  ;;  %v11105_v19 = vor.u32 %v16692_v7, %v11102_v10  ;;  %v11781_v7 = vor.u32 %v16865_v63, %v11780_v62  ;;  %v11492_v10 = vld [vmem:[#allocation5 + $0x358] sm:$0xf] }
  0xf2   :  { %v11358_v14 = vld [vmem:[#allocation5 + $0x270] sm:$0xf0]  ;;  %v11652_v62 = vld [vmem:[#allocation5 + $0x498] sm:$0xf] }
  0xf3   :  { %2020 = vmatpush.bf16.msrb.mxu2 %v11745_v31  ;;  %1995 = vmatpush.bf16.msrb.mxu0 %v11201_v45  ;;  %v16820_v15 = vld [vmem:[#allocation5 + $0x454] sm:$0xf]  ;;  %v11361_v23 = vor.u32 %v16756_v11, %v11358_v14  ;;  %v1755_v45 = vadd.f32 %v1754_v38, %v1742_v28  ;;  %v1756_v11 = vpop.f32.mrf.mxu1  ;;  %v11748_v14 = vld [vmem:[#allocation5 + $0x558] sm:$0xf] }
  0xf4   :  { %v11614_v16 = vld [vmem:[#allocation5 + $0x470] sm:$0xf0]  ;;  %v16785_v28 = vld [vmem:[#allocation5 + $0x334] sm:$0xf0] }
  0xf5   :  { %2033 = vmatpush.bf16.msrb.mxu3 %v12001_v37  ;;  %2008 = vmatpush.bf16.msrb.mxu1 %v11457_v46  ;;  %v16884_v17 = vld [vmem:[#allocation5 + $0x654] sm:$0xf]  ;;  %v11617_v24 = vor.u32 %v16820_v15, %v11614_v16  ;;  %v11556_v37 = vld [vmem:[#allocation5 + $0x3d8] sm:$0xf]  ;;  %v1768_v58 = vadd.f32 %v1767_v52, %v1755_v45 }
  0xf6   :  { %v11870_v18 = vld [vmem:[#allocation5 + $0x670] sm:$0xf0]  ;;  %v11557_v53 = vor.u32 %v16809_v40, %v11556_v37  ;;  %v16857_v15 = vld [vmem:[#allocation5 + $0x574] sm:$0xf0] }
  0xf7   :  { %2021 = vmatpush.bf16.msrb.mxu2 %v11713_v47  ;;  %1996 = vmatpush.bf16.msrb.mxu0 %v11169_v57  ;;  %v16684_v20 = vld [vmem:[#allocation5 + $0x14] sm:$0xf]  ;;  %v11873_v29 = vor.u32 %v16884_v17, %v11870_v18  ;;  %v11524_v57 = vld [vmem:[#allocation5 + $0x398] sm:$0xf]  ;;  %v11749_v22 = vor.u32 %v16857_v15, %v11748_v14 }
  0xf8   :  { %v11070_v21 = vld [vmem:[#allocation5 + $0x30] sm:$0xf0]  ;;  %v12004_v16 = vld [vmem:[#allocation5 + $0x758] sm:$0xf] }
  0xf9   :  { %2034 = vmatpush.bf16.msrb.mxu3 %v11969_v51  ;;  %2009 = vmatpush.bf16.msrb.mxu1 %v11425_v59  ;;  %v16748_v25 = vld [vmem:[#allocation5 + $0x214] sm:$0xf]  ;;  %v11073_v39 = vor.u32 %v16684_v20, %v11070_v21  ;;  %v11301_v51 = vor.u32 %v16745_v36, %v11300_v35  ;;  %v1780_v59 = vpop.f32.mrf.mxu3  ;;  %v16921_v17 = vld [vmem:[#allocation5 + $0x774] sm:$0xf0]  ;;  %v1769_v20 = vpop.f32.mrf.mxu2 }
  0xfa   :  { %v11326_v26 = vld [vmem:[#allocation5 + $0x230] sm:$0xf0]  ;;  %v18485_v4 = vadd.f32 %v1780_v59, %v1768_v58  ;;  %v16713_v40 = vld [vmem:[#allocation5 + $0xf4] sm:$0xf0] }
  0xfb   :  { %2022 = vmatpush.bf16.msrb.mxu2 %v11681_v60  ;;  %1997 = vmatpush.bf16.msrb.mxu0 %v11137_v6  ;;  %v16812_v27 = vld [vmem:[#allocation5 + $0x414] sm:$0xf]  ;;  %v11329_v46 = vor.u32 %v16748_v25, %v11326_v26  ;;  %v12069_v60 = vor.u32 %v16937_v49, %v12068_v48  ;;  %v11525_v6 = vor.u32 %v16801_v61, %v11524_v57  ;;  %v437_v26 = vperm.slane %v18482_v3, 1  ;;  %v11684_v48 = vld [vmem:[#allocation5 + $0x4d8] sm:$0xf] }
  0xfc   :  { %v11582_v30 = vld [vmem:[#allocation5 + $0x430] sm:$0xf0]  ;;  %v16841_v49 = vld [vmem:[#allocation5 + $0x4f4] sm:$0xf0] }
  0xfd   :  { %2035 = vmatpush.bf16.msrb.mxu3 %v11937_v0  ;;  %2010 = vmatpush.bf16.msrb.mxu1 %v11393_v8  ;;  %v16876_v31 = vld [vmem:[#allocation5 + $0x614] sm:$0xf]  ;;  %v11585_v47 = vor.u32 %v16812_v27, %v11582_v30  ;;  %v1743_v0 = vpop.f32.mrf.mxu0  ;;  %v11236_v8 = vld [vmem:[#allocation5 + $0x158] sm:$0xf]  ;;  %v12005_v27 = vor.u32 %v16921_v17, %v12004_v16  ;;  %v11685_v55 = vor.u32 %v16841_v49, %v11684_v48  ;;  %v16933_v48 = vld [vmem:[#allocation5 + $0x7dc] sm:$0xf] }
  0xfe   :  { %v11838_v32 = vld [vmem:[#allocation5 + $0x630] sm:$0xf0]  ;;  %v16849_v30 = vld [vmem:[#allocation5 + $0x534] sm:$0xf0]  ;;  %v12070_v49 = vld [vmem:[#allocation5 + $0x7f8] sm:$0xf0] }
  0xff   :  { %2023 = vmatpush.bf16.msrb.mxu2 %v11649_v9  ;;  %1998 = vmatpush.bf16.msrb.mxu0 %v11105_v19  ;;  %v11841_v50 = vor.u32 %v16876_v31, %v11838_v32  ;;  %v16729_v9 = vld [vmem:[#allocation5 + $0x174] sm:$0xf0] }
 0x100   :  { %v11237_v18 = vor.u32 %v16729_v9, %v11236_v8  ;;  %v11204_v19 = vld [vmem:[#allocation5 + $0x118] sm:$0xf] }
 0x101   :  { %2036 = vmatpush.bf16.msrb.mxu3 %v11905_v13  ;;  %2011 = vmatpush.bf16.msrb.mxu1 %v11361_v23  ;;  %v16793_v13 = vld [vmem:[#allocation5 + $0x374] sm:$0xf0]  ;;  %v1782_v25 = vpop.f32.mrf.mxu3 }
 0x102   :  { %v11493_v21 = vor.u32 %v16793_v13, %v11492_v10  ;;  %v16721_v23 = vld [vmem:[#allocation5 + $0x134] sm:$0xf0] }
 0x103   :  { %2024 = vmatpush.bf16.msrb.mxu2 %v11617_v24  ;;  %1999 = vmatpush.bf16.msrb.mxu0 %v11073_v39  ;;  %v11460_v24 = vld [vmem:[#allocation5 + $0x318] sm:$0xf]  ;;  %v11205_v35 = vor.u32 %v16721_v23, %v11204_v19 }
 0x104   :  { %v11972_v31 = vld [vmem:[#allocation5 + $0x718] sm:$0xf]  ;;  %v11461_v37 = vor.u32 %v16785_v28, %v11460_v24 }
 0x105   :  { %2037 = vmatpush.bf16.msrb.mxu3 %v11873_v29  ;;  %2012 = vmatpush.bf16.msrb.mxu1 %v11329_v46  ;;  %v11716_v29 = vld [vmem:[#allocation5 + $0x518] sm:$0xf]  ;;  %v1793_v36 = vpop.f32.mrf.mxu0  ;;  %v1806_v45 = vpop.f32.mrf.mxu1 }
 0x106   :  { %2000 = vmatmul.bf16.vlgmr.msrb.gmra.mxu0 %v18456_v34  ;;  %v16913_v32 = vld [vmem:[#allocation5 + $0x734] sm:$0xf0]  ;;  %v11717_v38 = vor.u32 %v16849_v30, %v11716_v29  ;;  %v1794_v44 = vadd.f32 %v1793_v36, %v437_v26 }
 0x107   :  { %2025 = vmatpush.bf16.msrb.mxu2 %v11585_v47  ;;  %2044 = vmatpush.bf16.msra.mxu0 %v11301_v51  ;;  %v11172_v39 = vld [vmem:[#allocation5 + $0xd8] sm:$0xf]  ;;  %v11973_v46 = vor.u32 %v16913_v32, %v11972_v31 }
 0x108   :  { %2013 = vmatmul.bf16.vlgmr.msrb.gmra.mxu1 %v18460_v42  ;;  %v16777_v47 = vld [vmem:[#allocation5 + $0x2f4] sm:$0xf0]  ;;  %v1807_v52 = vadd.f32 %v1806_v45, %v1794_v44  ;;  %v16869_v44 = vld [vmem:[#allocation5 + $0x5dc] sm:$0xf] }
 0x109   :  { %2038 = vmatpush.bf16.msrb.mxu3 %v11841_v50  ;;  %2057 = vmatpush.bf16.msra.mxu1 %v11557_v53  ;;  %v11940_v50 = vld [vmem:[#allocation5 + $0x6d8] sm:$0xf]  ;;  %v11173_v53 = vor.u32 %v16713_v40, %v11172_v39  ;;  %v16805_v39 = vld [vmem:[#allocation5 + $0x3dc] sm:$0xf] }
 0x10a   :  { %2026 = vmatmul.bf16.vlgmr.msrb.gmra.mxu2 %v18454_v33  ;;  %v16905_v51 = vld [vmem:[#allocation5 + $0x6f4] sm:$0xf0]  ;;  %v11814_v45 = vld [vmem:[#allocation5 + $0x5f8] sm:$0xf0] }
 0x10b   :  { %2070 = vmatpush.bf16.msra.mxu2 %v11813_v54  ;;  %2045 = vmatpush.bf16.msra.mxu0 %v11269_v5  ;;  %v11429_v54 = vor.u32 %v16777_v47, %v11428_v43  ;;  %v16705_v57 = vld [vmem:[#allocation5 + $0xb4] sm:$0xf0]  ;;  %v11558_v43 = vld [vmem:[#allocation5 + $0x3f8] sm:$0xf0] }
 0x10c   :  { %2039 = vmatmul.bf16.vlgmr.msrb.gmra.mxu3 %v18458_v41  ;;  %v11396_v58 = vld [vmem:[#allocation5 + $0x298] sm:$0xf] }
 0x10d   :  { %2083 = vmatpush.bf16.msra.mxu3 %v12069_v60  ;;  %2058 = vmatpush.bf16.msra.mxu1 %v11525_v6  ;;  %v1819_v59 = vpop.f32.mrf.mxu2  ;;  %v11941_v60 = vor.u32 %v16905_v51, %v11940_v50  ;;  %v16769_v61 = vld [vmem:[#allocation5 + $0x2b4] sm:$0xf0]  ;;  %v11141_v6 = vor.u32 %v16705_v57, %v11140_v56  ;;  %v1795_v8 = vpop.f32.mrf.mxu0  ;;  %v16797_v56 = vld [vmem:[#allocation5 + $0x39c] sm:$0xf]  ;;  %v12073_v57 = vor.u32 %v16933_v48, %v12070_v49 }
 0x10e   :  { %v16833_v63 = vld [vmem:[#allocation5 + $0x4b4] sm:$0xf0]  ;;  %v1820_v0 = vadd.f32 %v1819_v59, %v1807_v52  ;;  %v11397_v9 = vor.u32 %v16769_v61, %v11396_v58  ;;  %v1808_v14 = vpop.f32.mrf.mxu1  ;;  %v11561_v52 = vor.u32 %v16805_v39, %v11558_v43  ;;  %v11526_v58 = vld [vmem:[#allocation5 + $0x3b8] sm:$0xf0] }
 0x10f   :  { %2071 = vmatpush.bf16.msra.mxu2 %v11781_v7  ;;  %2046 = vmatpush.bf16.msra.mxu0 %v11237_v18  ;;  %v1832_v1 = vpop.f32.mrf.mxu3  ;;  %v16897_v5 = vld [vmem:[#allocation5 + $0x6b4] sm:$0xf0]  ;;  %v11653_v10 = vor.u32 %v16833_v63, %v11652_v62  ;;  %v16861_v59 = vld [vmem:[#allocation5 + $0x59c] sm:$0xf] }
 0x110   :  { %v18492_v7 = vadd.f32 %v1832_v1, %v1820_v0  ;;  %v11108_v11 = vld [vmem:[#allocation5 + $0x58] sm:$0xf]  ;;  %v11909_v15 = vor.u32 %v16897_v5, %v11908_v2  ;;  %v16925_v61 = vld [vmem:[#allocation5 + $0x79c] sm:$0xf]  ;;  %v11529_v0 = vor.u32 %v16797_v56, %v11526_v58 }
 0x111   :  { %2084 = vmatpush.bf16.msra.mxu3 %v12037_v12  ;;  %2059 = vmatpush.bf16.msra.mxu1 %v11493_v21  ;;  %v16697_v12 = vld [vmem:[#allocation5 + $0x74] sm:$0xf0]  ;;  %v12038_v62 = vld [vmem:[#allocation5 + $0x7b8] sm:$0xf0] }
 0x112   :  { %v11364_v13 = vld [vmem:[#allocation5 + $0x258] sm:$0xf]  ;;  %v11109_v21 = vor.u32 %v16697_v12, %v11108_v11  ;;  %v16725_v2 = vld [vmem:[#allocation5 + $0x15c] sm:$0xf]  ;;  %v12041_v8 = vor.u32 %v16925_v61, %v12038_v62 }
 0x113   :  { %2072 = vmatpush.bf16.msra.mxu2 %v11749_v22  ;;  %2047 = vmatpush.bf16.msra.mxu0 %v11205_v35  ;;  %v16761_v16 = vld [vmem:[#allocation5 + $0x274] sm:$0xf0]  ;;  %v11238_v5 = vld [vmem:[#allocation5 + $0x178] sm:$0xf0] }
 0x114   :  { %v11620_v17 = vld [vmem:[#allocation5 + $0x458] sm:$0xf]  ;;  %v11365_v24 = vor.u32 %v16761_v16, %v11364_v13  ;;  %v11750_v11 = vld [vmem:[#allocation5 + $0x578] sm:$0xf0]  ;;  %v11241_v14 = vor.u32 %v16725_v2, %v11238_v5 }
 0x115   :  { %2085 = vmatpush.bf16.msra.mxu3 %v12005_v27  ;;  %2060 = vmatpush.bf16.msra.mxu1 %v11461_v37  ;;  %v16825_v18 = vld [vmem:[#allocation5 + $0x474] sm:$0xf0]  ;;  %v1821_v29 = vpop.f32.mrf.mxu2  ;;  %v16741_v37 = vld [vmem:[#allocation5 + $0x1dc] sm:$0xf] }
 0x116   :  { %v11876_v19 = vld [vmem:[#allocation5 + $0x658] sm:$0xf]  ;;  %v11621_v25 = vor.u32 %v16825_v18, %v11620_v17  ;;  %v16917_v12 = vld [vmem:[#allocation5 + $0x75c] sm:$0xf] }
 0x117   :  { %2073 = vmatpush.bf16.msra.mxu2 %v11717_v38  ;;  %2048 = vmatpush.bf16.msra.mxu0 %v11173_v53  ;;  %v16889_v20 = vld [vmem:[#allocation5 + $0x674] sm:$0xf0]  ;;  %v1834_v36 = vpop.f32.mrf.mxu3  ;;  %v11302_v38 = vld [vmem:[#allocation5 + $0x1f8] sm:$0xf0]  ;;  %v11817_v53 = vor.u32 %v16869_v44, %v11814_v45 }
 0x118   :  { %v11076_v22 = vld [vmem:[#allocation5 + $0x18] sm:$0xf]  ;;  %v11877_v30 = vor.u32 %v16889_v20, %v11876_v19  ;;  %v11305_v51 = vor.u32 %v16741_v37, %v11302_v38  ;;  %v12006_v13 = vld [vmem:[#allocation5 + $0x778] sm:$0xf0] }
 0x119   :  { %2086 = vmatpush.bf16.msra.mxu3 %v11973_v46  ;;  %2061 = vmatpush.bf16.msra.mxu1 %v11429_v54  ;;  %v16689_v23 = vld [vmem:[#allocation5 + $0x34] sm:$0xf0]  ;;  %v16733_v54 = vld [vmem:[#allocation5 + $0x19c] sm:$0xf]  ;;  %v12009_v20 = vor.u32 %v16917_v12, %v12006_v13 }
 0x11a   :  { %v11332_v26 = vld [vmem:[#allocation5 + $0x218] sm:$0xf]  ;;  %v11077_v40 = vor.u32 %v16689_v23, %v11076_v22  ;;  %v16717_v17 = vld [vmem:[#allocation5 + $0x11c] sm:$0xf] }
 0x11b   :  { %2074 = vmatpush.bf16.msra.mxu2 %v11685_v55  ;;  %2049 = vmatpush.bf16.msra.mxu0 %v11141_v6  ;;  %v16753_v27 = vld [vmem:[#allocation5 + $0x234] sm:$0xf0]  ;;  %v11270_v55 = vld [vmem:[#allocation5 + $0x1b8] sm:$0xf0] }
 0x11c   :  { %v11588_v28 = vld [vmem:[#allocation5 + $0x418] sm:$0xf]  ;;  %v11333_v46 = vor.u32 %v16753_v27, %v11332_v26  ;;  %v11273_v63 = vor.u32 %v16733_v54, %v11270_v55  ;;  %v16789_v6 = vld [vmem:[#allocation5 + $0x35c] sm:$0xf] }
 0x11d   :  { %2087 = vmatpush.bf16.msra.mxu3 %v11941_v60  ;;  %2062 = vmatpush.bf16.msra.mxu1 %v11397_v9  ;;  %v16817_v31 = vld [vmem:[#allocation5 + $0x434] sm:$0xf0]  ;;  %v11782_v60 = vld [vmem:[#allocation5 + $0x5b8] sm:$0xf0] }
 0x11e   :  { %v11844_v32 = vld [vmem:[#allocation5 + $0x618] sm:$0xf]  ;;  %v11589_v47 = vor.u32 %v16817_v31, %v11588_v28  ;;  %v11785_v1 = vor.u32 %v16861_v59, %v11782_v60  ;;  %v11494_v9 = vld [vmem:[#allocation5 + $0x378] sm:$0xf0] }
 0x11f   :  { %2075 = vmatpush.bf16.msra.mxu2 %v11653_v10  ;;  %v16881_v35 = vld [vmem:[#allocation5 + $0x634] sm:$0xf0]  ;;  %2050 = vmatpush.bf16.msra.mxu0 %v11109_v21  ;;  %v16853_v10 = vld [vmem:[#allocation5 + $0x55c] sm:$0xf] }
 0x120   :  { %v11845_v50 = vor.u32 %v16881_v35, %v11844_v32  ;;  %v11753_v16 = vor.u32 %v16853_v10, %v11750_v11  ;;  %v11206_v18 = vld [vmem:[#allocation5 + $0x138] sm:$0xf0] }
 0x121   :  { %2088 = vmatpush.bf16.msra.mxu3 %v11909_v15  ;;  %2063 = vmatpush.bf16.msra.mxu1 %v11365_v24  ;;  %v11497_v15 = vor.u32 %v16789_v6, %v11494_v9  ;;  %v16781_v19 = vld [vmem:[#allocation5 + $0x31c] sm:$0xf]  ;;  %v11209_v26 = vor.u32 %v16717_v17, %v11206_v18 }
 0x122   :  { %v11462_v21 = vld [vmem:[#allocation5 + $0x338] sm:$0xf0] }
 0x123   :  { %2076 = vmatpush.bf16.msra.mxu2 %v11621_v25  ;;  %2051 = vmatpush.bf16.msra.mxu0 %v11077_v40  ;;  %v16845_v22 = vld [vmem:[#allocation5 + $0x51c] sm:$0xf]  ;;  %v18498_v27 = vpop.f32.mrf.mxu0  ;;  %v11465_v28 = vor.u32 %v16781_v19, %v11462_v21 }
 0x124   :  { %v11718_v23 = vld [vmem:[#allocation5 + $0x538] sm:$0xf0] }
 0x125   :  { %2089 = vmatpush.bf16.msra.mxu3 %v11877_v30  ;;  %2064 = vmatpush.bf16.msra.mxu1 %v11333_v46  ;;  %v16909_v24 = vld [vmem:[#allocation5 + $0x71c] sm:$0xf]  ;;  %v11721_v29 = vor.u32 %v16845_v22, %v11718_v23  ;;  %v18500_v35 = vpop.f32.mrf.mxu1 }
 0x126   :  { %2052 = vmatmul.bf16.vlgmr.msra.gmra.mxu0 %v18456_v34  ;;  %v11974_v25 = vld [vmem:[#allocation5 + $0x738] sm:$0xf0] }
 0x127   :  { %2077 = vmatpush.bf16.msra.mxu2 %v11589_v47  ;;  %2096 = vmatpush.bf16.msrb.mxu0 %v11305_v51  ;;  %v16709_v30 = vld [vmem:[#allocation5 + $0xdc] sm:$0xf]  ;;  %v11977_v36 = vor.u32 %v16909_v24, %v11974_v25  ;;  %v12300_v25 = vld [vmem:[#allocation8 + $0x1c0] sm:$0xf] }
 0x128   :  { %2065 = vmatmul.bf16.vlgmr.msra.gmra.mxu1 %v18460_v42  ;;  %v11174_v31 = vld [vmem:[#allocation5 + $0xf8] sm:$0xf0] }
 0x129   :  { %2090 = vmatpush.bf16.msra.mxu3 %v11845_v50  ;;  %2109 = vmatpush.bf16.msrb.mxu1 %v11561_v52  ;;  %v16773_v32 = vld [vmem:[#allocation5 + $0x2dc] sm:$0xf]  ;;  %v11177_v44 = vor.u32 %v16709_v30, %v11174_v31  ;;  %v17062_v30 = vld [vmem:[#allocation8 + $0x3dc] sm:$0xf0] }
 0x12a   :  { %2078 = vmatmul.bf16.vlgmr.msra.gmra.mxu2 %v18454_v33  ;;  %v11430_v37 = vld [vmem:[#allocation5 + $0x2f8] sm:$0xf0]  ;;  %v12812_v31 = vld [vmem:[#allocation8 + $0x5c0] sm:$0xf] }
 0x12b   :  { %2122 = vmatpush.bf16.msrb.mxu2 %v11817_v53  ;;  %2097 = vmatpush.bf16.msrb.mxu0 %v11273_v63  ;;  %v16837_v38 = vld [vmem:[#allocation5 + $0x4dc] sm:$0xf]  ;;  %v11433_v45 = vor.u32 %v16773_v32, %v11430_v37  ;;  %v1847_v59 = vpop.f32.mrf.mxu0  ;;  %v17126_v32 = vld [vmem:[#allocation8 + $0x5dc] sm:$0xf0] }
 0x12c   :  { %2091 = vmatmul.bf16.vlgmr.msra.gmra.mxu3 %v18458_v41  ;;  %v11686_v39 = vld [vmem:[#allocation5 + $0x4f8] sm:$0xf0] }
 0x12d   :  { %2135 = vmatpush.bf16.msrb.mxu3 %v12073_v57  ;;  %2110 = vmatpush.bf16.msrb.mxu1 %v11529_v0  ;;  %v16901_v40 = vld [vmem:[#allocation5 + $0x6dc] sm:$0xf]  ;;  %v11689_v46 = vor.u32 %v16837_v38, %v11686_v39  ;;  %v18502_v50 = vpop.f32.mrf.mxu2 }
 0x12e   :  { %v11942_v43 = vld [vmem:[#allocation5 + $0x6f8] sm:$0xf0] }
 0x12f   :  { %2123 = vmatpush.bf16.msrb.mxu2 %v11785_v1  ;;  %2098 = vmatpush.bf16.msrb.mxu0 %v11241_v14  ;;  %v16701_v47 = vld [vmem:[#allocation5 + $0x9c] sm:$0xf]  ;;  %v11945_v51 = vor.u32 %v16901_v40, %v11942_v43  ;;  %v18504_v55 = vpop.f32.mrf.mxu3  ;;  %v1860_v1 = vpop.f32.mrf.mxu1  ;;  %v13068_v40 = vld [vmem:[#allocation8 + $0x7c0] sm:$0xf] }
 0x130   :  { %v11142_v48 = vld [vmem:[#allocation5 + $0xb8] sm:$0xf0]  ;;  %v17190_v43 = vld [vmem:[#allocation8 + $0x7dc] sm:$0xf0] }
 0x131   :  { %2136 = vmatpush.bf16.msrb.mxu3 %v12041_v8  ;;  %2111 = vmatpush.bf16.msrb.mxu1 %v11497_v15  ;;  %v16765_v49 = vld [vmem:[#allocation5 + $0x29c] sm:$0xf]  ;;  %v11145_v58 = vor.u32 %v16701_v47, %v11142_v48  ;;  %v16990_v47 = vld [vmem:[#allocation8 + $0x19c] sm:$0xf0] }
 0x132   :  { %v11398_v52 = vld [vmem:[#allocation5 + $0x2b8] sm:$0xf0]  ;;  %v12524_v48 = vld [vmem:[#allocation8 + $0x380] sm:$0xf] }
 0x133   :  { %2124 = vmatpush.bf16.msrb.mxu2 %v11753_v16  ;;  %2099 = vmatpush.bf16.msrb.mxu0 %v11209_v26  ;;  %v16829_v53 = vld [vmem:[#allocation5 + $0x49c] sm:$0xf]  ;;  %v11401_v60 = vor.u32 %v16765_v49, %v11398_v52  ;;  %v16998_v26 = vld [vmem:[#allocation8 + $0x1dc] sm:$0xf0] }
 0x134   :  { %v11654_v54 = vld [vmem:[#allocation5 + $0x4b8] sm:$0xf0]  ;;  %v12301_v39 = vor.u32 %v16998_v26, %v12300_v25  ;;  %v17054_v49 = vld [vmem:[#allocation8 + $0x39c] sm:$0xf0] }
 0x135   :  { %2137 = vmatpush.bf16.msrb.mxu3 %v12009_v20  ;;  %2112 = vmatpush.bf16.msrb.mxu1 %v11465_v28  ;;  %v16893_v56 = vld [vmem:[#allocation5 + $0x69c] sm:$0xf]  ;;  %v11657_v61 = vor.u32 %v16829_v53, %v11654_v54  ;;  %v1873_v19 = vpop.f32.mrf.mxu2  ;;  %v12556_v28 = vld [vmem:[#allocation8 + $0x3c0] sm:$0xf]  ;;  %v13069_v53 = vor.u32 %v17190_v43, %v13068_v40 }
 0x136   :  { %v11910_v57 = vld [vmem:[#allocation5 + $0x6b8] sm:$0xf0]  ;;  %v17118_v52 = vld [vmem:[#allocation8 + $0x59c] sm:$0xf0] }
 0x137   :  { %2125 = vmatpush.bf16.msrb.mxu2 %v11721_v29  ;;  %2100 = vmatpush.bf16.msrb.mxu0 %v11177_v44  ;;  %v16693_v62 = vld [vmem:[#allocation5 + $0x5c] sm:$0xf]  ;;  %v11913_v2 = vor.u32 %v16893_v56, %v11910_v57  ;;  %v1886_v24 = vpop.f32.mrf.mxu3  ;;  %v12557_v44 = vor.u32 %v17062_v30, %v12556_v28  ;;  %v13036_v56 = vld [vmem:[#allocation8 + $0x780] sm:$0xf] }
 0x138   :  { %v11110_v63 = vld [vmem:[#allocation5 + $0x78] sm:$0xf0]  ;;  %v17182_v57 = vld [vmem:[#allocation8 + $0x79c] sm:$0xf0] }
 0x139   :  { %2138 = vmatpush.bf16.msrb.mxu3 %v11977_v36  ;;  %2113 = vmatpush.bf16.msrb.mxu1 %v11433_v45  ;;  %v16757_v0 = vld [vmem:[#allocation5 + $0x25c] sm:$0xf]  ;;  %v11113_v11 = vor.u32 %v16693_v62, %v11110_v63  ;;  %v12813_v45 = vor.u32 %v17126_v32, %v12812_v31  ;;  %v12492_v62 = vld [vmem:[#allocation8 + $0x340] sm:$0xf] }
 0x13a   :  { %v11366_v5 = vld [vmem:[#allocation5 + $0x278] sm:$0xf0]  ;;  %v17046_v63 = vld [vmem:[#allocation8 + $0x35c] sm:$0xf0] }
 0x13b   :  { %2126 = vmatpush.bf16.msrb.mxu2 %v11689_v46  ;;  %v16821_v6 = vld [vmem:[#allocation5 + $0x45c] sm:$0xf]  ;;  %2101 = vmatpush.bf16.msrb.mxu0 %v11145_v58  ;;  %v11369_v14 = vor.u32 %v16757_v0, %v11366_v5  ;;  %v12268_v46 = vld [vmem:[#allocation8 + $0x180] sm:$0xf]  ;;  %v12525_v58 = vor.u32 %v17054_v49, %v12524_v48 }
 0x13c   :  { %v11622_v8 = vld [vmem:[#allocation5 + $0x478] sm:$0xf0]  ;;  %v12269_v54 = vor.u32 %v16990_v47, %v12268_v46  ;;  %v12748_v0 = vld [vmem:[#allocation8 + $0x540] sm:$0xf] }
 0x13d   :  { %2139 = vmatpush.bf16.msrb.mxu3 %v11945_v51  ;;  %v16885_v9 = vld [vmem:[#allocation5 + $0x65c] sm:$0xf]  ;;  %2114 = vmatpush.bf16.msrb.mxu1 %v11401_v60  ;;  %v11625_v15 = vor.u32 %v16821_v6, %v11622_v8  ;;  %v12780_v51 = vld [vmem:[#allocation8 + $0x580] sm:$0xf] }
 0x13e   :  { %v11878_v10 = vld [vmem:[#allocation5 + $0x678] sm:$0xf0]  ;;  %v12781_v59 = vor.u32 %v17118_v52, %v12780_v51  ;;  %v12236_v60 = vld [vmem:[#allocation8 + $0x140] sm:$0xf] }
 0x13f   :  { %v16685_v12 = vld [vmem:[#allocation5 + $0x1c] sm:$0xf]  ;;  %2127 = vmatpush.bf16.msrb.mxu2 %v11657_v61  ;;  %v11881_v20 = vor.u32 %v16885_v9, %v11878_v10  ;;  %2102 = vmatpush.bf16.msrb.mxu0 %v11113_v11  ;;  %v16982_v61 = vld [vmem:[#allocation8 + $0x15c] sm:$0xf0]  ;;  %v12493_v9 = vor.u32 %v17046_v63, %v12492_v62 }
 0x140   :  { %v11078_v13 = vld [vmem:[#allocation5 + $0x38] sm:$0xf0]  ;;  %v17110_v1 = vld [vmem:[#allocation8 + $0x55c] sm:$0xf0]  ;;  %v12237_v5 = vor.u32 %v16982_v61, %v12236_v60 }
 0x141   :  { %v16749_v16 = vld [vmem:[#allocation5 + $0x21c] sm:$0xf]  ;;  %2140 = vmatpush.bf16.msrb.mxu3 %v11913_v2  ;;  %v11081_v29 = vor.u32 %v16685_v12, %v11078_v13  ;;  %2115 = vmatpush.bf16.msrb.mxu1 %v11369_v14  ;;  %v13037_v2 = vor.u32 %v17182_v57, %v13036_v56  ;;  %v13004_v6 = vld [vmem:[#allocation8 + $0x740] sm:$0xf]  ;;  %v12749_v10 = vor.u32 %v17110_v1, %v12748_v0 }
 0x142   :  { %v11334_v17 = vld [vmem:[#allocation5 + $0x238] sm:$0xf0]  ;;  %v17174_v8 = vld [vmem:[#allocation8 + $0x75c] sm:$0xf0] }
 0x143   :  { %v16813_v18 = vld [vmem:[#allocation5 + $0x41c] sm:$0xf]  ;;  %2128 = vmatpush.bf16.msrb.mxu2 %v11625_v15  ;;  %v11337_v36 = vor.u32 %v16749_v16, %v11334_v17  ;;  %2103 = vmatpush.bf16.msrb.mxu0 %v11081_v29  ;;  %v16974_v11 = vld [vmem:[#allocation8 + $0x11c] sm:$0xf0]  ;;  %v13005_v15 = vor.u32 %v17174_v8, %v13004_v6  ;;  %v1897_v19 = vpop.f32.mrf.mxu0 }
 0x144   :  { %v11590_v21 = vld [vmem:[#allocation5 + $0x438] sm:$0xf0]  ;;  %v17038_v12 = vld [vmem:[#allocation8 + $0x31c] sm:$0xf0] }
 0x145   :  { %v16877_v22 = vld [vmem:[#allocation5 + $0x61c] sm:$0xf]  ;;  %v11593_v37 = vor.u32 %v16813_v18, %v11590_v21  ;;  %2141 = vmatpush.bf16.msrb.mxu3 %v11881_v20  ;;  %2116 = vmatpush.bf16.msrb.mxu1 %v11337_v36  ;;  %v12716_v13 = vld [vmem:[#allocation8 + $0x500] sm:$0xf]  ;;  %v1910_v25 = vpop.f32.mrf.mxu1 }
 0x146   :  { %v11846_v23 = vld [vmem:[#allocation5 + $0x638] sm:$0xf0]  ;;  %2104 = vmatmul.bf16.vlgmr.msrb.gmra.mxu0 %v18456_v34  ;;  %v12204_v34 = vld [vmem:[#allocation8 + $0x100] sm:$0xf] }
 0x147   :  { %v11849_v38 = vor.u32 %v16877_v22, %v11846_v23  ;;  %2129 = vmatpush.bf16.msrb.mxu2 %v11593_v37  ;;  %5254 = vmatpush.bf16.msra.mxu0 %v12301_v39  ;;  %v17102_v14 = vld [vmem:[#allocation8 + $0x51c] sm:$0xf0]  ;;  %v12205_v16 = vor.u32 %v16974_v11, %v12204_v34 }
 0x148   :  { %2117 = vmatmul.bf16.vlgmr.msrb.gmra.mxu1 %v18460_v42  ;;  %v12460_v42 = vld [vmem:[#allocation8 + $0x300] sm:$0xf]  ;;  %v12717_v21 = vor.u32 %v17102_v14, %v12716_v13 }
 0x149   :  { %2142 = vmatpush.bf16.msrb.mxu3 %v11849_v38  ;;  %5267 = vmatpush.bf16.msra.mxu1 %v12557_v44  ;;  %v12972_v17 = vld [vmem:[#allocation8 + $0x700] sm:$0xf]  ;;  %v12461_v20 = vor.u32 %v17038_v12, %v12460_v42 }
 0x14a   :  { %2130 = vmatmul.bf16.vlgmr.msrb.gmra.mxu2 %v18454_v33  ;;  %v438_v33 = vperm.slane %v18482_v3, 2  ;;  %v17166_v18 = vld [vmem:[#allocation8 + $0x71c] sm:$0xf0] }
 0x14b   :  { %5280 = vmatpush.bf16.msra.mxu2 %v12813_v45  ;;  %5255 = vmatpush.bf16.msra.mxu0 %v12269_v54  ;;  %v12172_v22 = vld [vmem:[#allocation8 + $0xc0] sm:$0xf]  ;;  %v12973_v31 = vor.u32 %v17166_v18, %v12972_v17  ;;  %v1899_v57 = vpop.f32.mrf.mxu0 }
 0x14c   :  { %2143 = vmatmul.bf16.vlgmr.msrb.gmra.mxu3 %v18458_v41  ;;  %v439_v41 = vperm.slane %v18482_v3, 3  ;;  %v16966_v23 = vld [vmem:[#allocation8 + $0xdc] sm:$0xf0]  ;;  %v1846_v3 = vadd.f32 %v18498_v27, %v438_v33 }
 0x14d   :  { %5293 = vmatpush.bf16.msra.mxu3 %v13069_v53  ;;  %5268 = vmatpush.bf16.msra.mxu1 %v12525_v58  ;;  %v12428_v24 = vld [vmem:[#allocation8 + $0x2c0] sm:$0xf]  ;;  %v12173_v32 = vor.u32 %v16966_v23, %v12172_v22  ;;  %v1923_v45 = vpop.f32.mrf.mxu2  ;;  %v1912_v63 = vpop.f32.mrf.mxu1 }
 0x14e   :  { %v17030_v26 = vld [vmem:[#allocation8 + $0x2dc] sm:$0xf0]  ;;  %v1898_v30 = vadd.f32 %v1897_v19, %v439_v41  ;;  %v1859_v27 = vadd.f32 %v18500_v35, %v1846_v3 }
 0x14f   :  { %5281 = vmatpush.bf16.msra.mxu2 %v12781_v59  ;;  %5256 = vmatpush.bf16.msra.mxu0 %v12237_v5  ;;  %v12684_v28 = vld [vmem:[#allocation8 + $0x4c0] sm:$0xf]  ;;  %v12429_v38 = vor.u32 %v17030_v26, %v12428_v24  ;;  %v1936_v49 = vpop.f32.mrf.mxu3  ;;  %v2148_v26 = vmax.f32 %v18485_v4, 0.0 }
 0x150   :  { %v17094_v29 = vld [vmem:[#allocation8 + $0x4dc] sm:$0xf0]  ;;  %v1911_v51 = vadd.f32 %v1910_v25, %v1898_v30  ;;  %v1872_v35 = vadd.f32 %v18502_v50, %v1859_v27 }
 0x151   :  { %5294 = vmatpush.bf16.msra.mxu3 %v13037_v2  ;;  %5269 = vmatpush.bf16.msra.mxu1 %v12493_v9  ;;  %v12940_v36 = vld [vmem:[#allocation8 + $0x6c0] sm:$0xf]  ;;  %v12685_v39 = vor.u32 %v17094_v29, %v12684_v28 }
 0x152   :  { %v17158_v37 = vld [vmem:[#allocation8 + $0x6dc] sm:$0xf0]  ;;  %v1924_v5 = vadd.f32 %v1923_v45, %v1911_v51  ;;  %v1885_v17 = vadd.f32 %v18504_v55, %v1872_v35  ;;  %v2149_v55 = vmax.f32 %v18492_v7, 0.0 }
 0x153   :  { %5282 = vmatpush.bf16.msra.mxu2 %v12749_v10  ;;  %5257 = vmatpush.bf16.msra.mxu0 %v12205_v16  ;;  %v12140_v40 = vld [vmem:[#allocation8 + $0x80] sm:$0xf]  ;;  %v12941_v52 = vor.u32 %v17158_v37, %v12940_v36 }
 0x154   :  { %v16958_v43 = vld [vmem:[#allocation8 + $0x9c] sm:$0xf0]  ;;  %v1937_v18 = vadd.f32 %v1936_v49, %v1924_v5 }
 0x155   :  { %5295 = vmatpush.bf16.msra.mxu3 %v13005_v15  ;;  %5270 = vmatpush.bf16.msra.mxu1 %v12461_v20  ;;  %v12396_v44 = vld [vmem:[#allocation8 + $0x280] sm:$0xf]  ;;  %v12141_v53 = vor.u32 %v16958_v43, %v12140_v40  ;;  %v1925_v33 = vpop.f32.mrf.mxu2 }
 0x156   :  { %v17022_v46 = vld [vmem:[#allocation8 + $0x29c] sm:$0xf0] }
 0x157   :  { %5283 = vmatpush.bf16.msra.mxu2 %v12717_v21  ;;  %v12652_v47 = vld [vmem:[#allocation8 + $0x480] sm:$0xf]  ;;  %5258 = vmatpush.bf16.msra.mxu0 %v12173_v32  ;;  %v12397_v58 = vor.u32 %v17022_v46, %v12396_v44  ;;  %v1938_v50 = vpop.f32.mrf.mxu3 }
 0x158   :  { %v17086_v48 = vld [vmem:[#allocation8 + $0x49c] sm:$0xf0] }
 0x159   :  { %5296 = vmatpush.bf16.msra.mxu3 %v12973_v31  ;;  %v12908_v54 = vld [vmem:[#allocation8 + $0x680] sm:$0xf]  ;;  %5271 = vmatpush.bf16.msra.mxu1 %v12429_v38  ;;  %v12653_v59 = vor.u32 %v17086_v48, %v12652_v47  ;;  %v2150_v38 = vmax.f32 %v1885_v17, 0.0  ;;  %v18518_v47 = vpack.c.bf16 %v2148_v26, %v2148_v26  ;;  %v18520_v48 = vpack.c.bf16 %v2149_v55, %v2149_v55 }
 0x15a   :  { %v17150_v56 = vld [vmem:[#allocation8 + $0x69c] sm:$0xf0] }
 0x15b   :  { %5284 = vmatpush.bf16.msra.mxu2 %v12685_v39  ;;  %v12108_v60 = vld [vmem:[#allocation8 + $0x40] sm:$0xf]  ;;  %5259 = vmatpush.bf16.msra.mxu0 %v12141_v53  ;;  %v12909_v6 = vor.u32 %v17150_v56, %v12908_v54  ;;  %v2151_v39 = vmax.f32 %v1937_v18, 0.0  ;;  %v18522_v51 = vpack.c.bf16 %v2150_v38, %v2150_v38 }
 0x15c   :  { %v16950_v61 = vld [vmem:[#allocation8 + $0x5c] sm:$0xf0] }
 0x15d   :  { %v12364_v62 = vld [vmem:[#allocation8 + $0x240] sm:$0xf]  ;;  %5297 = vmatpush.bf16.msra.mxu3 %v12941_v52  ;;  %v12109_v8 = vor.u32 %v16950_v61, %v12108_v60  ;;  %5272 = vmatpush.bf16.msra.mxu1 %v12397_v58  ;;  %v18524_v52 = vpack.c.bf16 %v2151_v39, %v2151_v39 }
 0x15e   :  { %v17014_v0 = vld [vmem:[#allocation8 + $0x25c] sm:$0xf0] }
 0x15f   :  { %v12620_v1 = vld [vmem:[#allocation8 + $0x440] sm:$0xf]  ;;  %5285 = vmatpush.bf16.msra.mxu2 %v12653_v59  ;;  %v12365_v11 = vor.u32 %v17014_v0, %v12364_v62  ;;  %5260 = vmatpush.bf16.msra.mxu0 %v12109_v8 }
 0x160   :  { %v17078_v2 = vld [vmem:[#allocation8 + $0x45c] sm:$0xf0] }
 0x161   :  { %v12876_v9 = vld [vmem:[#allocation8 + $0x640] sm:$0xf]  ;;  %v12621_v42 = vor.u32 %v17078_v2, %v12620_v1  ;;  %5298 = vmatpush.bf16.msra.mxu3 %v12909_v6  ;;  %5273 = vmatpush.bf16.msra.mxu1 %v12365_v11  ;;  %v18530_v2 = vld [vmem:[#allocation7] sm:$0xff] }
 0x162   :  { %v17142_v10 = vld [vmem:[#allocation8 + $0x65c] sm:$0xf0]  ;;  %v440_v35 = vperm.slane %v18530_v2, 4 }
 0x163   :  { %v12076_v34 = vld [vmem:[#allocation8] sm:$0xf]  ;;  %v12877_v22 = vor.u32 %v17142_v10, %v12876_v9  ;;  %5286 = vmatpush.bf16.msra.mxu2 %v12621_v42  ;;  %v1949_v11 = vpop.f32.mrf.mxu0 }
 0x164   :  { %v16942_v12 = vld [vmem:[#allocation8 + $0x1c] sm:$0xf0] }
 0x165   :  { %v12332_v13 = vld [vmem:[#allocation8 + $0x200] sm:$0xf]  ;;  %v12077_v23 = vor.u32 %v16942_v12, %v12076_v34  ;;  %5299 = vmatpush.bf16.msra.mxu3 %v12877_v22  ;;  %v1962_v33 = vpop.f32.mrf.mxu1 }
 0x166   :  { %v17006_v14 = vld [vmem:[#allocation8 + $0x21c] sm:$0xf0] }
 0x167   :  { %v12588_v41 = vld [vmem:[#allocation8 + $0x400] sm:$0xf]  ;;  %v12333_v28 = vor.u32 %v17006_v14, %v12332_v13  ;;  %5261 = vmatpush.bf16.msra.mxu0 %v12077_v23  ;;  %v1950_v14 = vadd.f32 %v1949_v11, %v440_v35  ;;  %v16986_v11 = vld [vmem:[#allocation8 + $0x184] sm:$0xf] }
 0x168   :  { %v17070_v15 = vld [vmem:[#allocation8 + $0x41c] sm:$0xf0] }
 0x169   :  { %v13324_v16 = vld [vmem:[#allocation8 + $0x9c0] sm:$0xf]  ;;  %v12589_v29 = vor.u32 %v17070_v15, %v12588_v41  ;;  %5274 = vmatpush.bf16.msra.mxu1 %v12333_v28  ;;  %v1963_v50 = vadd.f32 %v1962_v33, %v1950_v14  ;;  %v17050_v14 = vld [vmem:[#allocation8 + $0x384] sm:$0xf] }
 0x16a   :  { %v17254_v19 = vld [vmem:[#allocation8 + $0x9dc] sm:$0xf0]  ;;  %5262 = vmatmul.bf16.vlgmr.msra.gmra.mxu0 %v18518_v47  ;;  %v12526_v33 = vld [vmem:[#allocation8 + $0x3a0] sm:$0xf0] }
 0x16b   :  { %v13580_v20 = vld [vmem:[#allocation8 + $0xbc0] sm:$0xf]  ;;  %v13325_v31 = vor.u32 %v17254_v19, %v13324_v16  ;;  %5287 = vmatpush.bf16.msra.mxu2 %v12589_v29 }
 0x16c   :  { %v17318_v21 = vld [vmem:[#allocation8 + $0xbdc] sm:$0xf0]  ;;  %5275 = vmatmul.bf16.vlgmr.msra.gmra.mxu1 %v18520_v48 }
 0x16d   :  { %v13836_v24 = vld [vmem:[#allocation8 + $0xdc0] sm:$0xf]  ;;  %v13581_v32 = vor.u32 %v17318_v21, %v13580_v20  ;;  %5306 = vmatpush.bf16.msrb.mxu0 %v13325_v31  ;;  %v1975_v23 = vpop.f32.mrf.mxu2  ;;  %v1951_v31 = vpop.f32.mrf.mxu0 }
 0x16e   :  { %v17382_v25 = vld [vmem:[#allocation8 + $0xddc] sm:$0xf0]  ;;  %5288 = vmatmul.bf16.vlgmr.msra.gmra.mxu2 %v18522_v51  ;;  %v1976_v29 = vadd.f32 %v1975_v23, %v1963_v50  ;;  %v1964_v38 = vpop.f32.mrf.mxu1 }
 0x16f   :  { %v12844_v3 = vld [vmem:[#allocation8 + $0x600] sm:$0xf]  ;;  %v13837_v44 = vor.u32 %v17382_v25, %v13836_v24  ;;  %5319 = vmatpush.bf16.msrb.mxu1 %v13581_v32  ;;  %v1988_v25 = vpop.f32.mrf.mxu3  ;;  %v12206_v38 = vld [vmem:[#allocation8 + $0x120] sm:$0xf0] }
 0x170   :  { %v17134_v30 = vld [vmem:[#allocation8 + $0x61c] sm:$0xf0] }
 0x171   :  { %v13292_v36 = vld [vmem:[#allocation8 + $0x980] sm:$0xf]  ;;  %v12845_v4 = vor.u32 %v17134_v30, %v12844_v3  ;;  %5332 = vmatpush.bf16.msrb.mxu2 %v13837_v44  ;;  %v1989_v44 = vadd.f32 %v1988_v25, %v1976_v29  ;;  %v17042_v25 = vld [vmem:[#allocation8 + $0x344] sm:$0xf] }
 0x172   :  { %v17246_v37 = vld [vmem:[#allocation8 + $0x99c] sm:$0xf0] }
 0x173   :  { %v13548_v40 = vld [vmem:[#allocation8 + $0xb80] sm:$0xf]  ;;  %v13293_v7 = vor.u32 %v17246_v37, %v13292_v36  ;;  %5300 = vmatpush.bf16.msra.mxu3 %v12845_v4 }
 0x174   :  { %v17310_v43 = vld [vmem:[#allocation8 + $0xb9c] sm:$0xf0] }
 0x175   :  { %v13804_v45 = vld [vmem:[#allocation8 + $0xd80] sm:$0xf]  ;;  %v13549_v49 = vor.u32 %v17310_v43, %v13548_v40  ;;  %5307 = vmatpush.bf16.msrb.mxu0 %v13293_v7 }
 0x176   :  { %v17374_v46 = vld [vmem:[#allocation8 + $0xd9c] sm:$0xf0]  ;;  %5301 = vmatmul.bf16.vlgmr.msra.gmra.mxu3 %v18524_v52 }
 0x177   :  { %v13260_v27 = vld [vmem:[#allocation8 + $0x940] sm:$0xf]  ;;  %v13805_v57 = vor.u32 %v17374_v46, %v13804_v45  ;;  %5320 = vmatpush.bf16.msrb.mxu1 %v13549_v49 }
 0x178   :  { %v17238_v53 = vld [vmem:[#allocation8 + $0x95c] sm:$0xf0] }
 0x179   :  { %v13516_v54 = vld [vmem:[#allocation8 + $0xb40] sm:$0xf]  ;;  %v13261_v60 = vor.u32 %v17238_v53, %v13260_v27  ;;  %5333 = vmatpush.bf16.msrb.mxu2 %v13805_v57  ;;  %v16994_v53 = vld [vmem:[#allocation8 + $0x1c4] sm:$0xf] }
 0x17a   :  { %v17302_v56 = vld [vmem:[#allocation8 + $0xb5c] sm:$0xf0] }
 0x17b   :  { %v13772_v58 = vld [vmem:[#allocation8 + $0xd40] sm:$0xf]  ;;  %v13517_v61 = vor.u32 %v17302_v56, %v13516_v54  ;;  %5308 = vmatpush.bf16.msrb.mxu0 %v13261_v60  ;;  %v1977_v54 = vpop.f32.mrf.mxu2  ;;  %v17058_v60 = vld [vmem:[#allocation8 + $0x3c4] sm:$0xf] }
 0x17c   :  { %v17366_v59 = vld [vmem:[#allocation8 + $0xd5c] sm:$0xf0] }
 0x17d   :  { %v13228_v62 = vld [vmem:[#allocation8 + $0x900] sm:$0xf]  ;;  %v13773_v5 = vor.u32 %v17366_v59, %v13772_v58  ;;  %5321 = vmatpush.bf16.msrb.mxu1 %v13517_v61  ;;  %v12302_v59 = vld [vmem:[#allocation8 + $0x1e0] sm:$0xf0] }
 0x17e   :  { %v17230_v63 = vld [vmem:[#allocation8 + $0x91c] sm:$0xf0]  ;;  %v12558_v61 = vld [vmem:[#allocation8 + $0x3e0] sm:$0xf0] }
 0x17f   :  { %v13484_v0 = vld [vmem:[#allocation8 + $0xb00] sm:$0xf]  ;;  %v13229_v9 = vor.u32 %v17230_v63, %v13228_v62  ;;  %5334 = vmatpush.bf16.msrb.mxu2 %v13773_v5  ;;  %v1990_v62 = vpop.f32.mrf.mxu3 }
 0x180   :  { %v17294_v1 = vld [vmem:[#allocation8 + $0xb1c] sm:$0xf0] }
 0x181   :  { %v13740_v6 = vld [vmem:[#allocation8 + $0xd00] sm:$0xf]  ;;  %v13485_v10 = vor.u32 %v17294_v1, %v13484_v0  ;;  %5309 = vmatpush.bf16.msrb.mxu0 %v13229_v9  ;;  %v2152_v0 = vmax.f32 %v1989_v44, 0.0  ;;  %v12814_v9 = vld [vmem:[#allocation8 + $0x5e0] sm:$0xf0]  ;;  %v441_v44 = vperm.slane %v18530_v2, 5 }
 0x182   :  { %v17358_v8 = vld [vmem:[#allocation8 + $0xd1c] sm:$0xf0] }
 0x183   :  { %v13196_v34 = vld [vmem:[#allocation8 + $0x8c0] sm:$0xf]  ;;  %v13741_v41 = vor.u32 %v17358_v8, %v13740_v6  ;;  %5322 = vmatpush.bf16.msrb.mxu1 %v13485_v10  ;;  %v17122_v8 = vld [vmem:[#allocation8 + $0x5c4] sm:$0xf]  ;;  %v12305_v10 = vor.u32 %v16994_v53, %v12302_v59 }
 0x184   :  { %v17222_v42 = vld [vmem:[#allocation8 + $0x8dc] sm:$0xf0]  ;;  %v12817_v50 = vor.u32 %v17122_v8, %v12814_v9  ;;  %v12430_v59 = vld [vmem:[#allocation8 + $0x2e0] sm:$0xf0] }
 0x185   :  { %v13452_v12 = vld [vmem:[#allocation8 + $0xac0] sm:$0xf]  ;;  %v13197_v17 = vor.u32 %v17222_v42, %v13196_v34  ;;  %5335 = vmatpush.bf16.msrb.mxu2 %v13741_v41  ;;  %v12561_v34 = vor.u32 %v17058_v60, %v12558_v61  ;;  %v2014_v62 = vpop.f32.mrf.mxu1  ;;  %v16954_v8 = vld [vmem:[#allocation8 + $0x84] sm:$0xf] }
 0x186   :  { %v17286_v13 = vld [vmem:[#allocation8 + $0xadc] sm:$0xf0] }
 0x187   :  { %v13708_v15 = vld [vmem:[#allocation8 + $0xcc0] sm:$0xf]  ;;  %v13453_v18 = vor.u32 %v17286_v13, %v13452_v12  ;;  %5310 = vmatpush.bf16.msrb.mxu0 %v13197_v17  ;;  %v12270_v13 = vld [vmem:[#allocation8 + $0x1a0] sm:$0xf0] }
 0x188   :  { %v17350_v16 = vld [vmem:[#allocation8 + $0xcdc] sm:$0xf0]  ;;  %v17114_v17 = vld [vmem:[#allocation8 + $0x584] sm:$0xf] }
 0x189   :  { %v13164_v19 = vld [vmem:[#allocation8 + $0x880] sm:$0xf]  ;;  %v13709_v24 = vor.u32 %v17350_v16, %v13708_v15  ;;  %5323 = vmatpush.bf16.msrb.mxu1 %v13453_v18  ;;  %v18533_v16 = vpack.c.bf16 %v2152_v0, %v2152_v0  ;;  %v12782_v18 = vld [vmem:[#allocation8 + $0x5a0] sm:$0xf0] }
 0x18a   :  { %v17214_v20 = vld [vmem:[#allocation8 + $0x89c] sm:$0xf0]  ;;  %v12785_v29 = vor.u32 %v17114_v17, %v12782_v18  ;;  %v17090_v0 = vld [vmem:[#allocation8 + $0x4c4] sm:$0xf] }
 0x18b   :  { %v13420_v21 = vld [vmem:[#allocation8 + $0xa80] sm:$0xf]  ;;  %v13165_v3 = vor.u32 %v17214_v20, %v13164_v19  ;;  %5336 = vmatpush.bf16.msrb.mxu2 %v13709_v24  ;;  %v12273_v19 = vor.u32 %v16986_v11, %v12270_v13  ;;  %v12529_v20 = vor.u32 %v17050_v14, %v12526_v33  ;;  %v12238_v24 = vld [vmem:[#allocation8 + $0x160] sm:$0xf0] }
 0x18c   :  { %v17278_v22 = vld [vmem:[#allocation8 + $0xa9c] sm:$0xf0]  ;;  %v17018_v11 = vld [vmem:[#allocation8 + $0x284] sm:$0xf] }
 0x18d   :  { %v13676_v26 = vld [vmem:[#allocation8 + $0xc80] sm:$0xf]  ;;  %v13421_v30 = vor.u32 %v17278_v22, %v13420_v21  ;;  %5311 = vmatpush.bf16.msrb.mxu0 %v13165_v3  ;;  %v16978_v21 = vld [vmem:[#allocation8 + $0x144] sm:$0xf]  ;;  %v2027_v13 = vpop.f32.mrf.mxu2 }
 0x18e   :  { %v17342_v28 = vld [vmem:[#allocation8 + $0xc9c] sm:$0xf0]  ;;  %v17106_v3 = vld [vmem:[#allocation8 + $0x544] sm:$0xf] }
 0x18f   :  { %v13132_v55 = vld [vmem:[#allocation8 + $0x840] sm:$0xf]  ;;  %v13677_v39 = vor.u32 %v17342_v28, %v13676_v26  ;;  %5324 = vmatpush.bf16.msrb.mxu1 %v13421_v30  ;;  %v12494_v26 = vld [vmem:[#allocation8 + $0x360] sm:$0xf0] }
 0x190   :  { %v17206_v32 = vld [vmem:[#allocation8 + $0x85c] sm:$0xf0]  ;;  %v12750_v30 = vld [vmem:[#allocation8 + $0x560] sm:$0xf0]  ;;  %v12497_v31 = vor.u32 %v17042_v25, %v12494_v26 }
 0x191   :  { %v13388_v36 = vld [vmem:[#allocation8 + $0xa40] sm:$0xf]  ;;  %v13133_v45 = vor.u32 %v17206_v32, %v13132_v55  ;;  %5337 = vmatpush.bf16.msrb.mxu2 %v13677_v39  ;;  %v12241_v55 = vor.u32 %v16978_v21, %v12238_v24  ;;  %v16970_v32 = vld [vmem:[#allocation8 + $0x104] sm:$0xf] }
 0x192   :  { %v17270_v37 = vld [vmem:[#allocation8 + $0xa5c] sm:$0xf0]  ;;  %v17034_v39 = vld [vmem:[#allocation8 + $0x304] sm:$0xf] }
 0x193   :  { %v13644_v40 = vld [vmem:[#allocation8 + $0xc40] sm:$0xf]  ;;  %v13389_v46 = vor.u32 %v17270_v37, %v13388_v36  ;;  %5312 = vmatpush.bf16.msrb.mxu0 %v13133_v45  ;;  %v17098_v45 = vld [vmem:[#allocation8 + $0x504] sm:$0xf] }
 0x194   :  { %v17334_v43 = vld [vmem:[#allocation8 + $0xc5c] sm:$0xf0]  ;;  %v17010_v24 = vld [vmem:[#allocation8 + $0x244] sm:$0xf] }
 0x195   :  { %v13100_v4 = vld [vmem:[#allocation8 + $0x800] sm:$0xf]  ;;  %v13645_v56 = vor.u32 %v17334_v43, %v13644_v40  ;;  %5325 = vmatpush.bf16.msrb.mxu1 %v13389_v46  ;;  %v12462_v40 = vld [vmem:[#allocation8 + $0x320] sm:$0xf0] }
 0x196   :  { %v17198_v7 = vld [vmem:[#allocation8 + $0x81c] sm:$0xf0]  ;;  %v12718_v46 = vld [vmem:[#allocation8 + $0x520] sm:$0xf0] }
 0x197   :  { %v13356_v49 = vld [vmem:[#allocation8 + $0xa00] sm:$0xf]  ;;  %v13101_v5 = vor.u32 %v17198_v7, %v13100_v4  ;;  %5338 = vmatpush.bf16.msrb.mxu2 %v13645_v56  ;;  %v12753_v4 = vor.u32 %v17106_v3, %v12750_v30  ;;  %v12209_v7 = vor.u32 %v16970_v32, %v12206_v38  ;;  %v2001_v56 = vpop.f32.mrf.mxu0  ;;  %v12366_v25 = vld [vmem:[#allocation8 + $0x260] sm:$0xf0] }
 0x198   :  { %v17262_v27 = vld [vmem:[#allocation8 + $0xa1c] sm:$0xf0]  ;;  %v2002_v61 = vadd.f32 %v2001_v56, %v441_v44  ;;  %v17002_v32 = vld [vmem:[#allocation8 + $0x204] sm:$0xf] }
 0x199   :  { %v14092_v57 = vld [vmem:[#allocation8 + $0xfc0] sm:$0xf]  ;;  %v13357_v6 = vor.u32 %v17262_v27, %v13356_v49  ;;  %5313 = vmatpush.bf16.msrb.mxu0 %v13101_v5  ;;  %v12465_v49 = vor.u32 %v17034_v39, %v12462_v40  ;;  %v16962_v27 = vld [vmem:[#allocation8 + $0xc4] sm:$0xf]  ;;  %v12369_v39 = vor.u32 %v17010_v24, %v12366_v25 }
 0x19a   :  { %v17446_v58 = vld [vmem:[#allocation8 + $0xfdc] sm:$0xf0]  ;;  %v12334_v40 = vld [vmem:[#allocation8 + $0x220] sm:$0xf0] }
 0x19b   :  { %v14093_v63 = vor.u32 %v17446_v58, %v14092_v57  ;;  %v13612_v1 = vld [vmem:[#allocation8 + $0xc00] sm:$0xf]  ;;  %5326 = vmatpush.bf16.msrb.mxu1 %v13357_v6  ;;  %v12174_v57 = vld [vmem:[#allocation8 + $0xe0] sm:$0xf0] }
 0x19c   :  { %v17326_v35 = vld [vmem:[#allocation8 + $0xc1c] sm:$0xf0]  ;;  %5314 = vmatmul.bf16.vlgmr.msrb.gmra.mxu0 %v18533_v16  ;;  %v17026_v58 = vld [vmem:[#allocation8 + $0x2c4] sm:$0xf]  ;;  %v12177_v5 = vor.u32 %v16962_v27, %v12174_v57  ;;  %v2029_v27 = vpop.f32.mrf.mxu2 }
 0x19d   :  { %5345 = vmatpush.bf16.msrb.mxu3 %v14093_v63  ;;  %v14060_v42 = vld [vmem:[#allocation8 + $0xf80] sm:$0xf]  ;;  %v13613_v41 = vor.u32 %v17326_v35, %v13612_v1  ;;  %5358 = vmatpush.bf16.msra.mxu0 %v12305_v10  ;;  %v12721_v63 = vor.u32 %v17098_v45, %v12718_v46  ;;  %v12686_v1 = vld [vmem:[#allocation8 + $0x4e0] sm:$0xf0]  ;;  %v2015_v35 = vadd.f32 %v2014_v62, %v2002_v61 }
 0x19e   :  { %v17438_v12 = vld [vmem:[#allocation8 + $0xf9c] sm:$0xf0]  ;;  %v12433_v6 = vor.u32 %v17026_v58, %v12430_v59  ;;  %v12689_v14 = vor.u32 %v17090_v0, %v12686_v1  ;;  %v13326_v45 = vld [vmem:[#allocation8 + $0x9e0] sm:$0xf0] }
 0x19f   :  { %v14061_v15 = vor.u32 %v17438_v12, %v14060_v42  ;;  %5371 = vmatpush.bf16.msra.mxu1 %v12561_v34  ;;  %v14028_v22 = vld [vmem:[#allocation8 + $0xf40] sm:$0xf]  ;;  %5339 = vmatpush.bf16.msrb.mxu2 %v13613_v41  ;;  %v12142_v34 = vld [vmem:[#allocation8 + $0xa0] sm:$0xf0]  ;;  %v2028_v33 = vadd.f32 %v2027_v13, %v2015_v35  ;;  %v2040_v41 = vpop.f32.mrf.mxu3  ;;  %v2003_v26 = vpop.f32.mrf.mxu0 }
 0x1a0   :  { %v17430_v23 = vld [vmem:[#allocation8 + $0xf5c] sm:$0xf0]  ;;  %v12398_v42 = vld [vmem:[#allocation8 + $0x2a0] sm:$0xf0]  ;;  %v12145_v17 = vor.u32 %v16954_v8, %v12142_v34 }
 0x1a1   :  { %5346 = vmatpush.bf16.msrb.mxu3 %v14061_v15  ;;  %v14029_v28 = vor.u32 %v17430_v23, %v14028_v22  ;;  %5359 = vmatpush.bf16.msra.mxu0 %v12273_v19  ;;  %v13996_v36 = vld [vmem:[#allocation8 + $0xf00] sm:$0xf]  ;;  %v17082_v15 = vld [vmem:[#allocation8 + $0x484] sm:$0xf]  ;;  %v12401_v18 = vor.u32 %v17018_v11, %v12398_v42  ;;  %v2041_v22 = vadd.f32 %v2040_v41, %v2028_v33 }
 0x1a2   :  { %v17422_v37 = vld [vmem:[#allocation8 + $0xf1c] sm:$0xf0]  ;;  %v16946_v19 = vld [vmem:[#allocation8 + $0x44] sm:$0xf] }
 0x1a3   :  { %5384 = vmatpush.bf16.msra.mxu2 %v12817_v50  ;;  %5372 = vmatpush.bf16.msra.mxu1 %v12529_v20  ;;  %v13997_v43 = vor.u32 %v17422_v37, %v13996_v36  ;;  %v13964_v53 = vld [vmem:[#allocation8 + $0xec0] sm:$0xf]  ;;  %v12654_v50 = vld [vmem:[#allocation8 + $0x4a0] sm:$0xf0]  ;;  %v2153_v30 = vmax.f32 %v2041_v22, 0.0 }
 0x1a4   :  { %v17414_v54 = vld [vmem:[#allocation8 + $0xedc] sm:$0xf0]  ;;  %v12110_v23 = vld [vmem:[#allocation8 + $0x60] sm:$0xf0]  ;;  %v12657_v3 = vor.u32 %v17082_v15, %v12654_v50 }
 0x1a5   :  { %5347 = vmatpush.bf16.msrb.mxu3 %v14029_v28  ;;  %5360 = vmatpush.bf16.msra.mxu0 %v12241_v55  ;;  %v13965_v60 = vor.u32 %v17414_v54, %v13964_v53  ;;  %v13932_v9 = vld [vmem:[#allocation8 + $0xe80] sm:$0xf]  ;;  %v16938_v55 = vld [vmem:[#allocation8 + $0x4] sm:$0xf]  ;;  %v12113_v38 = vor.u32 %v16946_v19, %v12110_v23 }
 0x1a6   :  { %v17406_v10 = vld [vmem:[#allocation8 + $0xe9c] sm:$0xf0]  ;;  %v17074_v36 = vld [vmem:[#allocation8 + $0x444] sm:$0xf] }
 0x1a7   :  { %5385 = vmatpush.bf16.msra.mxu2 %v12785_v29  ;;  %5373 = vmatpush.bf16.msra.mxu1 %v12497_v31  ;;  %v13933_v12 = vor.u32 %v17406_v10, %v13932_v9  ;;  %v13900_v20 = vld [vmem:[#allocation8 + $0xe40] sm:$0xf]  ;;  %v2016_v29 = vpop.f32.mrf.mxu1  ;;  %v12078_v31 = vld [vmem:[#allocation8 + $0x20] sm:$0xf0]  ;;  %v2042_v58 = vpop.f32.mrf.mxu3 }
 0x1a8   :  { %v17398_v21 = vld [vmem:[#allocation8 + $0xe5c] sm:$0xf0]  ;;  %v12622_v37 = vld [vmem:[#allocation8 + $0x460] sm:$0xf0]  ;;  %v12081_v62 = vor.u32 %v16938_v55, %v12078_v31 }
 0x1a9   :  { %5348 = vmatpush.bf16.msrb.mxu3 %v13997_v43  ;;  %5361 = vmatpush.bf16.msra.mxu0 %v12209_v7  ;;  %v13901_v28 = vor.u32 %v17398_v21, %v13900_v20  ;;  %v17250_v43 = vld [vmem:[#allocation8 + $0x9c4] sm:$0xf]  ;;  %v13868_v44 = vld [vmem:[#allocation8 + $0xe00] sm:$0xf]  ;;  %v12625_v53 = vor.u32 %v17074_v36, %v12622_v37 }
 0x1aa   :  { %v17314_v46 = vld [vmem:[#allocation8 + $0xbc4] sm:$0xf]  ;;  %v17390_v7 = vld [vmem:[#allocation8 + $0xe1c] sm:$0xf0]  ;;  %v13329_v0 = vor.u32 %v17250_v43, %v13326_v45 }
 0x1ab   :  { %5386 = vmatpush.bf16.msra.mxu2 %v12753_v4  ;;  %5374 = vmatpush.bf16.msra.mxu1 %v12465_v49  ;;  %v18537_v4 = vpack.c.bf16 %v2153_v30, %v2153_v30  ;;  %v13582_v49 = vld [vmem:[#allocation8 + $0xbe0] sm:$0xf0]  ;;  %v13869_v54 = vor.u32 %v17390_v7, %v13868_v44 }
 0x1ac   :  { %v17186_v56 = vld [vmem:[#allocation8 + $0x7c4] sm:$0xf]  ;;  %v13585_v1 = vor.u32 %v17314_v46, %v13582_v49 }
 0x1ad   :  { %5349 = vmatpush.bf16.msrb.mxu3 %v13965_v60  ;;  %5362 = vmatpush.bf16.msra.mxu0 %v12177_v5  ;;  %v13070_v57 = vld [vmem:[#allocation8 + $0x7e0] sm:$0xf0]  ;;  %v2079_v58 = vpop.f32.mrf.mxu2 }
 0x1ae   :  { %5327 = vmatmul.bf16.vlgmr.msrb.gmra.mxu1 %v18537_v4  ;;  %v17066_v59 = vld [vmem:[#allocation8 + $0x404] sm:$0xf]  ;;  %v13073_v61 = vor.u32 %v17186_v56, %v13070_v57 }
 0x1af   :  { %5387 = vmatpush.bf16.msra.mxu2 %v12721_v63  ;;  %5375 = vmatpush.bf16.msra.mxu1 %v12433_v6  ;;  %v12590_v60 = vld [vmem:[#allocation8 + $0x420] sm:$0xf0]  ;;  %v12337_v63 = vor.u32 %v17002_v32, %v12334_v40  ;;  %v2066_v43 = vpop.f32.mrf.mxu1 }
 0x1b0   :  { %v17242_v35 = vld [vmem:[#allocation8 + $0x984] sm:$0xf]  ;;  %v12593_v9 = vor.u32 %v17066_v59, %v12590_v60  ;;  %v2092_v60 = vpop.f32.mrf.mxu3 }
 0x1b1   :  { %5350 = vmatpush.bf16.msrb.mxu3 %v13933_v12  ;;  %5363 = vmatpush.bf16.msra.mxu0 %v12145_v17  ;;  %v13294_v5 = vld [vmem:[#allocation8 + $0x9a0] sm:$0xf0] }
 0x1b2   :  { %v17306_v6 = vld [vmem:[#allocation8 + $0xb84] sm:$0xf]  ;;  %v13297_v42 = vor.u32 %v17242_v35, %v13294_v5 }
 0x1b3   :  { %5388 = vmatpush.bf16.msra.mxu2 %v12689_v14  ;;  %5376 = vmatpush.bf16.msra.mxu1 %v12401_v18  ;;  %v13550_v8 = vld [vmem:[#allocation8 + $0xba0] sm:$0xf0] }
 0x1b4   :  { %v17178_v10 = vld [vmem:[#allocation8 + $0x784] sm:$0xf]  ;;  %v13553_v12 = vor.u32 %v17306_v6, %v13550_v8 }
 0x1b5   :  { %5351 = vmatpush.bf16.msrb.mxu3 %v13901_v28  ;;  %5364 = vmatpush.bf16.msra.mxu0 %v12113_v38  ;;  %v13038_v34 = vld [vmem:[#allocation8 + $0x7a0] sm:$0xf0]  ;;  %v442_v28 = vperm.slane %v18530_v2, 6 }
 0x1b6   :  { %v13041_v11 = vor.u32 %v17178_v10, %v13038_v34  ;;  %v17234_v13 = vld [vmem:[#allocation8 + $0x944] sm:$0xf] }
 0x1b7   :  { %5389 = vmatpush.bf16.msra.mxu2 %v12657_v3  ;;  %5377 = vmatpush.bf16.msra.mxu1 %v12369_v39  ;;  %v17170_v14 = vld [vmem:[#allocation8 + $0x744] sm:$0xf]  ;;  %v2053_v39 = vpop.f32.mrf.mxu0 }
 0x1b8   :  { %v13006_v33 = vld [vmem:[#allocation8 + $0x760] sm:$0xf0]  ;;  %v2054_v40 = vadd.f32 %v2053_v39, %v442_v28  ;;  %v12532_v39 = vld [vmem:[#allocation8 + $0x388] sm:$0xf] }
 0x1b9   :  { %5352 = vmatpush.bf16.msrb.mxu3 %v13869_v54  ;;  %5365 = vmatpush.bf16.msra.mxu0 %v12081_v62  ;;  %v13262_v41 = vld [vmem:[#allocation8 + $0x960] sm:$0xf0]  ;;  %v13009_v17 = vor.u32 %v17170_v14, %v13006_v33 }
 0x1ba   :  { %v17298_v15 = vld [vmem:[#allocation8 + $0xb44] sm:$0xf]  ;;  %v13265_v18 = vor.u32 %v17234_v13, %v13262_v41  ;;  %v2067_v27 = vadd.f32 %v2066_v43, %v2054_v40  ;;  %v17055_v40 = vld [vmem:[#allocation8 + $0x3a4] sm:$0xf0] }
 0x1bb   :  { %5390 = vmatpush.bf16.msra.mxu2 %v12625_v53  ;;  %5378 = vmatpush.bf16.msra.mxu1 %v12337_v63  ;;  %v13518_v50 = vld [vmem:[#allocation8 + $0xb60] sm:$0xf0] }
 0x1bc   :  { %5366 = vmatmul.bf16.vlgmr.msra.gmra.mxu0 %v18518_v47  ;;  %v13521_v19 = vor.u32 %v17298_v15, %v13518_v50  ;;  %v17226_v20 = vld [vmem:[#allocation8 + $0x904] sm:$0xf]  ;;  %v2080_v59 = vadd.f32 %v2079_v58, %v2067_v27  ;;  %v16983_v27 = vld [vmem:[#allocation8 + $0x164] sm:$0xf0] }
 0x1bd   :  { %5397 = vmatpush.bf16.msra.mxu3 %v13073_v61  ;;  %5410 = vmatpush.bf16.msrb.mxu0 %v13329_v0  ;;  %v17162_v21 = vld [vmem:[#allocation8 + $0x704] sm:$0xf] }
 0x1be   :  { %v12974_v22 = vld [vmem:[#allocation8 + $0x720] sm:$0xf0]  ;;  %5379 = vmatmul.bf16.vlgmr.msra.gmra.mxu1 %v18520_v48 }
 0x1bf   :  { %5423 = vmatpush.bf16.msrb.mxu1 %v13585_v1  ;;  %5391 = vmatpush.bf16.msra.mxu2 %v12593_v9  ;;  %v13230_v23 = vld [vmem:[#allocation8 + $0x920] sm:$0xf0]  ;;  %v12977_v26 = vor.u32 %v17162_v21, %v12974_v22  ;;  %v2093_v9 = vadd.f32 %v2092_v60, %v2080_v59  ;;  %v2055_v10 = vpop.f32.mrf.mxu0  ;;  %v16999_v22 = vld [vmem:[#allocation8 + $0x1e4] sm:$0xf0] }
 0x1c0   :  { %v17290_v24 = vld [vmem:[#allocation8 + $0xb04] sm:$0xf]  ;;  %v13233_v29 = vor.u32 %v17226_v20, %v13230_v23  ;;  %v12564_v23 = vld [vmem:[#allocation8 + $0x3c8] sm:$0xf] }
 0x1c1   :  { %5398 = vmatpush.bf16.msra.mxu3 %v13041_v11  ;;  %5411 = vmatpush.bf16.msrb.mxu0 %v13297_v42  ;;  %v13486_v25 = vld [vmem:[#allocation8 + $0xb20] sm:$0xf0]  ;;  %v2068_v42 = vpop.f32.mrf.mxu1  ;;  %v2154_v14 = vmax.f32 %v2093_v9, 0.0  ;;  %v12212_v60 = vld [vmem:[#allocation8 + $0x108] sm:$0xf] }
 0x1c2   :  { %v13489_v3 = vor.u32 %v17290_v24, %v13486_v25  ;;  %v17218_v30 = vld [vmem:[#allocation8 + $0x8c4] sm:$0xf]  ;;  %v17063_v24 = vld [vmem:[#allocation8 + $0x3e4] sm:$0xf0] }
 0x1c3   :  { %5424 = vmatpush.bf16.msrb.mxu1 %v13553_v12  ;;  %v17154_v55 = vld [vmem:[#allocation8 + $0x6c4] sm:$0xf]  ;;  %v18543_v20 = vpack.c.bf16 %v2154_v14, %v2154_v14  ;;  %v12180_v9 = vld [vmem:[#allocation8 + $0xc8] sm:$0xf] }
 0x1c4   :  { %v12942_v31 = vld [vmem:[#allocation8 + $0x6e0] sm:$0xf0]  ;;  %v16967_v10 = vld [vmem:[#allocation8 + $0xe4] sm:$0xf0] }
 0x1c5   :  { %5399 = vmatpush.bf16.msra.mxu3 %v13009_v17  ;;  %5412 = vmatpush.bf16.msrb.mxu0 %v13265_v18  ;;  %v13198_v32 = vld [vmem:[#allocation8 + $0x8e0] sm:$0xf0]  ;;  %v12945_v38 = vor.u32 %v17154_v55, %v12942_v31  ;;  %v12308_v18 = vld [vmem:[#allocation8 + $0x1c8] sm:$0xf]  ;;  %v2094_v55 = vpop.f32.mrf.mxu3 }
 0x1c6   :  { %v17282_v36 = vld [vmem:[#allocation8 + $0xac4] sm:$0xf]  ;;  %v13201_v44 = vor.u32 %v17218_v30, %v13198_v32  ;;  %5340 = vmatmul.bf16.vlgmr.msrb.gmra.mxu2 %v18543_v20  ;;  %v12309_v31 = vor.u32 %v16999_v22, %v12308_v18  ;;  %v12565_v32 = vor.u32 %v17063_v24, %v12564_v23  ;;  %v12404_v18 = vld [vmem:[#allocation8 + $0x288] sm:$0xf] }
 0x1c7   :  { %5425 = vmatpush.bf16.msrb.mxu1 %v13521_v19  ;;  %v13454_v37 = vld [vmem:[#allocation8 + $0xae0] sm:$0xf0]  ;;  %v2105_v42 = vpop.f32.mrf.mxu0  ;;  %v12372_v55 = vld [vmem:[#allocation8 + $0x248] sm:$0xf] }
 0x1c8   :  { %v13457_v45 = vor.u32 %v17282_v36, %v13454_v37  ;;  %v17210_v46 = vld [vmem:[#allocation8 + $0x884] sm:$0xf]  ;;  %v12276_v36 = vld [vmem:[#allocation8 + $0x188] sm:$0xf] }
 0x1c9   :  { %5400 = vmatpush.bf16.msra.mxu3 %v12977_v26  ;;  %5413 = vmatpush.bf16.msrb.mxu0 %v13233_v29  ;;  %v17146_v7 = vld [vmem:[#allocation8 + $0x684] sm:$0xf]  ;;  %v2081_v26 = vpop.f32.mrf.mxu2 }
 0x1ca   :  { %v12910_v49 = vld [vmem:[#allocation8 + $0x6a0] sm:$0xf0] }
 0x1cb   :  { %5426 = vmatpush.bf16.msrb.mxu1 %v13489_v3  ;;  %v13166_v53 = vld [vmem:[#allocation8 + $0x8a0] sm:$0xf0]  ;;  %v12913_v57 = vor.u32 %v17146_v7, %v12910_v49  ;;  %v12244_v7 = vld [vmem:[#allocation8 + $0x148] sm:$0xf] }
 0x1cc   :  { %v17274_v54 = vld [vmem:[#allocation8 + $0xa84] sm:$0xf]  ;;  %v13169_v61 = vor.u32 %v17210_v46, %v13166_v53  ;;  %v12533_v46 = vor.u32 %v17055_v40, %v12532_v39  ;;  %v12500_v53 = vld [vmem:[#allocation8 + $0x348] sm:$0xf]  ;;  %v12245_v58 = vor.u32 %v16983_v27, %v12244_v7 }
 0x1cd   :  { %v13422_v56 = vld [vmem:[#allocation8 + $0xaa0] sm:$0xf0]  ;;  %5401 = vmatpush.bf16.msra.mxu3 %v12945_v38  ;;  %5414 = vmatpush.bf16.msrb.mxu0 %v13201_v44  ;;  %v16991_v38 = vld [vmem:[#allocation8 + $0x1a4] sm:$0xf0] }
 0x1ce   :  { %v13425_v62 = vor.u32 %v17274_v54, %v13422_v56  ;;  %v17202_v63 = vld [vmem:[#allocation8 + $0x844] sm:$0xf]  ;;  %v17047_v54 = vld [vmem:[#allocation8 + $0x364] sm:$0xf0] }
 0x1cf   :  { %5427 = vmatpush.bf16.msrb.mxu1 %v13457_v45  ;;  %v17138_v0 = vld [vmem:[#allocation8 + $0x644] sm:$0xf]  ;;  %v12277_v45 = vor.u32 %v16991_v38, %v12276_v36  ;;  %v12501_v59 = vor.u32 %v17047_v54, %v12500_v53  ;;  %v2107_v36 = vpop.f32.mrf.mxu0  ;;  %v17127_v27 = vld [vmem:[#allocation8 + $0x5e4] sm:$0xf0] }
 0x1d0   :  { %v12878_v1 = vld [vmem:[#allocation8 + $0x660] sm:$0xf0]  ;;  %v12084_v53 = vld [vmem:[#allocation8 + $0x8] sm:$0xf] }
 0x1d1   :  { %v13134_v35 = vld [vmem:[#allocation8 + $0x860] sm:$0xf0]  ;;  %5402 = vmatpush.bf16.msra.mxu3 %v12913_v57  ;;  %v12881_v8 = vor.u32 %v17138_v0, %v12878_v1  ;;  %5415 = vmatpush.bf16.msrb.mxu0 %v13169_v61  ;;  %v17039_v0 = vld [vmem:[#allocation8 + $0x324] sm:$0xf0]  ;;  %v443_v1 = vperm.slane %v18530_v2, 7  ;;  %v12181_v2 = vor.u32 %v16967_v10, %v12180_v9 }
 0x1d2   :  { %v17266_v5 = vld [vmem:[#allocation8 + $0xa44] sm:$0xf]  ;;  %v13137_v33 = vor.u32 %v17202_v63, %v13134_v35  ;;  %v12468_v63 = vld [vmem:[#allocation8 + $0x308] sm:$0xf] }
 0x1d3   :  { %v13390_v6 = vld [vmem:[#allocation8 + $0xa60] sm:$0xf0]  ;;  %5428 = vmatpush.bf16.msrb.mxu1 %v13425_v62  ;;  %v16975_v62 = vld [vmem:[#allocation8 + $0x124] sm:$0xf0]  ;;  %v2106_v14 = vadd.f32 %v2105_v42, %v443_v1 }
 0x1d4   :  { %v17378_v34 = vld [vmem:[#allocation8 + $0xdc4] sm:$0xf]  ;;  %v13393_v41 = vor.u32 %v17266_v5, %v13390_v6  ;;  %v12213_v6 = vor.u32 %v16975_v62, %v12212_v60  ;;  %v16943_v54 = vld [vmem:[#allocation8 + $0x24] sm:$0xf0] }
 0x1d5   :  { %v13838_v11 = vld [vmem:[#allocation8 + $0xde0] sm:$0xf0]  ;;  %5403 = vmatpush.bf16.msra.mxu3 %v12881_v8  ;;  %5416 = vmatpush.bf16.msrb.mxu0 %v13137_v33  ;;  %v12469_v8 = vor.u32 %v17039_v0, %v12468_v63  ;;  %v13332_v60 = vld [vmem:[#allocation8 + $0x9c8] sm:$0xf] }
 0x1d6   :  { %v17194_v12 = vld [vmem:[#allocation8 + $0x804] sm:$0xf]  ;;  %v13841_v21 = vor.u32 %v17378_v34, %v13838_v11  ;;  %v12436_v34 = vld [vmem:[#allocation8 + $0x2c8] sm:$0xf]  ;;  %5392 = vmatmul.bf16.vlgmr.msra.gmra.mxu2 %v18522_v51 }
 0x1d7   :  { %v13102_v13 = vld [vmem:[#allocation8 + $0x820] sm:$0xf0]  ;;  %5429 = vmatpush.bf16.msrb.mxu1 %v13393_v41  ;;  %v17031_v11 = vld [vmem:[#allocation8 + $0x2e4] sm:$0xf0] }
 0x1d8   :  { %v17258_v15 = vld [vmem:[#allocation8 + $0xa04] sm:$0xf]  ;;  %v13105_v3 = vor.u32 %v17194_v12, %v13102_v13  ;;  %5436 = vmatpush.bf16.msrb.mxu2 %v13841_v21  ;;  %v2118_v12 = vpop.f32.mrf.mxu1  ;;  %v13588_v0 = vld [vmem:[#allocation8 + $0xbc8] sm:$0xf] }
 0x1d9   :  { %v17130_v50 = vld [vmem:[#allocation8 + $0x604] sm:$0xf]  ;;  %v2119_v21 = vadd.f32 %v2118_v12, %v2106_v14  ;;  %v17319_v1 = vld [vmem:[#allocation8 + $0xbe4] sm:$0xf0] }
 0x1da   :  { %v13358_v17 = vld [vmem:[#allocation8 + $0xa20] sm:$0xf0]  ;;  %5417 = vmatpush.bf16.msrb.mxu0 %v13105_v3  ;;  %v2144_v3 = vpop.f32.mrf.mxu3  ;;  %v12788_v10 = vld [vmem:[#allocation8 + $0x588] sm:$0xf] }
 0x1db   :  { %v12846_v19 = vld [vmem:[#allocation8 + $0x620] sm:$0xf0]  ;;  %v13361_v30 = vor.u32 %v17258_v15, %v13358_v17  ;;  %v12437_v15 = vor.u32 %v17031_v11, %v12436_v34  ;;  %v16959_v17 = vld [vmem:[#allocation8 + $0xa4] sm:$0xf0] }
 0x1dc   :  { %v12849_v25 = vor.u32 %v17130_v50, %v12846_v19  ;;  %v17370_v28 = vld [vmem:[#allocation8 + $0xd84] sm:$0xf]  ;;  %v12148_v50 = vld [vmem:[#allocation8 + $0x88] sm:$0xf] }
 0x1dd   :  { %v13806_v29 = vld [vmem:[#allocation8 + $0xda0] sm:$0xf0]  ;;  %5430 = vmatpush.bf16.msrb.mxu1 %v13361_v30  ;;  %5418 = vmatmul.bf16.vlgmr.msrb.gmra.mxu0 %v18533_v16  ;;  %v17023_v19 = vld [vmem:[#allocation8 + $0x2a4] sm:$0xf0] }
 0x1de   :  { %5404 = vmatpush.bf16.msra.mxu3 %v12849_v25  ;;  %v13809_v37 = vor.u32 %v17370_v28, %v13806_v29  ;;  %v17362_v43 = vld [vmem:[#allocation8 + $0xd44] sm:$0xf]  ;;  %5462 = vmatpush.bf16.msra.mxu0 %v12309_v31  ;;  %v12149_v25 = vor.u32 %v16959_v17, %v12148_v50  ;;  %v12405_v26 = vor.u32 %v17023_v19, %v12404_v18  ;;  %v12116_v28 = vld [vmem:[#allocation8 + $0x48] sm:$0xf]  ;;  %v2131_v29 = vpop.f32.mrf.mxu2 }
 0x1df   :  { %v13774_v44 = vld [vmem:[#allocation8 + $0xd60] sm:$0xf0]  ;;  %v16951_v30 = vld [vmem:[#allocation8 + $0x64] sm:$0xf0] }
 0x1e0   :  { %5437 = vmatpush.bf16.msrb.mxu2 %v13809_v37  ;;  %v13777_v49 = vor.u32 %v17362_v43, %v13774_v44  ;;  %5431 = vmatmul.bf16.vlgmr.msrb.gmra.mxu1 %v18537_v4  ;;  %v17354_v56 = vld [vmem:[#allocation8 + $0xd04] sm:$0xf]  ;;  %v17015_v31 = vld [vmem:[#allocation8 + $0x264] sm:$0xf0]  ;;  %v2120_v37 = vpop.f32.mrf.mxu1 }
 0x1e1   :  { %5475 = vmatpush.bf16.msra.mxu1 %v12565_v32  ;;  %v13742_v57 = vld [vmem:[#allocation8 + $0xd20] sm:$0xf0]  ;;  %v2132_v32 = vadd.f32 %v2131_v29, %v2119_v21  ;;  %v12373_v7 = vor.u32 %v17015_v31, %v12372_v55  ;;  %v17119_v34 = vld [vmem:[#allocation8 + $0x5a4] sm:$0xf0] }
 0x1e2   :  { %5463 = vmatpush.bf16.msra.mxu0 %v12277_v45  ;;  %v13745_v61 = vor.u32 %v17354_v56, %v13742_v57  ;;  %v17346_v35 = vld [vmem:[#allocation8 + $0xcc4] sm:$0xf]  ;;  %v12340_v56 = vld [vmem:[#allocation8 + $0x208] sm:$0xf]  ;;  %v2146_v42 = vpop.f32.mrf.mxu3 }
 0x1e3   :  { %v13710_v5 = vld [vmem:[#allocation8 + $0xce0] sm:$0xf0]  ;;  %v2145_v45 = vadd.f32 %v2144_v3, %v2132_v32  ;;  %v17007_v57 = vld [vmem:[#allocation8 + $0x224] sm:$0xf0] }
 0x1e4   :  { %5438 = vmatpush.bf16.msrb.mxu2 %v13777_v49  ;;  %v13713_v13 = vor.u32 %v17346_v35, %v13710_v5  ;;  %v17338_v33 = vld [vmem:[#allocation8 + $0xc84] sm:$0xf]  ;;  %v12820_v49 = vld [vmem:[#allocation8 + $0x5c8] sm:$0xf] }
 0x1e5   :  { %5476 = vmatpush.bf16.msra.mxu1 %v12533_v46  ;;  %v13678_v41 = vld [vmem:[#allocation8 + $0xca0] sm:$0xf0]  ;;  %v12117_v46 = vor.u32 %v16951_v30, %v12116_v28  ;;  %v12821_v63 = vor.u32 %v17127_v27, %v12820_v49  ;;  %v13300_v14 = vld [vmem:[#allocation8 + $0x988] sm:$0xf] }
 0x1e6   :  { %5464 = vmatpush.bf16.msra.mxu0 %v12245_v58  ;;  %v13681_v22 = vor.u32 %v17338_v33, %v13678_v41  ;;  %v17330_v23 = vld [vmem:[#allocation8 + $0xc44] sm:$0xf]  ;;  %v2155_v58 = vmax.f32 %v2145_v45, 0.0  ;;  %v2133_v11 = vpop.f32.mrf.mxu2  ;;  %v17247_v33 = vld [vmem:[#allocation8 + $0x9a4] sm:$0xf0] }
 0x1e7   :  { %v13646_v24 = vld [vmem:[#allocation8 + $0xc60] sm:$0xf0]  ;;  %v17311_v50 = vld [vmem:[#allocation8 + $0xba4] sm:$0xf0] }
 0x1e8   :  { %5439 = vmatpush.bf16.msrb.mxu2 %v13745_v61  ;;  %v13649_v38 = vor.u32 %v17330_v23, %v13646_v24  ;;  %v17322_v39 = vld [vmem:[#allocation8 + $0xc04] sm:$0xf]  ;;  %v17255_v61 = vld [vmem:[#allocation8 + $0x9e4] sm:$0xf0]  ;;  %v18550_v5 = vpack.c.bf16 %v2155_v58, %v2155_v58 }
 0x1e9   :  { %5477 = vmatpush.bf16.msra.mxu1 %v12501_v59  ;;  %v13614_v40 = vld [vmem:[#allocation8 + $0xc20] sm:$0xf0]  ;;  %v13333_v12 = vor.u32 %v17255_v61, %v13332_v60  ;;  %v12756_v19 = vld [vmem:[#allocation8 + $0x548] sm:$0xf]  ;;  %v5263_v60 = vpop.f32.mrf.mxu0 }
 0x1ea   :  { %5465 = vmatpush.bf16.msra.mxu0 %v12213_v6  ;;  %v17442_v43 = vld [vmem:[#allocation8 + $0xfc4] sm:$0xf]  ;;  %v13617_v59 = vor.u32 %v17322_v39, %v13614_v40  ;;  %v12085_v6 = vor.u32 %v16943_v54, %v12084_v53  ;;  %5353 = vmatmul.bf16.vlgmr.msrb.gmra.mxu3 %v18550_v5  ;;  %v17111_v21 = vld [vmem:[#allocation8 + $0x564] sm:$0xf0] }
 0x1eb   :  { %v14094_v44 = vld [vmem:[#allocation8 + $0xfe0] sm:$0xf0]  ;;  %v13268_v24 = vld [vmem:[#allocation8 + $0x948] sm:$0xf]  ;;  %v12757_v29 = vor.u32 %v17111_v21, %v12756_v19 }
 0x1ec   :  { %5440 = vmatpush.bf16.msrb.mxu2 %v13713_v13  ;;  %v14097_v62 = vor.u32 %v17442_v43, %v14094_v44  ;;  %v17434_v35 = vld [vmem:[#allocation8 + $0xf84] sm:$0xf]  ;;  %v13589_v13 = vor.u32 %v17319_v1, %v13588_v0  ;;  %v17303_v3 = vld [vmem:[#allocation8 + $0xb64] sm:$0xf0] }
 0x1ed   :  { %5478 = vmatpush.bf16.msra.mxu1 %v12469_v8  ;;  %v12341_v8 = vor.u32 %v17007_v57, %v12340_v56  ;;  %v14062_v9 = vld [vmem:[#allocation8 + $0xfa0] sm:$0xf0]  ;;  %v12724_v32 = vld [vmem:[#allocation8 + $0x508] sm:$0xf] }
 0x1ee   :  { %5466 = vmatpush.bf16.msra.mxu0 %v12181_v2  ;;  %5449 = vmatpush.bf16.msrb.mxu3 %v14097_v62  ;;  %v14065_v41 = vor.u32 %v17434_v35, %v14062_v9  ;;  %v12789_v2 = vor.u32 %v17119_v34, %v12788_v10  ;;  %v17426_v17 = vld [vmem:[#allocation8 + $0xf44] sm:$0xf]  ;;  %v17103_v36 = vld [vmem:[#allocation8 + $0x524] sm:$0xf0] }
 0x1ef   :  { %v14030_v18 = vld [vmem:[#allocation8 + $0xf60] sm:$0xf0]  ;;  %v13236_v40 = vld [vmem:[#allocation8 + $0x908] sm:$0xf]  ;;  %v12725_v45 = vor.u32 %v17103_v36, %v12724_v32 }
 0x1f0   :  { %5441 = vmatpush.bf16.msrb.mxu2 %v13681_v22  ;;  %v13301_v22 = vor.u32 %v17247_v33, %v13300_v14  ;;  %v14033_v28 = vor.u32 %v17426_v17, %v14030_v18  ;;  %v17418_v30 = vld [vmem:[#allocation8 + $0xf04] sm:$0xf]  ;;  %v17231_v43 = vld [vmem:[#allocation8 + $0x924] sm:$0xf0] }
 0x1f1   :  { %5479 = vmatpush.bf16.msra.mxu1 %v12437_v15  ;;  %v13556_v15 = vld [vmem:[#allocation8 + $0xb88] sm:$0xf]  ;;  %v18554_v55 = vld [vmem:[#allocation10] sm:$0xff]  ;;  %v13237_v56 = vor.u32 %v17231_v43, %v13236_v40 }
 0x1f2   :  { %5467 = vmatpush.bf16.msra.mxu0 %v12149_v25  ;;  %v13557_v23 = vor.u32 %v17311_v50, %v13556_v15  ;;  %v17239_v25 = vld [vmem:[#allocation8 + $0x964] sm:$0xf0]  ;;  %5450 = vmatpush.bf16.msrb.mxu3 %v14065_v41  ;;  %v13998_v31 = vld [vmem:[#allocation8 + $0xf20] sm:$0xf0]  ;;  %v2678_v39 = vperm.slane %v18554_v55, 0 }
 0x1f3   :  { %v13269_v37 = vor.u32 %v17239_v25, %v13268_v24  ;;  %v14001_v44 = vor.u32 %v17418_v30, %v13998_v31  ;;  %v17410_v49 = vld [vmem:[#allocation8 + $0xec4] sm:$0xf]  ;;  %v12692_v53 = vld [vmem:[#allocation8 + $0x4c8] sm:$0xf]  ;;  %v5289_v25 = vpop.f32.mrf.mxu2 }
 0x1f4   :  { %5442 = vmatpush.bf16.msrb.mxu2 %v13649_v38  ;;  %v13966_v27 = vld [vmem:[#allocation8 + $0xee0] sm:$0xf0]  ;;  %v17095_v54 = vld [vmem:[#allocation8 + $0x4e4] sm:$0xf0]  ;;  %v5264_v35 = vadd.f32 %v5263_v60, %v2678_v39 }
 0x1f5   :  { %5480 = vmatpush.bf16.msra.mxu1 %v12405_v26  ;;  %v13524_v26 = vld [vmem:[#allocation8 + $0xb48] sm:$0xf]  ;;  %v13969_v61 = vor.u32 %v17410_v49, %v13966_v27  ;;  %v12693_v62 = vor.u32 %v17095_v54, %v12692_v53  ;;  %v17402_v1 = vld [vmem:[#allocation8 + $0xe84] sm:$0xf] }
 0x1f6   :  { %5468 = vmatpush.bf16.msra.mxu0 %v12117_v46  ;;  %v13525_v38 = vor.u32 %v17303_v3, %v13524_v26  ;;  %5451 = vmatpush.bf16.msrb.mxu3 %v14033_v28  ;;  %v13492_v46 = vld [vmem:[#allocation8 + $0xb08] sm:$0xf]  ;;  %v17394_v15 = vld [vmem:[#allocation8 + $0xe44] sm:$0xf]  ;;  %v5265_v26 = vpop.f32.mrf.mxu0 }
 0x1f7   :  { %v13204_v58 = vld [vmem:[#allocation8 + $0x8c8] sm:$0xf]  ;;  %v13902_v50 = vld [vmem:[#allocation8 + $0xe60] sm:$0xf0]  ;;  %v17043_v26 = vld [vmem:[#allocation8 + $0x34c] sm:$0xf] }
 0x1f8   :  { %5443 = vmatpush.bf16.msrb.mxu2 %v13617_v59  ;;  %v17223_v59 = vld [vmem:[#allocation8 + $0x8e4] sm:$0xf0]  ;;  %v13905_v28 = vor.u32 %v17394_v15, %v13902_v50  ;;  %v17386_v30 = vld [vmem:[#allocation8 + $0xe04] sm:$0xf] }
 0x1f9   :  { %5481 = vmatpush.bf16.msra.mxu1 %v12373_v7  ;;  %v17295_v7 = vld [vmem:[#allocation8 + $0xb24] sm:$0xf0]  ;;  %v13205_v34 = vor.u32 %v17223_v59, %v13204_v58  ;;  %v13870_v31 = vld [vmem:[#allocation8 + $0xe20] sm:$0xf0]  ;;  %v5302_v40 = vpop.f32.mrf.mxu3 }
 0x1fa   :  { %5469 = vmatpush.bf16.msra.mxu0 %v12085_v6  ;;  %v13493_v57 = vor.u32 %v17295_v7, %v13492_v46  ;;  %5452 = vmatpush.bf16.msrb.mxu3 %v14001_v44  ;;  %v17287_v0 = vld [vmem:[#allocation8 + $0xae4] sm:$0xf0]  ;;  %v5276_v6 = vpop.f32.mrf.mxu1  ;;  %v13873_v54 = vor.u32 %v17386_v30, %v13870_v31 }
 0x1fb   :  { %5444 = vmatmul.bf16.vlgmr.msrb.gmra.mxu2 %v18543_v20  ;;  %v12660_v9 = vld [vmem:[#allocation8 + $0x488] sm:$0xf]  ;;  %v5277_v11 = vadd.f32 %v5276_v6, %v5264_v35  ;;  %5405 = vmatmul.bf16.vlgmr.msra.gmra.mxu3 %v18524_v52 }
 0x1fc   :  { %5488 = vmatpush.bf16.msra.mxu2 %v12821_v63  ;;  %v13460_v63 = vld [vmem:[#allocation8 + $0xac8] sm:$0xf] }
 0x1fd   :  { %5482 = vmatpush.bf16.msra.mxu1 %v12341_v8  ;;  %5470 = vmatmul.bf16.vlgmr.msra.gmra.mxu0 %v18518_v47  ;;  %v13934_v8 = vld [vmem:[#allocation8 + $0xea0] sm:$0xf0]  ;;  %v17087_v10 = vld [vmem:[#allocation8 + $0x4a4] sm:$0xf0]  ;;  %v13461_v42 = vor.u32 %v17287_v0, %v13460_v63  ;;  %v5290_v32 = vadd.f32 %v5289_v25, %v5277_v11  ;;  %v17059_v63 = vld [vmem:[#allocation8 + $0x3cc] sm:$0xf] }
 0x1fe   :  { %5514 = vmatpush.bf16.msrb.mxu0 %v13333_v12  ;;  %v13172_v12 = vld [vmem:[#allocation8 + $0x888] sm:$0xf]  ;;  %5453 = vmatpush.bf16.msrb.mxu3 %v13969_v61  ;;  %v13937_v14 = vor.u32 %v17402_v1, %v13934_v8  ;;  %v12661_v33 = vor.u32 %v17087_v10, %v12660_v9  ;;  %v16995_v61 = vld [vmem:[#allocation8 + $0x1cc] sm:$0xf] }
 0x1ff   :  { %v13428_v41 = vld [vmem:[#allocation8 + $0xa88] sm:$0xf]  ;;  %v18560_v7 = vadd.f32 %v5302_v40, %v5290_v32  ;;  %v12566_v1 = vld [vmem:[#allocation8 + $0x3e8] sm:$0xf0] }
 0x200   :  { %5489 = vmatpush.bf16.msra.mxu2 %v12789_v2  ;;  %5483 = vmatmul.bf16.vlgmr.msra.gmra.mxu1 %v18520_v48  ;;  %v17279_v2 = vld [vmem:[#allocation8 + $0xaa4] sm:$0xf0]  ;;  %v12246_v25 = vld [vmem:[#allocation8 + $0x168] sm:$0xf0] }
 0x201   :  { %5527 = vmatpush.bf16.msrb.mxu1 %v13589_v13  ;;  %v17215_v13 = vld [vmem:[#allocation8 + $0x8a4] sm:$0xf0]  ;;  %v13429_v21 = vor.u32 %v17279_v2, %v13428_v41  ;;  %v12534_v2 = vld [vmem:[#allocation8 + $0x3a8] sm:$0xf0] }
 0x202   :  { %5515 = vmatpush.bf16.msrb.mxu0 %v13301_v22  ;;  %v12628_v17 = vld [vmem:[#allocation8 + $0x448] sm:$0xf]  ;;  %v13173_v19 = vor.u32 %v17215_v13, %v13172_v12  ;;  %5454 = vmatpush.bf16.msrb.mxu3 %v13937_v14  ;;  %v5278_v36 = vpop.f32.mrf.mxu1  ;;  %v16987_v13 = vld [vmem:[#allocation8 + $0x18c] sm:$0xf] }
 0x203   :  { %v17079_v18 = vld [vmem:[#allocation8 + $0x464] sm:$0xf0]  ;;  %v12278_v14 = vld [vmem:[#allocation8 + $0x1a8] sm:$0xf0] }
 0x204   :  { %5490 = vmatpush.bf16.msra.mxu2 %v12757_v29  ;;  %v13140_v22 = vld [vmem:[#allocation8 + $0x848] sm:$0xf]  ;;  %v12629_v29 = vor.u32 %v17079_v18, %v12628_v17  ;;  %v5304_v17 = vpop.f32.mrf.mxu3  ;;  %v12214_v40 = vld [vmem:[#allocation8 + $0x128] sm:$0xf0] }
 0x205   :  { %5528 = vmatpush.bf16.msrb.mxu1 %v13557_v23  ;;  %v17207_v23 = vld [vmem:[#allocation8 + $0x864] sm:$0xf0] }
 0x206   :  { %5516 = vmatpush.bf16.msrb.mxu0 %v13269_v37  ;;  %v13396_v24 = vld [vmem:[#allocation8 + $0xa48] sm:$0xf]  ;;  %v13141_v43 = vor.u32 %v17207_v23, %v13140_v22  ;;  %5455 = vmatpush.bf16.msrb.mxu3 %v13905_v28 }
 0x207   :  { %v17271_v3 = vld [vmem:[#allocation8 + $0xa64] sm:$0xf0] }
 0x208   :  { %5491 = vmatpush.bf16.msra.mxu2 %v12725_v45  ;;  %v12596_v37 = vld [vmem:[#allocation8 + $0x408] sm:$0xf]  ;;  %v13397_v49 = vor.u32 %v17271_v3, %v13396_v24  ;;  %v16979_v24 = vld [vmem:[#allocation8 + $0x14c] sm:$0xf] }
 0x209   :  { %5529 = vmatpush.bf16.msrb.mxu1 %v13525_v38  ;;  %v17071_v38 = vld [vmem:[#allocation8 + $0x424] sm:$0xf0]  ;;  %v12249_v36 = vor.u32 %v16979_v24, %v12246_v25 }
 0x20a   :  { %5517 = vmatpush.bf16.msrb.mxu0 %v13237_v56  ;;  %v13076_v39 = vld [vmem:[#allocation8 + $0x7c8] sm:$0xf]  ;;  %v12597_v56 = vor.u32 %v17071_v38, %v12596_v37  ;;  %5456 = vmatpush.bf16.msrb.mxu3 %v13873_v54 }
 0x20b   :  { %v17191_v44 = vld [vmem:[#allocation8 + $0x7e4] sm:$0xf0] }
 0x20c   :  { %5492 = vmatpush.bf16.msra.mxu2 %v12693_v62  ;;  %v13844_v45 = vld [vmem:[#allocation8 + $0xdc8] sm:$0xf]  ;;  %v13077_v59 = vor.u32 %v17191_v44, %v13076_v39  ;;  %v12310_v62 = vld [vmem:[#allocation8 + $0x1e8] sm:$0xf0] }
 0x20d   :  { %5530 = vmatpush.bf16.msrb.mxu1 %v13493_v57  ;;  %v17383_v46 = vld [vmem:[#allocation8 + $0xde4] sm:$0xf0]  ;;  %v12313_v11 = vor.u32 %v16995_v61, %v12310_v62  ;;  %5457 = vmatmul.bf16.vlgmr.msrb.gmra.mxu3 %v18550_v5  ;;  %v16971_v39 = vld [vmem:[#allocation8 + $0x10c] sm:$0xf] }
 0x20e   :  { %5518 = vmatpush.bf16.msrb.mxu0 %v13205_v34  ;;  %v13108_v27 = vld [vmem:[#allocation8 + $0x808] sm:$0xf]  ;;  %v13845_v60 = vor.u32 %v17383_v46, %v13844_v45  ;;  %v5291_v34 = vpop.f32.mrf.mxu2  ;;  %5501 = vmatpush.bf16.msra.mxu3 %v13077_v59  ;;  %v12470_v45 = vld [vmem:[#allocation8 + $0x328] sm:$0xf0]  ;;  %v12217_v54 = vor.u32 %v16971_v39, %v12214_v40 }
 0x20f   :  { %v17199_v53 = vld [vmem:[#allocation8 + $0x824] sm:$0xf0]  ;;  %v12182_v59 = vld [vmem:[#allocation8 + $0xe8] sm:$0xf0] }
 0x210   :  { %5493 = vmatpush.bf16.msra.mxu2 %v12661_v33  ;;  %v13364_v57 = vld [vmem:[#allocation8 + $0xa08] sm:$0xf]  ;;  %v13109_v0 = vor.u32 %v17199_v53, %v13108_v27  ;;  %v17051_v33 = vld [vmem:[#allocation8 + $0x38c] sm:$0xf] }
 0x211   :  { %5531 = vmatpush.bf16.msrb.mxu1 %v13461_v42  ;;  %v17263_v58 = vld [vmem:[#allocation8 + $0xa24] sm:$0xf0]  ;;  %v12569_v42 = vor.u32 %v17059_v63, %v12566_v1  ;;  %v12537_v22 = vor.u32 %v17051_v33, %v12534_v2  ;;  %v12438_v63 = vld [vmem:[#allocation8 + $0x2e8] sm:$0xf0] }
 0x212   :  { %5519 = vmatpush.bf16.msrb.mxu0 %v13173_v19  ;;  %v13044_v35 = vld [vmem:[#allocation8 + $0x788] sm:$0xf]  ;;  %v13365_v8 = vor.u32 %v17263_v58, %v13364_v57  ;;  %v16963_v58 = vld [vmem:[#allocation8 + $0xcc] sm:$0xf] }
 0x213   :  { %v17183_v6 = vld [vmem:[#allocation8 + $0x7a4] sm:$0xf0]  ;;  %v16939_v39 = vld [vmem:[#allocation8 + $0xc] sm:$0xf] }
 0x214   :  { %5494 = vmatpush.bf16.msra.mxu2 %v12629_v29  ;;  %v13812_v9 = vld [vmem:[#allocation8 + $0xd88] sm:$0xf]  ;;  %v13045_v12 = vor.u32 %v17183_v6, %v13044_v35  ;;  %v12502_v29 = vld [vmem:[#allocation8 + $0x368] sm:$0xf0] }
 0x215   :  { %5532 = vmatpush.bf16.msrb.mxu1 %v13429_v21  ;;  %v17375_v10 = vld [vmem:[#allocation8 + $0xda4] sm:$0xf0]  ;;  %v12281_v21 = vor.u32 %v16987_v13, %v12278_v14  ;;  %v12505_v37 = vor.u32 %v17043_v26, %v12502_v29  ;;  %v12406_v14 = vld [vmem:[#allocation8 + $0x2a8] sm:$0xf0] }
 0x216   :  { %5520 = vmatpush.bf16.msrb.mxu0 %v13141_v43  ;;  %v13813_v41 = vor.u32 %v17375_v10, %v13812_v9  ;;  %v13012_v15 = vld [vmem:[#allocation8 + $0x748] sm:$0xf]  ;;  %5502 = vmatpush.bf16.msra.mxu3 %v13045_v12  ;;  %v17035_v43 = vld [vmem:[#allocation8 + $0x30c] sm:$0xf]  ;;  %v12185_v9 = vor.u32 %v16963_v58, %v12182_v59 }
 0x217   :  { %v17175_v50 = vld [vmem:[#allocation8 + $0x764] sm:$0xf0]  ;;  %v17019_v12 = vld [vmem:[#allocation8 + $0x28c] sm:$0xf] }
 0x218   :  { %5495 = vmatpush.bf16.msra.mxu2 %v12597_v56  ;;  %v13780_v18 = vld [vmem:[#allocation8 + $0xd48] sm:$0xf]  ;;  %v13013_v23 = vor.u32 %v17175_v50, %v13012_v15  ;;  %v12473_v56 = vor.u32 %v17035_v43, %v12470_v45  ;;  %v16947_v50 = vld [vmem:[#allocation8 + $0x4c] sm:$0xf]  ;;  %v12409_v17 = vor.u32 %v17019_v12, %v12406_v14 }
 0x219   :  { %5533 = vmatpush.bf16.msrb.mxu1 %v13397_v49  ;;  %v17367_v19 = vld [vmem:[#allocation8 + $0xd64] sm:$0xf0]  ;;  %v5315_v61 = vpop.f32.mrf.mxu0  ;;  %v12086_v40 = vld [vmem:[#allocation8 + $0x28] sm:$0xf0] }
 0x21a   :  { %5521 = vmatpush.bf16.msrb.mxu0 %v13109_v0  ;;  %v13781_v28 = vor.u32 %v17367_v19, %v13780_v18  ;;  %v12980_v3 = vld [vmem:[#allocation8 + $0x708] sm:$0xf]  ;;  %5503 = vmatpush.bf16.msra.mxu3 %v13013_v23  ;;  %v18567_v35 = vadd.f32 %v5315_v61, %v18560_v7  ;;  %v12118_v19 = vld [vmem:[#allocation8 + $0x68] sm:$0xf0]  ;;  %v12089_v58 = vor.u32 %v16939_v39, %v12086_v40 }
 0x21b   :  { %5496 = vmatmul.bf16.vlgmr.msra.gmra.mxu2 %v18522_v51  ;;  %v17167_v30 = vld [vmem:[#allocation8 + $0x724] sm:$0xf0]  ;;  %v17003_v43 = vld [vmem:[#allocation8 + $0x20c] sm:$0xf] }
 0x21c   :  { %5540 = vmatpush.bf16.msrb.mxu2 %v13845_v60  ;;  %v13748_v31 = vld [vmem:[#allocation8 + $0xd08] sm:$0xf]  ;;  %v12981_v38 = vor.u32 %v17167_v30, %v12980_v3  ;;  %v17027_v60 = vld [vmem:[#allocation8 + $0x2cc] sm:$0xf] }
 0x21d   :  { %5534 = vmatpush.bf16.msrb.mxu1 %v13365_v8  ;;  %5522 = vmatmul.bf16.vlgmr.msrb.gmra.mxu0 %v18533_v16  ;;  %v17359_v32 = vld [vmem:[#allocation8 + $0xd24] sm:$0xf0]  ;;  %v12441_v10 = vor.u32 %v17027_v60, %v12438_v63  ;;  %v17115_v60 = vld [vmem:[#allocation8 + $0x58c] sm:$0xf] }
 0x21e   :  { %5566 = vmatpush.bf16.msra.mxu0 %v12313_v11  ;;  %v13749_v44 = vor.u32 %v17359_v32, %v13748_v31  ;;  %v12948_v46 = vld [vmem:[#allocation8 + $0x6c8] sm:$0xf]  ;;  %5504 = vmatpush.bf16.msra.mxu3 %v12981_v38  ;;  %v16955_v11 = vld [vmem:[#allocation8 + $0x8c] sm:$0xf]  ;;  %v12121_v31 = vor.u32 %v16947_v50, %v12118_v19 }
 0x21f   :  { %v17159_v49 = vld [vmem:[#allocation8 + $0x6e4] sm:$0xf0]  ;;  %v17123_v32 = vld [vmem:[#allocation8 + $0x5cc] sm:$0xf] }
 0x220   :  { %5541 = vmatpush.bf16.msrb.mxu2 %v13813_v41  ;;  %5535 = vmatmul.bf16.vlgmr.msrb.gmra.mxu1 %v18537_v4  ;;  %v13716_v27 = vld [vmem:[#allocation8 + $0xcc8] sm:$0xf]  ;;  %v12949_v57 = vor.u32 %v17159_v49, %v12948_v46  ;;  %v12342_v46 = vld [vmem:[#allocation8 + $0x228] sm:$0xf0] }
 0x221   :  { %5579 = vmatpush.bf16.msra.mxu1 %v12569_v42  ;;  %v17351_v53 = vld [vmem:[#allocation8 + $0xce4] sm:$0xf0]  ;;  %v12150_v42 = vld [vmem:[#allocation8 + $0xa8] sm:$0xf0] }
 0x222   :  { %5567 = vmatpush.bf16.msra.mxu0 %v12281_v21  ;;  %v13717_v62 = vor.u32 %v17351_v53, %v13716_v27  ;;  %v12916_v0 = vld [vmem:[#allocation8 + $0x688] sm:$0xf]  ;;  %5505 = vmatpush.bf16.msra.mxu3 %v12949_v57  ;;  %v12153_v7 = vor.u32 %v16955_v11, %v12150_v42  ;;  %v17011_v21 = vld [vmem:[#allocation8 + $0x24c] sm:$0xf] }
 0x223   :  { %v17151_v1 = vld [vmem:[#allocation8 + $0x6a4] sm:$0xf0]  ;;  %v17251_v49 = vld [vmem:[#allocation8 + $0x9cc] sm:$0xf] }
 0x224   :  { %5542 = vmatpush.bf16.msrb.mxu2 %v13781_v28  ;;  %v13684_v6 = vld [vmem:[#allocation8 + $0xc88] sm:$0xf]  ;;  %v12917_v34 = vor.u32 %v17151_v1, %v12916_v0  ;;  %v5317_v28 = vpop.f32.mrf.mxu0  ;;  %v13334_v27 = vld [vmem:[#allocation8 + $0x9e8] sm:$0xf0] }
 0x225   :  { %5580 = vmatpush.bf16.msra.mxu1 %v12537_v22  ;;  %v17343_v8 = vld [vmem:[#allocation8 + $0xca4] sm:$0xf0]  ;;  %v12374_v22 = vld [vmem:[#allocation8 + $0x268] sm:$0xf0]  ;;  %v13337_v63 = vor.u32 %v17251_v49, %v13334_v27 }
 0x226   :  { %5568 = vmatpush.bf16.msra.mxu0 %v12249_v36  ;;  %v13685_v13 = vor.u32 %v17343_v8, %v13684_v6  ;;  %v12884_v33 = vld [vmem:[#allocation8 + $0x648] sm:$0xf]  ;;  %5506 = vmatpush.bf16.msra.mxu3 %v12917_v34  ;;  %v12822_v36 = vld [vmem:[#allocation8 + $0x5e8] sm:$0xf0] }
 0x227   :  { %v17143_v41 = vld [vmem:[#allocation8 + $0x664] sm:$0xf0]  ;;  %v12825_v53 = vor.u32 %v17123_v32, %v12822_v36  ;;  %v12790_v61 = vld [vmem:[#allocation8 + $0x5a8] sm:$0xf0] }
 0x228   :  { %5543 = vmatpush.bf16.msrb.mxu2 %v13749_v44  ;;  %v13652_v2 = vld [vmem:[#allocation8 + $0xc48] sm:$0xf]  ;;  %v12885_v18 = vor.u32 %v17143_v41, %v12884_v33  ;;  %v17243_v1 = vld [vmem:[#allocation8 + $0x98c] sm:$0xf] }
 0x229   :  { %5581 = vmatpush.bf16.msra.mxu1 %v12505_v37  ;;  %v17335_v15 = vld [vmem:[#allocation8 + $0xc64] sm:$0xf0]  ;;  %v12377_v37 = vor.u32 %v17011_v21, %v12374_v22  ;;  %v13302_v6 = vld [vmem:[#allocation8 + $0x9a8] sm:$0xf0] }
 0x22a   :  { %5569 = vmatpush.bf16.msra.mxu0 %v12217_v54  ;;  %v13653_v23 = vor.u32 %v17335_v15, %v13652_v2  ;;  %v12852_v24 = vld [vmem:[#allocation8 + $0x608] sm:$0xf]  ;;  %5507 = vmatpush.bf16.msra.mxu3 %v12885_v18  ;;  %v17315_v54 = vld [vmem:[#allocation8 + $0xbcc] sm:$0xf]  ;;  %v13305_v14 = vor.u32 %v17243_v1, %v13302_v6 }
 0x22b   :  { %v17135_v25 = vld [vmem:[#allocation8 + $0x624] sm:$0xf0]  ;;  %v13558_v34 = vld [vmem:[#allocation8 + $0xba8] sm:$0xf0]  ;;  %v5328_v50 = vpop.f32.mrf.mxu1 }
 0x22c   :  { %5544 = vmatpush.bf16.msrb.mxu2 %v13717_v62  ;;  %v13620_v26 = vld [vmem:[#allocation8 + $0xc08] sm:$0xf]  ;;  %v12853_v38 = vor.u32 %v17135_v25, %v12852_v24  ;;  %v12345_v62 = vor.u32 %v17003_v43, %v12342_v46  ;;  %v17107_v12 = vld [vmem:[#allocation8 + $0x54c] sm:$0xf]  ;;  %v18574_v21 = vadd.f32 %v5328_v50, %v18567_v35 }
 0x22d   :  { %5582 = vmatpush.bf16.msra.mxu1 %v12473_v56  ;;  %v17327_v29 = vld [vmem:[#allocation8 + $0xc24] sm:$0xf0]  ;;  %v13590_v56 = vld [vmem:[#allocation8 + $0xbe8] sm:$0xf0] }
 0x22e   :  { %5570 = vmatpush.bf16.msra.mxu0 %v12185_v9  ;;  %v14100_v3 = vld [vmem:[#allocation8 + $0xfc8] sm:$0xf]  ;;  %v13621_v44 = vor.u32 %v17327_v29, %v13620_v26  ;;  %5508 = vmatpush.bf16.msra.mxu3 %v12853_v38  ;;  %v13593_v0 = vor.u32 %v17315_v54, %v13590_v56  ;;  %v12793_v9 = vor.u32 %v17115_v60, %v12790_v61  ;;  %v17235_v41 = vld [vmem:[#allocation8 + $0x94c] sm:$0xf]  ;;  %v2679_v60 = vperm.slane %v18554_v55, 1 }
 0x22f   :  { %v17447_v30 = vld [vmem:[#allocation8 + $0xfe4] sm:$0xf0]  ;;  %v13270_v2 = vld [vmem:[#allocation8 + $0x968] sm:$0xf0] }
 0x230   :  { %5545 = vmatpush.bf16.msrb.mxu2 %v13685_v13  ;;  %v14101_v45 = vor.u32 %v17447_v30, %v14100_v3  ;;  %v14068_v57 = vld [vmem:[#allocation8 + $0xf88] sm:$0xf]  ;;  %v12758_v13 = vld [vmem:[#allocation8 + $0x568] sm:$0xf0]  ;;  %v13273_v25 = vor.u32 %v17235_v41, %v13270_v2 }
 0x231   :  { %5583 = vmatpush.bf16.msra.mxu1 %v12441_v10  ;;  %v17439_v59 = vld [vmem:[#allocation8 + $0xfa4] sm:$0xf0]  ;;  %v17307_v10 = vld [vmem:[#allocation8 + $0xb8c] sm:$0xf]  ;;  %5509 = vmatmul.bf16.vlgmr.msra.gmra.mxu3 %v18524_v52 }
 0x232   :  { %5571 = vmatpush.bf16.msra.mxu0 %v12153_v7  ;;  %5553 = vmatpush.bf16.msrb.mxu3 %v14101_v45  ;;  %v14069_v8 = vor.u32 %v17439_v59, %v14068_v57  ;;  %v14036_v11 = vld [vmem:[#allocation8 + $0xf48] sm:$0xf]  ;;  %v13561_v33 = vor.u32 %v17307_v10, %v13558_v34  ;;  %v12761_v7 = vor.u32 %v17107_v12, %v12758_v13  ;;  %v13526_v18 = vld [vmem:[#allocation8 + $0xb68] sm:$0xf0] }
 0x233   :  { %v17431_v42 = vld [vmem:[#allocation8 + $0xf64] sm:$0xf0]  ;;  %v12726_v24 = vld [vmem:[#allocation8 + $0x528] sm:$0xf0]  ;;  %v5330_v27 = vpop.f32.mrf.mxu1 }
 0x234   :  { %5546 = vmatpush.bf16.msrb.mxu2 %v13653_v23  ;;  %v14037_v15 = vor.u32 %v17431_v42, %v14036_v11  ;;  %v14004_v19 = vld [vmem:[#allocation8 + $0xf08] sm:$0xf]  ;;  %v17099_v23 = vld [vmem:[#allocation8 + $0x50c] sm:$0xf] }
 0x235   :  { %5584 = vmatpush.bf16.msra.mxu1 %v12409_v17  ;;  %v17299_v17 = vld [vmem:[#allocation8 + $0xb4c] sm:$0xf]  ;;  %v17423_v22 = vld [vmem:[#allocation8 + $0xf24] sm:$0xf0]  ;;  %v12729_v30 = vor.u32 %v17099_v23, %v12726_v24 }
 0x236   :  { %5572 = vmatpush.bf16.msra.mxu0 %v12121_v31  ;;  %5554 = vmatpush.bf16.msrb.mxu3 %v14069_v8  ;;  %v13529_v26 = vor.u32 %v17299_v17, %v13526_v18  ;;  %v17227_v28 = vld [vmem:[#allocation8 + $0x90c] sm:$0xf]  ;;  %v14005_v3 = vor.u32 %v17423_v22, %v14004_v19  ;;  %v13972_v36 = vld [vmem:[#allocation8 + $0xec8] sm:$0xf] }
 0x237   :  { %v13238_v29 = vld [vmem:[#allocation8 + $0x928] sm:$0xf0]  ;;  %v13940_v56 = vld [vmem:[#allocation8 + $0xe88] sm:$0xf] }
 0x238   :  { %5547 = vmatpush.bf16.msrb.mxu2 %v13621_v44  ;;  %v17291_v31 = vld [vmem:[#allocation8 + $0xb0c] sm:$0xf]  ;;  %v13241_v39 = vor.u32 %v17227_v28, %v13238_v29  ;;  %v17407_v57 = vld [vmem:[#allocation8 + $0xea4] sm:$0xf0] }
 0x239   :  { %5585 = vmatpush.bf16.msra.mxu1 %v12377_v37  ;;  %v13494_v32 = vld [vmem:[#allocation8 + $0xb28] sm:$0xf0]  ;;  %v17415_v37 = vld [vmem:[#allocation8 + $0xee4] sm:$0xf0]  ;;  %v5367_v45 = vpop.f32.mrf.mxu0  ;;  %v13941_v1 = vor.u32 %v17407_v57, %v13940_v56 }
 0x23a   :  { %5573 = vmatpush.bf16.msra.mxu0 %v12089_v58  ;;  %5555 = vmatpush.bf16.msrb.mxu3 %v14037_v15  ;;  %v17091_v38 = vld [vmem:[#allocation8 + $0x4cc] sm:$0xf]  ;;  %v13497_v40 = vor.u32 %v17291_v31, %v13494_v32  ;;  %v13973_v46 = vor.u32 %v17415_v37, %v13972_v36  ;;  %v13908_v10 = vld [vmem:[#allocation8 + $0xe48] sm:$0xf]  ;;  %v5368_v12 = vadd.f32 %v5367_v45, %v2679_v60  ;;  %v12572_v45 = vld [vmem:[#allocation8 + $0x3d0] sm:$0xf] }
 0x23b   :  { %5548 = vmatmul.bf16.vlgmr.msrb.gmra.mxu2 %v18543_v20  ;;  %v12694_v35 = vld [vmem:[#allocation8 + $0x4e8] sm:$0xf0]  ;;  %v17399_v34 = vld [vmem:[#allocation8 + $0xe64] sm:$0xf0]  ;;  %v5380_v50 = vpop.f32.mrf.mxu1 }
 0x23c   :  { %5592 = vmatpush.bf16.msra.mxu2 %v12825_v53  ;;  %v17219_v43 = vld [vmem:[#allocation8 + $0x8cc] sm:$0xf]  ;;  %v12697_v49 = vor.u32 %v17091_v38, %v12694_v35  ;;  %v13909_v15 = vor.u32 %v17399_v34, %v13908_v10  ;;  %v13876_v18 = vld [vmem:[#allocation8 + $0xe08] sm:$0xf]  ;;  %v18577_v22 = vadd.f32 %v5380_v50, %v5368_v12  ;;  %v12252_v12 = vld [vmem:[#allocation8 + $0x150] sm:$0xf] }
 0x23d   :  { %5586 = vmatpush.bf16.msra.mxu1 %v12345_v62  ;;  %5574 = vmatmul.bf16.vlgmr.msra.gmra.mxu0 %v18518_v47  ;;  %v13206_v44 = vld [vmem:[#allocation8 + $0x8e8] sm:$0xf0]  ;;  %v17391_v19 = vld [vmem:[#allocation8 + $0xe24] sm:$0xf0] }
 0x23e   :  { %5618 = vmatpush.bf16.msrb.mxu0 %v13337_v63  ;;  %5556 = vmatpush.bf16.msrb.mxu3 %v14005_v3  ;;  %v17283_v53 = vld [vmem:[#allocation8 + $0xacc] sm:$0xf]  ;;  %v13209_v61 = vor.u32 %v17219_v43, %v13206_v44  ;;  %v13877_v31 = vor.u32 %v17391_v19, %v13876_v18  ;;  %v12316_v43 = vld [vmem:[#allocation8 + $0x1d0] sm:$0xf] }
 0x23f   :  { %v13462_v54 = vld [vmem:[#allocation8 + $0xae8] sm:$0xf0]  ;;  %v17000_v44 = vld [vmem:[#allocation8 + $0x1ec] sm:$0xf0] }
 0x240   :  { %5593 = vmatpush.bf16.msra.mxu2 %v12793_v9  ;;  %5587 = vmatmul.bf16.vlgmr.msra.gmra.mxu1 %v18520_v48  ;;  %v17083_v58 = vld [vmem:[#allocation8 + $0x48c] sm:$0xf]  ;;  %v13465_v62 = vor.u32 %v17283_v53, %v13462_v54  ;;  %v12220_v19 = vld [vmem:[#allocation8 + $0x110] sm:$0xf] }
 0x241   :  { %5631 = vmatpush.bf16.msrb.mxu1 %v13593_v0  ;;  %v12662_v59 = vld [vmem:[#allocation8 + $0x4a8] sm:$0xf0]  ;;  %v5369_v2 = vpop.f32.mrf.mxu0 }
 0x242   :  { %5619 = vmatpush.bf16.msrb.mxu0 %v13305_v14  ;;  %v17211_v63 = vld [vmem:[#allocation8 + $0x88c] sm:$0xf]  ;;  %5557 = vmatpush.bf16.msrb.mxu3 %v13973_v46  ;;  %v12665_v6 = vor.u32 %v17083_v58, %v12662_v59  ;;  %v17064_v46 = vld [vmem:[#allocation8 + $0x3ec] sm:$0xf0]  ;;  %v12317_v59 = vor.u32 %v17000_v44, %v12316_v43 }
 0x243   :  { %v13174_v0 = vld [vmem:[#allocation8 + $0x8a8] sm:$0xf0]  ;;  %v5382_v58 = vpop.f32.mrf.mxu1  ;;  %v12573_v60 = vor.u32 %v17064_v46, %v12572_v45  ;;  %v12444_v45 = vld [vmem:[#allocation8 + $0x2d0] sm:$0xf] }
 0x244   :  { %5594 = vmatpush.bf16.msra.mxu2 %v12761_v7  ;;  %v17275_v8 = vld [vmem:[#allocation8 + $0xa8c] sm:$0xf]  ;;  %v13177_v55 = vor.u32 %v17211_v63, %v13174_v0  ;;  %v17032_v46 = vld [vmem:[#allocation8 + $0x2ec] sm:$0xf0] }
 0x245   :  { %5632 = vmatpush.bf16.msrb.mxu1 %v13561_v33  ;;  %v13430_v9 = vld [vmem:[#allocation8 + $0xaa8] sm:$0xf0]  ;;  %v12445_v58 = vor.u32 %v17032_v46, %v12444_v45  ;;  %v12796_v46 = vld [vmem:[#allocation8 + $0x590] sm:$0xf] }
 0x246   :  { %5620 = vmatpush.bf16.msrb.mxu0 %v13273_v25  ;;  %v17075_v11 = vld [vmem:[#allocation8 + $0x44c] sm:$0xf]  ;;  %v13433_v13 = vor.u32 %v17275_v8, %v13430_v9  ;;  %5558 = vmatpush.bf16.msrb.mxu3 %v13941_v1  ;;  %v12540_v1 = vld [vmem:[#allocation8 + $0x390] sm:$0xf] }
 0x247   :  { %v12630_v42 = vld [vmem:[#allocation8 + $0x468] sm:$0xf0] }
 0x248   :  { %5595 = vmatpush.bf16.msra.mxu2 %v12729_v30  ;;  %v17203_v14 = vld [vmem:[#allocation8 + $0x84c] sm:$0xf]  ;;  %v12633_v7 = vor.u32 %v17075_v11, %v12630_v42 }
 0x249   :  { %5633 = vmatpush.bf16.msrb.mxu1 %v13529_v26  ;;  %v13142_v33 = vld [vmem:[#allocation8 + $0x868] sm:$0xf0] }
 0x24a   :  { %5621 = vmatpush.bf16.msrb.mxu0 %v13241_v39  ;;  %v17267_v41 = vld [vmem:[#allocation8 + $0xa4c] sm:$0xf]  ;;  %v13145_v3 = vor.u32 %v17203_v14, %v13142_v33  ;;  %5559 = vmatpush.bf16.msrb.mxu3 %v13909_v15  ;;  %v12508_v33 = vld [vmem:[#allocation8 + $0x350] sm:$0xf] }
 0x24b   :  { %v13398_v17 = vld [vmem:[#allocation8 + $0xa68] sm:$0xf0] }
 0x24c   :  { %5596 = vmatpush.bf16.msra.mxu2 %v12697_v49  ;;  %v17067_v23 = vld [vmem:[#allocation8 + $0x40c] sm:$0xf]  ;;  %v13401_v30 = vor.u32 %v17267_v41, %v13398_v17  ;;  %v17048_v41 = vld [vmem:[#allocation8 + $0x36c] sm:$0xf0] }
 0x24d   :  { %5634 = vmatpush.bf16.msrb.mxu1 %v13497_v40  ;;  %v12598_v24 = vld [vmem:[#allocation8 + $0x428] sm:$0xf0]  ;;  %v12509_v18 = vor.u32 %v17048_v41, %v12508_v33  ;;  %v17016_v41 = vld [vmem:[#allocation8 + $0x26c] sm:$0xf0] }
 0x24e   :  { %5622 = vmatpush.bf16.msrb.mxu0 %v13209_v61  ;;  %v17187_v25 = vld [vmem:[#allocation8 + $0x7cc] sm:$0xf]  ;;  %v12601_v32 = vor.u32 %v17067_v23, %v12598_v24  ;;  %5560 = vmatpush.bf16.msrb.mxu3 %v13877_v31  ;;  %v12284_v61 = vld [vmem:[#allocation8 + $0x190] sm:$0xf] }
 0x24f   :  { %v13078_v26 = vld [vmem:[#allocation8 + $0x7e8] sm:$0xf0]  ;;  %v16976_v23 = vld [vmem:[#allocation8 + $0x12c] sm:$0xf0] }
 0x250   :  { %5597 = vmatpush.bf16.msra.mxu2 %v12665_v6  ;;  %v17379_v28 = vld [vmem:[#allocation8 + $0xdcc] sm:$0xf]  ;;  %v13081_v35 = vor.u32 %v17187_v25, %v13078_v26  ;;  %v17056_v6 = vld [vmem:[#allocation8 + $0x3ac] sm:$0xf0] }
 0x251   :  { %5635 = vmatpush.bf16.msrb.mxu1 %v13465_v62  ;;  %v13846_v29 = vld [vmem:[#allocation8 + $0xde8] sm:$0xf0]  ;;  %v16992_v62 = vld [vmem:[#allocation8 + $0x1ac] sm:$0xf0]  ;;  %5561 = vmatmul.bf16.vlgmr.msrb.gmra.mxu3 %v18550_v5  ;;  %v12541_v42 = vor.u32 %v17056_v6, %v12540_v1 }
 0x252   :  { %5623 = vmatpush.bf16.msrb.mxu0 %v13177_v55  ;;  %v17195_v36 = vld [vmem:[#allocation8 + $0x80c] sm:$0xf]  ;;  %v13849_v39 = vor.u32 %v17379_v28, %v13846_v29  ;;  %5605 = vmatpush.bf16.msra.mxu3 %v13081_v35  ;;  %v12285_v11 = vor.u32 %v16992_v62, %v12284_v61  ;;  %v16984_v55 = vld [vmem:[#allocation8 + $0x16c] sm:$0xf0] }
 0x253   :  { %v13110_v37 = vld [vmem:[#allocation8 + $0x828] sm:$0xf0]  ;;  %v12253_v17 = vor.u32 %v16984_v55, %v12252_v12  ;;  %v12476_v26 = vld [vmem:[#allocation8 + $0x310] sm:$0xf] }
 0x254   :  { %5598 = vmatpush.bf16.msra.mxu2 %v12633_v7  ;;  %v17259_v38 = vld [vmem:[#allocation8 + $0xa0c] sm:$0xf]  ;;  %v13113_v56 = vor.u32 %v17195_v36, %v13110_v37  ;;  %v17040_v28 = vld [vmem:[#allocation8 + $0x32c] sm:$0xf0]  ;;  %v12221_v37 = vor.u32 %v16976_v23, %v12220_v19 }
 0x255   :  { %5636 = vmatpush.bf16.msrb.mxu1 %v13433_v13  ;;  %v13366_v40 = vld [vmem:[#allocation8 + $0xa28] sm:$0xf0]  ;;  %v12188_v35 = vld [vmem:[#allocation8 + $0xd0] sm:$0xf] }
 0x256   :  { %v17179_v49 = vld [vmem:[#allocation8 + $0x78c] sm:$0xf]  ;;  %5624 = vmatpush.bf16.msrb.mxu0 %v13145_v3  ;;  %v13369_v57 = vor.u32 %v17259_v38, %v13366_v40  ;;  %v12477_v38 = vor.u32 %v17040_v28, %v12476_v26  ;;  %v5341_v40 = vpop.f32.mrf.mxu2  ;;  %v16952_v12 = vld [vmem:[#allocation8 + $0x6c] sm:$0xf0] }
 0x257   :  { %v13046_v27 = vld [vmem:[#allocation8 + $0x7a8] sm:$0xf0]  ;;  %v12380_v55 = vld [vmem:[#allocation8 + $0x250] sm:$0xf] }
 0x258   :  { %v17371_v53 = vld [vmem:[#allocation8 + $0xd8c] sm:$0xf]  ;;  %5599 = vmatpush.bf16.msra.mxu2 %v12601_v32  ;;  %v13049_v63 = vor.u32 %v17179_v49, %v13046_v27  ;;  %v18588_v27 = vadd.f32 %v5341_v40, %v18574_v21  ;;  %v12828_v19 = vld [vmem:[#allocation8 + $0x5d0] sm:$0xf] }
 0x259   :  { %5637 = vmatpush.bf16.msrb.mxu1 %v13401_v30  ;;  %v13814_v54 = vld [vmem:[#allocation8 + $0xda8] sm:$0xf0]  ;;  %v17128_v23 = vld [vmem:[#allocation8 + $0x5ec] sm:$0xf0] }
 0x25a   :  { %v13817_v0 = vor.u32 %v17371_v53, %v13814_v54  ;;  %v17171_v8 = vld [vmem:[#allocation8 + $0x74c] sm:$0xf]  ;;  %5625 = vmatpush.bf16.msrb.mxu0 %v13113_v56  ;;  %5606 = vmatpush.bf16.msra.mxu3 %v13049_v63  ;;  %v18583_v32 = vpop.f32.mrf.mxu0  ;;  %v12412_v63 = vld [vmem:[#allocation8 + $0x290] sm:$0xf] }
 0x25b   :  { %5600 = vmatmul.bf16.vlgmr.msra.gmra.mxu2 %v18522_v51  ;;  %v13014_v9 = vld [vmem:[#allocation8 + $0x768] sm:$0xf0]  ;;  %v13596_v40 = vld [vmem:[#allocation8 + $0xbd0] sm:$0xf] }
 0x25c   :  { %5644 = vmatpush.bf16.msrb.mxu2 %v13849_v39  ;;  %v17363_v10 = vld [vmem:[#allocation8 + $0xd4c] sm:$0xf]  ;;  %v13017_v13 = vor.u32 %v17171_v8, %v13014_v9  ;;  %v16968_v39 = vld [vmem:[#allocation8 + $0xec] sm:$0xf0] }
 0x25d   :  { %v13782_v34 = vld [vmem:[#allocation8 + $0xd68] sm:$0xf0]  ;;  %5638 = vmatpush.bf16.msrb.mxu1 %v13369_v57  ;;  %5626 = vmatmul.bf16.vlgmr.msrb.gmra.mxu0 %v18533_v16  ;;  %v18585_v36 = vpop.f32.mrf.mxu1  ;;  %v12189_v57 = vor.u32 %v16968_v39, %v12188_v35  ;;  %v13340_v35 = vld [vmem:[#allocation8 + $0x9d0] sm:$0xf] }
 0x25e   :  { %5670 = vmatpush.bf16.msra.mxu0 %v12317_v59  ;;  %v13785_v14 = vor.u32 %v17363_v10, %v13782_v34  ;;  %v17163_v2 = vld [vmem:[#allocation8 + $0x70c] sm:$0xf]  ;;  %5607 = vmatpush.bf16.msra.mxu3 %v13017_v13  ;;  %v12156_v59 = vld [vmem:[#allocation8 + $0x90] sm:$0xf]  ;;  %v5343_v13 = vpop.f32.mrf.mxu2 }
 0x25f   :  { %v12982_v15 = vld [vmem:[#allocation8 + $0x728] sm:$0xf0]  ;;  %v17256_v39 = vld [vmem:[#allocation8 + $0x9ec] sm:$0xf0] }
 0x260   :  { %5645 = vmatpush.bf16.msrb.mxu2 %v13817_v0  ;;  %5639 = vmatmul.bf16.vlgmr.msrb.gmra.mxu1 %v18537_v4  ;;  %v17355_v7 = vld [vmem:[#allocation8 + $0xd0c] sm:$0xf]  ;;  %v12985_v24 = vor.u32 %v17163_v2, %v12982_v15  ;;  %v17024_v0 = vld [vmem:[#allocation8 + $0x2ac] sm:$0xf0] }
 0x261   :  { %5683 = vmatpush.bf16.msra.mxu1 %v12573_v60  ;;  %v13750_v50 = vld [vmem:[#allocation8 + $0xd28] sm:$0xf0]  ;;  %v16960_v60 = vld [vmem:[#allocation8 + $0xac] sm:$0xf0] }
 0x262   :  { %5671 = vmatpush.bf16.msra.mxu0 %v12285_v11  ;;  %v13753_v25 = vor.u32 %v17355_v7, %v13750_v50  ;;  %v17155_v29 = vld [vmem:[#allocation8 + $0x6cc] sm:$0xf]  ;;  %5608 = vmatpush.bf16.msra.mxu3 %v12985_v24  ;;  %v5421_v9 = vpop.f32.mrf.mxu0  ;;  %v12157_v34 = vor.u32 %v16960_v60, %v12156_v59  ;;  %v12413_v11 = vor.u32 %v17024_v0, %v12412_v63  ;;  %v13308_v60 = vld [vmem:[#allocation8 + $0x990] sm:$0xf] }
 0x263   :  { %v12950_v3 = vld [vmem:[#allocation8 + $0x6e8] sm:$0xf0]  ;;  %v13564_v0 = vld [vmem:[#allocation8 + $0xb90] sm:$0xf] }
 0x264   :  { %5646 = vmatpush.bf16.msrb.mxu2 %v13785_v14  ;;  %v17347_v30 = vld [vmem:[#allocation8 + $0xccc] sm:$0xf]  ;;  %v12953_v43 = vor.u32 %v17155_v29, %v12950_v3  ;;  %v12092_v29 = vld [vmem:[#allocation8 + $0x10] sm:$0xf] }
 0x265   :  { %5684 = vmatpush.bf16.msra.mxu1 %v12541_v42  ;;  %v13718_v31 = vld [vmem:[#allocation8 + $0xce8] sm:$0xf0]  ;;  %v5434_v10 = vpop.f32.mrf.mxu1  ;;  %v12124_v42 = vld [vmem:[#allocation8 + $0x50] sm:$0xf] }
 0x266   :  { %5672 = vmatpush.bf16.msra.mxu0 %v12253_v17  ;;  %v13721_v44 = vor.u32 %v17347_v30, %v13718_v31  ;;  %v17147_v49 = vld [vmem:[#allocation8 + $0x68c] sm:$0xf]  ;;  %5609 = vmatpush.bf16.msra.mxu3 %v12953_v43  ;;  %v12125_v24 = vor.u32 %v16952_v12, %v12124_v42  ;;  %v16944_v3 = vld [vmem:[#allocation8 + $0x2c] sm:$0xf0] }
 0x267   :  { %v12918_v53 = vld [vmem:[#allocation8 + $0x6a8] sm:$0xf0]  ;;  %v12348_v30 = vld [vmem:[#allocation8 + $0x210] sm:$0xf] }
 0x268   :  { %5647 = vmatpush.bf16.msrb.mxu2 %v13753_v25  ;;  %v17339_v54 = vld [vmem:[#allocation8 + $0xc8c] sm:$0xf]  ;;  %v12921_v61 = vor.u32 %v17147_v49, %v12918_v53  ;;  %v12381_v25 = vor.u32 %v17016_v41, %v12380_v55  ;;  %v17320_v43 = vld [vmem:[#allocation8 + $0xbec] sm:$0xf0]  ;;  %v5393_v53 = vpop.f32.mrf.mxu2 }
 0x269   :  { %5685 = vmatpush.bf16.msra.mxu1 %v12509_v18  ;;  %v13686_v56 = vld [vmem:[#allocation8 + $0xca8] sm:$0xf0]  ;;  %v17120_v49 = vld [vmem:[#allocation8 + $0x5ac] sm:$0xf0]  ;;  %v13597_v59 = vor.u32 %v17320_v43, %v13596_v40 }
 0x26a   :  { %5673 = vmatpush.bf16.msra.mxu0 %v12221_v37  ;;  %v13689_v62 = vor.u32 %v17339_v54, %v13686_v56  ;;  %v17139_v1 = vld [vmem:[#allocation8 + $0x64c] sm:$0xf]  ;;  %5610 = vmatpush.bf16.msra.mxu3 %v12921_v61  ;;  %v12829_v37 = vor.u32 %v17128_v23, %v12828_v19  ;;  %v12093_v54 = vor.u32 %v16944_v3, %v12092_v29  ;;  %v17248_v61 = vld [vmem:[#allocation8 + $0x9ac] sm:$0xf0] }
 0x26b   :  { %v12886_v6 = vld [vmem:[#allocation8 + $0x668] sm:$0xf0]  ;;  %v12797_v63 = vor.u32 %v17120_v49, %v12796_v46  ;;  %v17112_v9 = vld [vmem:[#allocation8 + $0x56c] sm:$0xf0] }
 0x26c   :  { %5648 = vmatpush.bf16.msrb.mxu2 %v13721_v44  ;;  %v17331_v8 = vld [vmem:[#allocation8 + $0xc4c] sm:$0xf]  ;;  %v12889_v14 = vor.u32 %v17139_v1, %v12886_v6  ;;  %v17312_v1 = vld [vmem:[#allocation8 + $0xbac] sm:$0xf0] }
 0x26d   :  { %5686 = vmatpush.bf16.msra.mxu1 %v12477_v38  ;;  %v13654_v21 = vld [vmem:[#allocation8 + $0xc68] sm:$0xf0]  ;;  %v17008_v38 = vld [vmem:[#allocation8 + $0x22c] sm:$0xf0]  ;;  %v13565_v10 = vor.u32 %v17312_v1, %v13564_v0 }
 0x26e   :  { %5674 = vmatpush.bf16.msra.mxu0 %v12189_v57  ;;  %v13657_v33 = vor.u32 %v17331_v8, %v13654_v21  ;;  %v17131_v2 = vld [vmem:[#allocation8 + $0x60c] sm:$0xf]  ;;  %5611 = vmatpush.bf16.msra.mxu3 %v12889_v14  ;;  %v12349_v56 = vor.u32 %v17008_v38, %v12348_v30  ;;  %v18591_v57 = vadd.f32 %v5393_v53, %v18577_v22  ;;  %v12764_v21 = vld [vmem:[#allocation8 + $0x550] sm:$0xf] }
 0x26f   :  { %v12854_v15 = vld [vmem:[#allocation8 + $0x628] sm:$0xf0]  ;;  %v13309_v22 = vor.u32 %v17248_v61, %v13308_v60  ;;  %v12765_v12 = vor.u32 %v17112_v9, %v12764_v21  ;;  %v13532_v55 = vld [vmem:[#allocation8 + $0xb50] sm:$0xf] }
 0x270   :  { %5649 = vmatpush.bf16.msrb.mxu2 %v13689_v62  ;;  %v17323_v7 = vld [vmem:[#allocation8 + $0xc0c] sm:$0xf]  ;;  %v12857_v26 = vor.u32 %v17131_v2, %v12854_v15  ;;  %v17304_v13 = vld [vmem:[#allocation8 + $0xb6c] sm:$0xf0]  ;;  %v5395_v15 = vpop.f32.mrf.mxu2 }
 0x271   :  { %5687 = vmatpush.bf16.msra.mxu1 %v12445_v58  ;;  %v13622_v50 = vld [vmem:[#allocation8 + $0xc28] sm:$0xf0]  ;;  %v13341_v58 = vor.u32 %v17256_v39, %v13340_v35  ;;  %v12732_v41 = vld [vmem:[#allocation8 + $0x510] sm:$0xf] }
 0x272   :  { %v17443_v17 = vld [vmem:[#allocation8 + $0xfcc] sm:$0xf]  ;;  %5675 = vmatpush.bf16.msra.mxu0 %v12157_v34  ;;  %v13625_v28 = vor.u32 %v17323_v7, %v13622_v50  ;;  %5612 = vmatpush.bf16.msra.mxu3 %v12857_v26  ;;  %v13276_v34 = vld [vmem:[#allocation8 + $0x950] sm:$0xf]  ;;  %v13533_v50 = vor.u32 %v17304_v13, %v13532_v55 }
 0x273   :  { %v14102_v18 = vld [vmem:[#allocation8 + $0xfe8] sm:$0xf0]  ;;  %v17104_v2 = vld [vmem:[#allocation8 + $0x52c] sm:$0xf0] }
 0x274   :  { %5650 = vmatpush.bf16.msrb.mxu2 %v13657_v33  ;;  %v14105_v31 = vor.u32 %v17443_v17, %v14102_v18  ;;  %v17435_v44 = vld [vmem:[#allocation8 + $0xf8c] sm:$0xf]  ;;  %v18597_v17 = vld [vmem:[#allocation10] sm:$0xff]  ;;  %v13244_v19 = vld [vmem:[#allocation8 + $0x910] sm:$0xf] }
 0x275   :  { %5688 = vmatpush.bf16.msra.mxu1 %v12413_v11  ;;  %v14070_v45 = vld [vmem:[#allocation8 + $0xfa8] sm:$0xf0]  ;;  %5613 = vmatmul.bf16.vlgmr.msra.gmra.mxu3 %v18524_v52  ;;  %v17240_v11 = vld [vmem:[#allocation8 + $0x96c] sm:$0xf0]  ;;  %v2680_v18 = vperm.slane %v18597_v17, 2 }
 0x276   :  { %5676 = vmatpush.bf16.msra.mxu0 %v12125_v24  ;;  %5657 = vmatpush.bf16.msrb.mxu3 %v14105_v31  ;;  %v14073_v62 = vor.u32 %v17435_v44, %v14070_v45  ;;  %v17427_v6 = vld [vmem:[#allocation8 + $0xf4c] sm:$0xf]  ;;  %v13277_v7 = vor.u32 %v17240_v11, %v13276_v34  ;;  %v17232_v23 = vld [vmem:[#allocation8 + $0x92c] sm:$0xf0]  ;;  %v5354_v45 = vpop.f32.mrf.mxu3 }
 0x277   :  { %v14038_v8 = vld [vmem:[#allocation8 + $0xf68] sm:$0xf0]  ;;  %v13500_v26 = vld [vmem:[#allocation8 + $0xb10] sm:$0xf]  ;;  %v13245_v35 = vor.u32 %v17232_v23, %v13244_v19 }
 0x278   :  { %5651 = vmatpush.bf16.msrb.mxu2 %v13625_v28  ;;  %v14041_v42 = vor.u32 %v17427_v6, %v14038_v8  ;;  %v17419_v14 = vld [vmem:[#allocation8 + $0xf0c] sm:$0xf]  ;;  %v17296_v28 = vld [vmem:[#allocation8 + $0xb2c] sm:$0xf0] }
 0x279   :  { %5689 = vmatpush.bf16.msra.mxu1 %v12381_v25  ;;  %v14006_v33 = vld [vmem:[#allocation8 + $0xf28] sm:$0xf0]  ;;  %v12733_v25 = vor.u32 %v17104_v2, %v12732_v41  ;;  %v12700_v30 = vld [vmem:[#allocation8 + $0x4d0] sm:$0xf]  ;;  %v13501_v39 = vor.u32 %v17296_v28, %v13500_v26 }
 0x27a   :  { %5677 = vmatpush.bf16.msra.mxu0 %v12093_v54  ;;  %5658 = vmatpush.bf16.msrb.mxu3 %v14073_v62  ;;  %v14009_v24 = vor.u32 %v17419_v14, %v14006_v33  ;;  %v17411_v29 = vld [vmem:[#allocation8 + $0xecc] sm:$0xf]  ;;  %v17096_v31 = vld [vmem:[#allocation8 + $0x4ec] sm:$0xf0] }
 0x27b   :  { %5652 = vmatmul.bf16.vlgmr.msrb.gmra.mxu2 %v18543_v20  ;;  %v13974_v3 = vld [vmem:[#allocation8 + $0xee8] sm:$0xf0]  ;;  %v13212_v40 = vld [vmem:[#allocation8 + $0x8d0] sm:$0xf]  ;;  %v12701_v49 = vor.u32 %v17096_v31, %v12700_v30 }
 0x27c   :  { %5696 = vmatpush.bf16.msra.mxu2 %v12829_v37  ;;  %v5471_v37 = vpop.f32.mrf.mxu0  ;;  %v17224_v43 = vld [vmem:[#allocation8 + $0x8ec] sm:$0xf0]  ;;  %v13977_v46 = vor.u32 %v17411_v29, %v13974_v3  ;;  %v13910_v34 = vld [vmem:[#allocation8 + $0xe68] sm:$0xf0] }
 0x27d   :  { %5690 = vmatpush.bf16.msra.mxu1 %v12349_v56  ;;  %5678 = vmatmul.bf16.vlgmr.msra.gmra.mxu0 %v18518_v47  ;;  %v5484_v38 = vpop.f32.mrf.mxu1  ;;  %v5472_v44 = vadd.f32 %v5471_v37, %v2680_v18  ;;  %v13468_v53 = vld [vmem:[#allocation8 + $0xad0] sm:$0xf]  ;;  %v17403_v56 = vld [vmem:[#allocation8 + $0xe8c] sm:$0xf]  ;;  %v13213_v0 = vor.u32 %v17224_v43, %v13212_v40 }
 0x27e   :  { %5722 = vmatpush.bf16.msrb.mxu0 %v13341_v58  ;;  %5659 = vmatpush.bf16.msrb.mxu3 %v14041_v42  ;;  %v17288_v54 = vld [vmem:[#allocation8 + $0xaec] sm:$0xf0]  ;;  %v18601_v58 = vadd.f32 %v5354_v45, %v18588_v27  ;;  %v5356_v15 = vpop.f32.mrf.mxu3  ;;  %v17387_v19 = vld [vmem:[#allocation8 + $0xe0c] sm:$0xf] }
 0x27f   :  { %v12668_v60 = vld [vmem:[#allocation8 + $0x490] sm:$0xf]  ;;  %v18603_v62 = vadd.f32 %v5484_v38, %v5472_v44  ;;  %v13469_v1 = vor.u32 %v17288_v54, %v13468_v53  ;;  %v13878_v23 = vld [vmem:[#allocation8 + $0xe28] sm:$0xf0]  ;;  %v12318_v53 = vld [vmem:[#allocation8 + $0x1f0] sm:$0xf0] }
 0x280   :  { %5697 = vmatpush.bf16.msra.mxu2 %v12797_v63  ;;  %5691 = vmatmul.bf16.vlgmr.msra.gmra.mxu1 %v18520_v48  ;;  %v17088_v61 = vld [vmem:[#allocation8 + $0x4ac] sm:$0xf0]  ;;  %v18605_v63 = vpop.f32.mrf.mxu2  ;;  %v13881_v38 = vor.u32 %v17387_v19, %v13878_v23  ;;  %v17060_v54 = vld [vmem:[#allocation8 + $0x3d4] sm:$0xf] }
 0x281   :  { %5735 = vmatpush.bf16.msrb.mxu1 %v13597_v59  ;;  %v13942_v59 = vld [vmem:[#allocation8 + $0xea8] sm:$0xf0]  ;;  %v13180_v6 = vld [vmem:[#allocation8 + $0x890] sm:$0xf]  ;;  %v12669_v9 = vor.u32 %v17088_v61, %v12668_v60  ;;  %v16980_v15 = vld [vmem:[#allocation8 + $0x154] sm:$0xf] }
 0x282   :  { %5723 = vmatpush.bf16.msrb.mxu0 %v13309_v22  ;;  %5660 = vmatpush.bf16.msrb.mxu3 %v14009_v24  ;;  %v17216_v8 = vld [vmem:[#allocation8 + $0x8ac] sm:$0xf0]  ;;  %v13945_v21 = vor.u32 %v17403_v56, %v13942_v59  ;;  %v12574_v56 = vld [vmem:[#allocation8 + $0x3f0] sm:$0xf0] }
 0x283   :  { %v13436_v22 = vld [vmem:[#allocation8 + $0xa90] sm:$0xf]  ;;  %v13181_v13 = vor.u32 %v17216_v8, %v13180_v6  ;;  %v17044_v19 = vld [vmem:[#allocation8 + $0x354] sm:$0xf] }
 0x284   :  { %5698 = vmatpush.bf16.msra.mxu2 %v12765_v12  ;;  %v17280_v27 = vld [vmem:[#allocation8 + $0xaac] sm:$0xf0]  ;;  %v5473_v12 = vpop.f32.mrf.mxu0  ;;  %v12510_v23 = vld [vmem:[#allocation8 + $0x370] sm:$0xf0] }
 0x285   :  { %5736 = vmatpush.bf16.msrb.mxu1 %v13565_v10  ;;  %v17395_v10 = vld [vmem:[#allocation8 + $0xe4c] sm:$0xf]  ;;  %v12636_v11 = vld [vmem:[#allocation8 + $0x450] sm:$0xf]  ;;  %v5486_v55 = vpop.f32.mrf.mxu1  ;;  %v13437_v14 = vor.u32 %v17280_v27, %v13436_v22  ;;  %v12577_v22 = vor.u32 %v17060_v54, %v12574_v56  ;;  %v16988_v27 = vld [vmem:[#allocation8 + $0x194] sm:$0xf] }
 0x286   :  { %5724 = vmatpush.bf16.msrb.mxu0 %v13277_v7  ;;  %5661 = vmatpush.bf16.msrb.mxu3 %v13977_v46  ;;  %v17080_v42 = vld [vmem:[#allocation8 + $0x46c] sm:$0xf0]  ;;  %v13913_v7 = vor.u32 %v17395_v10, %v13910_v34  ;;  %v12286_v10 = vld [vmem:[#allocation8 + $0x1b0] sm:$0xf0] }
 0x287   :  { %v13148_v33 = vld [vmem:[#allocation8 + $0x850] sm:$0xf]  ;;  %v12542_v12 = vld [vmem:[#allocation8 + $0x3b0] sm:$0xf0] }
 0x288   :  { %5699 = vmatpush.bf16.msra.mxu2 %v12733_v25  ;;  %v17208_v41 = vld [vmem:[#allocation8 + $0x86c] sm:$0xf0]  ;;  %v5447_v28 = vpop.f32.mrf.mxu2  ;;  %v16964_v56 = vld [vmem:[#allocation8 + $0xd4] sm:$0xf] }
 0x289   :  { %5737 = vmatpush.bf16.msrb.mxu1 %v13533_v50  ;;  %v13404_v2 = vld [vmem:[#allocation8 + $0xa50] sm:$0xf]  ;;  %v12637_v50 = vor.u32 %v17080_v42, %v12636_v11  ;;  %v13149_v31 = vor.u32 %v17208_v41, %v13148_v33  ;;  %v17052_v42 = vld [vmem:[#allocation8 + $0x394] sm:$0xf] }
 0x28a   :  { %5725 = vmatpush.bf16.msrb.mxu0 %v13245_v35  ;;  %5662 = vmatpush.bf16.msrb.mxu3 %v13945_v21  ;;  %v17272_v18 = vld [vmem:[#allocation8 + $0xa6c] sm:$0xf0] }
 0x28b   :  { %v12604_v24 = vld [vmem:[#allocation8 + $0x410] sm:$0xf]  ;;  %v13405_v37 = vor.u32 %v17272_v18, %v13404_v2  ;;  %v12545_v2 = vor.u32 %v17052_v42, %v12542_v12  ;;  %v16956_v12 = vld [vmem:[#allocation8 + $0x94] sm:$0xf] }
 0x28c   :  { %5700 = vmatpush.bf16.msra.mxu2 %v12701_v49  ;;  %v17072_v25 = vld [vmem:[#allocation8 + $0x42c] sm:$0xf0]  ;;  %v16996_v49 = vld [vmem:[#allocation8 + $0x1d4] sm:$0xf] }
 0x28d   :  { %5738 = vmatpush.bf16.msrb.mxu1 %v13501_v39  ;;  %v13084_v26 = vld [vmem:[#allocation8 + $0x7d0] sm:$0xf]  ;;  %v12605_v35 = vor.u32 %v17072_v25, %v12604_v24 }
 0x28e   :  { %5726 = vmatpush.bf16.msrb.mxu0 %v13213_v0  ;;  %v17192_v29 = vld [vmem:[#allocation8 + $0x7ec] sm:$0xf0]  ;;  %5663 = vmatpush.bf16.msrb.mxu3 %v13913_v7  ;;  %v12254_v7 = vld [vmem:[#allocation8 + $0x170] sm:$0xf0] }
 0x28f   :  { %v13852_v3 = vld [vmem:[#allocation8 + $0xdd0] sm:$0xf]  ;;  %v13085_v44 = vor.u32 %v17192_v29, %v13084_v26 }
 0x290   :  { %5701 = vmatpush.bf16.msra.mxu2 %v12669_v9  ;;  %v17384_v30 = vld [vmem:[#allocation8 + $0xdec] sm:$0xf0]  ;;  %v12321_v9 = vor.u32 %v16996_v49, %v12318_v53 }
 0x291   :  { %5739 = vmatpush.bf16.msrb.mxu1 %v13469_v1  ;;  %v13116_v39 = vld [vmem:[#allocation8 + $0x810] sm:$0xf]  ;;  %v13853_v45 = vor.u32 %v17384_v30, %v13852_v3  ;;  %v5406_v1 = vpop.f32.mrf.mxu3  ;;  %v12513_v30 = vor.u32 %v17044_v19, %v12510_v23  ;;  %v16948_v19 = vld [vmem:[#allocation8 + $0x54] sm:$0xf] }
 0x292   :  { %5727 = vmatpush.bf16.msrb.mxu0 %v13181_v13  ;;  %v17200_v40 = vld [vmem:[#allocation8 + $0x82c] sm:$0xf0]  ;;  %5664 = vmatpush.bf16.msrb.mxu3 %v13881_v38  ;;  %v5407_v21 = vadd.f32 %v5406_v1, %v18591_v57  ;;  %v12289_v57 = vor.u32 %v16988_v27, %v12286_v10  ;;  %v12446_v1 = vld [vmem:[#allocation8 + $0x2f0] sm:$0xf0] }
 0x293   :  { %v13372_v43 = vld [vmem:[#allocation8 + $0xa10] sm:$0xf]  ;;  %v13117_v6 = vor.u32 %v17200_v40, %v13116_v39  ;;  %v17036_v39 = vld [vmem:[#allocation8 + $0x314] sm:$0xf] }
 0x294   :  { %5702 = vmatpush.bf16.msra.mxu2 %v12637_v50  ;;  %v17264_v46 = vld [vmem:[#allocation8 + $0xa2c] sm:$0xf0]  ;;  %v5420_v13 = vadd.f32 %v18583_v32, %v5407_v21  ;;  %v12478_v40 = vld [vmem:[#allocation8 + $0x330] sm:$0xf0] }
 0x295   :  { %5740 = vmatpush.bf16.msrb.mxu1 %v13437_v14  ;;  %v13052_v59 = vld [vmem:[#allocation8 + $0x790] sm:$0xf]  ;;  %v13373_v8 = vor.u32 %v17264_v46, %v13372_v43  ;;  %5665 = vmatmul.bf16.vlgmr.msrb.gmra.mxu3 %v18550_v5  ;;  %v12481_v54 = vor.u32 %v17036_v39, %v12478_v40  ;;  %v12126_v23 = vld [vmem:[#allocation8 + $0x70] sm:$0xf0] }
 0x296   :  { %5728 = vmatpush.bf16.msrb.mxu0 %v13149_v31  ;;  %v17184_v60 = vld [vmem:[#allocation8 + $0x7ac] sm:$0xf0]  ;;  %5709 = vmatpush.bf16.msra.mxu3 %v13085_v44  ;;  %v5433_v50 = vadd.f32 %v18585_v36, %v5420_v13  ;;  %v12257_v36 = vor.u32 %v16980_v15, %v12254_v7  ;;  %v16972_v31 = vld [vmem:[#allocation8 + $0x114] sm:$0xf] }
 0x297   :  { %v13820_v61 = vld [vmem:[#allocation8 + $0xd90] sm:$0xf]  ;;  %v13053_v34 = vor.u32 %v17184_v60, %v13052_v59  ;;  %v12190_v59 = vld [vmem:[#allocation8 + $0xf0] sm:$0xf0] }
 0x298   :  { %v17376_v0 = vld [vmem:[#allocation8 + $0xdac] sm:$0xf0]  ;;  %5703 = vmatpush.bf16.msra.mxu2 %v12605_v35  ;;  %v5446_v29 = vadd.f32 %v18605_v63, %v5433_v50  ;;  %v17124_v39 = vld [vmem:[#allocation8 + $0x5d4] sm:$0xf] }
 0x299   :  { %5741 = vmatpush.bf16.msrb.mxu1 %v13405_v37  ;;  %v13821_v11 = vor.u32 %v17376_v0, %v13820_v61  ;;  %v13020_v55 = vld [vmem:[#allocation8 + $0x750] sm:$0xf]  ;;  %v5408_v3 = vpop.f32.mrf.mxu3  ;;  %v12222_v37 = vld [vmem:[#allocation8 + $0x130] sm:$0xf0] }
 0x29a   :  { %v17176_v14 = vld [vmem:[#allocation8 + $0x76c] sm:$0xf0]  ;;  %5729 = vmatpush.bf16.msrb.mxu0 %v13117_v6  ;;  %5710 = vmatpush.bf16.msra.mxu3 %v13053_v34  ;;  %v18615_v49 = vpop.f32.mrf.mxu0  ;;  %v12225_v53 = vor.u32 %v16972_v31, %v12222_v37  ;;  %v17028_v0 = vld [vmem:[#allocation8 + $0x2d4] sm:$0xf] }
 0x29b   :  { %5704 = vmatmul.bf16.vlgmr.msra.gmra.mxu2 %v18522_v51  ;;  %v13788_v33 = vld [vmem:[#allocation8 + $0xd50] sm:$0xf]  ;;  %v13021_v32 = vor.u32 %v17176_v14, %v13020_v55  ;;  %v12449_v42 = vor.u32 %v17028_v0, %v12446_v1  ;;  %v12158_v55 = vld [vmem:[#allocation8 + $0xb0] sm:$0xf0] }
 0x29c   :  { %5748 = vmatpush.bf16.msrb.mxu2 %v13853_v45  ;;  %v17368_v41 = vld [vmem:[#allocation8 + $0xd6c] sm:$0xf0]  ;;  %v12830_v40 = vld [vmem:[#allocation8 + $0x5f0] sm:$0xf0] }
 0x29d   :  { %5742 = vmatpush.bf16.msrb.mxu1 %v13373_v8  ;;  %v13789_v18 = vor.u32 %v17368_v41, %v13788_v33  ;;  %v12988_v24 = vld [vmem:[#allocation8 + $0x710] sm:$0xf]  ;;  %5730 = vmatmul.bf16.vlgmr.msrb.gmra.mxu0 %v18533_v16  ;;  %v18617_v63 = vpop.f32.mrf.mxu1  ;;  %v17020_v33 = vld [vmem:[#allocation8 + $0x294] sm:$0xf] }
 0x29e   :  { %5774 = vmatpush.bf16.msra.mxu0 %v12321_v9  ;;  %v17168_v25 = vld [vmem:[#allocation8 + $0x72c] sm:$0xf0]  ;;  %5711 = vmatpush.bf16.msra.mxu3 %v13021_v32  ;;  %v5497_v8 = vpop.f32.mrf.mxu2  ;;  %v12414_v41 = vld [vmem:[#allocation8 + $0x2b0] sm:$0xf0]  ;;  %v12161_v32 = vor.u32 %v16956_v12, %v12158_v55 }
 0x29f   :  { %v13756_v26 = vld [vmem:[#allocation8 + $0xd10] sm:$0xf]  ;;  %v12989_v38 = vor.u32 %v17168_v25, %v12988_v24  ;;  %v18620_v27 = vadd.f32 %v5497_v8, %v18603_v62  ;;  %v17012_v24 = vld [vmem:[#allocation8 + $0x254] sm:$0xf] }
 0x2a0   :  { %5749 = vmatpush.bf16.msrb.mxu2 %v13821_v11  ;;  %5743 = vmatmul.bf16.vlgmr.msrb.gmra.mxu1 %v18537_v4  ;;  %v17360_v28 = vld [vmem:[#allocation8 + $0xd2c] sm:$0xf0]  ;;  %v12193_v11 = vor.u32 %v16964_v56, %v12190_v59  ;;  %v17004_v56 = vld [vmem:[#allocation8 + $0x214] sm:$0xf] }
 0x2a1   :  { %5787 = vmatpush.bf16.msra.mxu1 %v12577_v22  ;;  %v13757_v35 = vor.u32 %v17360_v28, %v13756_v26  ;;  %v12956_v43 = vld [vmem:[#allocation8 + $0x6d0] sm:$0xf]  ;;  %v5458_v10 = vpop.f32.mrf.mxu3  ;;  %v12382_v28 = vld [vmem:[#allocation8 + $0x270] sm:$0xf0] }
 0x2a2   :  { %5775 = vmatpush.bf16.msra.mxu0 %v12289_v57  ;;  %v17160_v44 = vld [vmem:[#allocation8 + $0x6ec] sm:$0xf0]  ;;  %5712 = vmatpush.bf16.msra.mxu3 %v12989_v38  ;;  %v18622_v34 = vadd.f32 %v5458_v10, %v5446_v29  ;;  %v5525_v7 = vpop.f32.mrf.mxu0  ;;  %v17252_v0 = vld [vmem:[#allocation8 + $0x9d4] sm:$0xf] }
 0x2a3   :  { %v13724_v45 = vld [vmem:[#allocation8 + $0xcd0] sm:$0xf]  ;;  %v12957_v60 = vor.u32 %v17160_v44, %v12956_v43  ;;  %v12129_v43 = vor.u32 %v16948_v19, %v12126_v23  ;;  %v12385_v44 = vor.u32 %v17012_v24, %v12382_v28  ;;  %v13342_v1 = vld [vmem:[#allocation8 + $0x9f0] sm:$0xf0] }
 0x2a4   :  { %5750 = vmatpush.bf16.msrb.mxu2 %v13789_v18  ;;  %v17352_v46 = vld [vmem:[#allocation8 + $0xcec] sm:$0xf0]  ;;  %v12417_v18 = vor.u32 %v17020_v33, %v12414_v41  ;;  %v13598_v8 = vld [vmem:[#allocation8 + $0xbf0] sm:$0xf0]  ;;  %v13345_v12 = vor.u32 %v17252_v0, %v13342_v1 }
 0x2a5   :  { %5788 = vmatpush.bf16.msra.mxu1 %v12545_v2  ;;  %v13725_v61 = vor.u32 %v17352_v46, %v13724_v45  ;;  %v12924_v6 = vld [vmem:[#allocation8 + $0x690] sm:$0xf]  ;;  %v5538_v50 = vpop.f32.mrf.mxu1  ;;  %v12798_v10 = vld [vmem:[#allocation8 + $0x5b0] sm:$0xf0] }
 0x2a6   :  { %5776 = vmatpush.bf16.msra.mxu0 %v12257_v36  ;;  %v17152_v21 = vld [vmem:[#allocation8 + $0x6ac] sm:$0xf0]  ;;  %5713 = vmatpush.bf16.msra.mxu3 %v12957_v60  ;;  %v5499_v36 = vpop.f32.mrf.mxu2  ;;  %v12833_v60 = vor.u32 %v17124_v39, %v12830_v40  ;;  %v17108_v7 = vld [vmem:[#allocation8 + $0x554] sm:$0xf] }
 0x2a7   :  { %v13692_v9 = vld [vmem:[#allocation8 + $0xc90] sm:$0xf]  ;;  %v12925_v13 = vor.u32 %v17152_v21, %v12924_v6  ;;  %v17316_v6 = vld [vmem:[#allocation8 + $0xbd4] sm:$0xf] }
 0x2a8   :  { %5751 = vmatpush.bf16.msrb.mxu2 %v13757_v35  ;;  %v17344_v22 = vld [vmem:[#allocation8 + $0xcac] sm:$0xf0]  ;;  %v13601_v55 = vor.u32 %v17316_v6, %v13598_v8  ;;  %v12766_v50 = vld [vmem:[#allocation8 + $0x570] sm:$0xf0] }
 0x2a9   :  { %5789 = vmatpush.bf16.msra.mxu1 %v12513_v30  ;;  %v13693_v14 = vor.u32 %v17344_v22, %v13692_v9  ;;  %v12892_v57 = vld [vmem:[#allocation8 + $0x650] sm:$0xf]  ;;  %v5460_v38 = vpop.f32.mrf.mxu3  ;;  %v17116_v22 = vld [vmem:[#allocation8 + $0x594] sm:$0xf] }
 0x2aa   :  { %5777 = vmatpush.bf16.msra.mxu0 %v12225_v53  ;;  %v17144_v2 = vld [vmem:[#allocation8 + $0x66c] sm:$0xf0]  ;;  %5714 = vmatpush.bf16.msra.mxu3 %v12925_v13  ;;  %v16940_v53 = vld [vmem:[#allocation8 + $0x14] sm:$0xf]  ;;  %v12801_v41 = vor.u32 %v17116_v22, %v12798_v10  ;;  %v2681_v38 = vperm.slane %v18597_v17, 3 }
 0x2ab   :  { %v13660_v15 = vld [vmem:[#allocation8 + $0xc50] sm:$0xf]  ;;  %v12893_v25 = vor.u32 %v17144_v2, %v12892_v57  ;;  %v17244_v13 = vld [vmem:[#allocation8 + $0x994] sm:$0xf] }
 0x2ac   :  { %5752 = vmatpush.bf16.msrb.mxu2 %v13725_v61  ;;  %v17336_v62 = vld [vmem:[#allocation8 + $0xc6c] sm:$0xf0]  ;;  %v12350_v61 = vld [vmem:[#allocation8 + $0x230] sm:$0xf0] }
 0x2ad   :  { %5790 = vmatpush.bf16.msra.mxu1 %v12481_v54  ;;  %v13661_v26 = vor.u32 %v17336_v62, %v13660_v15  ;;  %v12860_v29 = vld [vmem:[#allocation8 + $0x610] sm:$0xf]  ;;  %v12094_v54 = vld [vmem:[#allocation8 + $0x30] sm:$0xf0] }
 0x2ae   :  { %5778 = vmatpush.bf16.msra.mxu0 %v12193_v11  ;;  %v17136_v3 = vld [vmem:[#allocation8 + $0x62c] sm:$0xf0]  ;;  %5715 = vmatpush.bf16.msra.mxu3 %v12893_v25  ;;  %v12097_v11 = vor.u32 %v16940_v53, %v12094_v54  ;;  %v17308_v57 = vld [vmem:[#allocation8 + $0xb94] sm:$0xf]  ;;  %v12769_v25 = vor.u32 %v17108_v7, %v12766_v50 }
 0x2af   :  { %v13628_v30 = vld [vmem:[#allocation8 + $0xc10] sm:$0xf]  ;;  %v12861_v45 = vor.u32 %v17136_v3, %v12860_v29  ;;  %v13566_v2 = vld [vmem:[#allocation8 + $0xbb0] sm:$0xf0] }
 0x2b0   :  { %5753 = vmatpush.bf16.msrb.mxu2 %v13693_v14  ;;  %v17328_v31 = vld [vmem:[#allocation8 + $0xc2c] sm:$0xf0]  ;;  %v13310_v14 = vld [vmem:[#allocation8 + $0x9b0] sm:$0xf0] }
 0x2b1   :  { %5791 = vmatpush.bf16.msra.mxu1 %v12449_v42  ;;  %v14108_v37 = vld [vmem:[#allocation8 + $0xfd0] sm:$0xf]  ;;  %v13629_v46 = vor.u32 %v17328_v31, %v13628_v30  ;;  %v12353_v42 = vor.u32 %v17004_v56, %v12350_v61  ;;  %v17236_v19 = vld [vmem:[#allocation8 + $0x954] sm:$0xf] }
 0x2b2   :  { %v17448_v35 = vld [vmem:[#allocation8 + $0xfec] sm:$0xf0]  ;;  %5779 = vmatpush.bf16.msra.mxu0 %v12161_v32  ;;  %5716 = vmatpush.bf16.msra.mxu3 %v12861_v45  ;;  %v13313_v32 = vor.u32 %v17244_v13, %v13310_v14  ;;  %v13278_v23 = vld [vmem:[#allocation8 + $0x970] sm:$0xf0] }
 0x2b3   :  { %v14109_v59 = vor.u32 %v17448_v35, %v14108_v37  ;;  %v14076_v21 = vld [vmem:[#allocation8 + $0xf90] sm:$0xf]  ;;  %v13534_v28 = vld [vmem:[#allocation8 + $0xb70] sm:$0xf0]  ;;  %v13281_v31 = vor.u32 %v17236_v19, %v13278_v23 }
 0x2b4   :  { %5754 = vmatpush.bf16.msrb.mxu2 %v13661_v26  ;;  %v17440_v9 = vld [vmem:[#allocation8 + $0xfac] sm:$0xf0]  ;;  %v17300_v26 = vld [vmem:[#allocation8 + $0xb54] sm:$0xf] }
 0x2b5   :  { %5792 = vmatpush.bf16.msra.mxu1 %v12417_v18  ;;  %v14077_v33 = vor.u32 %v17440_v9, %v14076_v21  ;;  %v14044_v15 = vld [vmem:[#allocation8 + $0xf50] sm:$0xf]  ;;  %5717 = vmatmul.bf16.vlgmr.msra.gmra.mxu3 %v18524_v52  ;;  %v13569_v18 = vor.u32 %v17308_v57, %v13566_v2  ;;  %v17100_v36 = vld [vmem:[#allocation8 + $0x514] sm:$0xf]  ;;  %v13537_v37 = vor.u32 %v17300_v26, %v13534_v28  ;;  %v5510_v9 = vpop.f32.mrf.mxu3 }
 0x2b6   :  { %5780 = vmatpush.bf16.msra.mxu0 %v12129_v43  ;;  %5761 = vmatpush.bf16.msrb.mxu3 %v14109_v59  ;;  %v17432_v62 = vld [vmem:[#allocation8 + $0xf6c] sm:$0xf0]  ;;  %v12734_v30 = vld [vmem:[#allocation8 + $0x530] sm:$0xf0] }
 0x2b7   :  { %v14045_v24 = vor.u32 %v17432_v62, %v14044_v15  ;;  %v14012_v29 = vld [vmem:[#allocation8 + $0xf10] sm:$0xf]  ;;  %v17228_v35 = vld [vmem:[#allocation8 + $0x914] sm:$0xf]  ;;  %v12737_v43 = vor.u32 %v17100_v36, %v12734_v30 }
 0x2b8   :  { %5755 = vmatpush.bf16.msrb.mxu2 %v13629_v46  ;;  %v17424_v3 = vld [vmem:[#allocation8 + $0xf2c] sm:$0xf0]  ;;  %v13246_v39 = vld [vmem:[#allocation8 + $0x930] sm:$0xf0] }
 0x2b9   :  { %5793 = vmatpush.bf16.msra.mxu1 %v12385_v44  ;;  %v14013_v40 = vor.u32 %v17424_v3, %v14012_v29  ;;  %v17292_v44 = vld [vmem:[#allocation8 + $0xb14] sm:$0xf]  ;;  %v13980_v46 = vld [vmem:[#allocation8 + $0xed0] sm:$0xf]  ;;  %v13249_v0 = vor.u32 %v17228_v35, %v13246_v39 }
 0x2ba   :  { %5781 = vmatpush.bf16.msra.mxu0 %v12097_v11  ;;  %5762 = vmatpush.bf16.msrb.mxu3 %v14077_v33  ;;  %v13502_v45 = vld [vmem:[#allocation8 + $0xb30] sm:$0xf0]  ;;  %v17416_v53 = vld [vmem:[#allocation8 + $0xeec] sm:$0xf0]  ;;  %v5575_v59 = vpop.f32.mrf.mxu0 }
 0x2bb   :  { %5756 = vmatmul.bf16.vlgmr.msrb.gmra.mxu2 %v18543_v20  ;;  %v17092_v54 = vld [vmem:[#allocation8 + $0x4d4] sm:$0xf]  ;;  %v5576_v61 = vadd.f32 %v5575_v59, %v2681_v38  ;;  %v13505_v1 = vor.u32 %v17292_v44, %v13502_v45  ;;  %v13981_v8 = vor.u32 %v17416_v53, %v13980_v46  ;;  %v13948_v11 = vld [vmem:[#allocation8 + $0xe90] sm:$0xf] }
 0x2bc   :  { %5800 = vmatpush.bf16.msra.mxu2 %v12833_v60  ;;  %v12702_v56 = vld [vmem:[#allocation8 + $0x4f0] sm:$0xf0]  ;;  %v17408_v13 = vld [vmem:[#allocation8 + $0xeac] sm:$0xf0] }
 0x2bd   :  { %5794 = vmatpush.bf16.msra.mxu1 %v12353_v42  ;;  %5782 = vmatmul.bf16.vlgmr.msra.gmra.mxu0 %v18518_v47  ;;  %v5588_v60 = vpop.f32.mrf.mxu1  ;;  %v17220_v17 = vld [vmem:[#allocation8 + $0x8d4] sm:$0xf]  ;;  %v12705_v21 = vor.u32 %v17092_v54, %v12702_v56  ;;  %v13949_v7 = vor.u32 %v17408_v13, %v13948_v11  ;;  %v13916_v19 = vld [vmem:[#allocation8 + $0xe50] sm:$0xf]  ;;  %v5512_v35 = vpop.f32.mrf.mxu3  ;;  %v12580_v11 = vld [vmem:[#allocation8 + $0x3d8] sm:$0xf] }
 0x2be   :  { %5826 = vmatpush.bf16.msrb.mxu0 %v13345_v12  ;;  %5763 = vmatpush.bf16.msrb.mxu3 %v14045_v24  ;;  %v13214_v6 = vld [vmem:[#allocation8 + $0x8f0] sm:$0xf0]  ;;  %v18629_v42 = vadd.f32 %v5588_v60, %v5576_v61  ;;  %v5511_v12 = vadd.f32 %v5510_v9, %v18620_v27  ;;  %v17400_v23 = vld [vmem:[#allocation8 + $0xe6c] sm:$0xf0] }
 0x2bf   :  { %v17284_v22 = vld [vmem:[#allocation8 + $0xad4] sm:$0xf]  ;;  %v13217_v57 = vor.u32 %v17220_v17, %v13214_v6  ;;  %v13884_v39 = vld [vmem:[#allocation8 + $0xe10] sm:$0xf] }
 0x2c0   :  { %5801 = vmatpush.bf16.msra.mxu2 %v12801_v41  ;;  %5795 = vmatmul.bf16.vlgmr.msra.gmra.mxu1 %v18520_v48  ;;  %v13470_v10 = vld [vmem:[#allocation8 + $0xaf0] sm:$0xf0]  ;;  %v5524_v41 = vadd.f32 %v18615_v49, %v5511_v12  ;;  %v17065_v12 = vld [vmem:[#allocation8 + $0x3f4] sm:$0xf0] }
 0x2c1   :  { %5839 = vmatpush.bf16.msrb.mxu1 %v13601_v55  ;;  %v5549_v55 = vpop.f32.mrf.mxu2  ;;  %v17084_v14 = vld [vmem:[#allocation8 + $0x494] sm:$0xf]  ;;  %v13473_v2 = vor.u32 %v17284_v22, %v13470_v10  ;;  %v12324_v22 = vld [vmem:[#allocation8 + $0x1d8] sm:$0xf] }
 0x2c2   :  { %5827 = vmatpush.bf16.msrb.mxu0 %v13313_v32  ;;  %5764 = vmatpush.bf16.msrb.mxu3 %v14013_v40  ;;  %v12670_v33 = vld [vmem:[#allocation8 + $0x4b0] sm:$0xf0]  ;;  %v5537_v27 = vadd.f32 %v18617_v63, %v5524_v41  ;;  %v5577_v26 = vpop.f32.mrf.mxu0  ;;  %v17392_v40 = vld [vmem:[#allocation8 + $0xe2c] sm:$0xf0]  ;;  %v17001_v10 = vld [vmem:[#allocation8 + $0x1f4] sm:$0xf0] }
 0x2c3   :  { %v17212_v15 = vld [vmem:[#allocation8 + $0x894] sm:$0xf]  ;;  %v12673_v50 = vor.u32 %v17084_v14, %v12670_v33  ;;  %v13885_v61 = vor.u32 %v17392_v40, %v13884_v39 }
 0x2c4   :  { %5802 = vmatpush.bf16.msra.mxu2 %v12769_v25  ;;  %v13182_v62 = vld [vmem:[#allocation8 + $0x8b0] sm:$0xf0]  ;;  %v18634_v29 = vadd.f32 %v5549_v55, %v5537_v27 }
 0x2c5   :  { %5840 = vmatpush.bf16.msrb.mxu1 %v13569_v18  ;;  %v17276_v32 = vld [vmem:[#allocation8 + $0xa94] sm:$0xf]  ;;  %v5590_v28 = vpop.f32.mrf.mxu1  ;;  %v13185_v49 = vor.u32 %v17212_v15, %v13182_v62  ;;  %v12581_v15 = vor.u32 %v17065_v12, %v12580_v11  ;;  %v12292_v62 = vld [vmem:[#allocation8 + $0x198] sm:$0xf] }
 0x2c6   :  { %5828 = vmatpush.bf16.msrb.mxu0 %v13281_v31  ;;  %5765 = vmatpush.bf16.msrb.mxu3 %v13981_v8  ;;  %v13438_v18 = vld [vmem:[#allocation8 + $0xab0] sm:$0xf0] }
 0x2c7   :  { %v17076_v24 = vld [vmem:[#allocation8 + $0x454] sm:$0xf]  ;;  %v13441_v3 = vor.u32 %v17276_v32, %v13438_v18  ;;  %v12548_v18 = vld [vmem:[#allocation8 + $0x398] sm:$0xf] }
 0x2c8   :  { %5803 = vmatpush.bf16.msra.mxu2 %v12737_v43  ;;  %v12638_v25 = vld [vmem:[#allocation8 + $0x470] sm:$0xf0] }
 0x2c9   :  { %5841 = vmatpush.bf16.msrb.mxu1 %v13537_v37  ;;  %v17204_v36 = vld [vmem:[#allocation8 + $0x854] sm:$0xf]  ;;  %v13917_v37 = vor.u32 %v17400_v23, %v13916_v19  ;;  %v12641_v38 = vor.u32 %v17076_v24, %v12638_v25  ;;  %v5551_v43 = vpop.f32.mrf.mxu2  ;;  %v17057_v19 = vld [vmem:[#allocation8 + $0x3b4] sm:$0xf0] }
 0x2ca   :  { %5829 = vmatpush.bf16.msrb.mxu0 %v13249_v0  ;;  %v13150_v30 = vld [vmem:[#allocation8 + $0x870] sm:$0xf0]  ;;  %5766 = vmatpush.bf16.msrb.mxu3 %v13949_v7  ;;  %v16993_v7 = vld [vmem:[#allocation8 + $0x1b4] sm:$0xf0]  ;;  %v12549_v28 = vor.u32 %v17057_v19, %v12548_v18 }
 0x2cb   :  { %v17268_v31 = vld [vmem:[#allocation8 + $0xa54] sm:$0xf]  ;;  %v13153_v59 = vor.u32 %v17204_v36, %v13150_v30  ;;  %v12293_v26 = vor.u32 %v16993_v7, %v12292_v62 }
 0x2cc   :  { %5804 = vmatpush.bf16.msra.mxu2 %v12705_v21  ;;  %v13406_v63 = vld [vmem:[#allocation8 + $0xa70] sm:$0xf0] }
 0x2cd   :  { %5842 = vmatpush.bf16.msrb.mxu1 %v13505_v1  ;;  %v17068_v44 = vld [vmem:[#allocation8 + $0x414] sm:$0xf]  ;;  %v13409_v60 = vor.u32 %v17268_v31, %v13406_v63  ;;  %v12516_v31 = vld [vmem:[#allocation8 + $0x358] sm:$0xf] }
 0x2ce   :  { %5830 = vmatpush.bf16.msrb.mxu0 %v13217_v57  ;;  %v12606_v45 = vld [vmem:[#allocation8 + $0x430] sm:$0xf0]  ;;  %5767 = vmatpush.bf16.msrb.mxu3 %v13917_v37  ;;  %v17049_v37 = vld [vmem:[#allocation8 + $0x374] sm:$0xf0] }
 0x2cf   :  { %v17188_v46 = vld [vmem:[#allocation8 + $0x7d4] sm:$0xf]  ;;  %v12609_v0 = vor.u32 %v17068_v44, %v12606_v45  ;;  %v12517_v43 = vor.u32 %v17049_v37, %v12516_v31  ;;  %v12228_v44 = vld [vmem:[#allocation8 + $0x118] sm:$0xf] }
 0x2d0   :  { %5805 = vmatpush.bf16.msra.mxu2 %v12673_v50  ;;  %v13086_v53 = vld [vmem:[#allocation8 + $0x7f0] sm:$0xf0]  ;;  %v16977_v45 = vld [vmem:[#allocation8 + $0x134] sm:$0xf0] }
 0x2d1   :  { %5843 = vmatpush.bf16.msrb.mxu1 %v13473_v2  ;;  %v17380_v54 = vld [vmem:[#allocation8 + $0xdd4] sm:$0xf]  ;;  %v13089_v8 = vor.u32 %v17188_v46, %v13086_v53  ;;  %v12325_v2 = vor.u32 %v17001_v10, %v12324_v22  ;;  %v12388_v31 = vld [vmem:[#allocation8 + $0x258] sm:$0xf] }
 0x2d2   :  { %v13854_v56 = vld [vmem:[#allocation8 + $0xdf0] sm:$0xf0]  ;;  %5831 = vmatpush.bf16.msrb.mxu0 %v13185_v49  ;;  %5768 = vmatpush.bf16.msrb.mxu3 %v13885_v61  ;;  %v12260_v49 = vld [vmem:[#allocation8 + $0x158] sm:$0xf] }
 0x2d3   :  { %v17196_v1 = vld [vmem:[#allocation8 + $0x814] sm:$0xf]  ;;  %v13857_v21 = vor.u32 %v17380_v54, %v13854_v56  ;;  %v12484_v54 = vld [vmem:[#allocation8 + $0x318] sm:$0xf] }
 0x2d4   :  { %5806 = vmatpush.bf16.msra.mxu2 %v12641_v38  ;;  %v13118_v17 = vld [vmem:[#allocation8 + $0x830] sm:$0xf0]  ;;  %v17041_v56 = vld [vmem:[#allocation8 + $0x334] sm:$0xf0]  ;;  %v5562_v11 = vpop.f32.mrf.mxu3 }
 0x2d5   :  { %5844 = vmatpush.bf16.msrb.mxu1 %v13441_v3  ;;  %v17260_v6 = vld [vmem:[#allocation8 + $0xa14] sm:$0xf]  ;;  %v13121_v41 = vor.u32 %v17196_v1, %v13118_v17  ;;  %5769 = vmatmul.bf16.vlgmr.msrb.gmra.mxu3 %v18550_v5  ;;  %v16985_v3 = vld [vmem:[#allocation8 + $0x174] sm:$0xf0] }
 0x2d6   :  { %v13374_v9 = vld [vmem:[#allocation8 + $0xa30] sm:$0xf0]  ;;  %5832 = vmatpush.bf16.msrb.mxu0 %v13153_v59  ;;  %5813 = vmatpush.bf16.msra.mxu3 %v13089_v8  ;;  %v12261_v40 = vor.u32 %v16985_v3, %v12260_v49  ;;  %v12485_v8 = vor.u32 %v17041_v56, %v12484_v54  ;;  %v12836_v54 = vld [vmem:[#allocation8 + $0x5d8] sm:$0xf] }
 0x2d7   :  { %v17180_v55 = vld [vmem:[#allocation8 + $0x794] sm:$0xf]  ;;  %v13377_v57 = vor.u32 %v17260_v6, %v13374_v9  ;;  %v12229_v6 = vor.u32 %v16977_v45, %v12228_v44  ;;  %v16969_v9 = vld [vmem:[#allocation8 + $0xf4] sm:$0xf0] }
 0x2d8   :  { %v13054_v13 = vld [vmem:[#allocation8 + $0x7b0] sm:$0xf0]  ;;  %5807 = vmatpush.bf16.msra.mxu2 %v12609_v0  ;;  %v17129_v56 = vld [vmem:[#allocation8 + $0x5f4] sm:$0xf0] }
 0x2d9   :  { %5845 = vmatpush.bf16.msrb.mxu1 %v13409_v60  ;;  %v17372_v14 = vld [vmem:[#allocation8 + $0xd94] sm:$0xf]  ;;  %v13057_v50 = vor.u32 %v17180_v55, %v13054_v13  ;;  %v12452_v55 = vld [vmem:[#allocation8 + $0x2d8] sm:$0xf] }
 0x2da   :  { %v13822_v33 = vld [vmem:[#allocation8 + $0xdb0] sm:$0xf0]  ;;  %5833 = vmatpush.bf16.msrb.mxu0 %v13121_v41  ;;  %v18640_v1 = vpop.f32.mrf.mxu0  ;;  %v17033_v13 = vld [vmem:[#allocation8 + $0x2f4] sm:$0xf0] }
 0x2db   :  { %v13825_v32 = vor.u32 %v17372_v14, %v13822_v33  ;;  %v17172_v27 = vld [vmem:[#allocation8 + $0x754] sm:$0xf]  ;;  %5808 = vmatmul.bf16.vlgmr.msra.gmra.mxu2 %v18522_v51  ;;  %5814 = vmatpush.bf16.msra.mxu3 %v13057_v50  ;;  %v18645_v33 = vadd.f32 %v5562_v11, %v18634_v29  ;;  %v12453_v7 = vor.u32 %v17033_v13, %v12452_v55  ;;  %v12164_v50 = vld [vmem:[#allocation8 + $0x98] sm:$0xf] }
 0x2dc   :  { %5852 = vmatpush.bf16.msrb.mxu2 %v13857_v21  ;;  %v13022_v23 = vld [vmem:[#allocation8 + $0x770] sm:$0xf0]  ;;  %v12196_v21 = vld [vmem:[#allocation8 + $0xd8] sm:$0xf] }
 0x2dd   :  { %v17364_v24 = vld [vmem:[#allocation8 + $0xd54] sm:$0xf]  ;;  %5846 = vmatpush.bf16.msrb.mxu1 %v13377_v57  ;;  %v13025_v36 = vor.u32 %v17172_v27, %v13022_v23  ;;  %5834 = vmatmul.bf16.vlgmr.msrb.gmra.mxu0 %v18533_v16  ;;  %v18642_v17 = vpop.f32.mrf.mxu1  ;;  %v12197_v62 = vor.u32 %v16969_v9, %v12196_v21  ;;  %v12420_v27 = vld [vmem:[#allocation8 + $0x298] sm:$0xf] }
 0x2de   :  { %v13790_v25 = vld [vmem:[#allocation8 + $0xd70] sm:$0xf0]  ;;  %5878 = vmatpush.bf16.msra.mxu0 %v12325_v2  ;;  %v5601_v12 = vpop.f32.mrf.mxu2  ;;  %v17025_v23 = vld [vmem:[#allocation8 + $0x2b4] sm:$0xf0] }
 0x2df   :  { %v13793_v30 = vor.u32 %v17364_v24, %v13790_v25  ;;  %v17164_v38 = vld [vmem:[#allocation8 + $0x714] sm:$0xf]  ;;  %5815 = vmatpush.bf16.msra.mxu3 %v13025_v36  ;;  %v18648_v41 = vadd.f32 %v5601_v12, %v18629_v42  ;;  %v12421_v3 = vor.u32 %v17025_v23, %v12420_v27  ;;  %v12132_v36 = vld [vmem:[#allocation8 + $0x58] sm:$0xf] }
 0x2e0   :  { %5853 = vmatpush.bf16.msrb.mxu2 %v13825_v32  ;;  %5847 = vmatmul.bf16.vlgmr.msrb.gmra.mxu1 %v18537_v4  ;;  %v12990_v35 = vld [vmem:[#allocation8 + $0x730] sm:$0xf0]  ;;  %v16961_v32 = vld [vmem:[#allocation8 + $0xb4] sm:$0xf0] }
 0x2e1   :  { %5891 = vmatpush.bf16.msra.mxu1 %v12581_v15  ;;  %v17356_v63 = vld [vmem:[#allocation8 + $0xd14] sm:$0xf]  ;;  %v12993_v46 = vor.u32 %v17164_v38, %v12990_v35  ;;  %v12165_v49 = vor.u32 %v16961_v32, %v12164_v50  ;;  %v5564_v35 = vpop.f32.mrf.mxu3  ;;  %v12356_v21 = vld [vmem:[#allocation8 + $0x218] sm:$0xf] }
 0x2e2   :  { %v13758_v39 = vld [vmem:[#allocation8 + $0xd30] sm:$0xf0]  ;;  %5879 = vmatpush.bf16.msra.mxu0 %v12293_v26  ;;  %v5629_v26 = vpop.f32.mrf.mxu0  ;;  %v13348_v11 = vld [vmem:[#allocation8 + $0x9d8] sm:$0xf] }
 0x2e3   :  { %v13761_v53 = vor.u32 %v17356_v63, %v13758_v39  ;;  %v17156_v59 = vld [vmem:[#allocation8 + $0x6d4] sm:$0xf]  ;;  %5816 = vmatpush.bf16.msra.mxu3 %v12993_v46  ;;  %v17017_v39 = vld [vmem:[#allocation8 + $0x274] sm:$0xf0] }
 0x2e4   :  { %5854 = vmatpush.bf16.msrb.mxu2 %v13793_v30  ;;  %v12958_v60 = vld [vmem:[#allocation8 + $0x6f0] sm:$0xf0]  ;;  %v16953_v30 = vld [vmem:[#allocation8 + $0x74] sm:$0xf0] }
 0x2e5   :  { %5892 = vmatpush.bf16.msra.mxu1 %v12549_v28  ;;  %v17348_v61 = vld [vmem:[#allocation8 + $0xcd4] sm:$0xf]  ;;  %v12961_v22 = vor.u32 %v17156_v59, %v12958_v60  ;;  %v5642_v28 = vpop.f32.mrf.mxu1  ;;  %v12133_v59 = vor.u32 %v16953_v30, %v12132_v36  ;;  %v12389_v60 = vor.u32 %v17017_v39, %v12388_v31  ;;  %v17257_v12 = vld [vmem:[#allocation8 + $0x9f4] sm:$0xf0] }
 0x2e6   :  { %v13726_v0 = vld [vmem:[#allocation8 + $0xcf0] sm:$0xf0]  ;;  %5880 = vmatpush.bf16.msra.mxu0 %v12261_v40  ;;  %v5603_v63 = vpop.f32.mrf.mxu2  ;;  %v13604_v55 = vld [vmem:[#allocation8 + $0xbd8] sm:$0xf]  ;;  %v13349_v50 = vor.u32 %v17257_v12, %v13348_v11 }
 0x2e7   :  { %v13729_v10 = vor.u32 %v17348_v61, %v13726_v0  ;;  %v17148_v14 = vld [vmem:[#allocation8 + $0x694] sm:$0xf]  ;;  %5817 = vmatpush.bf16.msra.mxu3 %v12961_v22  ;;  %v12837_v22 = vor.u32 %v17129_v56, %v12836_v54  ;;  %v17321_v13 = vld [vmem:[#allocation8 + $0xbf4] sm:$0xf0] }
 0x2e8   :  { %5855 = vmatpush.bf16.msrb.mxu2 %v13761_v53  ;;  %v12926_v57 = vld [vmem:[#allocation8 + $0x6b0] sm:$0xf0]  ;;  %v13605_v32 = vor.u32 %v17321_v13, %v13604_v55  ;;  %v12772_v26 = vld [vmem:[#allocation8 + $0x558] sm:$0xf] }
 0x2e9   :  { %5893 = vmatpush.bf16.msra.mxu1 %v12517_v43  ;;  %v17340_v2 = vld [vmem:[#allocation8 + $0xc94] sm:$0xf]  ;;  %v12929_v18 = vor.u32 %v17148_v14, %v12926_v57  ;;  %v17113_v28 = vld [vmem:[#allocation8 + $0x574] sm:$0xf0] }
 0x2ea   :  { %v13694_v15 = vld [vmem:[#allocation8 + $0xcb0] sm:$0xf0]  ;;  %5881 = vmatpush.bf16.msra.mxu0 %v12229_v6  ;;  %v12100_v6 = vld [vmem:[#allocation8 + $0x18] sm:$0xf] }
 0x2eb   :  { %v13697_v19 = vor.u32 %v17340_v2, %v13694_v15  ;;  %v17140_v29 = vld [vmem:[#allocation8 + $0x654] sm:$0xf]  ;;  %5818 = vmatpush.bf16.msra.mxu3 %v12929_v18  ;;  %v12804_v2 = vld [vmem:[#allocation8 + $0x598] sm:$0xf] }
 0x2ec   :  { %5856 = vmatpush.bf16.msrb.mxu2 %v13729_v10  ;;  %v12894_v24 = vld [vmem:[#allocation8 + $0x670] sm:$0xf0]  ;;  %v17009_v10 = vld [vmem:[#allocation8 + $0x234] sm:$0xf0] }
 0x2ed   :  { %5894 = vmatpush.bf16.msra.mxu1 %v12485_v8  ;;  %v17332_v25 = vld [vmem:[#allocation8 + $0xc54] sm:$0xf]  ;;  %v12897_v37 = vor.u32 %v17140_v29, %v12894_v24  ;;  %v16945_v8 = vld [vmem:[#allocation8 + $0x34] sm:$0xf0] }
 0x2ee   :  { %v13662_v42 = vld [vmem:[#allocation8 + $0xc70] sm:$0xf0]  ;;  %5882 = vmatpush.bf16.msra.mxu0 %v12197_v62  ;;  %v17121_v15 = vld [vmem:[#allocation8 + $0x5b4] sm:$0xf0]  ;;  %v12101_v62 = vor.u32 %v16945_v8, %v12100_v6 }
 0x2ef   :  { %v13665_v38 = vor.u32 %v17332_v25, %v13662_v42  ;;  %v17132_v40 = vld [vmem:[#allocation8 + $0x614] sm:$0xf]  ;;  %5819 = vmatpush.bf16.msra.mxu3 %v12897_v37  ;;  %v13316_v18 = vld [vmem:[#allocation8 + $0x998] sm:$0xf]  ;;  %v12805_v23 = vor.u32 %v17121_v15, %v12804_v2  ;;  %v12773_v37 = vor.u32 %v17113_v28, %v12772_v26 }
 0x2f0   :  { %5857 = vmatpush.bf16.msrb.mxu2 %v13697_v19  ;;  %v12862_v43 = vld [vmem:[#allocation8 + $0x630] sm:$0xf0]  ;;  %v17249_v19 = vld [vmem:[#allocation8 + $0x9b4] sm:$0xf0] }
 0x2f1   :  { %5895 = vmatpush.bf16.msra.mxu1 %v12453_v7  ;;  %v17324_v44 = vld [vmem:[#allocation8 + $0xc14] sm:$0xf]  ;;  %v12865_v61 = vor.u32 %v17132_v40, %v12862_v43  ;;  %v12357_v7 = vor.u32 %v17009_v10, %v12356_v21  ;;  %v13572_v29 = vld [vmem:[#allocation8 + $0xb98] sm:$0xf] }
 0x2f2   :  { %v13630_v45 = vld [vmem:[#allocation8 + $0xc30] sm:$0xf0]  ;;  %5883 = vmatpush.bf16.msra.mxu0 %v12165_v49  ;;  %v17313_v24 = vld [vmem:[#allocation8 + $0xbb4] sm:$0xf0]  ;;  %v13317_v49 = vor.u32 %v17249_v19, %v13316_v18 }
 0x2f3   :  { %v17444_v46 = vld [vmem:[#allocation8 + $0xfd4] sm:$0xf]  ;;  %v13633_v0 = vor.u32 %v17324_v44, %v13630_v45  ;;  %5820 = vmatpush.bf16.msra.mxu3 %v12865_v61  ;;  %v13284_v36 = vld [vmem:[#allocation8 + $0x958] sm:$0xf] }
 0x2f4   :  { %v14110_v53 = vld [vmem:[#allocation8 + $0xff0] sm:$0xf0]  ;;  %5858 = vmatpush.bf16.msrb.mxu2 %v13665_v38  ;;  %v17241_v30 = vld [vmem:[#allocation8 + $0x974] sm:$0xf0] }
 0x2f5   :  { %5896 = vmatpush.bf16.msra.mxu1 %v12421_v3  ;;  %v14113_v9 = vor.u32 %v17444_v46, %v14110_v53  ;;  %v17436_v14 = vld [vmem:[#allocation8 + $0xf94] sm:$0xf]  ;;  %v13573_v3 = vor.u32 %v17313_v24, %v13572_v29  ;;  %v13540_v38 = vld [vmem:[#allocation8 + $0xb58] sm:$0xf]  ;;  %v13285_v44 = vor.u32 %v17241_v30, %v13284_v36  ;;  %v18654_v46 = vld [vmem:[#allocation10] sm:$0xff] }
 0x2f6   :  { %5884 = vmatpush.bf16.msra.mxu0 %v12133_v59  ;;  %v14078_v57 = vld [vmem:[#allocation8 + $0xfb0] sm:$0xf0]  ;;  %5821 = vmatmul.bf16.vlgmr.msra.gmra.mxu3 %v18524_v52  ;;  %v17305_v35 = vld [vmem:[#allocation8 + $0xb74] sm:$0xf0]  ;;  %v2682_v53 = vperm.slane %v18654_v46, 4 }
 0x2f7   :  { %5865 = vmatpush.bf16.msrb.mxu3 %v14113_v9  ;;  %v14081_v27 = vor.u32 %v17436_v14, %v14078_v57  ;;  %v17428_v25 = vld [vmem:[#allocation8 + $0xf54] sm:$0xf]  ;;  %v12740_v40 = vld [vmem:[#allocation8 + $0x518] sm:$0xf]  ;;  %v13541_v45 = vor.u32 %v17305_v35, %v13540_v38 }
 0x2f8   :  { %5859 = vmatpush.bf16.msrb.mxu2 %v13633_v0  ;;  %v14046_v42 = vld [vmem:[#allocation8 + $0xf70] sm:$0xf0]  ;;  %v17105_v43 = vld [vmem:[#allocation8 + $0x534] sm:$0xf0]  ;;  %v5614_v15 = vpop.f32.mrf.mxu3 }
 0x2f9   :  { %5897 = vmatpush.bf16.msra.mxu1 %v12389_v60  ;;  %v14049_v31 = vor.u32 %v17428_v25, %v14046_v42  ;;  %v17420_v63 = vld [vmem:[#allocation8 + $0xf14] sm:$0xf]  ;;  %v13252_v54 = vld [vmem:[#allocation8 + $0x918] sm:$0xf]  ;;  %v12741_v60 = vor.u32 %v17105_v43, %v12740_v40  ;;  %v5615_v19 = vadd.f32 %v5614_v15, %v18648_v41 }
 0x2fa   :  { %5885 = vmatpush.bf16.msra.mxu0 %v12101_v62  ;;  %v14014_v39 = vld [vmem:[#allocation8 + $0xf30] sm:$0xf0]  ;;  %v17233_v56 = vld [vmem:[#allocation8 + $0x934] sm:$0xf0] }
 0x2fb   :  { %5860 = vmatmul.bf16.vlgmr.msrb.gmra.mxu2 %v18543_v20  ;;  %5866 = vmatpush.bf16.msrb.mxu3 %v14081_v27  ;;  %v14017_v59 = vor.u32 %v17420_v63, %v14014_v39  ;;  %v13508_v61 = vld [vmem:[#allocation8 + $0xb18] sm:$0xf]  ;;  %v17412_v6 = vld [vmem:[#allocation8 + $0xed4] sm:$0xf]  ;;  %v13253_v12 = vor.u32 %v17233_v56, %v13252_v54  ;;  %v5628_v24 = vadd.f32 %v18640_v1, %v5615_v19  ;;  %v17061_v19 = vld [vmem:[#allocation8 + $0x3dc] sm:$0xf] }
 0x2fc   :  { %5904 = vmatpush.bf16.msra.mxu2 %v12837_v22  ;;  %v17297_v0 = vld [vmem:[#allocation8 + $0xb34] sm:$0xf0]  ;;  %v13982_v8 = vld [vmem:[#allocation8 + $0xef0] sm:$0xf0]  ;;  %v5679_v22 = vpop.f32.mrf.mxu0 }
 0x2fd   :  { %5898 = vmatpush.bf16.msra.mxu1 %v12357_v7  ;;  %5886 = vmatmul.bf16.vlgmr.msra.gmra.mxu0 %v18518_v47  ;;  %v12708_v21 = vld [vmem:[#allocation8 + $0x4d8] sm:$0xf]  ;;  %v5692_v10 = vpop.f32.mrf.mxu1  ;;  %v5680_v11 = vadd.f32 %v5679_v22, %v2682_v53  ;;  %v13509_v55 = vor.u32 %v17297_v0, %v13508_v61  ;;  %v13985_v57 = vor.u32 %v17412_v6, %v13982_v8  ;;  %v13950_v27 = vld [vmem:[#allocation8 + $0xeb0] sm:$0xf0] }
 0x2fe   :  { %5930 = vmatpush.bf16.msrb.mxu0 %v13349_v50  ;;  %v17097_v9 = vld [vmem:[#allocation8 + $0x4f4] sm:$0xf0]  ;;  %v5653_v62 = vpop.f32.mrf.mxu2  ;;  %v5641_v41 = vadd.f32 %v18642_v17, %v5628_v24  ;;  %v17388_v61 = vld [vmem:[#allocation8 + $0xe14] sm:$0xf] }
 0x2ff   :  { %5867 = vmatpush.bf16.msrb.mxu3 %v14049_v31  ;;  %v13220_v13 = vld [vmem:[#allocation8 + $0x8d8] sm:$0xf]  ;;  %v12709_v2 = vor.u32 %v17097_v9, %v12708_v21  ;;  %v18657_v18 = vadd.f32 %v5692_v10, %v5680_v11  ;;  %v17396_v31 = vld [vmem:[#allocation8 + $0xe54] sm:$0xf] }
 0x300   :  { %5905 = vmatpush.bf16.msra.mxu2 %v12805_v23  ;;  %5899 = vmatmul.bf16.vlgmr.msra.gmra.mxu1 %v18520_v48  ;;  %v17225_v14 = vld [vmem:[#allocation8 + $0x8f4] sm:$0xf0]  ;;  %v18662_v40 = vadd.f32 %v5653_v62, %v5641_v41  ;;  %v13886_v0 = vld [vmem:[#allocation8 + $0xe30] sm:$0xf0]  ;;  %v17053_v41 = vld [vmem:[#allocation8 + $0x39c] sm:$0xf] }
 0x301   :  { %5943 = vmatpush.bf16.msrb.mxu1 %v13605_v32  ;;  %v13476_v7 = vld [vmem:[#allocation8 + $0xad8] sm:$0xf]  ;;  %v17404_v32 = vld [vmem:[#allocation8 + $0xe94] sm:$0xf]  ;;  %v13221_v25 = vor.u32 %v17225_v14, %v13220_v13 }
 0x302   :  { %5931 = vmatpush.bf16.msrb.mxu0 %v13317_v49  ;;  %v17289_v50 = vld [vmem:[#allocation8 + $0xaf4] sm:$0xf0]  ;;  %v13953_v49 = vor.u32 %v17404_v32, %v13950_v27  ;;  %v12326_v32 = vld [vmem:[#allocation8 + $0x1f8] sm:$0xf0] }
 0x303   :  { %5868 = vmatpush.bf16.msrb.mxu3 %v14017_v59  ;;  %v12676_v23 = vld [vmem:[#allocation8 + $0x498] sm:$0xf]  ;;  %v13477_v42 = vor.u32 %v17289_v50, %v13476_v7  ;;  %v5616_v59 = vpop.f32.mrf.mxu3  ;;  %v16997_v50 = vld [vmem:[#allocation8 + $0x1dc] sm:$0xf] }
 0x304   :  { %5906 = vmatpush.bf16.msra.mxu2 %v12773_v37  ;;  %v17089_v29 = vld [vmem:[#allocation8 + $0x4b4] sm:$0xf0]  ;;  %v13918_v37 = vld [vmem:[#allocation8 + $0xe70] sm:$0xf0]  ;;  %v5681_v63 = vpop.f32.mrf.mxu0  ;;  %v12582_v27 = vld [vmem:[#allocation8 + $0x3f8] sm:$0xf0] }
 0x305   :  { %5944 = vmatpush.bf16.msrb.mxu1 %v13573_v3  ;;  %v13188_v26 = vld [vmem:[#allocation8 + $0x898] sm:$0xf]  ;;  %v12677_v3 = vor.u32 %v17089_v29, %v12676_v23  ;;  %v5694_v39 = vpop.f32.mrf.mxu1  ;;  %v13921_v54 = vor.u32 %v17396_v31, %v13918_v37  ;;  %v12550_v37 = vld [vmem:[#allocation8 + $0x3b8] sm:$0xf0] }
 0x306   :  { %5932 = vmatpush.bf16.msrb.mxu0 %v13285_v44  ;;  %v17217_v28 = vld [vmem:[#allocation8 + $0x8b4] sm:$0xf0]  ;;  %v5655_v17 = vpop.f32.mrf.mxu2  ;;  %v12518_v59 = vld [vmem:[#allocation8 + $0x378] sm:$0xf0] }
 0x307   :  { %5869 = vmatpush.bf16.msrb.mxu3 %v13985_v57  ;;  %v13444_v36 = vld [vmem:[#allocation8 + $0xa98] sm:$0xf]  ;;  %v13189_v1 = vor.u32 %v17217_v28, %v13188_v26  ;;  %v12329_v28 = vor.u32 %v16997_v50, %v12326_v32  ;;  %v16965_v50 = vld [vmem:[#allocation8 + $0xdc] sm:$0xf] }
 0x308   :  { %5907 = vmatpush.bf16.msra.mxu2 %v12741_v60  ;;  %v17281_v30 = vld [vmem:[#allocation8 + $0xab4] sm:$0xf0]  ;;  %v12198_v32 = vld [vmem:[#allocation8 + $0xf8] sm:$0xf0] }
 0x309   :  { %5945 = vmatpush.bf16.msrb.mxu1 %v13541_v45  ;;  %v12644_v38 = vld [vmem:[#allocation8 + $0x458] sm:$0xf]  ;;  %v13445_v43 = vor.u32 %v17281_v30, %v13444_v36  ;;  %v12294_v36 = vld [vmem:[#allocation8 + $0x1b8] sm:$0xf0] }
 0x30a   :  { %5933 = vmatpush.bf16.msrb.mxu0 %v13253_v12  ;;  %v17081_v35 = vld [vmem:[#allocation8 + $0x474] sm:$0xf0] }
 0x30b   :  { %v13156_v44 = vld [vmem:[#allocation8 + $0x858] sm:$0xf]  ;;  %5870 = vmatpush.bf16.msrb.mxu3 %v13953_v49  ;;  %v12645_v56 = vor.u32 %v17081_v35, %v12644_v38  ;;  %v12585_v49 = vor.u32 %v17061_v19, %v12582_v27 }
 0x30c   :  { %5908 = vmatpush.bf16.msra.mxu2 %v12709_v2  ;;  %v17209_v45 = vld [vmem:[#allocation8 + $0x874] sm:$0xf0] }
 0x30d   :  { %5946 = vmatpush.bf16.msrb.mxu1 %v13509_v55  ;;  %v13412_v53 = vld [vmem:[#allocation8 + $0xa58] sm:$0xf]  ;;  %v13157_v11 = vor.u32 %v17209_v45, %v13156_v44  ;;  %v13889_v55 = vor.u32 %v17388_v61, %v13886_v0  ;;  %v16981_v44 = vld [vmem:[#allocation8 + $0x15c] sm:$0xf] }
 0x30e   :  { %5934 = vmatpush.bf16.msrb.mxu0 %v13221_v25  ;;  %v17273_v60 = vld [vmem:[#allocation8 + $0xa74] sm:$0xf0]  ;;  %v12262_v45 = vld [vmem:[#allocation8 + $0x178] sm:$0xf0] }
 0x30f   :  { %v12612_v6 = vld [vmem:[#allocation8 + $0x418] sm:$0xf]  ;;  %v13413_v12 = vor.u32 %v17273_v60, %v13412_v53  ;;  %5871 = vmatpush.bf16.msrb.mxu3 %v13921_v54 }
 0x310   :  { %5909 = vmatpush.bf16.msra.mxu2 %v12677_v3  ;;  %v17073_v8 = vld [vmem:[#allocation8 + $0x434] sm:$0xf0]  ;;  %v16989_v3 = vld [vmem:[#allocation8 + $0x19c] sm:$0xf] }
 0x311   :  { %5947 = vmatpush.bf16.msrb.mxu1 %v13477_v42  ;;  %v13092_v21 = vld [vmem:[#allocation8 + $0x7d8] sm:$0xf]  ;;  %v12613_v13 = vor.u32 %v17073_v8, %v12612_v6  ;;  %v12265_v6 = vor.u32 %v16981_v44, %v12262_v45 }
 0x312   :  { %v17193_v9 = vld [vmem:[#allocation8 + $0x7f4] sm:$0xf0]  ;;  %5935 = vmatpush.bf16.msrb.mxu0 %v13189_v1  ;;  %v12297_v1 = vor.u32 %v16989_v3, %v12294_v36 }
 0x313   :  { %v13860_v22 = vld [vmem:[#allocation8 + $0xdd8] sm:$0xf]  ;;  %v13093_v15 = vor.u32 %v17193_v9, %v13092_v21  ;;  %5872 = vmatpush.bf16.msrb.mxu3 %v13889_v55  ;;  %v16973_v21 = vld [vmem:[#allocation8 + $0x11c] sm:$0xf] }
 0x314   :  { %v17385_v10 = vld [vmem:[#allocation8 + $0xdf4] sm:$0xf0]  ;;  %5910 = vmatpush.bf16.msra.mxu2 %v12645_v56  ;;  %v17045_v56 = vld [vmem:[#allocation8 + $0x35c] sm:$0xf] }
 0x315   :  { %5948 = vmatpush.bf16.msrb.mxu1 %v13445_v43  ;;  %v13124_v14 = vld [vmem:[#allocation8 + $0x818] sm:$0xf]  ;;  %v13861_v62 = vor.u32 %v17385_v10, %v13860_v22  ;;  %v12553_v43 = vor.u32 %v17053_v41, %v12550_v37  ;;  %v12521_v8 = vor.u32 %v17045_v56, %v12518_v59  ;;  %v12230_v9 = vld [vmem:[#allocation8 + $0x138] sm:$0xf0] }
 0x316   :  { %v17201_v57 = vld [vmem:[#allocation8 + $0x834] sm:$0xf0]  ;;  %5936 = vmatpush.bf16.msrb.mxu0 %v13157_v11  ;;  %5873 = vmatmul.bf16.vlgmr.msrb.gmra.mxu3 %v18550_v5  ;;  %v17037_v11 = vld [vmem:[#allocation8 + $0x31c] sm:$0xf] }
 0x317   :  { %v13380_v2 = vld [vmem:[#allocation8 + $0xa18] sm:$0xf]  ;;  %v13125_v42 = vor.u32 %v17201_v57, %v13124_v14  ;;  %5917 = vmatpush.bf16.msra.mxu3 %v13093_v15  ;;  %v16957_v41 = vld [vmem:[#allocation8 + $0x9c] sm:$0xf] }
 0x318   :  { %v17265_v7 = vld [vmem:[#allocation8 + $0xa34] sm:$0xf0]  ;;  %5911 = vmatpush.bf16.msra.mxu2 %v12613_v13  ;;  %v12166_v37 = vld [vmem:[#allocation8 + $0xb8] sm:$0xf0] }
 0x319   :  { %v13060_v23 = vld [vmem:[#allocation8 + $0x798] sm:$0xf]  ;;  %5949 = vmatpush.bf16.msrb.mxu1 %v13413_v12  ;;  %v13381_v26 = vor.u32 %v17265_v7, %v13380_v2  ;;  %v12486_v12 = vld [vmem:[#allocation8 + $0x338] sm:$0xf0] }
 0x31a   :  { %v17185_v29 = vld [vmem:[#allocation8 + $0x7b4] sm:$0xf0]  ;;  %5937 = vmatpush.bf16.msrb.mxu0 %v13125_v42  ;;  %v18668_v2 = vpop.f32.mrf.mxu0  ;;  %v12489_v7 = vor.u32 %v17037_v11, %v12486_v12  ;;  %v16949_v56 = vld [vmem:[#allocation8 + $0x5c] sm:$0xf] }
 0x31b   :  { %v13828_v24 = vld [vmem:[#allocation8 + $0xd98] sm:$0xf]  ;;  %v13061_v30 = vor.u32 %v17185_v29, %v13060_v23  ;;  %5912 = vmatmul.bf16.vlgmr.msra.gmra.mxu2 %v18522_v51  ;;  %v5666_v23 = vpop.f32.mrf.mxu3  ;;  %v12134_v59 = vld [vmem:[#allocation8 + $0x78] sm:$0xf0] }
 0x31c   :  { %v17377_v25 = vld [vmem:[#allocation8 + $0xdb4] sm:$0xf0]  ;;  %5956 = vmatpush.bf16.msrb.mxu2 %v13861_v62  ;;  %v12233_v62 = vor.u32 %v16973_v21, %v12230_v9 }
 0x31d   :  { %v13829_v31 = vor.u32 %v17377_v25, %v13828_v24  ;;  %v13028_v38 = vld [vmem:[#allocation8 + $0x758] sm:$0xf]  ;;  %5950 = vmatpush.bf16.msrb.mxu1 %v13381_v26  ;;  %5918 = vmatpush.bf16.msra.mxu3 %v13061_v30  ;;  %v18670_v15 = vpop.f32.mrf.mxu1  ;;  %v17029_v24 = vld [vmem:[#allocation8 + $0x2dc] sm:$0xf]  ;;  %v18673_v26 = vadd.f32 %v5666_v23, %v18662_v40  ;;  %v12201_v30 = vor.u32 %v16965_v50, %v12198_v32 }
 0x31e   :  { %v17177_v35 = vld [vmem:[#allocation8 + $0x774] sm:$0xf0]  ;;  %5982 = vmatpush.bf16.msra.mxu0 %v12329_v28  ;;  %v5705_v29 = vpop.f32.mrf.mxu2  ;;  %v12454_v25 = vld [vmem:[#allocation8 + $0x2f8] sm:$0xf0] }
 0x31f   :  { %v13796_v63 = vld [vmem:[#allocation8 + $0xd58] sm:$0xf]  ;;  %v13029_v53 = vor.u32 %v17177_v35, %v13028_v38  ;;  %5938 = vmatmul.bf16.vlgmr.msrb.gmra.mxu0 %v18533_v16  ;;  %v18676_v28 = vadd.f32 %v5705_v29, %v18657_v18  ;;  %v16941_v50 = vld [vmem:[#allocation8 + $0x1c] sm:$0xf] }
 0x320   :  { %v17369_v39 = vld [vmem:[#allocation8 + $0xd74] sm:$0xf0]  ;;  %5957 = vmatpush.bf16.msrb.mxu2 %v13829_v31  ;;  %5951 = vmatmul.bf16.vlgmr.msrb.gmra.mxu1 %v18537_v4  ;;  %v12457_v31 = vor.u32 %v17029_v24, %v12454_v25  ;;  %v12102_v32 = vld [vmem:[#allocation8 + $0x38] sm:$0xf0] }
 0x321   :  { %5995 = vmatpush.bf16.msra.mxu1 %v12585_v49  ;;  %v13797_v54 = vor.u32 %v17369_v39, %v13796_v63  ;;  %v12996_v17 = vld [vmem:[#allocation8 + $0x718] sm:$0xf]  ;;  %5919 = vmatpush.bf16.msra.mxu3 %v13029_v53  ;;  %v17021_v63 = vld [vmem:[#allocation8 + $0x29c] sm:$0xf]  ;;  %v12169_v53 = vor.u32 %v16957_v41, %v12166_v37  ;;  %v12105_v41 = vor.u32 %v16941_v50, %v12102_v32 }
 0x322   :  { %v17169_v60 = vld [vmem:[#allocation8 + $0x734] sm:$0xf0]  ;;  %5983 = vmatpush.bf16.msra.mxu0 %v12297_v1  ;;  %v12422_v39 = vld [vmem:[#allocation8 + $0x2b8] sm:$0xf0]  ;;  %v5733_v44 = vpop.f32.mrf.mxu0 }
 0x323   :  { %v13764_v61 = vld [vmem:[#allocation8 + $0xd18] sm:$0xf]  ;;  %v12997_v22 = vor.u32 %v17169_v60, %v12996_v17  ;;  %v17013_v17 = vld [vmem:[#allocation8 + $0x25c] sm:$0xf] }
 0x324   :  { %v17361_v0 = vld [vmem:[#allocation8 + $0xd34] sm:$0xf0]  ;;  %5958 = vmatpush.bf16.msrb.mxu2 %v13797_v54  ;;  %v12425_v54 = vor.u32 %v17021_v63, %v12422_v39  ;;  %v12358_v29 = vld [vmem:[#allocation8 + $0x238] sm:$0xf0] }
 0x325   :  { %5996 = vmatpush.bf16.msra.mxu1 %v12553_v43  ;;  %v13765_v10 = vor.u32 %v17361_v0, %v13764_v61  ;;  %v12964_v55 = vld [vmem:[#allocation8 + $0x6d8] sm:$0xf]  ;;  %5920 = vmatpush.bf16.msra.mxu3 %v12997_v22  ;;  %v5746_v45 = vpop.f32.mrf.mxu1  ;;  %v5668_v0 = vpop.f32.mrf.mxu3  ;;  %v17253_v24 = vld [vmem:[#allocation8 + $0x9dc] sm:$0xf] }
 0x326   :  { %v17161_v13 = vld [vmem:[#allocation8 + $0x6f4] sm:$0xf0]  ;;  %5984 = vmatpush.bf16.msra.mxu0 %v12265_v6  ;;  %v5707_v6 = vpop.f32.mrf.mxu2  ;;  %v13350_v25 = vld [vmem:[#allocation8 + $0x9f8] sm:$0xf0] }
 0x327   :  { %v13732_v14 = vld [vmem:[#allocation8 + $0xcd8] sm:$0xf]  ;;  %v12965_v19 = vor.u32 %v17161_v13, %v12964_v55  ;;  %v17125_v55 = vld [vmem:[#allocation8 + $0x5dc] sm:$0xf] }
 0x328   :  { %v17353_v57 = vld [vmem:[#allocation8 + $0xcf4] sm:$0xf0]  ;;  %5959 = vmatpush.bf16.msrb.mxu2 %v13765_v10  ;;  %v12838_v13 = vld [vmem:[#allocation8 + $0x5f8] sm:$0xf0] }
 0x329   :  { %5997 = vmatpush.bf16.msra.mxu1 %v12521_v8  ;;  %v13733_v27 = vor.u32 %v17353_v57, %v13732_v14  ;;  %v12932_v42 = vld [vmem:[#allocation8 + $0x698] sm:$0xf]  ;;  %5921 = vmatpush.bf16.msra.mxu3 %v12965_v19  ;;  %v12390_v8 = vld [vmem:[#allocation8 + $0x278] sm:$0xf0]  ;;  %v12137_v14 = vor.u32 %v16949_v56, %v12134_v59  ;;  %v12841_v23 = vor.u32 %v17125_v55, %v12838_v13  ;;  %v2683_v55 = vperm.slane %v18654_v46, 5 }
 0x32a   :  { %v17153_v49 = vld [vmem:[#allocation8 + $0x6b4] sm:$0xf0]  ;;  %5985 = vmatpush.bf16.msra.mxu0 %v12233_v62  ;;  %v12393_v57 = vor.u32 %v17013_v17, %v12390_v8  ;;  %v17005_v19 = vld [vmem:[#allocation8 + $0x21c] sm:$0xf] }
 0x32b   :  { %v13700_v3 = vld [vmem:[#allocation8 + $0xc98] sm:$0xf]  ;;  %v12933_v38 = vor.u32 %v17153_v49, %v12932_v42  ;;  %v17317_v42 = vld [vmem:[#allocation8 + $0xbdc] sm:$0xf]  ;;  %v12361_v37 = vor.u32 %v17005_v19, %v12358_v29 }
 0x32c   :  { %v17345_v36 = vld [vmem:[#allocation8 + $0xcb4] sm:$0xf0]  ;;  %5960 = vmatpush.bf16.msrb.mxu2 %v13733_v27  ;;  %v13606_v49 = vld [vmem:[#allocation8 + $0xbf8] sm:$0xf0] }
 0x32d   :  { %5998 = vmatpush.bf16.msra.mxu1 %v12489_v7  ;;  %v13701_v35 = vor.u32 %v17345_v36, %v13700_v3  ;;  %v12900_v40 = vld [vmem:[#allocation8 + $0x658] sm:$0xf]  ;;  %5922 = vmatpush.bf16.msra.mxu3 %v12933_v38  ;;  %v13353_v38 = vor.u32 %v17253_v24, %v13350_v25  ;;  %v17245_v63 = vld [vmem:[#allocation8 + $0x99c] sm:$0xf] }
 0x32e   :  { %v17145_v1 = vld [vmem:[#allocation8 + $0x674] sm:$0xf0]  ;;  %5986 = vmatpush.bf16.msra.mxu0 %v12201_v30  ;;  %v17117_v30 = vld [vmem:[#allocation8 + $0x59c] sm:$0xf] }
 0x32f   :  { %v13668_v43 = vld [vmem:[#allocation8 + $0xc58] sm:$0xf]  ;;  %v12901_v60 = vor.u32 %v17145_v1, %v12900_v40  ;;  %v13318_v39 = vld [vmem:[#allocation8 + $0x9b8] sm:$0xf0] }
 0x330   :  { %v17337_v18 = vld [vmem:[#allocation8 + $0xc74] sm:$0xf0]  ;;  %5961 = vmatpush.bf16.msrb.mxu2 %v13701_v35  ;;  %v13609_v35 = vor.u32 %v17317_v42, %v13606_v49  ;;  %v13321_v56 = vor.u32 %v17245_v63, %v13318_v39  ;;  %v17237_v17 = vld [vmem:[#allocation8 + $0x95c] sm:$0xf] }
 0x331   :  { %5999 = vmatpush.bf16.msra.mxu1 %v12457_v31  ;;  %v13669_v61 = vor.u32 %v17337_v18, %v13668_v43  ;;  %v12868_v21 = vld [vmem:[#allocation8 + $0x618] sm:$0xf]  ;;  %5923 = vmatpush.bf16.msra.mxu3 %v12901_v60  ;;  %v12806_v31 = vld [vmem:[#allocation8 + $0x5b8] sm:$0xf0] }
 0x332   :  { %v17137_v9 = vld [vmem:[#allocation8 + $0x634] sm:$0xf0]  ;;  %5987 = vmatpush.bf16.msra.mxu0 %v12169_v53  ;;  %v12809_v1 = vor.u32 %v17117_v30, %v12806_v31  ;;  %v17309_v43 = vld [vmem:[#allocation8 + $0xb9c] sm:$0xf] }
 0x333   :  { %v13636_v22 = vld [vmem:[#allocation8 + $0xc18] sm:$0xf]  ;;  %v12869_v62 = vor.u32 %v17137_v9, %v12868_v21  ;;  %v13574_v18 = vld [vmem:[#allocation8 + $0xbb8] sm:$0xf0] }
 0x334   :  { %v17329_v10 = vld [vmem:[#allocation8 + $0xc34] sm:$0xf0]  ;;  %5962 = vmatpush.bf16.msrb.mxu2 %v13669_v61  ;;  %v17109_v53 = vld [vmem:[#allocation8 + $0x55c] sm:$0xf]  ;;  %v13577_v59 = vor.u32 %v17309_v43, %v13574_v18 }
 0x335   :  { %v14116_v11 = vld [vmem:[#allocation8 + $0xfd8] sm:$0xf]  ;;  %6000 = vmatpush.bf16.msra.mxu1 %v12425_v54  ;;  %v13637_v7 = vor.u32 %v17329_v10, %v13636_v22  ;;  %5924 = vmatpush.bf16.msra.mxu3 %v12869_v62  ;;  %v12774_v54 = vld [vmem:[#allocation8 + $0x578] sm:$0xf0] }
 0x336   :  { %v17449_v12 = vld [vmem:[#allocation8 + $0xff4] sm:$0xf0]  ;;  %5988 = vmatpush.bf16.msra.mxu0 %v12137_v14  ;;  %v13286_v60 = vld [vmem:[#allocation8 + $0x978] sm:$0xf0]  ;;  %v12777_v0 = vor.u32 %v17109_v53, %v12774_v54 }
 0x337   :  { %v14117_v27 = vor.u32 %v17449_v12, %v14116_v11  ;;  %v14084_v3 = vld [vmem:[#allocation8 + $0xf98] sm:$0xf]  ;;  %v17301_v6 = vld [vmem:[#allocation8 + $0xb5c] sm:$0xf]  ;;  %v13289_v11 = vor.u32 %v17237_v17, %v13286_v60 }
 0x338   :  { %v17441_v36 = vld [vmem:[#allocation8 + $0xfb4] sm:$0xf0]  ;;  %5963 = vmatpush.bf16.msrb.mxu2 %v13637_v7  ;;  %5925 = vmatmul.bf16.vlgmr.msra.gmra.mxu3 %v18524_v52  ;;  %v13542_v8 = vld [vmem:[#allocation8 + $0xb78] sm:$0xf0] }
 0x339   :  { %6001 = vmatpush.bf16.msra.mxu1 %v12393_v57  ;;  %5969 = vmatpush.bf16.msrb.mxu3 %v14117_v27  ;;  %v14085_v40 = vor.u32 %v17441_v36, %v14084_v3  ;;  %v14052_v44 = vld [vmem:[#allocation8 + $0xf58] sm:$0xf]  ;;  %v17101_v22 = vld [vmem:[#allocation8 + $0x51c] sm:$0xf]  ;;  %v13545_v12 = vor.u32 %v17301_v6, %v13542_v8  ;;  %v5718_v36 = vpop.f32.mrf.mxu3 }
 0x33a   :  { %v17433_v45 = vld [vmem:[#allocation8 + $0xf74] sm:$0xf0]  ;;  %5989 = vmatpush.bf16.msra.mxu0 %v12105_v41  ;;  %v12742_v10 = vld [vmem:[#allocation8 + $0x538] sm:$0xf0]  ;;  %v5783_v27 = vpop.f32.mrf.mxu0 }
 0x33b   :  { %5964 = vmatmul.bf16.vlgmr.msrb.gmra.mxu2 %v18543_v20  ;;  %v14053_v61 = vor.u32 %v17433_v45, %v14052_v44  ;;  %v14020_v21 = vld [vmem:[#allocation8 + $0xf18] sm:$0xf]  ;;  %v17229_v13 = vld [vmem:[#allocation8 + $0x91c] sm:$0xf]  ;;  %v12745_v62 = vor.u32 %v17101_v22, %v12742_v10  ;;  %v5784_v29 = vadd.f32 %v5783_v27, %v2683_v55 }
 0x33c   :  { %6008 = vmatpush.bf16.msra.mxu2 %v12841_v23  ;;  %v17425_v9 = vld [vmem:[#allocation8 + $0xf34] sm:$0xf0]  ;;  %v13254_v14 = vld [vmem:[#allocation8 + $0x938] sm:$0xf0] }
 0x33d   :  { %6002 = vmatpush.bf16.msra.mxu1 %v12361_v37  ;;  %5970 = vmatpush.bf16.msrb.mxu3 %v14085_v40  ;;  %v14021_v57 = vor.u32 %v17425_v9, %v14020_v21  ;;  %v17293_v7 = vld [vmem:[#allocation8 + $0xb1c] sm:$0xf]  ;;  %v17417_v32 = vld [vmem:[#allocation8 + $0xef4] sm:$0xf0]  ;;  %v5796_v23 = vpop.f32.mrf.mxu1  ;;  %v13257_v24 = vor.u32 %v17229_v13, %v13254_v14 }
 0x33e   :  { %6034 = vmatpush.bf16.msrb.mxu0 %v13353_v38  ;;  %v13510_v50 = vld [vmem:[#allocation8 + $0xb38] sm:$0xf0]  ;;  %v5757_v30 = vpop.f32.mrf.mxu2  ;;  %v13956_v37 = vld [vmem:[#allocation8 + $0xe98] sm:$0xf]  ;;  %v18683_v38 = vadd.f32 %v5796_v23, %v5784_v29 }
 0x33f   :  { %5990 = vmatmul.bf16.vlgmr.msra.gmra.mxu0 %v18518_v47  ;;  %v13988_v47 = vld [vmem:[#allocation8 + $0xed8] sm:$0xf]  ;;  %v12710_v19 = vld [vmem:[#allocation8 + $0x4f8] sm:$0xf0]  ;;  %v13513_v25 = vor.u32 %v17293_v7, %v13510_v50 }
 0x340   :  { %6009 = vmatpush.bf16.msra.mxu2 %v12809_v1  ;;  %6003 = vmatmul.bf16.vlgmr.msra.gmra.mxu1 %v18520_v48  ;;  %v17093_v48 = vld [vmem:[#allocation8 + $0x4dc] sm:$0xf]  ;;  %v13989_v49 = vor.u32 %v17417_v32, %v13988_v47  ;;  %v17409_v63 = vld [vmem:[#allocation8 + $0xeb4] sm:$0xf0] }
 0x341   :  { %6047 = vmatpush.bf16.msrb.mxu1 %v13609_v35  ;;  %5971 = vmatpush.bf16.msrb.mxu3 %v14053_v61  ;;  %v17221_v46 = vld [vmem:[#allocation8 + $0x8dc] sm:$0xf]  ;;  %v12713_v3 = vor.u32 %v17093_v48, %v12710_v19  ;;  %v5719_v35 = vadd.f32 %v5718_v36, %v18676_v28  ;;  %v13957_v53 = vor.u32 %v17409_v63, %v13956_v37  ;;  %v13924_v17 = vld [vmem:[#allocation8 + $0xe58] sm:$0xf]  ;;  %v5720_v13 = vpop.f32.mrf.mxu3  ;;  %v17574_v37 = vld [vmem:[#allocation11 + $0x3dc] sm:$0xf0] }
 0x342   :  { %6035 = vmatpush.bf16.msrb.mxu0 %v13321_v56  ;;  %v13222_v42 = vld [vmem:[#allocation8 + $0x8f8] sm:$0xf0]  ;;  %v17401_v60 = vld [vmem:[#allocation8 + $0xe74] sm:$0xf0]  ;;  %v5785_v6 = vpop.f32.mrf.mxu0 }
 0x343   :  { %v17285_v31 = vld [vmem:[#allocation8 + $0xadc] sm:$0xf]  ;;  %v5732_v1 = vadd.f32 %v18668_v2, %v5719_v35  ;;  %v13225_v43 = vor.u32 %v17221_v46, %v13222_v42 }
 0x344   :  { %6010 = vmatpush.bf16.msra.mxu2 %v12777_v0  ;;  %v13478_v41 = vld [vmem:[#allocation8 + $0xaf8] sm:$0xf0] }
 0x345   :  { %6048 = vmatpush.bf16.msrb.mxu1 %v13577_v59  ;;  %5972 = vmatpush.bf16.msrb.mxu3 %v14021_v57  ;;  %v17085_v39 = vld [vmem:[#allocation8 + $0x49c] sm:$0xf]  ;;  %v13481_v18 = vor.u32 %v17285_v31, %v13478_v41  ;;  %v5745_v28 = vadd.f32 %v18670_v15, %v5732_v1  ;;  %v5798_v8 = vpop.f32.mrf.mxu1  ;;  %v13892_v57 = vld [vmem:[#allocation8 + $0xe18] sm:$0xf]  ;;  %v17510_v31 = vld [vmem:[#allocation11 + $0x1dc] sm:$0xf0] }
 0x346   :  { %6036 = vmatpush.bf16.msrb.mxu0 %v13289_v11  ;;  %v12678_v40 = vld [vmem:[#allocation8 + $0x4b8] sm:$0xf0]  ;;  %v5759_v15 = vpop.f32.mrf.mxu2  ;;  %v14604_v41 = vld [vmem:[#allocation11 + $0x3c0] sm:$0xf] }
 0x347   :  { %v17213_v44 = vld [vmem:[#allocation8 + $0x89c] sm:$0xf]  ;;  %v12681_v54 = vor.u32 %v17085_v39, %v12678_v40  ;;  %v18688_v21 = vadd.f32 %v5757_v30, %v5745_v28  ;;  %v14348_v30 = vld [vmem:[#allocation11 + $0x1c0] sm:$0xf] }
 0x348   :  { %6011 = vmatpush.bf16.msra.mxu2 %v12745_v62  ;;  %v13190_v45 = vld [vmem:[#allocation8 + $0x8b8] sm:$0xf0]  ;;  %v17393_v62 = vld [vmem:[#allocation8 + $0xe34] sm:$0xf0] }
 0x349   :  { %6049 = vmatpush.bf16.msrb.mxu1 %v13545_v12  ;;  %5973 = vmatpush.bf16.msrb.mxu3 %v13989_v49  ;;  %v17277_v56 = vld [vmem:[#allocation8 + $0xa9c] sm:$0xf]  ;;  %v13193_v2 = vor.u32 %v17213_v44, %v13190_v45  ;;  %v13925_v12 = vor.u32 %v17401_v60, %v13924_v17  ;;  %v13893_v29 = vor.u32 %v17393_v62, %v13892_v57  ;;  %v14316_v45 = vld [vmem:[#allocation11 + $0x180] sm:$0xf] }
 0x34a   :  { %6037 = vmatpush.bf16.msrb.mxu0 %v13257_v24  ;;  %v13446_v59 = vld [vmem:[#allocation8 + $0xab8] sm:$0xf0]  ;;  %v14605_v44 = vor.u32 %v17574_v37, %v14604_v41  ;;  %v17566_v17 = vld [vmem:[#allocation11 + $0x39c] sm:$0xf0] }
 0x34b   :  { %v17077_v61 = vld [vmem:[#allocation8 + $0x45c] sm:$0xf]  ;;  %v13449_v9 = vor.u32 %v17277_v56, %v13446_v59  ;;  %v14572_v59 = vld [vmem:[#allocation11 + $0x380] sm:$0xf] }
 0x34c   :  { %6012 = vmatpush.bf16.msra.mxu2 %v12713_v3  ;;  %v12646_v0 = vld [vmem:[#allocation8 + $0x478] sm:$0xf0]  ;;  %v14573_v8 = vor.u32 %v17566_v17, %v14572_v59  ;;  %v14252_v62 = vld [vmem:[#allocation11 + $0x100] sm:$0xf] }
 0x34d   :  { %6050 = vmatpush.bf16.msrb.mxu1 %v13513_v25  ;;  %v17205_v22 = vld [vmem:[#allocation8 + $0x85c] sm:$0xf]  ;;  %5974 = vmatpush.bf16.msrb.mxu3 %v13957_v53  ;;  %v12649_v55 = vor.u32 %v17077_v61, %v12646_v0  ;;  %v17502_v53 = vld [vmem:[#allocation11 + $0x19c] sm:$0xf0] }
 0x34e   :  { %6038 = vmatpush.bf16.msrb.mxu0 %v13225_v43  ;;  %v13158_v10 = vld [vmem:[#allocation8 + $0x878] sm:$0xf0]  ;;  %v14317_v6 = vor.u32 %v17502_v53, %v14316_v45  ;;  %v17542_v41 = vld [vmem:[#allocation11 + $0x2dc] sm:$0xf0] }
 0x34f   :  { %v17269_v11 = vld [vmem:[#allocation8 + $0xa5c] sm:$0xf]  ;;  %v13161_v27 = vor.u32 %v17205_v22, %v13158_v10  ;;  %v14444_v53 = vld [vmem:[#allocation11 + $0x280] sm:$0xf] }
 0x350   :  { %6013 = vmatpush.bf16.msra.mxu2 %v12681_v54  ;;  %v13414_v14 = vld [vmem:[#allocation8 + $0xa78] sm:$0xf0] }
 0x351   :  { %6051 = vmatpush.bf16.msrb.mxu1 %v13481_v18  ;;  %v17069_v7 = vld [vmem:[#allocation8 + $0x41c] sm:$0xf]  ;;  %v13417_v23 = vor.u32 %v17269_v11, %v13414_v14  ;;  %5975 = vmatpush.bf16.msrb.mxu3 %v13925_v12  ;;  %v14349_v18 = vor.u32 %v17510_v31, %v14348_v30  ;;  %v14540_v11 = vld [vmem:[#allocation11 + $0x340] sm:$0xf] }
 0x352   :  { %v12614_v50 = vld [vmem:[#allocation8 + $0x438] sm:$0xf0]  ;;  %6039 = vmatpush.bf16.msrb.mxu0 %v13193_v2  ;;  %v14284_v2 = vld [vmem:[#allocation11 + $0x140] sm:$0xf] }
 0x353   :  { %v17189_v47 = vld [vmem:[#allocation8 + $0x7dc] sm:$0xf]  ;;  %v12617_v24 = vor.u32 %v17069_v7, %v12614_v50  ;;  %v17558_v12 = vld [vmem:[#allocation11 + $0x35c] sm:$0xf0] }
 0x354   :  { %v13094_v32 = vld [vmem:[#allocation8 + $0x7f8] sm:$0xf0]  ;;  %6014 = vmatpush.bf16.msra.mxu2 %v12649_v55  ;;  %v14541_v57 = vor.u32 %v17558_v12, %v14540_v11  ;;  %v17486_v7 = vld [vmem:[#allocation11 + $0x11c] sm:$0xf0] }
 0x355   :  { %v17381_v48 = vld [vmem:[#allocation8 + $0xddc] sm:$0xf]  ;;  %6052 = vmatpush.bf16.msrb.mxu1 %v13449_v9  ;;  %v13097_v49 = vor.u32 %v17189_v47, %v13094_v32  ;;  %5976 = vmatpush.bf16.msrb.mxu3 %v13893_v29  ;;  %v17494_v9 = vld [vmem:[#allocation11 + $0x15c] sm:$0xf0] }
 0x356   :  { %v13862_v19 = vld [vmem:[#allocation8 + $0xdf8] sm:$0xf0]  ;;  %6040 = vmatpush.bf16.msrb.mxu0 %v13161_v27  ;;  %v14285_v14 = vor.u32 %v17494_v9, %v14284_v2  ;;  %v14508_v32 = vld [vmem:[#allocation11 + $0x300] sm:$0xf] }
 0x357   :  { %v17197_v25 = vld [vmem:[#allocation8 + $0x81c] sm:$0xf]  ;;  %v13865_v3 = vor.u32 %v17381_v48, %v13862_v19  ;;  %v17550_v48 = vld [vmem:[#allocation11 + $0x31c] sm:$0xf0] }
 0x358   :  { %v13126_v46 = vld [vmem:[#allocation8 + $0x838] sm:$0xf0]  ;;  %6015 = vmatpush.bf16.msra.mxu2 %v12617_v24  ;;  %5977 = vmatmul.bf16.vlgmr.msrb.gmra.mxu3 %v18550_v5  ;;  %v14253_v24 = vor.u32 %v17486_v7, %v14252_v62  ;;  %v14476_v31 = vld [vmem:[#allocation11 + $0x2c0] sm:$0xf] }
 0x359   :  { %v17261_v42 = vld [vmem:[#allocation8 + $0xa1c] sm:$0xf]  ;;  %6053 = vmatpush.bf16.msrb.mxu1 %v13417_v23  ;;  %v13129_v1 = vor.u32 %v17197_v25, %v13126_v46  ;;  %6021 = vmatpush.bf16.msra.mxu3 %v13097_v49  ;;  %v14509_v25 = vor.u32 %v17550_v48, %v14508_v32  ;;  %v14220_v46 = vld [vmem:[#allocation11 + $0xc0] sm:$0xf] }
 0x35a   :  { %v13382_v36 = vld [vmem:[#allocation8 + $0xa38] sm:$0xf0]  ;;  %v17462_v2 = vld [vmem:[#allocation11 + $0x5c] sm:$0xf0] }
 0x35b   :  { %v17181_v35 = vld [vmem:[#allocation8 + $0x79c] sm:$0xf]  ;;  %v13385_v43 = vor.u32 %v17261_v42, %v13382_v36  ;;  %6016 = vmatmul.bf16.vlgmr.msra.gmra.mxu2 %v18522_v51  ;;  %6041 = vmatpush.bf16.msrb.mxu0 %v13129_v1  ;;  %v17478_v42 = vld [vmem:[#allocation11 + $0xdc] sm:$0xf0]  ;;  %v18698_v36 = vpop.f32.mrf.mxu3  ;;  %v14477_v1 = vor.u32 %v17542_v41, %v14476_v31 }
 0x35c   :  { %v13062_v63 = vld [vmem:[#allocation8 + $0x7b8] sm:$0xf0]  ;;  %6060 = vmatpush.bf16.msrb.mxu2 %v13865_v3  ;;  %v14412_v9 = vld [vmem:[#allocation11 + $0x240] sm:$0xf] }
 0x35d   :  { %v17373_v39 = vld [vmem:[#allocation8 + $0xd9c] sm:$0xf]  ;;  %v13065_v54 = vor.u32 %v17181_v35, %v13062_v63  ;;  %6054 = vmatpush.bf16.msrb.mxu1 %v13385_v43  ;;  %v18696_v29 = vpop.f32.mrf.mxu1  ;;  %v14188_v43 = vld [vmem:[#allocation11 + $0x80] sm:$0xf] }
 0x35e   :  { %v13830_v40 = vld [vmem:[#allocation8 + $0xdb8] sm:$0xf0]  ;;  %6042 = vmatmul.bf16.vlgmr.msrb.gmra.mxu0 %v18533_v16  ;;  %v18700_v30 = vpop.f32.mrf.mxu2  ;;  %v14860_v7 = vld [vmem:[#allocation11 + $0x5c0] sm:$0xf] }
 0x35f   :  { %v13833_v56 = vor.u32 %v17373_v39, %v13830_v40  ;;  %v17173_v28 = vld [vmem:[#allocation8 + $0x75c] sm:$0xf]  ;;  %9192 = vmatpush.bf16.msra.mxu0 %v14349_v18  ;;  %6022 = vmatpush.bf16.msra.mxu3 %v13065_v54  ;;  %v14221_v40 = vor.u32 %v17478_v42, %v14220_v46  ;;  %v17470_v18 = vld [vmem:[#allocation11 + $0x9c] sm:$0xf0] }
 0x360   :  { %v13030_v60 = vld [vmem:[#allocation8 + $0x778] sm:$0xf0]  ;;  %6055 = vmatmul.bf16.vlgmr.msrb.gmra.mxu1 %v18537_v4  ;;  %v18694_v4 = vpop.f32.mrf.mxu0  ;;  %v17534_v54 = vld [vmem:[#allocation11 + $0x29c] sm:$0xf0] }
 0x361   :  { %v17365_v61 = vld [vmem:[#allocation8 + $0xd5c] sm:$0xf]  ;;  %9205 = vmatpush.bf16.msra.mxu1 %v14605_v44  ;;  %6061 = vmatpush.bf16.msrb.mxu2 %v13833_v56  ;;  %v13033_v22 = vor.u32 %v17173_v28, %v13030_v60  ;;  %v17518_v46 = vld [vmem:[#allocation11 + $0x21c] sm:$0xf0] }
 0x362   :  { %v13798_v0 = vld [vmem:[#allocation8 + $0xd78] sm:$0xf0]  ;;  %v15372_v42 = vld [vmem:[#allocation11 + $0x9c0] sm:$0xf] }
 0x363   :  { %v13801_v10 = vor.u32 %v17365_v61, %v13798_v0  ;;  %v17165_v55 = vld [vmem:[#allocation8 + $0x71c] sm:$0xf]  ;;  %9193 = vmatpush.bf16.msra.mxu0 %v14317_v6  ;;  %6023 = vmatpush.bf16.msra.mxu3 %v13033_v22  ;;  %v14189_v0 = vor.u32 %v17470_v18, %v14188_v43  ;;  %v14445_v6 = vor.u32 %v17534_v54, %v14444_v53  ;;  %v5772_v11 = vpop.f32.mrf.mxu3  ;;  %v17830_v31 = vld [vmem:[#allocation11 + $0xbdc] sm:$0xf0]  ;;  %v6087_v43 = vmax.f32 %v18622_v34, 0.0 }
 0x364   :  { %v12998_v51 = vld [vmem:[#allocation8 + $0x738] sm:$0xf0]  ;;  %v17758_v53 = vld [vmem:[#allocation11 + $0x99c] sm:$0xf0] }
 0x365   :  { %v17357_v13 = vld [vmem:[#allocation8 + $0xd1c] sm:$0xf]  ;;  %9206 = vmatpush.bf16.msra.mxu1 %v14573_v8  ;;  %6062 = vmatpush.bf16.msrb.mxu2 %v13801_v10  ;;  %v13001_v50 = vor.u32 %v17165_v55, %v12998_v51  ;;  %v5850_v61 = vpop.f32.mrf.mxu1  ;;  %v14156_v8 = vld [vmem:[#allocation11 + $0x40] sm:$0xf]  ;;  %v18708_v34 = vpack.c.bf16 %v6087_v43, %v6087_v43 }
 0x366   :  { %v13766_v15 = vld [vmem:[#allocation8 + $0xd38] sm:$0xf0]  ;;  %v5811_v12 = vpop.f32.mrf.mxu2  ;;  %v17526_v55 = vld [vmem:[#allocation11 + $0x25c] sm:$0xf0] }
 0x367   :  { %v13769_v47 = vor.u32 %v17357_v13, %v13766_v15  ;;  %v17157_v19 = vld [vmem:[#allocation8 + $0x6dc] sm:$0xf]  ;;  %9194 = vmatpush.bf16.msra.mxu0 %v14285_v14  ;;  %6024 = vmatpush.bf16.msra.mxu3 %v13001_v50  ;;  %v17638_v50 = vld [vmem:[#allocation11 + $0x5dc] sm:$0xf0]  ;;  %v14413_v32 = vor.u32 %v17526_v55, %v14412_v9 }
 0x368   :  { %v12966_v27 = vld [vmem:[#allocation8 + $0x6f8] sm:$0xf0]  ;;  %v5837_v60 = vpop.f32.mrf.mxu0  ;;  %v17622_v61 = vld [vmem:[#allocation11 + $0x55c] sm:$0xf0] }
 0x369   :  { %v17349_v16 = vld [vmem:[#allocation8 + $0xcdc] sm:$0xf]  ;;  %9207 = vmatpush.bf16.msra.mxu1 %v14541_v57  ;;  %6063 = vmatpush.bf16.msrb.mxu2 %v13769_v47  ;;  %v12969_v49 = vor.u32 %v17157_v19, %v12966_v27  ;;  %v14157_v47 = vor.u32 %v17462_v2, %v14156_v8  ;;  %v14124_v27 = vld [vmem:[#allocation11] sm:$0xf] }
 0x36a   :  { %v13734_v23 = vld [vmem:[#allocation8 + $0xcf8] sm:$0xf0]  ;;  %v14796_v60 = vld [vmem:[#allocation11 + $0x540] sm:$0xf] }
 0x36b   :  { %v13737_v3 = vor.u32 %v17349_v16, %v13734_v23  ;;  %v17149_v37 = vld [vmem:[#allocation8 + $0x69c] sm:$0xf]  ;;  %9195 = vmatpush.bf16.msra.mxu0 %v14253_v24  ;;  %6025 = vmatpush.bf16.msra.mxu3 %v12969_v49  ;;  %v17454_v16 = vld [vmem:[#allocation11 + $0x1c] sm:$0xf0] }
 0x36c   :  { %v12934_v35 = vld [vmem:[#allocation8 + $0x6b8] sm:$0xf0]  ;;  %v14380_v23 = vld [vmem:[#allocation11 + $0x200] sm:$0xf] }
 0x36d   :  { %v17341_v63 = vld [vmem:[#allocation8 + $0xc9c] sm:$0xf]  ;;  %9208 = vmatpush.bf16.msra.mxu1 %v14509_v25  ;;  %6064 = vmatpush.bf16.msrb.mxu2 %v13737_v3  ;;  %v12937_v44 = vor.u32 %v17149_v37, %v12934_v35  ;;  %v14861_v25 = vor.u32 %v17638_v50, %v14860_v7  ;;  %v17766_v49 = vld [vmem:[#allocation11 + $0x9dc] sm:$0xf0] }
 0x36e   :  { %v13702_v39 = vld [vmem:[#allocation8 + $0xcb8] sm:$0xf0]  ;;  %v15628_v3 = vld [vmem:[#allocation11 + $0xbc0] sm:$0xf]  ;;  %v15373_v18 = vor.u32 %v17766_v49, %v15372_v42 }
 0x36f   :  { %v13705_v45 = vor.u32 %v17341_v63, %v13702_v39  ;;  %v17141_v56 = vld [vmem:[#allocation8 + $0x65c] sm:$0xf]  ;;  %9196 = vmatpush.bf16.msra.mxu0 %v14221_v40  ;;  %6026 = vmatpush.bf16.msra.mxu3 %v12937_v44  ;;  %v14828_v35 = vld [vmem:[#allocation11 + $0x580] sm:$0xf]  ;;  %v6086_v39 = vmax.f32 %v18601_v58, 0.0  ;;  %v14125_v40 = vor.u32 %v17454_v16, %v14124_v27  ;;  %v15629_v44 = vor.u32 %v17830_v31, %v15628_v3 }
 0x370   :  { %v12902_v59 = vld [vmem:[#allocation8 + $0x678] sm:$0xf0]  ;;  %v17630_v63 = vld [vmem:[#allocation11 + $0x59c] sm:$0xf0] }
 0x371   :  { %v17333_v17 = vld [vmem:[#allocation8 + $0xc5c] sm:$0xf]  ;;  %9209 = vmatpush.bf16.msra.mxu1 %v14477_v1  ;;  %6065 = vmatpush.bf16.msrb.mxu2 %v13705_v45  ;;  %v12905_v22 = vor.u32 %v17141_v56, %v12902_v59  ;;  %v14381_v1 = vor.u32 %v17518_v46, %v14380_v23  ;;  %v15340_v45 = vld [vmem:[#allocation11 + $0x980] sm:$0xf]  ;;  %v14829_v56 = vor.u32 %v17630_v63, %v14828_v35 }
 0x372   :  { %v13670_v28 = vld [vmem:[#allocation8 + $0xc78] sm:$0xf0]  ;;  %v15596_v59 = vld [vmem:[#allocation11 + $0xb80] sm:$0xf] }
 0x373   :  { %v13673_v10 = vor.u32 %v17333_v17, %v13670_v28  ;;  %v17133_v51 = vld [vmem:[#allocation8 + $0x61c] sm:$0xf]  ;;  %9197 = vmatpush.bf16.msra.mxu0 %v14189_v0  ;;  %6027 = vmatpush.bf16.msra.mxu3 %v12905_v22  ;;  %v17822_v17 = vld [vmem:[#allocation11 + $0xb9c] sm:$0xf0]  ;;  %v18706_v0 = vpack.c.bf16 %v6086_v39, %v6086_v39  ;;  %v14797_v22 = vor.u32 %v17622_v61, %v14796_v60 }
 0x374   :  { %v12870_v13 = vld [vmem:[#allocation8 + $0x638] sm:$0xf0]  ;;  %v15597_v8 = vor.u32 %v17822_v17, %v15596_v59  ;;  %v15308_v2 = vld [vmem:[#allocation11 + $0x940] sm:$0xf] }
 0x375   :  { %v17325_v15 = vld [vmem:[#allocation8 + $0xc1c] sm:$0xf]  ;;  %9210 = vmatpush.bf16.msra.mxu1 %v14445_v6  ;;  %6066 = vmatpush.bf16.msrb.mxu2 %v13673_v10  ;;  %v12873_v48 = vor.u32 %v17133_v51, %v12870_v13  ;;  %v15341_v6 = vor.u32 %v17758_v53, %v15340_v45  ;;  %v17750_v9 = vld [vmem:[#allocation11 + $0x95c] sm:$0xf0] }
 0x376   :  { %v13638_v14 = vld [vmem:[#allocation8 + $0xc38] sm:$0xf0]  ;;  %v17814_v10 = vld [vmem:[#allocation11 + $0xb5c] sm:$0xf0]  ;;  %v15309_v13 = vor.u32 %v17750_v9, %v15308_v2 }
 0x377   :  { %v17445_v57 = vld [vmem:[#allocation8 + $0xfdc] sm:$0xf]  ;;  %v13641_v19 = vor.u32 %v17325_v15, %v13638_v14  ;;  %9198 = vmatpush.bf16.msra.mxu0 %v14157_v47  ;;  %6028 = vmatpush.bf16.msra.mxu3 %v12873_v48  ;;  %v14764_v55 = vld [vmem:[#allocation11 + $0x500] sm:$0xf]  ;;  %v18712_v14 = vld [vmem:[#allocation10] sm:$0xff] }
 0x378   :  { %v14118_v62 = vld [vmem:[#allocation8 + $0xff8] sm:$0xf0]  ;;  %v17614_v51 = vld [vmem:[#allocation11 + $0x51c] sm:$0xf0] }
 0x379   :  { %v14121_v24 = vor.u32 %v17445_v57, %v14118_v62  ;;  %v17437_v41 = vld [vmem:[#allocation8 + $0xf9c] sm:$0xf]  ;;  %9211 = vmatpush.bf16.msra.mxu1 %v14413_v32  ;;  %6067 = vmatpush.bf16.msrb.mxu2 %v13641_v19  ;;  %v2684_v57 = vperm.slane %v18712_v14, 6  ;;  %v15276_v62 = vld [vmem:[#allocation11 + $0x900] sm:$0xf]  ;;  %v14765_v47 = vor.u32 %v17614_v51, %v14764_v55  ;;  %v18715_v35 = vpop.f32.mrf.mxu3 }
 0x37a   :  { %v14086_v37 = vld [vmem:[#allocation8 + $0xfb8] sm:$0xf0]  ;;  %6029 = vmatmul.bf16.vlgmr.msra.gmra.mxu3 %v18524_v52  ;;  %v17742_v7 = vld [vmem:[#allocation11 + $0x91c] sm:$0xf0] }
 0x37b   :  { %6073 = vmatpush.bf16.msrb.mxu3 %v14121_v24  ;;  %v14089_v54 = vor.u32 %v17437_v41, %v14086_v37  ;;  %v17429_v28 = vld [vmem:[#allocation8 + $0xf5c] sm:$0xf]  ;;  %9199 = vmatpush.bf16.msra.mxu0 %v14125_v40  ;;  %v15532_v32 = vld [vmem:[#allocation11 + $0xb00] sm:$0xf]  ;;  %v5887_v24 = vpop.f32.mrf.mxu0  ;;  %v15277_v42 = vor.u32 %v17742_v7, %v15276_v62 }
 0x37c   :  { %6068 = vmatmul.bf16.vlgmr.msrb.gmra.mxu2 %v18543_v20  ;;  %v14054_v58 = vld [vmem:[#allocation8 + $0xf78] sm:$0xf0]  ;;  %v15564_v20 = vld [vmem:[#allocation11 + $0xb40] sm:$0xf]  ;;  %v5888_v46 = vadd.f32 %v5887_v24, %v2684_v57 }
 0x37d   :  { %9218 = vmatpush.bf16.msra.mxu2 %v14861_v25  ;;  %9212 = vmatpush.bf16.msra.mxu1 %v14381_v1  ;;  %v14057_v52 = vor.u32 %v17429_v28, %v14054_v58  ;;  %v17421_v11 = vld [vmem:[#allocation8 + $0xf1c] sm:$0xf]  ;;  %v15565_v15 = vor.u32 %v17814_v10, %v15564_v20  ;;  %v17806_v48 = vld [vmem:[#allocation11 + $0xb1c] sm:$0xf0]  ;;  %v5900_v25 = vpop.f32.mrf.mxu1 }
 0x37e   :  { %9200 = vmatmul.bf16.vlgmr.msra.gmra.mxu0 %v18706_v0  ;;  %v14022_v12 = vld [vmem:[#allocation8 + $0xf38] sm:$0xf0]  ;;  %v14732_v16 = vld [vmem:[#allocation11 + $0x4c0] sm:$0xf]  ;;  %v15533_v49 = vor.u32 %v17806_v48, %v15532_v32  ;;  %v18717_v63 = vpop.f32.mrf.mxu2  ;;  %v18719_v43 = vadd.f32 %v5900_v25, %v5888_v46  ;;  %v5771_v25 = vadd.f32 %v18698_v36, %v18688_v21 }
 0x37f   :  { %9244 = vmatpush.bf16.msrb.mxu0 %v15373_v18  ;;  %6074 = vmatpush.bf16.msrb.mxu3 %v14089_v54  ;;  %v14025_v50 = vor.u32 %v17421_v11, %v14022_v12  ;;  %v17413_v19 = vld [vmem:[#allocation8 + $0xedc] sm:$0xf]  ;;  %v17606_v23 = vld [vmem:[#allocation11 + $0x4dc] sm:$0xf0] }
 0x380   :  { %9213 = vmatmul.bf16.vlgmr.msra.gmra.mxu1 %v18708_v34  ;;  %v13990_v27 = vld [vmem:[#allocation8 + $0xef8] sm:$0xf0]  ;;  %v15244_v3 = vld [vmem:[#allocation11 + $0x8c0] sm:$0xf]  ;;  %v14733_v37 = vor.u32 %v17606_v23, %v14732_v16  ;;  %v6088_v16 = vmax.f32 %v18645_v33, 0.0 }
 0x381   :  { %9257 = vmatpush.bf16.msrb.mxu1 %v15629_v44  ;;  %9219 = vmatpush.bf16.msra.mxu2 %v14829_v56  ;;  %v17734_v31 = vld [vmem:[#allocation11 + $0x8dc] sm:$0xf0]  ;;  %v13993_v41 = vor.u32 %v17413_v19, %v13990_v27  ;;  %v17405_v1 = vld [vmem:[#allocation8 + $0xe9c] sm:$0xf]  ;;  %v17570_v33 = vld [vmem:[#allocation11 + $0x3c4] sm:$0xf] }
 0x382   :  { %v15500_v39 = vld [vmem:[#allocation11 + $0xac0] sm:$0xf]  ;;  %v13958_v18 = vld [vmem:[#allocation8 + $0xeb8] sm:$0xf0]  ;;  %v15245_v53 = vor.u32 %v17734_v31, %v15244_v3 }
 0x383   :  { %9245 = vmatpush.bf16.msrb.mxu0 %v15341_v6  ;;  %6075 = vmatpush.bf16.msrb.mxu3 %v14057_v52  ;;  %v17798_v40 = vld [vmem:[#allocation11 + $0xadc] sm:$0xf0]  ;;  %v13961_v17 = vor.u32 %v17405_v1, %v13958_v18  ;;  %v17397_v61 = vld [vmem:[#allocation8 + $0xe5c] sm:$0xf]  ;;  %v5889_v9 = vpop.f32.mrf.mxu0  ;;  %v14606_v18 = vld [vmem:[#allocation11 + $0x3e0] sm:$0xf0] }
 0x384   :  { %v14700_v44 = vld [vmem:[#allocation11 + $0x480] sm:$0xf]  ;;  %v15501_v54 = vor.u32 %v17798_v40, %v15500_v39  ;;  %v13926_v6 = vld [vmem:[#allocation8 + $0xe78] sm:$0xf0]  ;;  %v17506_v39 = vld [vmem:[#allocation11 + $0x1c4] sm:$0xf] }
 0x385   :  { %9258 = vmatpush.bf16.msrb.mxu1 %v15597_v8  ;;  %9220 = vmatpush.bf16.msra.mxu2 %v14797_v22  ;;  %v17598_v45 = vld [vmem:[#allocation11 + $0x49c] sm:$0xf0]  ;;  %v5902_v52 = vpop.f32.mrf.mxu1  ;;  %v13929_v55 = vor.u32 %v17397_v61, %v13926_v6  ;;  %v17389_v62 = vld [vmem:[#allocation8 + $0xe1c] sm:$0xf]  ;;  %v14350_v40 = vld [vmem:[#allocation11 + $0x1e0] sm:$0xf0] }
 0x386   :  { %v15212_v56 = vld [vmem:[#allocation11 + $0x880] sm:$0xf]  ;;  %v14701_v28 = vor.u32 %v17598_v45, %v14700_v44  ;;  %v13894_v7 = vld [vmem:[#allocation8 + $0xe38] sm:$0xf0]  ;;  %v5810_v45 = vadd.f32 %v18700_v30, %v18683_v38  ;;  %v17498_v61 = vld [vmem:[#allocation11 + $0x184] sm:$0xf] }
 0x387   :  { %9246 = vmatpush.bf16.msrb.mxu0 %v15309_v13  ;;  %6076 = vmatpush.bf16.msrb.mxu3 %v14025_v50  ;;  %v17726_v59 = vld [vmem:[#allocation11 + $0x89c] sm:$0xf0]  ;;  %v5824_v13 = vpop.f32.mrf.mxu3  ;;  %v13897_v46 = vor.u32 %v17389_v62, %v13894_v7  ;;  %v14318_v6 = vld [vmem:[#allocation11 + $0x1a0] sm:$0xf0] }
 0x388   :  { %v15468_v58 = vld [vmem:[#allocation11 + $0xa80] sm:$0xf]  ;;  %v15213_v22 = vor.u32 %v17726_v59, %v15212_v56  ;;  %v6090_v56 = vmax.f32 %v5771_v25, 0.0  ;;  %v17562_v30 = vld [vmem:[#allocation11 + $0x384] sm:$0xf] }
 0x389   :  { %9259 = vmatpush.bf16.msrb.mxu1 %v15565_v15  ;;  %9221 = vmatpush.bf16.msra.mxu2 %v14765_v47  ;;  %v17790_v60 = vld [vmem:[#allocation11 + $0xa9c] sm:$0xf0]  ;;  %v5863_v15 = vpop.f32.mrf.mxu2 }
 0x38a   :  { %v14668_v8 = vld [vmem:[#allocation11 + $0x440] sm:$0xf]  ;;  %v15469_v20 = vor.u32 %v17790_v60, %v15468_v58  ;;  %v14353_v58 = vor.u32 %v17506_v39, %v14350_v40  ;;  %v14609_v60 = vor.u32 %v17570_v33, %v14606_v18  ;;  %v14542_v15 = vld [vmem:[#allocation11 + $0x360] sm:$0xf0] }
 0x38b   :  { %9247 = vmatpush.bf16.msrb.mxu0 %v15277_v42  ;;  %6077 = vmatpush.bf16.msrb.mxu3 %v13993_v41  ;;  %v17590_v2 = vld [vmem:[#allocation11 + $0x45c] sm:$0xf0]  ;;  %v17474_v40 = vld [vmem:[#allocation11 + $0xc4] sm:$0xf] }
 0x38c   :  { %v15180_v10 = vld [vmem:[#allocation11 + $0x840] sm:$0xf]  ;;  %v14669_v51 = vor.u32 %v17590_v2, %v14668_v8  ;;  %v14574_v8 = vld [vmem:[#allocation11 + $0x3a0] sm:$0xf0] }
 0x38d   :  { %9260 = vmatpush.bf16.msrb.mxu1 %v15533_v49  ;;  %9222 = vmatpush.bf16.msra.mxu2 %v14733_v37  ;;  %v17718_v11 = vld [vmem:[#allocation11 + $0x85c] sm:$0xf0] }
 0x38e   :  { %v15436_v12 = vld [vmem:[#allocation11 + $0xa40] sm:$0xf]  ;;  %v15181_v23 = vor.u32 %v17718_v11, %v15180_v10  ;;  %v18731_v10 = vpack.c.bf16 %v6090_v56, %v6090_v56  ;;  %v14321_v11 = vor.u32 %v17498_v61, %v14318_v6  ;;  %v17466_v61 = vld [vmem:[#allocation11 + $0x84] sm:$0xf] }
 0x38f   :  { %9248 = vmatpush.bf16.msrb.mxu0 %v15245_v53  ;;  %6078 = vmatpush.bf16.msrb.mxu3 %v13961_v17  ;;  %v17782_v57 = vld [vmem:[#allocation11 + $0xa5c] sm:$0xf0] }
 0x390   :  { %v14636_v50 = vld [vmem:[#allocation11 + $0x400] sm:$0xf]  ;;  %v15437_v24 = vor.u32 %v17782_v57, %v15436_v12  ;;  %v14577_v12 = vor.u32 %v17562_v30, %v14574_v8  ;;  %v17530_v30 = vld [vmem:[#allocation11 + $0x284] sm:$0xf] }
 0x391   :  { %9261 = vmatpush.bf16.msrb.mxu1 %v15501_v54  ;;  %9223 = vmatpush.bf16.msra.mxu2 %v14701_v28  ;;  %v17582_v47 = vld [vmem:[#allocation11 + $0x41c] sm:$0xf0]  ;;  %v18726_v54 = vpack.c.bf16 %v6088_v16, %v6088_v16  ;;  %v5823_v28 = vadd.f32 %v18715_v35, %v5810_v45  ;;  %v17538_v45 = vld [vmem:[#allocation11 + $0x2c4] sm:$0xf] }
 0x392   :  { %v15116_v32 = vld [vmem:[#allocation11 + $0x7c0] sm:$0xf]  ;;  %v14637_v42 = vor.u32 %v17582_v47, %v14636_v50  ;;  %v14446_v8 = vld [vmem:[#allocation11 + $0x2a0] sm:$0xf0] }
 0x393   :  { %v17702_v48 = vld [vmem:[#allocation11 + $0x7dc] sm:$0xf0]  ;;  %9249 = vmatpush.bf16.msrb.mxu0 %v15213_v22  ;;  %6079 = vmatpush.bf16.msrb.mxu3 %v13929_v55  ;;  %v5836_v35 = vadd.f32 %v18694_v4, %v5823_v28  ;;  %v17490_v55 = vld [vmem:[#allocation11 + $0x144] sm:$0xf] }
 0x394   :  { %v15884_v19 = vld [vmem:[#allocation11 + $0xdc0] sm:$0xf]  ;;  %v15117_v41 = vor.u32 %v17702_v48, %v15116_v32 }
 0x395   :  { %v17894_v27 = vld [vmem:[#allocation11 + $0xddc] sm:$0xf0]  ;;  %9262 = vmatpush.bf16.msrb.mxu1 %v15469_v20  ;;  %9224 = vmatpush.bf16.msra.mxu2 %v14669_v51  ;;  %v14286_v51 = vld [vmem:[#allocation11 + $0x160] sm:$0xf0]  ;;  %v5849_v4 = vadd.f32 %v18696_v29, %v5836_v35 }
 0x396   :  { %v15148_v49 = vld [vmem:[#allocation11 + $0x800] sm:$0xf]  ;;  %v15885_v1 = vor.u32 %v17894_v27, %v15884_v19  ;;  %v14289_v32 = vor.u32 %v17490_v55, %v14286_v51  ;;  %v17482_v19 = vld [vmem:[#allocation11 + $0x104] sm:$0xf]  ;;  %v14449_v51 = vor.u32 %v17530_v30, %v14446_v8 }
 0x397   :  { %v17710_v3 = vld [vmem:[#allocation11 + $0x81c] sm:$0xf0]  ;;  %9250 = vmatpush.bf16.msrb.mxu0 %v15181_v23  ;;  %6080 = vmatpush.bf16.msrb.mxu3 %v13897_v46  ;;  %v14254_v27 = vld [vmem:[#allocation11 + $0x120] sm:$0xf0]  ;;  %v5862_v29 = vadd.f32 %v18717_v63, %v5849_v4 }
 0x398   :  { %v15404_v31 = vld [vmem:[#allocation11 + $0xa00] sm:$0xf]  ;;  %v15149_v59 = vor.u32 %v17710_v3, %v15148_v49  ;;  %v17546_v23 = vld [vmem:[#allocation11 + $0x304] sm:$0xf] }
 0x399   :  { %v17774_v37 = vld [vmem:[#allocation11 + $0xa1c] sm:$0xf0]  ;;  %9263 = vmatpush.bf16.msrb.mxu1 %v15437_v24  ;;  %9225 = vmatpush.bf16.msra.mxu2 %v14637_v42  ;;  %v14510_v24 = vld [vmem:[#allocation11 + $0x320] sm:$0xf0]  ;;  %v5874_v33 = vpop.f32.mrf.mxu3 }
 0x39a   :  { %v15084_v44 = vld [vmem:[#allocation11 + $0x780] sm:$0xf]  ;;  %v15405_v17 = vor.u32 %v17774_v37, %v15404_v31  ;;  %6081 = vmatmul.bf16.vlgmr.msrb.gmra.mxu3 %v18550_v5  ;;  %v17554_v5 = vld [vmem:[#allocation11 + $0x344] sm:$0xf]  ;;  %v14257_v37 = vor.u32 %v17482_v19, %v14254_v27  ;;  %v14513_v39 = vor.u32 %v17546_v23, %v14510_v24  ;;  %v6089_v27 = vmax.f32 %v18673_v26, 0.0 }
 0x39b   :  { %v17694_v21 = vld [vmem:[#allocation11 + $0x79c] sm:$0xf0]  ;;  %9231 = vmatpush.bf16.msra.mxu3 %v15117_v41  ;;  %9251 = vmatpush.bf16.msrb.mxu0 %v15149_v59  ;;  %v14545_v48 = vor.u32 %v17554_v5, %v14542_v15  ;;  %v17634_v24 = vld [vmem:[#allocation11 + $0x5c4] sm:$0xf] }
 0x39c   :  { %v15852_v36 = vld [vmem:[#allocation11 + $0xd80] sm:$0xf]  ;;  %v15085_v38 = vor.u32 %v17694_v21, %v15084_v44  ;;  %9226 = vmatmul.bf16.vlgmr.msra.gmra.mxu2 %v18726_v54  ;;  %v18736_v31 = vpop.f32.mrf.mxu0  ;;  %v14222_v44 = vld [vmem:[#allocation11 + $0xe0] sm:$0xf0] }
 0x39d   :  { %v17886_v53 = vld [vmem:[#allocation11 + $0xd9c] sm:$0xf0]  ;;  %9270 = vmatpush.bf16.msrb.mxu2 %v15885_v1  ;;  %9264 = vmatpush.bf16.msrb.mxu1 %v15405_v17  ;;  %v18738_v41 = vpop.f32.mrf.mxu1  ;;  %v14478_v21 = vld [vmem:[#allocation11 + $0x2e0] sm:$0xf0] }
 0x39e   :  { %v15052_v2 = vld [vmem:[#allocation11 + $0x740] sm:$0xf]  ;;  %v15853_v9 = vor.u32 %v17886_v53, %v15852_v36  ;;  %9252 = vmatmul.bf16.vlgmr.msrb.gmra.mxu0 %v18731_v10  ;;  %v18741_v18 = vpop.f32.mrf.mxu2  ;;  %v5875_v53 = vadd.f32 %v5874_v33, %v5862_v29  ;;  %v14382_v29 = vld [vmem:[#allocation11 + $0x220] sm:$0xf0] }
 0x39f   :  { %v17686_v52 = vld [vmem:[#allocation11 + $0x75c] sm:$0xf0]  ;;  %9296 = vmatpush.bf16.msra.mxu0 %v14353_v58  ;;  %9232 = vmatpush.bf16.msra.mxu3 %v15085_v38  ;;  %v14225_v58 = vor.u32 %v17474_v40, %v14222_v44  ;;  %v14190_v38 = vld [vmem:[#allocation11 + $0xa0] sm:$0xf0] }
 0x3a0   :  { %v15820_v22 = vld [vmem:[#allocation11 + $0xd40] sm:$0xf]  ;;  %v15053_v13 = vor.u32 %v17686_v52, %v15052_v2  ;;  %v6091_v28 = vmax.f32 %v5875_v53, 0.0  ;;  %v14193_v55 = vor.u32 %v17466_v61, %v14190_v38  ;;  %v15630_v33 = vld [vmem:[#allocation11 + $0xbe0] sm:$0xf0] }
 0x3a1   :  { %v17878_v20 = vld [vmem:[#allocation11 + $0xd5c] sm:$0xf0]  ;;  %9309 = vmatpush.bf16.msra.mxu1 %v14609_v60  ;;  %9271 = vmatpush.bf16.msrb.mxu2 %v15853_v9  ;;  %v14481_v60 = vor.u32 %v17538_v45, %v14478_v21  ;;  %v5876_v15 = vpop.f32.mrf.mxu3  ;;  %v17626_v45 = vld [vmem:[#allocation11 + $0x584] sm:$0xf] }
 0x3a2   :  { %v15020_v57 = vld [vmem:[#allocation11 + $0x700] sm:$0xf]  ;;  %v15821_v62 = vor.u32 %v17878_v20, %v15820_v22  ;;  %v18743_v2 = vpack.c.bf16 %v6091_v28, %v6091_v28  ;;  %v14830_v21 = vld [vmem:[#allocation11 + $0x5a0] sm:$0xf0] }
 0x3a3   :  { %v17678_v7 = vld [vmem:[#allocation11 + $0x71c] sm:$0xf0]  ;;  %9297 = vmatpush.bf16.msra.mxu0 %v14321_v11  ;;  %9233 = vmatpush.bf16.msra.mxu3 %v15053_v13  ;;  %v17458_v13 = vld [vmem:[#allocation11 + $0x44] sm:$0xf] }
 0x3a4   :  { %v15788_v50 = vld [vmem:[#allocation11 + $0xd00] sm:$0xf]  ;;  %v15021_v16 = vor.u32 %v17678_v7, %v15020_v57  ;;  %v5941_v20 = vpop.f32.mrf.mxu0  ;;  %9265 = vmatmul.bf16.vlgmr.msrb.gmra.mxu1 %v18743_v2  ;;  %v17522_v7 = vld [vmem:[#allocation11 + $0x244] sm:$0xf] }
 0x3a5   :  { %v17870_v47 = vld [vmem:[#allocation11 + $0xd1c] sm:$0xf0]  ;;  %9310 = vmatpush.bf16.msra.mxu1 %v14577_v12  ;;  %9272 = vmatpush.bf16.msrb.mxu2 %v15821_v62  ;;  %v5954_v35 = vpop.f32.mrf.mxu1  ;;  %v14158_v62 = vld [vmem:[#allocation11 + $0x60] sm:$0xf0] }
 0x3a6   :  { %v14988_v25 = vld [vmem:[#allocation11 + $0x6c0] sm:$0xf]  ;;  %v15789_v46 = vor.u32 %v17870_v47, %v15788_v50  ;;  %v5915_v57 = vpop.f32.mrf.mxu2  ;;  %v14414_v50 = vld [vmem:[#allocation11 + $0x260] sm:$0xf0] }
 0x3a7   :  { %v17670_v42 = vld [vmem:[#allocation11 + $0x6dc] sm:$0xf0]  ;;  %9298 = vmatpush.bf16.msra.mxu0 %v14289_v32  ;;  %9234 = vmatpush.bf16.msra.mxu3 %v15021_v16  ;;  %v14161_v16 = vor.u32 %v17458_v13, %v14158_v62  ;;  %v14417_v23 = vor.u32 %v17522_v7, %v14414_v50  ;;  %v17818_v28 = vld [vmem:[#allocation11 + $0xb84] sm:$0xf] }
 0x3a8   :  { %v15756_v49 = vld [vmem:[#allocation11 + $0xcc0] sm:$0xf]  ;;  %v14989_v1 = vor.u32 %v17670_v42, %v14988_v25  ;;  %v14862_v25 = vld [vmem:[#allocation11 + $0x5e0] sm:$0xf0] }
 0x3a9   :  { %v17862_v3 = vld [vmem:[#allocation11 + $0xcdc] sm:$0xf0]  ;;  %9311 = vmatpush.bf16.msra.mxu1 %v14545_v48  ;;  %9273 = vmatpush.bf16.msrb.mxu2 %v15789_v46  ;;  %v17450_v42 = vld [vmem:[#allocation11 + $0x4] sm:$0xf]  ;;  %v14865_v44 = vor.u32 %v17634_v24, %v14862_v25 }
 0x3aa   :  { %v15757_v36 = vor.u32 %v17862_v3, %v15756_v49  ;;  %v14956_v56 = vld [vmem:[#allocation11 + $0x680] sm:$0xf]  ;;  %v14126_v49 = vld [vmem:[#allocation11 + $0x20] sm:$0xf0] }
 0x3ab   :  { %v17662_v59 = vld [vmem:[#allocation11 + $0x69c] sm:$0xf0]  ;;  %9299 = vmatpush.bf16.msra.mxu0 %v14257_v37  ;;  %9235 = vmatpush.bf16.msra.mxu3 %v14989_v1  ;;  %v17514_v3 = vld [vmem:[#allocation11 + $0x204] sm:$0xf]  ;;  %v14129_v26 = vor.u32 %v17450_v42, %v14126_v49 }
 0x3ac   :  { %v15724_v17 = vld [vmem:[#allocation11 + $0xc80] sm:$0xf]  ;;  %v14957_v6 = vor.u32 %v17662_v59, %v14956_v56  ;;  %v17762_v37 = vld [vmem:[#allocation11 + $0x9c4] sm:$0xf]  ;;  %v18747_v56 = vpack.c.bf16 %v6089_v27, %v6089_v27 }
 0x3ad   :  { %v17854_v63 = vld [vmem:[#allocation11 + $0xc9c] sm:$0xf0]  ;;  %9312 = vmatpush.bf16.msra.mxu1 %v14513_v39  ;;  %9274 = vmatpush.bf16.msrb.mxu2 %v15757_v36  ;;  %v15374_v39 = vld [vmem:[#allocation11 + $0x9e0] sm:$0xf0]  ;;  %v14385_v36 = vor.u32 %v17514_v3, %v14382_v29 }
 0x3ae   :  { %v14924_v9 = vld [vmem:[#allocation11 + $0x640] sm:$0xf]  ;;  %v15725_v22 = vor.u32 %v17854_v63, %v15724_v17  ;;  %v17826_v1 = vld [vmem:[#allocation11 + $0xbc4] sm:$0xf]  ;;  %v15377_v53 = vor.u32 %v17762_v37, %v15374_v39 }
 0x3af   :  { %v17654_v52 = vld [vmem:[#allocation11 + $0x65c] sm:$0xf0]  ;;  %9300 = vmatpush.bf16.msra.mxu0 %v14225_v58  ;;  %9236 = vmatpush.bf16.msra.mxu3 %v14957_v6  ;;  %v15633_v59 = vor.u32 %v17826_v1, %v15630_v33  ;;  %v17754_v17 = vld [vmem:[#allocation11 + $0x984] sm:$0xf] }
 0x3b0   :  { %v15692_v11 = vld [vmem:[#allocation11 + $0xc40] sm:$0xf]  ;;  %v14925_v5 = vor.u32 %v17654_v52, %v14924_v9  ;;  %v15342_v63 = vld [vmem:[#allocation11 + $0x9a0] sm:$0xf0] }
 0x3b1   :  { %v17846_v12 = vld [vmem:[#allocation11 + $0xc5c] sm:$0xf0]  ;;  %9313 = vmatpush.bf16.msra.mxu1 %v14481_v60  ;;  %9275 = vmatpush.bf16.msrb.mxu2 %v15725_v22  ;;  %v15598_v58 = vld [vmem:[#allocation11 + $0xba0] sm:$0xf0]  ;;  %v14833_v60 = vor.u32 %v17626_v45, %v14830_v21  ;;  %v15345_v38 = vor.u32 %v17754_v17, %v15342_v63 }
 0x3b2   :  { %v14892_v47 = vld [vmem:[#allocation11 + $0x600] sm:$0xf]  ;;  %v15693_v32 = vor.u32 %v17846_v12, %v15692_v11  ;;  %v17618_v61 = vld [vmem:[#allocation11 + $0x544] sm:$0xf]  ;;  %v15601_v30 = vor.u32 %v17818_v28, %v15598_v58 }
 0x3b3   :  { %v17646_v4 = vld [vmem:[#allocation11 + $0x61c] sm:$0xf0]  ;;  %9301 = vmatpush.bf16.msra.mxu0 %v14193_v55  ;;  %9237 = vmatpush.bf16.msra.mxu3 %v14925_v5  ;;  %v14798_v6 = vld [vmem:[#allocation11 + $0x560] sm:$0xf0] }
 0x3b4   :  { %v15660_v48 = vld [vmem:[#allocation11 + $0xc00] sm:$0xf]  ;;  %v14893_v46 = vor.u32 %v17646_v4, %v14892_v47  ;;  %v17746_v8 = vld [vmem:[#allocation11 + $0x944] sm:$0xf]  ;;  %v14801_v20 = vor.u32 %v17618_v61, %v14798_v6 }
 0x3b5   :  { %v17838_v19 = vld [vmem:[#allocation11 + $0xc1c] sm:$0xf0]  ;;  %9314 = vmatpush.bf16.msra.mxu1 %v14449_v51  ;;  %9276 = vmatpush.bf16.msrb.mxu2 %v15693_v32  ;;  %v15310_v9 = vld [vmem:[#allocation11 + $0x960] sm:$0xf0]  ;;  %v2685_v51 = vperm.slane %v18712_v14, 7 }
 0x3b6   :  { %v15661_v40 = vor.u32 %v17838_v19, %v15660_v48  ;;  %v17810_v52 = vld [vmem:[#allocation11 + $0xb44] sm:$0xf]  ;;  %v15313_v12 = vor.u32 %v17746_v8, %v15310_v9  ;;  %v17958_v17 = vld [vmem:[#allocation11 + $0xfdc] sm:$0xf0] }
 0x3b7   :  { %9302 = vmatpush.bf16.msra.mxu0 %v14161_v16  ;;  %9238 = vmatpush.bf16.msra.mxu3 %v14893_v46  ;;  %v15566_v22 = vld [vmem:[#allocation11 + $0xb60] sm:$0xf0] }
 0x3b8   :  { %v17610_v35 = vld [vmem:[#allocation11 + $0x504] sm:$0xf]  ;;  %v15569_v55 = vor.u32 %v17810_v52, %v15566_v22 }
 0x3b9   :  { %9315 = vmatpush.bf16.msra.mxu1 %v14417_v23  ;;  %9277 = vmatpush.bf16.msrb.mxu2 %v15661_v40  ;;  %v14766_v11 = vld [vmem:[#allocation11 + $0x520] sm:$0xf0] }
 0x3ba   :  { %9239 = vmatmul.bf16.vlgmr.msra.gmra.mxu3 %v18747_v56  ;;  %v17738_v13 = vld [vmem:[#allocation11 + $0x904] sm:$0xf]  ;;  %v14769_v62 = vor.u32 %v17610_v35, %v14766_v11  ;;  %v17950_v35 = vld [vmem:[#allocation11 + $0xf9c] sm:$0xf0] }
 0x3bb   :  { %9303 = vmatpush.bf16.msra.mxu0 %v14129_v26  ;;  %v15278_v5 = vld [vmem:[#allocation11 + $0x920] sm:$0xf0]  ;;  %v18753_v23 = vpop.f32.mrf.mxu3 }
 0x3bc   :  { %v17802_v15 = vld [vmem:[#allocation11 + $0xb04] sm:$0xf]  ;;  %v5991_v47 = vpop.f32.mrf.mxu0  ;;  %v15281_v32 = vor.u32 %v17738_v13, %v15278_v5 }
 0x3bd   :  { %9322 = vmatpush.bf16.msra.mxu2 %v14865_v44  ;;  %9316 = vmatpush.bf16.msra.mxu1 %v14385_v36  ;;  %v15534_v57 = vld [vmem:[#allocation11 + $0xb20] sm:$0xf0]  ;;  %v6004_v4 = vpop.f32.mrf.mxu1  ;;  %v5992_v48 = vadd.f32 %v5991_v47, %v2685_v51 }
 0x3be   :  { %9304 = vmatmul.bf16.vlgmr.msra.gmra.mxu0 %v18706_v0  ;;  %v17602_v7 = vld [vmem:[#allocation11 + $0x4c4] sm:$0xf]  ;;  %v15537_v19 = vor.u32 %v17802_v15, %v15534_v57  ;;  %v18755_v14 = vpop.f32.mrf.mxu2  ;;  %v14356_v15 = vld [vmem:[#allocation11 + $0x1c8] sm:$0xf] }
 0x3bf   :  { %9348 = vmatpush.bf16.msrb.mxu0 %v15377_v53  ;;  %v14734_v50 = vld [vmem:[#allocation11 + $0x4e0] sm:$0xf0]  ;;  %v18757_v42 = vadd.f32 %v6004_v4, %v5992_v48  ;;  %v17511_v57 = vld [vmem:[#allocation11 + $0x1e4] sm:$0xf0]  ;;  %v16076_v4 = vld [vmem:[#allocation11 + $0xf40] sm:$0xf]  ;;  %v5914_v48 = vadd.f32 %v18741_v18, %v18719_v43 }
 0x3c0   :  { %9317 = vmatmul.bf16.vlgmr.msra.gmra.mxu1 %v18708_v34  ;;  %v17730_v27 = vld [vmem:[#allocation11 + $0x8c4] sm:$0xf]  ;;  %v14737_v46 = vor.u32 %v17602_v7, %v14734_v50  ;;  %v14612_v7 = vld [vmem:[#allocation11 + $0x3c8] sm:$0xf] }
 0x3c1   :  { %9361 = vmatpush.bf16.msrb.mxu1 %v15633_v59  ;;  %9323 = vmatpush.bf16.msra.mxu2 %v14833_v60  ;;  %v15246_v16 = vld [vmem:[#allocation11 + $0x8e0] sm:$0xf0]  ;;  %v16140_v59 = vld [vmem:[#allocation11 + $0xfc0] sm:$0xf]  ;;  %v17575_v50 = vld [vmem:[#allocation11 + $0x3e4] sm:$0xf0] }
 0x3c2   :  { %v17794_v24 = vld [vmem:[#allocation11 + $0xac4] sm:$0xf]  ;;  %v15249_v29 = vor.u32 %v17730_v27, %v15246_v16  ;;  %v16141_v60 = vor.u32 %v17958_v17, %v16140_v59  ;;  %v14357_v27 = vor.u32 %v17511_v57, %v14356_v15  ;;  %v14260_v17 = vld [vmem:[#allocation11 + $0x108] sm:$0xf] }
 0x3c3   :  { %9349 = vmatpush.bf16.msrb.mxu0 %v15345_v38  ;;  %v15502_v25 = vld [vmem:[#allocation11 + $0xae0] sm:$0xf0]  ;;  %v5928_v61 = vpop.f32.mrf.mxu3 }
 0x3c4   :  { %v17594_v49 = vld [vmem:[#allocation11 + $0x484] sm:$0xf]  ;;  %v15505_v37 = vor.u32 %v17794_v24, %v15502_v25  ;;  %v5993_v21 = vpop.f32.mrf.mxu0  ;;  %9283 = vmatpush.bf16.msrb.mxu3 %v16141_v60  ;;  %v14613_v24 = vor.u32 %v17575_v50, %v14612_v7  ;;  %v14324_v25 = vld [vmem:[#allocation11 + $0x188] sm:$0xf]  ;;  %v17918_v61 = vld [vmem:[#allocation11 + $0xe9c] sm:$0xf0] }
 0x3c5   :  { %9362 = vmatpush.bf16.msrb.mxu1 %v15601_v30  ;;  %9324 = vmatpush.bf16.msra.mxu2 %v14801_v20  ;;  %v14702_v3 = vld [vmem:[#allocation11 + $0x4a0] sm:$0xf0]  ;;  %v6006_v36 = vpop.f32.mrf.mxu1  ;;  %v16108_v20 = vld [vmem:[#allocation11 + $0xf80] sm:$0xf]  ;;  %v17551_v60 = vld [vmem:[#allocation11 + $0x324] sm:$0xf0] }
 0x3c6   :  { %v17722_v39 = vld [vmem:[#allocation11 + $0x884] sm:$0xf]  ;;  %v14705_v44 = vor.u32 %v17594_v49, %v14702_v3  ;;  %v5967_v6 = vpop.f32.mrf.mxu2  ;;  %v16109_v13 = vor.u32 %v17950_v35, %v16108_v20  ;;  %v5927_v49 = vadd.f32 %v18753_v23, %v5914_v48  ;;  %v14580_v3 = vld [vmem:[#allocation11 + $0x388] sm:$0xf]  ;;  %v17926_v21 = vld [vmem:[#allocation11 + $0xedc] sm:$0xf0] }
 0x3c7   :  { %9350 = vmatpush.bf16.msrb.mxu0 %v15313_v12  ;;  %v15214_v40 = vld [vmem:[#allocation11 + $0x8a0] sm:$0xf0]  ;;  %v17559_v23 = vld [vmem:[#allocation11 + $0x364] sm:$0xf0] }
 0x3c8   :  { %v17786_v1 = vld [vmem:[#allocation11 + $0xa84] sm:$0xf]  ;;  %v15217_v53 = vor.u32 %v17722_v39, %v15214_v40  ;;  %9284 = vmatpush.bf16.msrb.mxu3 %v16109_v13  ;;  %v17934_v39 = vld [vmem:[#allocation11 + $0xf1c] sm:$0xf0]  ;;  %v14484_v35 = vld [vmem:[#allocation11 + $0x2c8] sm:$0xf] }
 0x3c9   :  { %9363 = vmatpush.bf16.msrb.mxu1 %v15569_v55  ;;  %9325 = vmatpush.bf16.msra.mxu2 %v14769_v62  ;;  %v15470_v33 = vld [vmem:[#allocation11 + $0xaa0] sm:$0xf0]  ;;  %v14196_v50 = vld [vmem:[#allocation11 + $0x88] sm:$0xf] }
 0x3ca   :  { %v17586_v26 = vld [vmem:[#allocation11 + $0x444] sm:$0xf]  ;;  %v15473_v63 = vor.u32 %v17786_v1, %v15470_v33  ;;  %v14292_v1 = vld [vmem:[#allocation11 + $0x148] sm:$0xf] }
 0x3cb   :  { %9351 = vmatpush.bf16.msrb.mxu0 %v15281_v32  ;;  %v14670_v45 = vld [vmem:[#allocation11 + $0x460] sm:$0xf0]  ;;  %v17942_v32 = vld [vmem:[#allocation11 + $0xf5c] sm:$0xf0]  ;;  %v17495_v33 = vld [vmem:[#allocation11 + $0x164] sm:$0xf0] }
 0x3cc   :  { %v17714_v28 = vld [vmem:[#allocation11 + $0x844] sm:$0xf]  ;;  %v14673_v8 = vor.u32 %v17586_v26, %v14670_v45  ;;  %v16077_v16 = vor.u32 %v17942_v32, %v16076_v4  ;;  %v5940_v26 = vadd.f32 %v18736_v31, %v5927_v49  ;;  %v16012_v45 = vld [vmem:[#allocation11 + $0xec0] sm:$0xf]  ;;  %v17535_v32 = vld [vmem:[#allocation11 + $0x2a4] sm:$0xf0] }
 0x3cd   :  { %9364 = vmatpush.bf16.msrb.mxu1 %v15537_v19  ;;  %9326 = vmatpush.bf16.msra.mxu2 %v14737_v46  ;;  %v15182_v58 = vld [vmem:[#allocation11 + $0x860] sm:$0xf0]  ;;  %v17503_v46 = vld [vmem:[#allocation11 + $0x1a4] sm:$0xf0]  ;;  %v16013_v36 = vor.u32 %v17926_v21, %v16012_v45  ;;  %v15980_v31 = vld [vmem:[#allocation11 + $0xe80] sm:$0xf] }
 0x3ce   :  { %v17778_v38 = vld [vmem:[#allocation11 + $0xa44] sm:$0xf]  ;;  %v15185_v22 = vor.u32 %v17714_v28, %v15182_v58  ;;  %9285 = vmatpush.bf16.msrb.mxu3 %v16077_v16  ;;  %v14325_v40 = vor.u32 %v17503_v46, %v14324_v25  ;;  %v5953_v28 = vadd.f32 %v18738_v41, %v5940_v26  ;;  %v14516_v58 = vld [vmem:[#allocation11 + $0x308] sm:$0xf] }
 0x3cf   :  { %9352 = vmatpush.bf16.msrb.mxu0 %v15249_v29  ;;  %v15438_v30 = vld [vmem:[#allocation11 + $0xa60] sm:$0xf0]  ;;  %v17567_v29 = vld [vmem:[#allocation11 + $0x3a4] sm:$0xf0] }
 0x3d0   :  { %v17578_v9 = vld [vmem:[#allocation11 + $0x404] sm:$0xf]  ;;  %v15441_v11 = vor.u32 %v17778_v38, %v15438_v30  ;;  %v14581_v18 = vor.u32 %v17567_v29, %v14580_v3  ;;  %v15981_v38 = vor.u32 %v17918_v61, %v15980_v31  ;;  %v5966_v20 = vadd.f32 %v18755_v14, %v5953_v28  ;;  %v17543_v41 = vld [vmem:[#allocation11 + $0x2e4] sm:$0xf0] }
 0x3d1   :  { %9365 = vmatpush.bf16.msrb.mxu1 %v15505_v37  ;;  %9327 = vmatpush.bf16.msra.mxu2 %v14705_v44  ;;  %v14638_v52 = vld [vmem:[#allocation11 + $0x420] sm:$0xf0]  ;;  %v16044_v37 = vld [vmem:[#allocation11 + $0xf00] sm:$0xf]  ;;  %v14548_v44 = vld [vmem:[#allocation11 + $0x348] sm:$0xf]  ;;  %v14485_v7 = vor.u32 %v17543_v41, %v14484_v35 }
 0x3d2   :  { %v17706_v12 = vld [vmem:[#allocation11 + $0x804] sm:$0xf]  ;;  %v14641_v62 = vor.u32 %v17578_v9, %v14638_v52  ;;  %v16045_v43 = vor.u32 %v17934_v39, %v16044_v37  ;;  %v14549_v59 = vor.u32 %v17559_v23, %v14548_v44  ;;  %v14517_v9 = vor.u32 %v17551_v60, %v14516_v58  ;;  %v14228_v52 = vld [vmem:[#allocation11 + $0xc8] sm:$0xf] }
 0x3d3   :  { %9353 = vmatpush.bf16.msrb.mxu0 %v15217_v53  ;;  %v15150_v55 = vld [vmem:[#allocation11 + $0x820] sm:$0xf0]  ;;  %v14293_v53 = vor.u32 %v17495_v33, %v14292_v1  ;;  %v14452_v14 = vld [vmem:[#allocation11 + $0x288] sm:$0xf] }
 0x3d4   :  { %v17770_v51 = vld [vmem:[#allocation11 + $0xa04] sm:$0xf]  ;;  %v15153_v47 = vor.u32 %v17706_v12, %v15150_v55  ;;  %9286 = vmatpush.bf16.msrb.mxu3 %v16045_v43  ;;  %v15948_v55 = vld [vmem:[#allocation11 + $0xe40] sm:$0xf]  ;;  %v14453_v37 = vor.u32 %v17535_v32, %v14452_v14  ;;  %v14164_v39 = vld [vmem:[#allocation11 + $0x48] sm:$0xf] }
 0x3d5   :  { %9366 = vmatpush.bf16.msrb.mxu1 %v15473_v63  ;;  %v15406_v5 = vld [vmem:[#allocation11 + $0xa20] sm:$0xf0]  ;;  %9328 = vmatpush.bf16.msra.mxu2 %v14673_v8  ;;  %v17487_v63 = vld [vmem:[#allocation11 + $0x124] sm:$0xf0] }
 0x3d6   :  { %v15409_v19 = vor.u32 %v17770_v51, %v15406_v5  ;;  %v14261_v6 = vor.u32 %v17487_v63, %v14260_v17  ;;  %v17910_v51 = vld [vmem:[#allocation11 + $0xe5c] sm:$0xf0]  ;;  %v17890_v15 = vld [vmem:[#allocation11 + $0xdc4] sm:$0xf]  ;;  %v17527_v1 = vld [vmem:[#allocation11 + $0x264] sm:$0xf0] }
 0x3d7   :  { %9354 = vmatpush.bf16.msrb.mxu0 %v15185_v22  ;;  %v17479_v22 = vld [vmem:[#allocation11 + $0xe4] sm:$0xf0]  ;;  %v15886_v57 = vld [vmem:[#allocation11 + $0xde0] sm:$0xf0] }
 0x3d8   :  { %9287 = vmatpush.bf16.msrb.mxu3 %v16013_v36  ;;  %v14229_v5 = vor.u32 %v17479_v22, %v14228_v52  ;;  %v15889_v48 = vor.u32 %v17890_v15, %v15886_v57  ;;  %v17882_v25 = vld [vmem:[#allocation11 + $0xd84] sm:$0xf]  ;;  %v14132_v28 = vld [vmem:[#allocation11 + $0x8] sm:$0xf] }
 0x3d9   :  { %9367 = vmatpush.bf16.msrb.mxu1 %v15441_v11  ;;  %9329 = vmatpush.bf16.msra.mxu2 %v14641_v62  ;;  %v15949_v62 = vor.u32 %v17910_v51, %v15948_v55  ;;  %v15854_v46 = vld [vmem:[#allocation11 + $0xda0] sm:$0xf0]  ;;  %v17455_v58 = vld [vmem:[#allocation11 + $0x24] sm:$0xf0] }
 0x3da   :  { %v17698_v43 = vld [vmem:[#allocation11 + $0x7c4] sm:$0xf]  ;;  %v15857_v23 = vor.u32 %v17882_v25, %v15854_v46  ;;  %v14388_v60 = vld [vmem:[#allocation11 + $0x208] sm:$0xf]  ;;  %v14133_v35 = vor.u32 %v17455_v58, %v14132_v28 }
 0x3db   :  { %9355 = vmatpush.bf16.msrb.mxu0 %v15153_v47  ;;  %v18766_v30 = vpop.f32.mrf.mxu0  ;;  %v5978_v11 = vpop.f32.mrf.mxu3  ;;  %v17471_v47 = vld [vmem:[#allocation11 + $0xa4] sm:$0xf0]  ;;  %v15118_v33 = vld [vmem:[#allocation11 + $0x7e0] sm:$0xf0] }
 0x3dc   :  { %9288 = vmatpush.bf16.msrb.mxu3 %v15981_v38  ;;  %v5979_v13 = vadd.f32 %v5978_v11, %v5966_v20  ;;  %v17874_v45 = vld [vmem:[#allocation11 + $0xd44] sm:$0xf]  ;;  %v15121_v21 = vor.u32 %v17698_v43, %v15118_v33  ;;  %v17519_v61 = vld [vmem:[#allocation11 + $0x224] sm:$0xf0] }
 0x3dd   :  { %9368 = vmatpush.bf16.msrb.mxu1 %v15409_v19  ;;  %v18768_v8 = vpop.f32.mrf.mxu1  ;;  %v15916_v19 = vld [vmem:[#allocation11 + $0xe00] sm:$0xf]  ;;  %v15086_v17 = vld [vmem:[#allocation11 + $0x7a0] sm:$0xf0]  ;;  %v17767_v38 = vld [vmem:[#allocation11 + $0x9e4] sm:$0xf0]  ;;  %v14389_v51 = vor.u32 %v17519_v61, %v14388_v60 }
 0x3de   :  { %9356 = vmatmul.bf16.vlgmr.msrb.gmra.mxu0 %v18731_v10  ;;  %v18771_v12 = vpop.f32.mrf.mxu2  ;;  %v6092_v4 = vmax.f32 %v5979_v13, 0.0  ;;  %v15636_v52 = vld [vmem:[#allocation11 + $0xbc8] sm:$0xf]  ;;  %v17866_v20 = vld [vmem:[#allocation11 + $0xd04] sm:$0xf] }
 0x3df   :  { %9400 = vmatpush.bf16.msra.mxu0 %v14357_v27  ;;  %v17902_v27 = vld [vmem:[#allocation11 + $0xe1c] sm:$0xf0]  ;;  %v17831_v22 = vld [vmem:[#allocation11 + $0xbe4] sm:$0xf0]  ;;  %v15790_v41 = vld [vmem:[#allocation11 + $0xd20] sm:$0xf0] }
 0x3e0   :  { %9369 = vmatmul.bf16.vlgmr.msrb.gmra.mxu1 %v18743_v2  ;;  %9289 = vmatpush.bf16.msrb.mxu3 %v15949_v62  ;;  %v18773_v16 = vpack.c.bf16 %v6092_v4, %v6092_v4  ;;  %v15917_v49 = vor.u32 %v17902_v27, %v15916_v19  ;;  %v17682_v11 = vld [vmem:[#allocation11 + $0x744] sm:$0xf]  ;;  %v15348_v15 = vld [vmem:[#allocation11 + $0x988] sm:$0xf] }
 0x3e1   :  { %9413 = vmatpush.bf16.msra.mxu1 %v14613_v24  ;;  %v14197_v24 = vor.u32 %v17471_v47, %v14196_v50  ;;  %v15054_v55 = vld [vmem:[#allocation11 + $0x760] sm:$0xf0]  ;;  %v17759_v57 = vld [vmem:[#allocation11 + $0x9a4] sm:$0xf0] }
 0x3e2   :  { %9278 = vmatmul.bf16.vlgmr.msrb.gmra.mxu2 %v18773_v16  ;;  %v15057_v62 = vor.u32 %v17682_v11, %v15054_v55  ;;  %v15604_v50 = vld [vmem:[#allocation11 + $0xb88] sm:$0xf]  ;;  %v17858_v4 = vld [vmem:[#allocation11 + $0xcc4] sm:$0xf]  ;;  %v15349_v19 = vor.u32 %v17759_v57, %v15348_v15 }
 0x3e3   :  { %9401 = vmatpush.bf16.msra.mxu0 %v14325_v40  ;;  %v6045_v3 = vpop.f32.mrf.mxu0  ;;  %v17463_v40 = vld [vmem:[#allocation11 + $0x64] sm:$0xf0]  ;;  %9374 = vmatpush.bf16.msrb.mxu2 %v15889_v48  ;;  %v5980_v44 = vpop.f32.mrf.mxu3  ;;  %v15758_v14 = vld [vmem:[#allocation11 + $0xce0] sm:$0xf0] }
 0x3e4   :  { %9290 = vmatpush.bf16.msrb.mxu3 %v15917_v49  ;;  %v14165_v36 = vor.u32 %v17463_v40, %v14164_v39  ;;  %v17823_v47 = vld [vmem:[#allocation11 + $0xba4] sm:$0xf0]  ;;  %v17674_v32 = vld [vmem:[#allocation11 + $0x704] sm:$0xf]  ;;  %v15761_v49 = vor.u32 %v17858_v4, %v15758_v14 }
 0x3e5   :  { %9414 = vmatpush.bf16.msra.mxu1 %v14581_v18  ;;  %v6058_v29 = vpop.f32.mrf.mxu1  ;;  %v14420_v18 = vld [vmem:[#allocation11 + $0x248] sm:$0xf]  ;;  %v15022_v48 = vld [vmem:[#allocation11 + $0x720] sm:$0xf0]  ;;  %v15605_v27 = vor.u32 %v17823_v47, %v15604_v50 }
 0x3e6   :  { %v6019_v26 = vpop.f32.mrf.mxu2  ;;  %v14421_v63 = vor.u32 %v17527_v1, %v14420_v18  ;;  %v17751_v25 = vld [vmem:[#allocation11 + $0x964] sm:$0xf0]  ;;  %v18777_v29 = vld [vmem:[#allocation13] sm:$0xff]  ;;  %v15025_v39 = vor.u32 %v17674_v32, %v15022_v48 }
 0x3e7   :  { %9402 = vmatpush.bf16.msra.mxu0 %v14293_v53  ;;  %v15822_v53 = vld [vmem:[#allocation11 + $0xd60] sm:$0xf0]  ;;  %9375 = vmatpush.bf16.msrb.mxu2 %v15857_v23  ;;  %v15572_v46 = vld [vmem:[#allocation11 + $0xb48] sm:$0xf]  ;;  %v6616_v44 = vperm.slane %v18777_v29, 0 }
 0x3e8   :  { %9335 = vmatpush.bf16.msra.mxu3 %v15121_v21  ;;  %v17815_v3 = vld [vmem:[#allocation11 + $0xb64] sm:$0xf0]  ;;  %v15726_v40 = vld [vmem:[#allocation11 + $0xca0] sm:$0xf0] }
 0x3e9   :  { %9415 = vmatpush.bf16.msra.mxu1 %v14549_v59  ;;  %v17690_v59 = vld [vmem:[#allocation11 + $0x784] sm:$0xf]  ;;  %v15573_v33 = vor.u32 %v17815_v3, %v15572_v46  ;;  %v15284_v26 = vld [vmem:[#allocation11 + $0x908] sm:$0xf] }
 0x3ea   :  { %v15089_v31 = vor.u32 %v17690_v59, %v15086_v17  ;;  %v17666_v43 = vld [vmem:[#allocation11 + $0x6c4] sm:$0xf]  ;;  %v17743_v23 = vld [vmem:[#allocation11 + $0x924] sm:$0xf0] }
 0x3eb   :  { %9403 = vmatpush.bf16.msra.mxu0 %v14261_v6  ;;  %v15380_v6 = vld [vmem:[#allocation11 + $0x9c8] sm:$0xf]  ;;  %v14990_v18 = vld [vmem:[#allocation11 + $0x6e0] sm:$0xf0]  ;;  %v15285_v58 = vor.u32 %v17743_v23, %v15284_v26 }
 0x3ec   :  { %v15381_v13 = vor.u32 %v17767_v38, %v15380_v6  ;;  %9336 = vmatpush.bf16.msra.mxu3 %v15089_v31  ;;  %v15540_v21 = vld [vmem:[#allocation11 + $0xb08] sm:$0xf]  ;;  %v14993_v59 = vor.u32 %v17666_v43, %v14990_v18  ;;  %v15694_v17 = vld [vmem:[#allocation11 + $0xc60] sm:$0xf0] }
 0x3ed   :  { %9416 = vmatpush.bf16.msra.mxu1 %v14517_v9  ;;  %v15825_v9 = vor.u32 %v17874_v45, %v15822_v53  ;;  %v17842_v53 = vld [vmem:[#allocation11 + $0xc44] sm:$0xf]  ;;  %v15252_v31 = vld [vmem:[#allocation11 + $0x8c8] sm:$0xf] }
 0x3ee   :  { %v14958_v28 = vld [vmem:[#allocation11 + $0x6a0] sm:$0xf0]  ;;  %v17735_v61 = vld [vmem:[#allocation11 + $0x8e4] sm:$0xf0] }
 0x3ef   :  { %9404 = vmatpush.bf16.msra.mxu0 %v14229_v5  ;;  %v15637_v5 = vor.u32 %v17831_v22, %v15636_v52  ;;  %9376 = vmatpush.bf16.msrb.mxu2 %v15825_v9  ;;  %v15697_v9 = vor.u32 %v17842_v53, %v15694_v17  ;;  %v15508_v52 = vld [vmem:[#allocation11 + $0xac8] sm:$0xf]  ;;  %v15662_v11 = vld [vmem:[#allocation11 + $0xc20] sm:$0xf0]  ;;  %v15253_v15 = vor.u32 %v17735_v61, %v15252_v31  ;;  %v14358_v31 = vld [vmem:[#allocation11 + $0x1e8] sm:$0xf0] }
 0x3f0   :  { %9337 = vmatpush.bf16.msra.mxu3 %v15057_v62  ;;  %v17799_v22 = vld [vmem:[#allocation11 + $0xae4] sm:$0xf0]  ;;  %v17650_v55 = vld [vmem:[#allocation11 + $0x644] sm:$0xf] }
 0x3f1   :  { %9417 = vmatpush.bf16.msra.mxu1 %v14485_v7  ;;  %v15793_v7 = vor.u32 %v17866_v20, %v15790_v41  ;;  %v17834_v20 = vld [vmem:[#allocation11 + $0xc04] sm:$0xf]  ;;  %v14868_v57 = vld [vmem:[#allocation11 + $0x5c8] sm:$0xf]  ;;  %v15509_v50 = vor.u32 %v17799_v22, %v15508_v52 }
 0x3f2   :  { %9330 = vmatmul.bf16.vlgmr.msra.gmra.mxu2 %v18726_v54  ;;  %v17639_v62 = vld [vmem:[#allocation11 + $0x5e4] sm:$0xf0]  ;;  %v15665_v14 = vor.u32 %v17834_v20, %v15662_v11  ;;  %v17499_v11 = vld [vmem:[#allocation11 + $0x18c] sm:$0xf] }
 0x3f3   :  { %9405 = vmatpush.bf16.msra.mxu0 %v14197_v24  ;;  %v15316_v24 = vld [vmem:[#allocation11 + $0x948] sm:$0xf]  ;;  %9377 = vmatpush.bf16.msrb.mxu2 %v15793_v7 }
 0x3f4   :  { %v15317_v1 = vor.u32 %v17751_v25, %v15316_v24  ;;  %9338 = vmatpush.bf16.msra.mxu3 %v15025_v39  ;;  %v15220_v47 = vld [vmem:[#allocation11 + $0x888] sm:$0xf]  ;;  %v17642_v24 = vld [vmem:[#allocation11 + $0x604] sm:$0xf] }
 0x3f5   :  { %9418 = vmatpush.bf16.msra.mxu1 %v14453_v37  ;;  %v17850_v37 = vld [vmem:[#allocation11 + $0xc84] sm:$0xf]  ;;  %v17727_v4 = vld [vmem:[#allocation11 + $0x8a4] sm:$0xf0] }
 0x3f6   :  { %v15729_v45 = vor.u32 %v17850_v37, %v15726_v40  ;;  %v15476_v32 = vld [vmem:[#allocation11 + $0xa88] sm:$0xf]  ;;  %v14894_v25 = vld [vmem:[#allocation11 + $0x620] sm:$0xf0]  ;;  %v15221_v46 = vor.u32 %v17727_v4, %v15220_v47 }
 0x3f7   :  { %9406 = vmatpush.bf16.msra.mxu0 %v14165_v36  ;;  %9378 = vmatpush.bf16.msrb.mxu2 %v15761_v49  ;;  %v17807_v36 = vld [vmem:[#allocation11 + $0xb24] sm:$0xf0] }
 0x3f8   :  { %v15541_v60 = vor.u32 %v17807_v36, %v15540_v21  ;;  %9339 = vmatpush.bf16.msra.mxu3 %v14993_v59  ;;  %v17791_v48 = vld [vmem:[#allocation11 + $0xaa4] sm:$0xf0] }
 0x3f9   :  { %9419 = vmatpush.bf16.msra.mxu1 %v14421_v63  ;;  %v17658_v63 = vld [vmem:[#allocation11 + $0x684] sm:$0xf]  ;;  %v14836_v49 = vld [vmem:[#allocation11 + $0x588] sm:$0xf]  ;;  %v15477_v37 = vor.u32 %v17791_v48, %v15476_v32  ;;  %v17491_v48 = vld [vmem:[#allocation11 + $0x14c] sm:$0xf] }
 0x3fa   :  { %v17631_v3 = vld [vmem:[#allocation11 + $0x5a4] sm:$0xf0] }
 0x3fb   :  { %9407 = vmatpush.bf16.msra.mxu0 %v14133_v35  ;;  %v9201_v6 = vpop.f32.mrf.mxu0  ;;  %9379 = vmatpush.bf16.msrb.mxu2 %v15729_v45  ;;  %v14961_v35 = vor.u32 %v17658_v63, %v14958_v28  ;;  %v15188_v39 = vld [vmem:[#allocation11 + $0x848] sm:$0xf]  ;;  %v14837_v26 = vor.u32 %v17631_v3, %v14836_v49  ;;  %v17483_v3 = vld [vmem:[#allocation11 + $0x10c] sm:$0xf] }
 0x3fc   :  { %v9202_v41 = vadd.f32 %v9201_v6, %v6616_v44  ;;  %v17719_v40 = vld [vmem:[#allocation11 + $0x864] sm:$0xf0]  ;;  %v14897_v44 = vor.u32 %v17642_v24, %v14894_v25  ;;  %v17571_v6 = vld [vmem:[#allocation11 + $0x3cc] sm:$0xf] }
 0x3fd   :  { %9420 = vmatpush.bf16.msra.mxu1 %v14389_v51  ;;  %v9214_v38 = vpop.f32.mrf.mxu1  ;;  %v14926_v51 = vld [vmem:[#allocation11 + $0x660] sm:$0xf0]  ;;  %9340 = vmatpush.bf16.msra.mxu3 %v14961_v35  ;;  %v15189_v21 = vor.u32 %v17719_v40, %v15188_v39  ;;  %v14804_v36 = vld [vmem:[#allocation11 + $0x548] sm:$0xf]  ;;  %v17547_v40 = vld [vmem:[#allocation11 + $0x30c] sm:$0xf] }
 0x3fe   :  { %9408 = vmatmul.bf16.vlgmr.msra.gmra.mxu0 %v18706_v0  ;;  %v18786_v7 = vadd.f32 %v9214_v38, %v9202_v41  ;;  %v17623_v53 = vld [vmem:[#allocation11 + $0x564] sm:$0xf0]  ;;  %v14614_v38 = vld [vmem:[#allocation11 + $0x3e8] sm:$0xf0] }
 0x3ff   :  { %9452 = vmatpush.bf16.msrb.mxu0 %v15381_v13  ;;  %v18782_v13 = vpop.f32.mrf.mxu3  ;;  %9380 = vmatpush.bf16.msrb.mxu2 %v15697_v9  ;;  %v15156_v17 = vld [vmem:[#allocation11 + $0x808] sm:$0xf]  ;;  %v14805_v61 = vor.u32 %v17623_v53, %v14804_v36  ;;  %v14617_v41 = vor.u32 %v17571_v6, %v14614_v38  ;;  %v14486_v36 = vld [vmem:[#allocation11 + $0x2e8] sm:$0xf0] }
 0x400   :  { %9421 = vmatmul.bf16.vlgmr.msra.gmra.mxu1 %v18708_v34  ;;  %v17711_v63 = vld [vmem:[#allocation11 + $0x824] sm:$0xf0]  ;;  %v17467_v6 = vld [vmem:[#allocation11 + $0x8c] sm:$0xf] }
 0x401   :  { %9465 = vmatpush.bf16.msrb.mxu1 %v15637_v5  ;;  %v18784_v5 = vpop.f32.mrf.mxu2  ;;  %v15412_v28 = vld [vmem:[#allocation11 + $0xa08] sm:$0xf]  ;;  %v15157_v9 = vor.u32 %v17711_v63, %v15156_v17  ;;  %v14198_v38 = vld [vmem:[#allocation11 + $0xa8] sm:$0xf0] }
 0x402   :  { %v14772_v52 = vld [vmem:[#allocation11 + $0x508] sm:$0xf] }
 0x403   :  { %9453 = vmatpush.bf16.msrb.mxu0 %v15349_v19  ;;  %v14929_v19 = vor.u32 %v17650_v55, %v14926_v51  ;;  %v9203_v43 = vpop.f32.mrf.mxu0  ;;  %9381 = vmatpush.bf16.msrb.mxu2 %v15665_v14  ;;  %v17615_v22 = vld [vmem:[#allocation11 + $0x524] sm:$0xf0]  ;;  %v14326_v55 = vld [vmem:[#allocation11 + $0x1a8] sm:$0xf0]  ;;  %v6018_v51 = vadd.f32 %v18771_v12, %v18757_v42 }
 0x404   :  { %v17607_v47 = vld [vmem:[#allocation11 + $0x4e4] sm:$0xf0]  ;;  %v14329_v14 = vor.u32 %v17499_v11, %v14326_v55  ;;  %v17555_v12 = vld [vmem:[#allocation11 + $0x34c] sm:$0xf] }
 0x405   :  { %9466 = vmatpush.bf16.msrb.mxu1 %v15605_v27  ;;  %v14869_v27 = vor.u32 %v17639_v62, %v14868_v57  ;;  %v9216_v18 = vpop.f32.mrf.mxu1  ;;  %9341 = vmatpush.bf16.msra.mxu3 %v14929_v19  ;;  %v17563_v57 = vld [vmem:[#allocation11 + $0x38c] sm:$0xf]  ;;  %v6031_v4 = vadd.f32 %v18782_v13, %v6018_v51  ;;  %v14708_v24 = vld [vmem:[#allocation11 + $0x488] sm:$0xf]  ;;  %v14201_v51 = vor.u32 %v17467_v6, %v14198_v38 }
 0x406   :  { %9382 = vmatmul.bf16.vlgmr.msrb.gmra.mxu2 %v18773_v16  ;;  %v14582_v62 = vld [vmem:[#allocation11 + $0x3a8] sm:$0xf0]  ;;  %v17599_v25 = vld [vmem:[#allocation11 + $0x4a4] sm:$0xf0] }
 0x407   :  { %9454 = vmatpush.bf16.msrb.mxu0 %v15317_v1  ;;  %v15444_v1 = vld [vmem:[#allocation11 + $0xa48] sm:$0xf]  ;;  %9426 = vmatpush.bf16.msra.mxu2 %v14869_v27  ;;  %v6032_v23 = vpop.f32.mrf.mxu3  ;;  %v14585_v32 = vor.u32 %v17563_v57, %v14582_v62  ;;  %v14294_v19 = vld [vmem:[#allocation11 + $0x168] sm:$0xf0]  ;;  %v14709_v39 = vor.u32 %v17599_v25, %v14708_v24 }
 0x408   :  { %v14550_v27 = vld [vmem:[#allocation11 + $0x368] sm:$0xf0]  ;;  %v14297_v13 = vor.u32 %v17491_v48, %v14294_v19  ;;  %v14676_v18 = vld [vmem:[#allocation11 + $0x448] sm:$0xf]  ;;  %v17946_v48 = vld [vmem:[#allocation11 + $0xf84] sm:$0xf] }
 0x409   :  { %9467 = vmatpush.bf16.msrb.mxu1 %v15573_v33  ;;  %v17783_v33 = vld [vmem:[#allocation11 + $0xa64] sm:$0xf0]  ;;  %v6071_v45 = vpop.f32.mrf.mxu2  ;;  %9342 = vmatpush.bf16.msra.mxu3 %v14897_v44  ;;  %v14553_v49 = vor.u32 %v17555_v12, %v14550_v27  ;;  %v14518_v43 = vld [vmem:[#allocation11 + $0x328] sm:$0xf0]  ;;  %v16110_v19 = vld [vmem:[#allocation11 + $0xfa0] sm:$0xf0] }
 0x40a   :  { %v15445_v59 = vor.u32 %v17783_v33, %v15444_v1  ;;  %v17591_v1 = vld [vmem:[#allocation11 + $0x464] sm:$0xf0]  ;;  %v17475_v23 = vld [vmem:[#allocation11 + $0xcc] sm:$0xf] }
 0x40b   :  { %9455 = vmatpush.bf16.msrb.mxu0 %v15285_v58  ;;  %v17775_v58 = vld [vmem:[#allocation11 + $0xa24] sm:$0xf0]  ;;  %9427 = vmatpush.bf16.msra.mxu2 %v14837_v26  ;;  %v14521_v26 = vor.u32 %v17547_v40, %v14518_v43  ;;  %v14677_v45 = vor.u32 %v17591_v1, %v14676_v18  ;;  %v17451_v24 = vld [vmem:[#allocation11 + $0xc] sm:$0xf]  ;;  %v17938_v18 = vld [vmem:[#allocation11 + $0xf44] sm:$0xf] }
 0x40c   :  { %v15413_v20 = vor.u32 %v17775_v58, %v15412_v28  ;;  %v17583_v17 = vld [vmem:[#allocation11 + $0x424] sm:$0xf0]  ;;  %v17515_v40 = vld [vmem:[#allocation11 + $0x20c] sm:$0xf]  ;;  %v16078_v1 = vld [vmem:[#allocation11 + $0xf60] sm:$0xf0] }
 0x40d   :  { %9468 = vmatpush.bf16.msrb.mxu1 %v15541_v60  ;;  %v17507_v60 = vld [vmem:[#allocation11 + $0x1cc] sm:$0xf]  ;;  %v15892_v58 = vld [vmem:[#allocation11 + $0xdc8] sm:$0xf] }
 0x40e   :  { %v14361_v35 = vor.u32 %v17507_v60, %v14358_v31  ;;  %v17887_v57 = vld [vmem:[#allocation11 + $0xda4] sm:$0xf0]  ;;  %v14390_v43 = vld [vmem:[#allocation11 + $0x228] sm:$0xf0] }
 0x40f   :  { %9456 = vmatpush.bf16.msrb.mxu0 %v15253_v15  ;;  %9428 = vmatpush.bf16.msra.mxu2 %v14805_v61  ;;  %v14773_v15 = vor.u32 %v17615_v22, %v14772_v52  ;;  %v15828_v25 = vld [vmem:[#allocation11 + $0xd48] sm:$0xf]  ;;  %v15350_v6 = vld [vmem:[#allocation11 + $0x9a8] sm:$0xf0] }
 0x410   :  { %v17819_v38 = vld [vmem:[#allocation11 + $0xb8c] sm:$0xf] }
 0x411   :  { %9469 = vmatpush.bf16.msrb.mxu1 %v15509_v50  ;;  %v14740_v50 = vld [vmem:[#allocation11 + $0x4c8] sm:$0xf] }
 0x412   :  { %v14741_v42 = vor.u32 %v17607_v47, %v14740_v50  ;;  %v17459_v47 = vld [vmem:[#allocation11 + $0x4c] sm:$0xf] }
 0x413   :  { %9457 = vmatpush.bf16.msrb.mxu0 %v15221_v46  ;;  %9429 = vmatpush.bf16.msra.mxu2 %v14773_v15  ;;  %v6044_v46 = vadd.f32 %v18766_v30, %v6031_v4  ;;  %v14230_v30 = vld [vmem:[#allocation11 + $0xe8] sm:$0xf0]  ;;  %v15860_v15 = vld [vmem:[#allocation11 + $0xd88] sm:$0xf] }
 0x414   :  { %v14233_v28 = vor.u32 %v17475_v23, %v14230_v30  ;;  %v14166_v4 = vld [vmem:[#allocation11 + $0x68] sm:$0xf0]  ;;  %v15861_v12 = vor.u32 %v17887_v57, %v15860_v15 }
 0x415   :  { %9470 = vmatpush.bf16.msrb.mxu1 %v15477_v37  ;;  %v14262_v37 = vld [vmem:[#allocation11 + $0x128] sm:$0xf0]  ;;  %v6057_v33 = vadd.f32 %v18768_v8, %v6044_v46  ;;  %v17895_v8 = vld [vmem:[#allocation11 + $0xde4] sm:$0xf0]  ;;  %v14169_v27 = vor.u32 %v17459_v47, %v14166_v4 }
 0x416   :  { %v14265_v44 = vor.u32 %v17483_v3, %v14262_v37  ;;  %v15893_v11 = vor.u32 %v17895_v8, %v15892_v58  ;;  %v17879_v46 = vld [vmem:[#allocation11 + $0xd64] sm:$0xf0]  ;;  %v16113_v37 = vor.u32 %v17946_v48, %v16110_v19  ;;  %v17827_v23 = vld [vmem:[#allocation11 + $0xbcc] sm:$0xf]  ;;  %v17930_v8 = vld [vmem:[#allocation11 + $0xf04] sm:$0xf] }
 0x417   :  { %9458 = vmatpush.bf16.msrb.mxu0 %v15189_v21  ;;  %9430 = vmatpush.bf16.msra.mxu2 %v14741_v42  ;;  %v17539_v21 = vld [vmem:[#allocation11 + $0x2cc] sm:$0xf]  ;;  %v6070_v63 = vadd.f32 %v18784_v5, %v6057_v33  ;;  %v16142_v5 = vld [vmem:[#allocation11 + $0xfe0] sm:$0xf0]  ;;  %v15732_v47 = vld [vmem:[#allocation11 + $0xc88] sm:$0xf] }
 0x418   :  { %v14489_v61 = vor.u32 %v17539_v21, %v14486_v36  ;;  %v17763_v33 = vld [vmem:[#allocation11 + $0x9cc] sm:$0xf]  ;;  %v15796_v21 = vld [vmem:[#allocation11 + $0xd08] sm:$0xf] }
 0x419   :  { %9471 = vmatpush.bf16.msrb.mxu1 %v15445_v59  ;;  %v14644_v59 = vld [vmem:[#allocation11 + $0x408] sm:$0xf]  ;;  %v15638_v30 = vld [vmem:[#allocation11 + $0xbe8] sm:$0xf0] }
 0x41a   :  { %v17871_v36 = vld [vmem:[#allocation11 + $0xd24] sm:$0xf0]  ;;  %v15318_v57 = vld [vmem:[#allocation11 + $0x968] sm:$0xf0] }
 0x41b   :  { %9459 = vmatpush.bf16.msrb.mxu0 %v15157_v9  ;;  %9431 = vmatpush.bf16.msra.mxu2 %v14709_v39  ;;  %v18796_v53 = vpop.f32.mrf.mxu0  ;;  %v17531_v9 = vld [vmem:[#allocation11 + $0x28c] sm:$0xf]  ;;  %v17855_v4 = vld [vmem:[#allocation11 + $0xca4] sm:$0xf0] }
 0x41c   :  { %v14134_v39 = vld [vmem:[#allocation11 + $0x28] sm:$0xf0] }
 0x41d   :  { %9472 = vmatpush.bf16.msrb.mxu1 %v15413_v20  ;;  %v6082_v60 = vpop.f32.mrf.mxu3  ;;  %v14645_v20 = vor.u32 %v17583_v17, %v14644_v59  ;;  %v14393_v59 = vor.u32 %v17515_v40, %v14390_v43  ;;  %v16081_v17 = vor.u32 %v17938_v18, %v16078_v1  ;;  %v17906_v18 = vld [vmem:[#allocation11 + $0xe44] sm:$0xf] }
 0x41e   :  { %9460 = vmatmul.bf16.vlgmr.msrb.gmra.mxu0 %v18731_v10  ;;  %v6083_v52 = vadd.f32 %v6082_v60, %v6070_v63  ;;  %v16046_v60 = vld [vmem:[#allocation11 + $0xf20] sm:$0xf0] }
 0x41f   :  { %9504 = vmatpush.bf16.msra.mxu0 %v14361_v35  ;;  %v9227_v31 = vpop.f32.mrf.mxu2  ;;  %9432 = vmatpush.bf16.msra.mxu2 %v14677_v45  ;;  %v14454_v35 = vld [vmem:[#allocation11 + $0x2a8] sm:$0xf0]  ;;  %v14137_v45 = vor.u32 %v17451_v24, %v14134_v39  ;;  %v15733_v24 = vor.u32 %v17855_v4, %v15732_v47  ;;  %v15950_v1 = vld [vmem:[#allocation11 + $0xe60] sm:$0xf0] }
 0x420   :  { %9473 = vmatmul.bf16.vlgmr.msrb.gmra.mxu1 %v18743_v2  ;;  %v18800_v22 = vadd.f32 %v9227_v31, %v18786_v7  ;;  %v6093_v55 = vmax.f32 %v6083_v52, 0.0  ;;  %v14457_v62 = vor.u32 %v17531_v9, %v14454_v35  ;;  %v14422_v7 = vld [vmem:[#allocation11 + $0x268] sm:$0xf0]  ;;  %v15764_v52 = vld [vmem:[#allocation11 + $0xcc8] sm:$0xf]  ;;  %v16049_v35 = vor.u32 %v17930_v8, %v16046_v60 }
 0x421   :  { %9517 = vmatpush.bf16.msra.mxu1 %v14617_v41  ;;  %v17954_v41 = vld [vmem:[#allocation11 + $0xfc4] sm:$0xf]  ;;  %v18806_v58 = vpop.f32.mrf.mxu1  ;;  %v17755_v31 = vld [vmem:[#allocation11 + $0x98c] sm:$0xf] }
 0x422   :  { %v16145_v50 = vor.u32 %v17954_v41, %v16142_v5  ;;  %v15606_v9 = vld [vmem:[#allocation11 + $0xba8] sm:$0xf0]  ;;  %v15353_v41 = vor.u32 %v17755_v31, %v15350_v6  ;;  %v17898_v31 = vld [vmem:[#allocation11 + $0xe04] sm:$0xf] }
 0x423   :  { %9505 = vmatpush.bf16.msra.mxu0 %v14329_v14  ;;  %v17523_v14 = vld [vmem:[#allocation11 + $0x24c] sm:$0xf]  ;;  %9433 = vmatpush.bf16.msra.mxu2 %v14645_v20  ;;  %v9255_v42 = vpop.f32.mrf.mxu0  ;;  %v17863_v20 = vld [vmem:[#allocation11 + $0xce4] sm:$0xf0]  ;;  %v15609_v5 = vor.u32 %v17819_v38, %v15606_v9 }
 0x424   :  { %v14425_v3 = vor.u32 %v17523_v14, %v14422_v7  ;;  %v15765_v15 = vor.u32 %v17863_v20, %v15764_v52  ;;  %v17914_v42 = vld [vmem:[#allocation11 + $0xe84] sm:$0xf]  ;;  %v17723_v6 = vld [vmem:[#allocation11 + $0x88c] sm:$0xf] }
 0x425   :  { %9518 = vmatpush.bf16.msra.mxu1 %v14585_v32  ;;  %v18802_v32 = vpack.c.bf16 %v6093_v55, %v6093_v55  ;;  %v16014_v55 = vld [vmem:[#allocation11 + $0xee0] sm:$0xf0]  ;;  %v15222_v20 = vld [vmem:[#allocation11 + $0x8a8] sm:$0xf0] }
 0x426   :  { %9434 = vmatmul.bf16.vlgmr.msra.gmra.mxu2 %v18726_v54  ;;  %v15225_v47 = vor.u32 %v17723_v6, %v15222_v20  ;;  %v17504_v6 = vld [vmem:[#allocation11 + $0x1ac] sm:$0xf0]  ;;  %v17603_v20 = vld [vmem:[#allocation11 + $0x4cc] sm:$0xf] }
 0x427   :  { %9506 = vmatpush.bf16.msra.mxu0 %v14297_v13  ;;  %9478 = vmatpush.bf16.msrb.mxu2 %v15893_v11  ;;  %v6084_v13 = vpop.f32.mrf.mxu3  ;;  %v17922_v11 = vld [vmem:[#allocation11 + $0xec4] sm:$0xf] }
 0x428   :  { %9291 = vmatmul.bf16.vlgmr.msrb.gmra.mxu3 %v18802_v32  ;;  %v16017_v14 = vor.u32 %v17922_v11, %v16014_v55  ;;  %v15542_v13 = vld [vmem:[#allocation11 + $0xb28] sm:$0xf0]  ;;  %v15124_v11 = vld [vmem:[#allocation11 + $0x7c8] sm:$0xf] }
 0x429   :  { %9519 = vmatpush.bf16.msra.mxu1 %v14553_v49  ;;  %9387 = vmatpush.bf16.msrb.mxu3 %v16145_v50  ;;  %v9229_v49 = vpop.f32.mrf.mxu2  ;;  %v15574_v50 = vld [vmem:[#allocation11 + $0xb68] sm:$0xf0]  ;;  %v9268_v19 = vpop.f32.mrf.mxu1  ;;  %v17703_v55 = vld [vmem:[#allocation11 + $0x7e4] sm:$0xf0] }
 0x42a   :  { %v15700_v49 = vld [vmem:[#allocation11 + $0xc48] sm:$0xf]  ;;  %v17779_v19 = vld [vmem:[#allocation11 + $0xa4c] sm:$0xf] }
 0x42b   :  { %9507 = vmatpush.bf16.msra.mxu0 %v14265_v44  ;;  %9479 = vmatpush.bf16.msrb.mxu2 %v15861_v12  ;;  %v15829_v44 = vor.u32 %v17879_v46, %v15828_v25  ;;  %v15982_v12 = vld [vmem:[#allocation11 + $0xea0] sm:$0xf0]  ;;  %v15286_v25 = vld [vmem:[#allocation11 + $0x928] sm:$0xf0] }
 0x42c   :  { %v17803_v46 = vld [vmem:[#allocation11 + $0xb0c] sm:$0xf]  ;;  %v15985_v39 = vor.u32 %v17914_v42, %v15982_v12  ;;  %v15092_v12 = vld [vmem:[#allocation11 + $0x788] sm:$0xf] }
 0x42d   :  { %9520 = vmatpush.bf16.msra.mxu1 %v14521_v26  ;;  %v15382_v26 = vld [vmem:[#allocation11 + $0x9e8] sm:$0xf0]  ;;  %9388 = vmatpush.bf16.msrb.mxu3 %v16113_v37  ;;  %v6617_v37 = vperm.slane %v18777_v29, 1  ;;  %v15545_v43 = vor.u32 %v17803_v46, %v15542_v13 }
 0x42e   :  { %v15385_v63 = vor.u32 %v17763_v33, %v15382_v26  ;;  %v17731_v33 = vld [vmem:[#allocation11 + $0x8cc] sm:$0xf] }
 0x42f   :  { %9508 = vmatpush.bf16.msra.mxu0 %v14233_v28  ;;  %v15641_v28 = vor.u32 %v17827_v23, %v15638_v30  ;;  %9480 = vmatpush.bf16.msrb.mxu2 %v15829_v44  ;;  %v15254_v26 = vld [vmem:[#allocation11 + $0x8e8] sm:$0xf0] }
 0x430   :  { %v17795_v23 = vld [vmem:[#allocation11 + $0xacc] sm:$0xf] }
 0x431   :  { %9521 = vmatpush.bf16.msra.mxu1 %v14489_v61  ;;  %v15797_v61 = vor.u32 %v17871_v36, %v15796_v21  ;;  %9389 = vmatpush.bf16.msrb.mxu3 %v16081_v17  ;;  %v15510_v30 = vld [vmem:[#allocation11 + $0xae8] sm:$0xf0]  ;;  %v15668_v21 = vld [vmem:[#allocation11 + $0xc08] sm:$0xf]  ;;  %v15953_v17 = vor.u32 %v17906_v18, %v15950_v1 }
 0x432   :  { %v17839_v36 = vld [vmem:[#allocation11 + $0xc24] sm:$0xf0]  ;;  %v17635_v29 = vld [vmem:[#allocation11 + $0x5cc] sm:$0xf]  ;;  %v15513_v8 = vor.u32 %v17795_v23, %v15510_v30  ;;  %v17512_v23 = vld [vmem:[#allocation11 + $0x1ec] sm:$0xf0] }
 0x433   :  { %9509 = vmatpush.bf16.msra.mxu0 %v14201_v51  ;;  %v17747_v51 = vld [vmem:[#allocation11 + $0x94c] sm:$0xf]  ;;  %9481 = vmatpush.bf16.msrb.mxu2 %v15797_v61  ;;  %v15918_v61 = vld [vmem:[#allocation11 + $0xe20] sm:$0xf0]  ;;  %v15669_v52 = vor.u32 %v17839_v36, %v15668_v21  ;;  %v14620_v30 = vld [vmem:[#allocation11 + $0x3d0] sm:$0xf] }
 0x434   :  { %v15321_v7 = vor.u32 %v17747_v51, %v15318_v57  ;;  %v17627_v57 = vld [vmem:[#allocation11 + $0x58c] sm:$0xf] }
 0x435   :  { %9522 = vmatpush.bf16.msra.mxu1 %v14457_v62  ;;  %v17811_v62 = vld [vmem:[#allocation11 + $0xb4c] sm:$0xf]  ;;  %9390 = vmatpush.bf16.msrb.mxu3 %v16049_v35 }
 0x436   :  { %v15577_v48 = vor.u32 %v17811_v62, %v15574_v50  ;;  %v17787_v35 = vld [vmem:[#allocation11 + $0xa8c] sm:$0xf] }
 0x437   :  { %9510 = vmatpush.bf16.msra.mxu0 %v14169_v27  ;;  %v17739_v27 = vld [vmem:[#allocation11 + $0x90c] sm:$0xf]  ;;  %9482 = vmatpush.bf16.msrb.mxu2 %v15765_v15  ;;  %v15921_v15 = vor.u32 %v17898_v31, %v15918_v61  ;;  %v14332_v61 = vld [vmem:[#allocation11 + $0x190] sm:$0xf] }
 0x438   :  { %9343 = vmatmul.bf16.vlgmr.msra.gmra.mxu3 %v18747_v56  ;;  %v15289_v40 = vor.u32 %v17739_v27, %v15286_v25  ;;  %v14838_v62 = vld [vmem:[#allocation11 + $0x5a8] sm:$0xf0]  ;;  %v17695_v27 = vld [vmem:[#allocation11 + $0x7a4] sm:$0xf0] }
 0x439   :  { %9523 = vmatpush.bf16.msra.mxu1 %v14425_v3  ;;  %v17847_v3 = vld [vmem:[#allocation11 + $0xc64] sm:$0xf0]  ;;  %9391 = vmatpush.bf16.msrb.mxu3 %v16017_v14  ;;  %v17715_v14 = vld [vmem:[#allocation11 + $0x84c] sm:$0xf]  ;;  %v15093_v18 = vor.u32 %v17695_v27, %v15092_v12  ;;  %v14268_v27 = vld [vmem:[#allocation11 + $0x110] sm:$0xf] }
 0x43a   :  { %v15701_v44 = vor.u32 %v17847_v3, %v15700_v49  ;;  %v15446_v42 = vld [vmem:[#allocation11 + $0xa68] sm:$0xf0] }
 0x43b   :  { %9511 = vmatpush.bf16.msra.mxu0 %v14137_v45  ;;  %9483 = vmatpush.bf16.msrb.mxu2 %v15733_v24  ;;  %v9305_v45 = vpop.f32.mrf.mxu0  ;;  %v14841_v24 = vor.u32 %v17627_v57, %v14838_v62  ;;  %v14806_v46 = vld [vmem:[#allocation11 + $0x568] sm:$0xf0]  ;;  %v15449_v49 = vor.u32 %v17779_v19, %v15446_v42  ;;  %v14300_v57 = vld [vmem:[#allocation11 + $0x150] sm:$0xf]  ;;  %v14964_v19 = vld [vmem:[#allocation11 + $0x688] sm:$0xf] }
 0x43c   :  { %v15414_v1 = vld [vmem:[#allocation11 + $0xa28] sm:$0xf0]  ;;  %v17496_v62 = vld [vmem:[#allocation11 + $0x16c] sm:$0xf0]  ;;  %v17663_v42 = vld [vmem:[#allocation11 + $0x6a4] sm:$0xf0] }
 0x43d   :  { %9524 = vmatpush.bf16.msra.mxu1 %v14393_v59  ;;  %v9306_v59 = vadd.f32 %v9305_v45, %v6617_v37  ;;  %9392 = vmatpush.bf16.msrb.mxu3 %v15985_v39  ;;  %v9318_v60 = vpop.f32.mrf.mxu1  ;;  %v9240_v38 = vpop.f32.mrf.mxu3  ;;  %v17707_v37 = vld [vmem:[#allocation11 + $0x80c] sm:$0xf]  ;;  %v17576_v45 = vld [vmem:[#allocation11 + $0x3ec] sm:$0xf0] }
 0x43e   :  { %9512 = vmatmul.bf16.vlgmr.msra.gmra.mxu0 %v18706_v0  ;;  %v15158_v39 = vld [vmem:[#allocation11 + $0x828] sm:$0xf0] }
 0x43f   :  { %9556 = vmatpush.bf16.msrb.mxu0 %v15385_v63  ;;  %v14870_v63 = vld [vmem:[#allocation11 + $0x5e8] sm:$0xf0]  ;;  %9484 = vmatpush.bf16.msrb.mxu2 %v15701_v44  ;;  %v18812_v9 = vadd.f32 %v9318_v60, %v9306_v59  ;;  %v15161_v59 = vor.u32 %v17707_v37, %v15158_v39  ;;  %v14621_v60 = vor.u32 %v17576_v45, %v14620_v30  ;;  %v14932_v39 = vld [vmem:[#allocation11 + $0x648] sm:$0xf] }
 0x440   :  { %9525 = vmatmul.bf16.vlgmr.msra.gmra.mxu1 %v18708_v34  ;;  %v14873_v51 = vor.u32 %v17635_v29, %v14870_v63  ;;  %v17611_v21 = vld [vmem:[#allocation11 + $0x50c] sm:$0xf] }
 0x441   :  { %9569 = vmatpush.bf16.msrb.mxu1 %v15641_v28  ;;  %v15257_v28 = vor.u32 %v17731_v33, %v15254_v26  ;;  %9393 = vmatpush.bf16.msrb.mxu3 %v15953_v17  ;;  %v15060_v33 = vld [vmem:[#allocation11 + $0x748] sm:$0xf]  ;;  %v14364_v26 = vld [vmem:[#allocation11 + $0x1d0] sm:$0xf]  ;;  %v14774_v36 = vld [vmem:[#allocation11 + $0x528] sm:$0xf0] }
 0x442   :  { %v14365_v63 = vor.u32 %v17512_v23, %v14364_v26  ;;  %v14777_v31 = vor.u32 %v17611_v21, %v14774_v36  ;;  %v17544_v26 = vld [vmem:[#allocation11 + $0x2ec] sm:$0xf0]  ;;  %v17579_v23 = vld [vmem:[#allocation11 + $0x40c] sm:$0xf] }
 0x443   :  { %9557 = vmatpush.bf16.msrb.mxu0 %v15353_v41  ;;  %v15478_v41 = vld [vmem:[#allocation11 + $0xaa8] sm:$0xf0]  ;;  %9485 = vmatpush.bf16.msrb.mxu2 %v15669_v52  ;;  %v17568_v52 = vld [vmem:[#allocation11 + $0x3ac] sm:$0xf0] }
 0x444   :  { %v15481_v4 = vor.u32 %v17787_v35, %v15478_v41  ;;  %v14742_v35 = vld [vmem:[#allocation11 + $0x4e8] sm:$0xf0] }
 0x445   :  { %9570 = vmatpush.bf16.msrb.mxu1 %v15609_v5  ;;  %v9241_v5 = vadd.f32 %v9240_v38, %v18800_v22  ;;  %v9307_v22 = vpop.f32.mrf.mxu0  ;;  %9394 = vmatpush.bf16.msrb.mxu3 %v15921_v15  ;;  %v9320_v3 = vpop.f32.mrf.mxu1  ;;  %v14588_v38 = vld [vmem:[#allocation11 + $0x390] sm:$0xf]  ;;  %v14745_v15 = vor.u32 %v17603_v20, %v14742_v35  ;;  %v14646_v30 = vld [vmem:[#allocation11 + $0x428] sm:$0xf0] }
 0x446   :  { %9486 = vmatmul.bf16.vlgmr.msrb.gmra.mxu2 %v18773_v16  ;;  %v14965_v3 = vor.u32 %v17663_v42, %v14964_v19  ;;  %v17891_v21 = vld [vmem:[#allocation11 + $0xdcc] sm:$0xf]  ;;  %v14140_v42 = vld [vmem:[#allocation11 + $0x10] sm:$0xf] }
 0x447   :  { %9558 = vmatpush.bf16.msrb.mxu0 %v15321_v7  ;;  %v9254_v50 = vadd.f32 %v18796_v53, %v9241_v5  ;;  %v15125_v7 = vor.u32 %v17703_v55, %v15124_v11  ;;  %9530 = vmatpush.bf16.msra.mxu2 %v14873_v51  ;;  %v17619_v53 = vld [vmem:[#allocation11 + $0x54c] sm:$0xf]  ;;  %v14333_v5 = vor.u32 %v17504_v6, %v14332_v61  ;;  %v14996_v11 = vld [vmem:[#allocation11 + $0x6c8] sm:$0xf]  ;;  %v14460_v61 = vld [vmem:[#allocation11 + $0x290] sm:$0xf] }
 0x448   :  { %9395 = vmatmul.bf16.vlgmr.msrb.gmra.mxu3 %v18802_v32  ;;  %v14809_v44 = vor.u32 %v17619_v53, %v14806_v46  ;;  %v17671_v55 = vld [vmem:[#allocation11 + $0x6e4] sm:$0xf0]  ;;  %v14589_v51 = vor.u32 %v17568_v52, %v14588_v38  ;;  %v14524_v53 = vld [vmem:[#allocation11 + $0x310] sm:$0xf]  ;;  %v15894_v36 = vld [vmem:[#allocation11 + $0xde8] sm:$0xf0] }
 0x449   :  { %9571 = vmatpush.bf16.msrb.mxu1 %v15577_v48  ;;  %v15190_v48 = vld [vmem:[#allocation11 + $0x868] sm:$0xf0]  ;;  %v18817_v25 = vadd.f32 %v18806_v58, %v9254_v50  ;;  %9439 = vmatpush.bf16.msra.mxu3 %v15125_v7  ;;  %v17687_v58 = vld [vmem:[#allocation11 + $0x764] sm:$0xf0]  ;;  %v14556_v50 = vld [vmem:[#allocation11 + $0x350] sm:$0xf]  ;;  %v14997_v7 = vor.u32 %v17671_v55, %v14996_v11  ;;  %v15897_v20 = vor.u32 %v17891_v21, %v15894_v36 }
 0x44a   :  { %v15193_v13 = vor.u32 %v17715_v14, %v15190_v48  ;;  %v15061_v29 = vor.u32 %v17687_v58, %v15060_v33  ;;  %v14710_v14 = vld [vmem:[#allocation11 + $0x4a8] sm:$0xf0]  ;;  %v14301_v48 = vor.u32 %v17496_v62, %v14300_v57  ;;  %v17552_v46 = vld [vmem:[#allocation11 + $0x32c] sm:$0xf0]  ;;  %v16148_v38 = vld [vmem:[#allocation11 + $0xfc8] sm:$0xf] }
 0x44b   :  { %9559 = vmatpush.bf16.msrb.mxu0 %v15289_v40  ;;  %v17771_v40 = vld [vmem:[#allocation11 + $0xa0c] sm:$0xf]  ;;  %9531 = vmatpush.bf16.msra.mxu2 %v14841_v24  ;;  %v17488_v24 = vld [vmem:[#allocation11 + $0x12c] sm:$0xf0]  ;;  %v17959_v52 = vld [vmem:[#allocation11 + $0xfe4] sm:$0xf0] }
 0x44c   :  { %v15417_v17 = vor.u32 %v17771_v40, %v15414_v1  ;;  %v14269_v37 = vor.u32 %v17488_v24, %v14268_v27  ;;  %v17655_v40 = vld [vmem:[#allocation11 + $0x664] sm:$0xf0]  ;;  %v14236_v1 = vld [vmem:[#allocation11 + $0xd0] sm:$0xf]  ;;  %v15862_v11 = vld [vmem:[#allocation11 + $0xda8] sm:$0xf0] }
 0x44d   :  { %9572 = vmatpush.bf16.msrb.mxu1 %v15545_v43  ;;  %v9242_v43 = vpop.f32.mrf.mxu3  ;;  %9440 = vmatpush.bf16.msra.mxu3 %v15093_v18  ;;  %v17480_v33 = vld [vmem:[#allocation11 + $0xec] sm:$0xf0]  ;;  %v16052_v36 = vld [vmem:[#allocation11 + $0xf08] sm:$0xf] }
 0x44e   :  { %v14525_v43 = vor.u32 %v17552_v46, %v14524_v53  ;;  %v14492_v58 = vld [vmem:[#allocation11 + $0x2d0] sm:$0xf] }
 0x44f   :  { %9560 = vmatpush.bf16.msrb.mxu0 %v15257_v28  ;;  %v15028_v28 = vld [vmem:[#allocation11 + $0x708] sm:$0xf]  ;;  %9532 = vmatpush.bf16.msra.mxu2 %v14809_v44  ;;  %v17536_v6 = vld [vmem:[#allocation11 + $0x2ac] sm:$0xf0] }
 0x450   :  { %v14461_v55 = vor.u32 %v17536_v6, %v14460_v61  ;;  %v17464_v57 = vld [vmem:[#allocation11 + $0x6c] sm:$0xf0] }
 0x451   :  { %9573 = vmatpush.bf16.msrb.mxu1 %v15513_v8  ;;  %v17679_v8 = vld [vmem:[#allocation11 + $0x724] sm:$0xf0]  ;;  %9441 = vmatpush.bf16.msra.mxu3 %v15061_v29  ;;  %v14428_v62 = vld [vmem:[#allocation11 + $0x250] sm:$0xf] }
 0x452   :  { %v15029_v41 = vor.u32 %v17679_v8, %v15028_v28  ;;  %v14900_v29 = vld [vmem:[#allocation11 + $0x608] sm:$0xf]  ;;  %v14493_v28 = vor.u32 %v17544_v26, %v14492_v58  ;;  %v14649_v8 = vor.u32 %v17579_v23, %v14646_v30  ;;  %v17456_v53 = vld [vmem:[#allocation11 + $0x2c] sm:$0xf0]  ;;  %v15798_v58 = vld [vmem:[#allocation11 + $0xd28] sm:$0xf0] }
 0x453   :  { %9561 = vmatpush.bf16.msrb.mxu0 %v15225_v47  ;;  %9533 = vmatpush.bf16.msra.mxu2 %v14777_v31  ;;  %v17560_v47 = vld [vmem:[#allocation11 + $0x36c] sm:$0xf0] }
 0x454   :  { %v14557_v22 = vor.u32 %v17560_v47, %v14556_v50  ;;  %v17472_v31 = vld [vmem:[#allocation11 + $0xac] sm:$0xf0] }
 0x455   :  { %9574 = vmatpush.bf16.msrb.mxu1 %v15481_v4  ;;  %v17595_v4 = vld [vmem:[#allocation11 + $0x48c] sm:$0xf]  ;;  %9442 = vmatpush.bf16.msra.mxu3 %v15029_v41  ;;  %v17528_v47 = vld [vmem:[#allocation11 + $0x26c] sm:$0xf0] }
 0x456   :  { %v14713_v12 = vor.u32 %v17595_v4, %v14710_v14  ;;  %v16116_v4 = vld [vmem:[#allocation11 + $0xf88] sm:$0xf]  ;;  %v14429_v27 = vor.u32 %v17528_v47, %v14428_v62  ;;  %v14396_v46 = vld [vmem:[#allocation11 + $0x210] sm:$0xf] }
 0x457   :  { %9562 = vmatpush.bf16.msrb.mxu0 %v15193_v13  ;;  %9534 = vmatpush.bf16.msra.mxu2 %v14745_v15  ;;  %v17587_v13 = vld [vmem:[#allocation11 + $0x44c] sm:$0xf]  ;;  %v14172_v15 = vld [vmem:[#allocation11 + $0x50] sm:$0xf]  ;;  %v17951_v14 = vld [vmem:[#allocation11 + $0xfa4] sm:$0xf0] }
 0x458   :  { %v14173_v19 = vor.u32 %v17464_v57, %v14172_v15  ;;  %v16117_v24 = vor.u32 %v17951_v14, %v16116_v4  ;;  %v17851_v15 = vld [vmem:[#allocation11 + $0xc8c] sm:$0xf]  ;;  %v15988_v14 = vld [vmem:[#allocation11 + $0xe88] sm:$0xf] }
 0x459   :  { %9575 = vmatpush.bf16.msrb.mxu1 %v15449_v49  ;;  %v14678_v49 = vld [vmem:[#allocation11 + $0x468] sm:$0xf0]  ;;  %9443 = vmatpush.bf16.msra.mxu3 %v14997_v7 }
 0x45a   :  { %v14681_v18 = vor.u32 %v17587_v13, %v14678_v49  ;;  %v17520_v13 = vld [vmem:[#allocation11 + $0x22c] sm:$0xf0]  ;;  %v16084_v49 = vld [vmem:[#allocation11 + $0xf48] sm:$0xf]  ;;  %v15734_v57 = vld [vmem:[#allocation11 + $0xca8] sm:$0xf0] }
 0x45b   :  { %9563 = vmatpush.bf16.msrb.mxu0 %v15161_v59  ;;  %9535 = vmatpush.bf16.msra.mxu2 %v14713_v12  ;;  %v18823_v44 = vpop.f32.mrf.mxu0  ;;  %v14933_v59 = vor.u32 %v17655_v40, %v14932_v39  ;;  %v15830_v12 = vld [vmem:[#allocation11 + $0xd68] sm:$0xf0]  ;;  %v17768_v40 = vld [vmem:[#allocation11 + $0x9ec] sm:$0xf0]  ;;  %v14397_v26 = vor.u32 %v17520_v13, %v14396_v46 }
 0x45d   :  { %9576 = vmatpush.bf16.msrb.mxu1 %v15417_v17  ;;  %v18825_v45 = vpop.f32.mrf.mxu1  ;;  %9444 = vmatpush.bf16.msra.mxu3 %v14965_v3  ;;  %v14237_v17 = vor.u32 %v17480_v33, %v14236_v1  ;;  %v17943_v3 = vld [vmem:[#allocation11 + $0xf64] sm:$0xf0]  ;;  %v14141_v1 = vor.u32 %v17456_v53, %v14140_v42  ;;  %v17867_v33 = vld [vmem:[#allocation11 + $0xd0c] sm:$0xf]  ;;  %v17744_v42 = vld [vmem:[#allocation11 + $0x92c] sm:$0xf0] }
 0x45e   :  { %9564 = vmatmul.bf16.vlgmr.msrb.gmra.mxu0 %v18731_v10  ;;  %v16085_v23 = vor.u32 %v17943_v3, %v16084_v49  ;;  %v17843_v53 = vld [vmem:[#allocation11 + $0xc4c] sm:$0xf]  ;;  %v15956_v3 = vld [vmem:[#allocation11 + $0xe48] sm:$0xf] }
 0x45f   :  { %9608 = vmatpush.bf16.msra.mxu0 %v14365_v63  ;;  %v17647_v63 = vld [vmem:[#allocation11 + $0x624] sm:$0xf0]  ;;  %9536 = vmatpush.bf16.msra.mxu2 %v14681_v18  ;;  %v17832_v18 = vld [vmem:[#allocation11 + $0xbec] sm:$0xf0] }
 0x460   :  { %9577 = vmatmul.bf16.vlgmr.msrb.gmra.mxu1 %v18743_v2  ;;  %v14901_v35 = vor.u32 %v17647_v63, %v14900_v29  ;;  %v15801_v29 = vor.u32 %v17867_v33, %v15798_v58  ;;  %v17760_v63 = vld [vmem:[#allocation11 + $0x9ac] sm:$0xf0] }
 0x461   :  { %9621 = vmatpush.bf16.msra.mxu1 %v14621_v60  ;;  %v14204_v60 = vld [vmem:[#allocation11 + $0x90] sm:$0xf]  ;;  %9445 = vmatpush.bf16.msra.mxu3 %v14933_v59  ;;  %v17935_v59 = vld [vmem:[#allocation11 + $0xf24] sm:$0xf0] }
 0x462   :  { %v14205_v41 = vor.u32 %v17472_v31, %v14204_v60  ;;  %v17859_v60 = vld [vmem:[#allocation11 + $0xccc] sm:$0xf]  ;;  %v16053_v61 = vor.u32 %v17935_v59, %v16052_v36  ;;  %v17800_v33 = vld [vmem:[#allocation11 + $0xaec] sm:$0xf0] }
 0x463   :  { %9609 = vmatpush.bf16.msra.mxu0 %v14333_v5  ;;  %v17883_v5 = vld [vmem:[#allocation11 + $0xd8c] sm:$0xf]  ;;  %9537 = vmatpush.bf16.msra.mxu2 %v14649_v8  ;;  %v9359_v50 = vpop.f32.mrf.mxu0  ;;  %v17824_v8 = vld [vmem:[#allocation11 + $0xbac] sm:$0xf0] }
 0x464   :  { %v15766_v31 = vld [vmem:[#allocation11 + $0xce8] sm:$0xf0]  ;;  %v14876_v59 = vld [vmem:[#allocation11 + $0x5d0] sm:$0xf] }
 0x465   :  { %9622 = vmatpush.bf16.msra.mxu1 %v14589_v51  ;;  %v16149_v51 = vor.u32 %v17959_v52, %v16148_v38  ;;  %v9372_v7 = vpop.f32.mrf.mxu1  ;;  %9446 = vmatpush.bf16.msra.mxu3 %v14901_v35  ;;  %v16020_v52 = vld [vmem:[#allocation11 + $0xec8] sm:$0xf]  ;;  %v15324_v35 = vld [vmem:[#allocation11 + $0x950] sm:$0xf] }
 0x466   :  { %9538 = vmatmul.bf16.vlgmr.msra.gmra.mxu2 %v18726_v54  ;;  %v17919_v7 = vld [vmem:[#allocation11 + $0xea4] sm:$0xf0] }
 0x467   :  { %9610 = vmatpush.bf16.msra.mxu0 %v14301_v48  ;;  %9582 = vmatpush.bf16.msrb.mxu2 %v15897_v20  ;;  %v15865_v48 = vor.u32 %v17883_v5, %v15862_v11  ;;  %v17927_v20 = vld [vmem:[#allocation11 + $0xee4] sm:$0xf0]  ;;  %v17752_v5 = vld [vmem:[#allocation11 + $0x96c] sm:$0xf0]  ;;  %v15989_v46 = vor.u32 %v17919_v7, %v15988_v14 }
 0x468   :  { %9447 = vmatmul.bf16.vlgmr.msra.gmra.mxu3 %v18747_v56  ;;  %v15580_v11 = vld [vmem:[#allocation11 + $0xb50] sm:$0xf]  ;;  %v16021_v50 = vor.u32 %v17927_v20, %v16020_v52  ;;  %v15325_v47 = vor.u32 %v17752_v5, %v15324_v35  ;;  %v17699_v20 = vld [vmem:[#allocation11 + $0x7cc] sm:$0xf] }
 0x469   :  { %9623 = vmatpush.bf16.msra.mxu1 %v14557_v22  ;;  %v17875_v22 = vld [vmem:[#allocation11 + $0xd4c] sm:$0xf]  ;;  %9491 = vmatpush.bf16.msrb.mxu3 %v16149_v51  ;;  %v9279_v51 = vpop.f32.mrf.mxu2  ;;  %v17792_v52 = vld [vmem:[#allocation11 + $0xaac] sm:$0xf0] }
 0x46a   :  { %v15833_v39 = vor.u32 %v17875_v22, %v15830_v12  ;;  %v18832_v62 = vadd.f32 %v9279_v51, %v18817_v25  ;;  %v15548_v22 = vld [vmem:[#allocation11 + $0xb10] sm:$0xf]  ;;  %v15702_v25 = vld [vmem:[#allocation11 + $0xc68] sm:$0xf0] }
 0x46b   :  { %9611 = vmatpush.bf16.msra.mxu0 %v14269_v37  ;;  %v15388_v37 = vld [vmem:[#allocation11 + $0x9d0] sm:$0xf]  ;;  %9583 = vmatpush.bf16.msrb.mxu2 %v15865_v48  ;;  %v15126_v35 = vld [vmem:[#allocation11 + $0x7e8] sm:$0xf0] }
 0x46c   :  { %v15389_v30 = vor.u32 %v17768_v40, %v15388_v37  ;;  %v15292_v48 = vld [vmem:[#allocation11 + $0x910] sm:$0xf]  ;;  %v17911_v37 = vld [vmem:[#allocation11 + $0xe64] sm:$0xf0] }
 0x46d   :  { %9624 = vmatpush.bf16.msra.mxu1 %v14525_v43  ;;  %v15644_v43 = vld [vmem:[#allocation11 + $0xbd0] sm:$0xf]  ;;  %9492 = vmatpush.bf16.msrb.mxu3 %v16117_v24  ;;  %v15293_v13 = vor.u32 %v17744_v42, %v15292_v48  ;;  %v15957_v36 = vor.u32 %v17911_v37, %v15956_v3  ;;  %v17691_v42 = vld [vmem:[#allocation11 + $0x78c] sm:$0xf] }
 0x46e   :  { %v15645_v21 = vor.u32 %v17832_v18, %v15644_v43  ;;  %v17808_v12 = vld [vmem:[#allocation11 + $0xb2c] sm:$0xf0]  ;;  %v15705_v43 = vor.u32 %v17843_v53, %v15702_v25 }
 0x46f   :  { %9612 = vmatpush.bf16.msra.mxu0 %v14237_v17  ;;  %v15356_v17 = vld [vmem:[#allocation11 + $0x990] sm:$0xf]  ;;  %9584 = vmatpush.bf16.msrb.mxu2 %v15833_v39  ;;  %v15549_v49 = vor.u32 %v17808_v12, %v15548_v22  ;;  %v15094_v22 = vld [vmem:[#allocation11 + $0x7a8] sm:$0xf0] }
 0x470   :  { %v15357_v6 = vor.u32 %v17760_v63, %v15356_v17  ;;  %v15260_v39 = vld [vmem:[#allocation11 + $0x8d0] sm:$0xf] }
 0x471   :  { %9625 = vmatpush.bf16.msra.mxu1 %v14493_v28  ;;  %v15612_v28 = vld [vmem:[#allocation11 + $0xb90] sm:$0xf]  ;;  %9493 = vmatpush.bf16.msrb.mxu3 %v16085_v23  ;;  %v9281_v23 = vpop.f32.mrf.mxu2 }
 0x472   :  { %v15613_v38 = vor.u32 %v17824_v8, %v15612_v28  ;;  %v17736_v18 = vld [vmem:[#allocation11 + $0x8ec] sm:$0xf0]  ;;  %v15924_v8 = vld [vmem:[#allocation11 + $0xe08] sm:$0xf] }
 0x473   :  { %9613 = vmatpush.bf16.msra.mxu0 %v14205_v41  ;;  %9585 = vmatpush.bf16.msrb.mxu2 %v15801_v29  ;;  %v15769_v41 = vor.u32 %v17859_v60, %v15766_v31  ;;  %v17640_v17 = vld [vmem:[#allocation11 + $0x5ec] sm:$0xf0]  ;;  %v15261_v63 = vor.u32 %v17736_v18, %v15260_v39  ;;  %v17903_v60 = vld [vmem:[#allocation11 + $0xe24] sm:$0xf0]  ;;  %v15097_v39 = vor.u32 %v17691_v42, %v15094_v22  ;;  %v15062_v18 = vld [vmem:[#allocation11 + $0x768] sm:$0xf0] }
 0x474   :  { %v15228_v31 = vld [vmem:[#allocation11 + $0x890] sm:$0xf]  ;;  %v15925_v5 = vor.u32 %v17903_v60, %v15924_v8  ;;  %v17659_v42 = vld [vmem:[#allocation11 + $0x68c] sm:$0xf] }
 0x475   :  { %9626 = vmatpush.bf16.msra.mxu1 %v14461_v55  ;;  %v17816_v55 = vld [vmem:[#allocation11 + $0xb6c] sm:$0xf0]  ;;  %9494 = vmatpush.bf16.msrb.mxu3 %v16053_v61  ;;  %v14966_v22 = vld [vmem:[#allocation11 + $0x6a8] sm:$0xf0] }
 0x476   :  { %v15581_v4 = vor.u32 %v17816_v55, %v15580_v11  ;;  %v14844_v11 = vld [vmem:[#allocation11 + $0x590] sm:$0xf] }
 0x477   :  { %9614 = vmatpush.bf16.msra.mxu0 %v14173_v19  ;;  %9586 = vmatpush.bf16.msrb.mxu2 %v15769_v41  ;;  %v15737_v19 = vor.u32 %v17851_v15, %v15734_v57  ;;  %v14877_v41 = vor.u32 %v17640_v17, %v14876_v59  ;;  %v17632_v55 = vld [vmem:[#allocation11 + $0x5ac] sm:$0xf0] }
 0x478   :  { %v15196_v57 = vld [vmem:[#allocation11 + $0x850] sm:$0xf]  ;;  %v14845_v12 = vor.u32 %v17632_v55, %v14844_v11  ;;  %v17667_v11 = vld [vmem:[#allocation11 + $0x6cc] sm:$0xf] }
 0x479   :  { %9627 = vmatpush.bf16.msra.mxu1 %v14429_v27  ;;  %v18834_v27 = vld [vmem:[#allocation13] sm:$0xff]  ;;  %9495 = vmatpush.bf16.msrb.mxu3 %v16021_v50  ;;  %v15452_v14 = vld [vmem:[#allocation11 + $0xa50] sm:$0xf]  ;;  %v14998_v55 = vld [vmem:[#allocation11 + $0x6e8] sm:$0xf0] }
 0x47a   :  { %v6618_v24 = vperm.slane %v18834_v27, 2  ;;  %v17784_v7 = vld [vmem:[#allocation11 + $0xa6c] sm:$0xf0] }
 0x47b   :  { %9615 = vmatpush.bf16.msra.mxu0 %v14141_v1  ;;  %v9409_v40 = vpop.f32.mrf.mxu0  ;;  %9587 = vmatpush.bf16.msrb.mxu2 %v15737_v19  ;;  %v15516_v1 = vld [vmem:[#allocation11 + $0xad0] sm:$0xf]  ;;  %v9331_v19 = vpop.f32.mrf.mxu2 }
 0x47c   :  { %v9410_v58 = vadd.f32 %v9409_v40, %v6618_v24  ;;  %v15517_v28 = vor.u32 %v17800_v33, %v15516_v1  ;;  %v18840_v24 = vadd.f32 %v9331_v19, %v18812_v9  ;;  %v14812_v53 = vld [vmem:[#allocation11 + $0x550] sm:$0xf]  ;;  %v17508_v1 = vld [vmem:[#allocation11 + $0x1d4] sm:$0xf] }
 0x47d   :  { %9628 = vmatpush.bf16.msra.mxu1 %v14397_v26  ;;  %v9422_v26 = vpop.f32.mrf.mxu1  ;;  %9496 = vmatpush.bf16.msrb.mxu3 %v15989_v46  ;;  %v17624_v25 = vld [vmem:[#allocation11 + $0x56c] sm:$0xf0]  ;;  %v14366_v33 = vld [vmem:[#allocation11 + $0x1f0] sm:$0xf0] }
 0x47e   :  { %9616 = vmatmul.bf16.vlgmr.msra.gmra.mxu0 %v18706_v0  ;;  %v18837_v29 = vadd.f32 %v9422_v26, %v9410_v58  ;;  %v17712_v3 = vld [vmem:[#allocation11 + $0x82c] sm:$0xf0]  ;;  %v14813_v9 = vor.u32 %v17624_v25, %v14812_v53  ;;  %v17572_v58 = vld [vmem:[#allocation11 + $0x3d4] sm:$0xf]  ;;  %v14369_v17 = vor.u32 %v17508_v1, %v14366_v33 }
 0x47f   :  { %9660 = vmatpush.bf16.msrb.mxu0 %v15389_v30  ;;  %v17835_v30 = vld [vmem:[#allocation11 + $0xc0c] sm:$0xf]  ;;  %9588 = vmatpush.bf16.msrb.mxu2 %v15705_v43  ;;  %v15420_v37 = vld [vmem:[#allocation11 + $0xa10] sm:$0xf]  ;;  %v14622_v26 = vld [vmem:[#allocation11 + $0x3f0] sm:$0xf0] }
 0x480   :  { %9629 = vmatmul.bf16.vlgmr.msra.gmra.mxu1 %v18708_v34  ;;  %v17776_v40 = vld [vmem:[#allocation11 + $0xa2c] sm:$0xf0]  ;;  %v17683_v43 = vld [vmem:[#allocation11 + $0x74c] sm:$0xf]  ;;  %v14625_v8 = vor.u32 %v17572_v58, %v14622_v26  ;;  %v17476_v26 = vld [vmem:[#allocation11 + $0xd4] sm:$0xf] }
 0x481   :  { %9673 = vmatpush.bf16.msrb.mxu1 %v15645_v21  ;;  %v15670_v21 = vld [vmem:[#allocation11 + $0xc28] sm:$0xf0]  ;;  %9497 = vmatpush.bf16.msrb.mxu3 %v15957_v36  ;;  %v14780_v23 = vld [vmem:[#allocation11 + $0x510] sm:$0xf]  ;;  %v15421_v36 = vor.u32 %v17776_v40, %v15420_v37  ;;  %v15065_v59 = vor.u32 %v17683_v43, %v15062_v18  ;;  %v14969_v40 = vor.u32 %v17659_v42, %v14966_v22  ;;  %v17524_v42 = vld [vmem:[#allocation11 + $0x254] sm:$0xf] }
 0x482   :  { %v15673_v61 = vor.u32 %v17835_v30, %v15670_v21  ;;  %v17616_v30 = vld [vmem:[#allocation11 + $0x52c] sm:$0xf0]  ;;  %v17651_v18 = vld [vmem:[#allocation11 + $0x64c] sm:$0xf] }
 0x483   :  { %9661 = vmatpush.bf16.msrb.mxu0 %v15357_v6  ;;  %v17728_v6 = vld [vmem:[#allocation11 + $0x8ac] sm:$0xf0]  ;;  %v9411_v50 = vpop.f32.mrf.mxu0  ;;  %v9333_v60 = vpop.f32.mrf.mxu2 }
 0x484   :  { %v15229_v51 = vor.u32 %v17728_v6, %v15228_v31  ;;  %9589 = vmatpush.bf16.msrb.mxu2 %v15673_v61  ;;  %v14781_v31 = vor.u32 %v17616_v30, %v14780_v23  ;;  %v17500_v61 = vld [vmem:[#allocation11 + $0x194] sm:$0xf]  ;;  %v14684_v37 = vld [vmem:[#allocation11 + $0x450] sm:$0xf] }
 0x485   :  { %9674 = vmatpush.bf16.msrb.mxu1 %v15613_v38  ;;  %v15484_v38 = vld [vmem:[#allocation11 + $0xa90] sm:$0xf]  ;;  %v9424_v48 = vpop.f32.mrf.mxu1  ;;  %9498 = vmatpush.bf16.msrb.mxu3 %v15925_v5  ;;  %v14334_v6 = vld [vmem:[#allocation11 + $0x1b0] sm:$0xf0] }
 0x486   :  { %v15485_v15 = vor.u32 %v17792_v52, %v15484_v38  ;;  %v17564_v38 = vld [vmem:[#allocation11 + $0x394] sm:$0xf]  ;;  %v14337_v5 = vor.u32 %v17500_v61, %v14334_v6  ;;  %v15001_v48 = vor.u32 %v17667_v11, %v14998_v55  ;;  %v14902_v61 = vld [vmem:[#allocation11 + $0x628] sm:$0xf0] }
 0x487   :  { %9662 = vmatpush.bf16.msrb.mxu0 %v15325_v47  ;;  %v15129_v47 = vor.u32 %v17699_v20, %v15126_v35  ;;  %9590 = vmatmul.bf16.vlgmr.msrb.gmra.mxu2 %v18773_v16  ;;  %v14590_v52 = vld [vmem:[#allocation11 + $0x3b0] sm:$0xf0]  ;;  %v14748_v20 = vld [vmem:[#allocation11 + $0x4d0] sm:$0xf]  ;;  %v17955_v11 = vld [vmem:[#allocation11 + $0xfcc] sm:$0xf] }
 0x488   :  { %9634 = vmatpush.bf16.msra.mxu2 %v14877_v41  ;;  %9499 = vmatmul.bf16.vlgmr.msrb.gmra.mxu3 %v18802_v32  ;;  %v17608_v35 = vld [vmem:[#allocation11 + $0x4ec] sm:$0xf0]  ;;  %v14302_v50 = vld [vmem:[#allocation11 + $0x170] sm:$0xf0]  ;;  %v16150_v55 = vld [vmem:[#allocation11 + $0xfe8] sm:$0xf0] }
 0x489   :  { %9675 = vmatpush.bf16.msrb.mxu1 %v15581_v4  ;;  %v17720_v4 = vld [vmem:[#allocation11 + $0x86c] sm:$0xf0]  ;;  %9543 = vmatpush.bf16.msra.mxu3 %v15129_v47  ;;  %v17556_v47 = vld [vmem:[#allocation11 + $0x354] sm:$0xf] }
 0x48a   :  { %v15197_v46 = vor.u32 %v17720_v4, %v15196_v57  ;;  %v17492_v57 = vld [vmem:[#allocation11 + $0x154] sm:$0xf] }
 0x48b   :  { %9663 = vmatpush.bf16.msrb.mxu0 %v15293_v13  ;;  %v15453_v13 = vor.u32 %v17784_v7, %v15452_v14  ;;  %v14558_v4 = vld [vmem:[#allocation11 + $0x370] sm:$0xf0]  ;;  %v14716_v14 = vld [vmem:[#allocation11 + $0x490] sm:$0xf]  ;;  %v14305_v19 = vor.u32 %v17492_v57, %v14302_v50  ;;  %v18846_v53 = vpop.f32.mrf.mxu2 }
 0x48c   :  { %9635 = vmatpush.bf16.msra.mxu2 %v14845_v12  ;;  %v17600_v7 = vld [vmem:[#allocation11 + $0x4ac] sm:$0xf0]  ;;  %v14561_v12 = vor.u32 %v17556_v47, %v14558_v4  ;;  %v14238_v23 = vld [vmem:[#allocation11 + $0xf0] sm:$0xf0] }
 0x48d   :  { %9676 = vmatpush.bf16.msrb.mxu1 %v15549_v49  ;;  %v15164_v49 = vld [vmem:[#allocation11 + $0x810] sm:$0xf]  ;;  %9544 = vmatpush.bf16.msra.mxu3 %v15097_v39  ;;  %v14717_v25 = vor.u32 %v17600_v7, %v14716_v14  ;;  %v17540_v30 = vld [vmem:[#allocation11 + $0x2d4] sm:$0xf]  ;;  %v14241_v60 = vor.u32 %v17476_v26, %v14238_v23  ;;  %v16153_v7 = vor.u32 %v17955_v11, %v16150_v55  ;;  %v16086_v26 = vld [vmem:[#allocation11 + $0xf68] sm:$0xf0] }
 0x48e   :  { %v15165_v21 = vor.u32 %v17712_v3, %v15164_v49  ;;  %v17548_v49 = vld [vmem:[#allocation11 + $0x314] sm:$0xf]  ;;  %v17592_v39 = vld [vmem:[#allocation11 + $0x46c] sm:$0xf0] }
 0x48f   :  { %9664 = vmatpush.bf16.msrb.mxu0 %v15261_v63  ;;  %v17675_v63 = vld [vmem:[#allocation11 + $0x70c] sm:$0xf]  ;;  %v14526_v3 = vld [vmem:[#allocation11 + $0x330] sm:$0xf0]  ;;  %v14685_v58 = vor.u32 %v17592_v39, %v14684_v37  ;;  %v15868_v50 = vld [vmem:[#allocation11 + $0xd90] sm:$0xf] }
 0x490   :  { %9636 = vmatpush.bf16.msra.mxu2 %v14813_v9  ;;  %v14934_v9 = vld [vmem:[#allocation11 + $0x668] sm:$0xf0]  ;;  %v14529_v33 = vor.u32 %v17548_v49, %v14526_v3  ;;  %v17888_v47 = vld [vmem:[#allocation11 + $0xdac] sm:$0xf0]  ;;  %v17452_v3 = vld [vmem:[#allocation11 + $0x14] sm:$0xf] }
 0x491   :  { %9677 = vmatpush.bf16.msrb.mxu1 %v15517_v28  ;;  %v15030_v28 = vld [vmem:[#allocation11 + $0x728] sm:$0xf0]  ;;  %9545 = vmatpush.bf16.msra.mxu3 %v15065_v59  ;;  %v14652_v59 = vld [vmem:[#allocation11 + $0x410] sm:$0xf]  ;;  %v17764_v23 = vld [vmem:[#allocation11 + $0x9d4] sm:$0xf] }
 0x492   :  { %v15033_v41 = vor.u32 %v17675_v63, %v15030_v28  ;;  %v15900_v63 = vld [vmem:[#allocation11 + $0xdd0] sm:$0xf]  ;;  %v15614_v11 = vld [vmem:[#allocation11 + $0xbb0] sm:$0xf0] }
 0x493   :  { %9665 = vmatpush.bf16.msrb.mxu0 %v15229_v51  ;;  %v14593_v51 = vor.u32 %v17564_v38, %v14590_v52  ;;  %v17896_v28 = vld [vmem:[#allocation11 + $0xdec] sm:$0xf0]  ;;  %v9385_v38 = vpop.f32.mrf.mxu2 }
 0x494   :  { %9637 = vmatpush.bf16.msra.mxu2 %v14781_v31  ;;  %v17643_v31 = vld [vmem:[#allocation11 + $0x60c] sm:$0xf]  ;;  %v15836_v37 = vld [vmem:[#allocation11 + $0xd50] sm:$0xf] }
 0x495   :  { %9678 = vmatpush.bf16.msrb.mxu1 %v15485_v15  ;;  %v14749_v15 = vor.u32 %v17608_v35, %v14748_v20  ;;  %9546 = vmatpush.bf16.msra.mxu3 %v15033_v41  ;;  %v17468_v20 = vld [vmem:[#allocation11 + $0x94] sm:$0xf]  ;;  %v17880_v39 = vld [vmem:[#allocation11 + $0xd6c] sm:$0xf0]  ;;  %v17931_v38 = vld [vmem:[#allocation11 + $0xf0c] sm:$0xf] }
 0x496   :  { %v14206_v35 = vld [vmem:[#allocation11 + $0xb0] sm:$0xf0]  ;;  %v15772_v55 = vld [vmem:[#allocation11 + $0xcd0] sm:$0xf] }
 0x497   :  { %9666 = vmatpush.bf16.msrb.mxu0 %v15197_v46  ;;  %v17484_v46 = vld [vmem:[#allocation11 + $0x114] sm:$0xf]  ;;  %v14209_v57 = vor.u32 %v17468_v20, %v14206_v35 }
 0x498   :  { %9638 = vmatpush.bf16.msra.mxu2 %v14749_v15  ;;  %v17532_v41 = vld [vmem:[#allocation11 + $0x294] sm:$0xf]  ;;  %v14905_v15 = vor.u32 %v17643_v31, %v14902_v61 }
 0x499   :  { %9679 = vmatpush.bf16.msrb.mxu1 %v15453_v13  ;;  %v14270_v13 = vld [vmem:[#allocation11 + $0x130] sm:$0xf0]  ;;  %9547 = vmatpush.bf16.msra.mxu3 %v15001_v48 }
 0x49a   :  { %v14273_v43 = vor.u32 %v17484_v46, %v14270_v13  ;;  %v17460_v48 = vld [vmem:[#allocation11 + $0x54] sm:$0xf]  ;;  %v16118_v46 = vld [vmem:[#allocation11 + $0xfa8] sm:$0xf0]  ;;  %v15869_v13 = vor.u32 %v17888_v47, %v15868_v50 }
 0x49b   :  { %9667 = vmatpush.bf16.msrb.mxu0 %v15165_v21  ;;  %v18848_v1 = vpop.f32.mrf.mxu0  ;;  %v17756_v20 = vld [vmem:[#allocation11 + $0x994] sm:$0xf]  ;;  %v17923_v47 = vld [vmem:[#allocation11 + $0xecc] sm:$0xf] }
 0x49c   :  { %9639 = vmatpush.bf16.msra.mxu2 %v14717_v25  ;;  %v17947_v25 = vld [vmem:[#allocation11 + $0xf8c] sm:$0xf] }
 0x49d   :  { %9680 = vmatpush.bf16.msrb.mxu1 %v15421_v36  ;;  %v18850_v21 = vpop.f32.mrf.mxu1  ;;  %v14494_v36 = vld [vmem:[#allocation11 + $0x2f0] sm:$0xf0]  ;;  %9548 = vmatpush.bf16.msra.mxu3 %v14969_v40 }
 0x49e   :  { %9668 = vmatmul.bf16.vlgmr.msrb.gmra.mxu0 %v18731_v10  ;;  %v14497_v6 = vor.u32 %v17540_v30, %v14494_v36  ;;  %v15837_v30 = vor.u32 %v17880_v39, %v15836_v37  ;;  %v15390_v36 = vld [vmem:[#allocation11 + $0x9f0] sm:$0xf0]  ;;  %v17915_v39 = vld [vmem:[#allocation11 + $0xe8c] sm:$0xf] }
 0x49f   :  { %9712 = vmatpush.bf16.msra.mxu0 %v14369_v17  ;;  %v17584_v17 = vld [vmem:[#allocation11 + $0x42c] sm:$0xf0]  ;;  %v15393_v61 = vor.u32 %v17764_v23, %v15390_v36 }
 0x4a0   :  { %9681 = vmatmul.bf16.vlgmr.msrb.gmra.mxu1 %v18743_v2  ;;  %9640 = vmatpush.bf16.msra.mxu2 %v14685_v58  ;;  %v14653_v52 = vor.u32 %v17584_v17, %v14652_v59  ;;  %v17939_v58 = vld [vmem:[#allocation11 + $0xf4c] sm:$0xf]  ;;  %v17828_v59 = vld [vmem:[#allocation11 + $0xbd4] sm:$0xf] }
 0x4a1   :  { %9725 = vmatpush.bf16.msra.mxu1 %v14625_v8  ;;  %v14937_v8 = vor.u32 %v17651_v18, %v14934_v9  ;;  %v14142_v18 = vld [vmem:[#allocation11 + $0x30] sm:$0xf0]  ;;  %v16089_v31 = vor.u32 %v17939_v58, %v16086_v26 }
 0x4a2   :  { %v17516_v9 = vld [vmem:[#allocation11 + $0x214] sm:$0xf] }
 0x4a3   :  { %9713 = vmatpush.bf16.msra.mxu0 %v14337_v5  ;;  %v14462_v5 = vld [vmem:[#allocation11 + $0x2b0] sm:$0xf0]  ;;  %9549 = vmatpush.bf16.msra.mxu3 %v14937_v8  ;;  %v9463_v4 = vpop.f32.mrf.mxu0  ;;  %v17872_v8 = vld [vmem:[#allocation11 + $0xd2c] sm:$0xf0] }
 0x4a4   :  { %9641 = vmatpush.bf16.msra.mxu2 %v14653_v52  ;;  %v14465_v14 = vor.u32 %v17532_v41, %v14462_v5  ;;  %v15646_v17 = vld [vmem:[#allocation11 + $0xbf0] sm:$0xf0]  ;;  %v16054_v52 = vld [vmem:[#allocation11 + $0xf28] sm:$0xf0] }
 0x4a5   :  { %9726 = vmatpush.bf16.msra.mxu1 %v14593_v51  ;;  %v15901_v51 = vor.u32 %v17896_v28, %v15900_v63  ;;  %v9476_v22 = vpop.f32.mrf.mxu1  ;;  %v14145_v63 = vor.u32 %v17452_v3, %v14142_v18  ;;  %v15804_v28 = vld [vmem:[#allocation11 + $0xd10] sm:$0xf]  ;;  %v15358_v41 = vld [vmem:[#allocation11 + $0x9b0] sm:$0xf0]  ;;  %v16022_v4 = vld [vmem:[#allocation11 + $0xee8] sm:$0xf0] }
 0x4a6   :  { %v15805_v35 = vor.u32 %v17872_v8, %v15804_v28  ;;  %v17820_v5 = vld [vmem:[#allocation11 + $0xb94] sm:$0xf]  ;;  %v15740_v22 = vld [vmem:[#allocation11 + $0xc90] sm:$0xf]  ;;  %v15958_v28 = vld [vmem:[#allocation11 + $0xe68] sm:$0xf0] }
 0x4a7   :  { %9714 = vmatpush.bf16.msra.mxu0 %v14305_v19  ;;  %v14174_v19 = vld [vmem:[#allocation11 + $0x70] sm:$0xf0]  ;;  %9550 = vmatpush.bf16.msra.mxu3 %v14905_v15  ;;  %v16057_v15 = vor.u32 %v17931_v38, %v16054_v52  ;;  %v15617_v50 = vor.u32 %v17820_v5, %v15614_v11  ;;  %v15676_v52 = vld [vmem:[#allocation11 + $0xc10] sm:$0xf] }
 0x4a8   :  { %9686 = vmatpush.bf16.msrb.mxu2 %v15901_v51  ;;  %v14177_v49 = vor.u32 %v17460_v48, %v14174_v19  ;;  %v17864_v51 = vld [vmem:[#allocation11 + $0xcec] sm:$0xf0]  ;;  %v15326_v48 = vld [vmem:[#allocation11 + $0x970] sm:$0xf0] }
 0x4a9   :  { %9727 = vmatpush.bf16.msra.mxu1 %v14561_v12  ;;  %v14430_v12 = vld [vmem:[#allocation11 + $0x270] sm:$0xf0]  ;;  %9642 = vmatmul.bf16.vlgmr.msra.gmra.mxu2 %v18726_v54  ;;  %v9435_v18 = vpop.f32.mrf.mxu2 }
 0x4aa   :  { %v14433_v40 = vor.u32 %v17524_v42, %v14430_v12  ;;  %9551 = vmatmul.bf16.vlgmr.msra.gmra.mxu3 %v18747_v56  ;;  %v17812_v19 = vld [vmem:[#allocation11 + $0xb54] sm:$0xf]  ;;  %v17856_v12 = vld [vmem:[#allocation11 + $0xcac] sm:$0xf0]  ;;  %v18861_v23 = vadd.f32 %v9435_v18, %v18837_v29 }
 0x4ab   :  { %9715 = vmatpush.bf16.msra.mxu0 %v14273_v43  ;;  %9595 = vmatpush.bf16.msrb.mxu3 %v16153_v7  ;;  %v16121_v43 = vor.u32 %v17947_v25, %v16118_v46  ;;  %v15773_v7 = vor.u32 %v17864_v51, %v15772_v55  ;;  %v15582_v42 = vld [vmem:[#allocation11 + $0xb70] sm:$0xf0]  ;;  %v9292_v25 = vpop.f32.mrf.mxu3  ;;  %v16025_v46 = vor.u32 %v17923_v47, %v16022_v4 }
 0x4ac   :  { %9687 = vmatpush.bf16.msrb.mxu2 %v15869_v13  ;;  %v6619_v13 = vperm.slane %v18834_v27, 3  ;;  %v15585_v37 = vor.u32 %v17812_v19, %v15582_v42  ;;  %v17804_v58 = vld [vmem:[#allocation11 + $0xb14] sm:$0xf]  ;;  %v15708_v27 = vld [vmem:[#allocation11 + $0xc50] sm:$0xf] }
 0x4ad   :  { %9728 = vmatpush.bf16.msra.mxu1 %v14529_v33  ;;  %v14398_v33 = vld [vmem:[#allocation11 + $0x230] sm:$0xf0]  ;;  %v15132_v42 = vld [vmem:[#allocation11 + $0x7d0] sm:$0xf] }
 0x4ae   :  { %v15550_v26 = vld [vmem:[#allocation11 + $0xb30] sm:$0xf0] }
 0x4af   :  { %9716 = vmatpush.bf16.msra.mxu0 %v14241_v60  ;;  %9596 = vmatpush.bf16.msrb.mxu3 %v16121_v43  ;;  %v14401_v60 = vor.u32 %v17516_v9, %v14398_v33  ;;  %v17740_v43 = vld [vmem:[#allocation11 + $0x914] sm:$0xf]  ;;  %v15741_v9 = vor.u32 %v17856_v12, %v15740_v22  ;;  %v17704_v22 = vld [vmem:[#allocation11 + $0x7ec] sm:$0xf0] }
 0x4b0   :  { %9688 = vmatpush.bf16.msrb.mxu2 %v15837_v30  ;;  %v15294_v33 = vld [vmem:[#allocation11 + $0x930] sm:$0xf0]  ;;  %v17848_v30 = vld [vmem:[#allocation11 + $0xc6c] sm:$0xf0]  ;;  %v15133_v18 = vor.u32 %v17704_v22, %v15132_v42  ;;  %v17505_v42 = vld [vmem:[#allocation11 + $0x1b4] sm:$0xf0] }
 0x4b1   :  { %9729 = vmatpush.bf16.msra.mxu1 %v14497_v6  ;;  %v15649_v6 = vor.u32 %v17828_v59, %v15646_v17  ;;  %v15297_v59 = vor.u32 %v17740_v43, %v15294_v33  ;;  %v15553_v17 = vor.u32 %v17804_v58, %v15550_v26  ;;  %v17732_v8 = vld [vmem:[#allocation11 + $0x8d4] sm:$0xf]  ;;  %v9437_v4 = vpop.f32.mrf.mxu2  ;;  %v15100_v26 = vld [vmem:[#allocation11 + $0x790] sm:$0xf]  ;;  %v14596_v22 = vld [vmem:[#allocation11 + $0x398] sm:$0xf] }
 0x4b2   :  { %v17796_v38 = vld [vmem:[#allocation11 + $0xad4] sm:$0xf] }
 0x4b3   :  { %9717 = vmatpush.bf16.msra.mxu0 %v14209_v57  ;;  %9597 = vmatpush.bf16.msrb.mxu3 %v16089_v31  ;;  %v15361_v57 = vor.u32 %v17756_v20, %v15358_v41  ;;  %v15518_v29 = vld [vmem:[#allocation11 + $0xaf0] sm:$0xf0]  ;;  %v17840_v20 = vld [vmem:[#allocation11 + $0xc2c] sm:$0xf0]  ;;  %v9294_v41 = vpop.f32.mrf.mxu3 }
 0x4b4   :  { %9689 = vmatpush.bf16.msrb.mxu2 %v15805_v35  ;;  %v17636_v11 = vld [vmem:[#allocation11 + $0x5d4] sm:$0xf]  ;;  %v14372_v41 = vld [vmem:[#allocation11 + $0x1d8] sm:$0xf] }
 0x4b5   :  { %9730 = vmatpush.bf16.msra.mxu1 %v14465_v14  ;;  %v17748_v14 = vld [vmem:[#allocation11 + $0x954] sm:$0xf] }
 0x4b6   :  { %v15329_v3 = vor.u32 %v17748_v14, %v15326_v48  ;;  %v14878_v55 = vld [vmem:[#allocation11 + $0x5f0] sm:$0xf0]  ;;  %v15677_v14 = vor.u32 %v17840_v20, %v15676_v52 }
 0x4b7   :  { %9718 = vmatpush.bf16.msra.mxu0 %v14177_v49  ;;  %9598 = vmatpush.bf16.msrb.mxu3 %v16057_v15  ;;  %v18858_v49 = vadd.f32 %v9292_v25, %v18832_v62  ;;  %v15521_v15 = vor.u32 %v17796_v38, %v15518_v29  ;;  %v17724_v47 = vld [vmem:[#allocation11 + $0x894] sm:$0xf]  ;;  %v14881_v12 = vor.u32 %v17636_v11, %v14878_v55  ;;  %v15068_v38 = vld [vmem:[#allocation11 + $0x750] sm:$0xf]  ;;  %v17577_v11 = vld [vmem:[#allocation11 + $0x3f4] sm:$0xf0] }
 0x4b8   :  { %9690 = vmatpush.bf16.msrb.mxu2 %v15773_v7  ;;  %v15230_v7 = vld [vmem:[#allocation11 + $0x8b0] sm:$0xf0]  ;;  %v17688_v29 = vld [vmem:[#allocation11 + $0x76c] sm:$0xf0] }
 0x4b9   :  { %9731 = vmatpush.bf16.msra.mxu1 %v14433_v40  ;;  %v15990_v40 = vld [vmem:[#allocation11 + $0xea8] sm:$0xf0]  ;;  %v17788_v48 = vld [vmem:[#allocation11 + $0xa94] sm:$0xf] }
 0x4ba   :  { %v15993_v36 = vor.u32 %v17915_v39, %v15990_v40  ;;  %v15486_v19 = vld [vmem:[#allocation11 + $0xab0] sm:$0xf0] }
 0x4bb   :  { %9719 = vmatpush.bf16.msra.mxu0 %v14145_v63  ;;  %9599 = vmatpush.bf16.msrb.mxu3 %v16025_v46  ;;  %v9513_v62 = vpop.f32.mrf.mxu0  ;;  %v17907_v63 = vld [vmem:[#allocation11 + $0xe4c] sm:$0xf]  ;;  %v17628_v46 = vld [vmem:[#allocation11 + $0x594] sm:$0xf]  ;;  %v15489_v39 = vor.u32 %v17788_v48, %v15486_v19  ;;  %v14340_v19 = vld [vmem:[#allocation11 + $0x198] sm:$0xf] }
 0x4bc   :  { %9691 = vmatpush.bf16.msrb.mxu2 %v15741_v9  ;;  %v15961_v5 = vor.u32 %v17907_v63, %v15958_v28  ;;  %v17716_v40 = vld [vmem:[#allocation11 + $0x854] sm:$0xf] }
 0x4bd   :  { %9732 = vmatpush.bf16.msra.mxu1 %v14401_v60  ;;  %v9514_v60 = vadd.f32 %v9513_v62, %v6619_v13  ;;  %v9526_v31 = vpop.f32.mrf.mxu1  ;;  %v14846_v13 = vld [vmem:[#allocation11 + $0x5b0] sm:$0xf0] }
 0x4be   :  { %9720 = vmatmul.bf16.vlgmr.msra.gmra.mxu0 %v18706_v0  ;;  %v15198_v9 = vld [vmem:[#allocation11 + $0x870] sm:$0xf0] }
 0x4bf   :  { %9764 = vmatpush.bf16.msrb.mxu0 %v15393_v61  ;;  %v15709_v61 = vor.u32 %v17848_v30, %v15708_v27  ;;  %v18863_v35 = vadd.f32 %v9526_v31, %v9514_v60  ;;  %9600 = vmatpush.bf16.msrb.mxu3 %v15993_v36  ;;  %v17780_v33 = vld [vmem:[#allocation11 + $0xa54] sm:$0xf]  ;;  %v17696_v27 = vld [vmem:[#allocation11 + $0x7ac] sm:$0xf0]  ;;  %v14849_v30 = vor.u32 %v17628_v46, %v14846_v13  ;;  %v9344_v36 = vpop.f32.mrf.mxu3  ;;  %v17569_v46 = vld [vmem:[#allocation11 + $0x3b4] sm:$0xf0] }
 0x4c0   :  { %9733 = vmatmul.bf16.vlgmr.msra.gmra.mxu1 %v18708_v34  ;;  %v15454_v58 = vld [vmem:[#allocation11 + $0xa70] sm:$0xf0]  ;;  %v15201_v63 = vor.u32 %v17716_v40, %v15198_v9  ;;  %v17672_v40 = vld [vmem:[#allocation11 + $0x6ec] sm:$0xf0]  ;;  %v14308_v9 = vld [vmem:[#allocation11 + $0x158] sm:$0xf] }
 0x4c1   :  { %9777 = vmatpush.bf16.msrb.mxu1 %v15649_v6  ;;  %v15262_v6 = vld [vmem:[#allocation11 + $0x8f0] sm:$0xf0]  ;;  %9692 = vmatpush.bf16.msrb.mxu2 %v15709_v61  ;;  %v15457_v28 = vor.u32 %v17780_v33, %v15454_v58  ;;  %v15101_v61 = vor.u32 %v17696_v27, %v15100_v26  ;;  %v17497_v33 = vld [vmem:[#allocation11 + $0x174] sm:$0xf0] }
 0x4c2   :  { %v15265_v51 = vor.u32 %v17732_v8, %v15262_v6  ;;  %v17620_v62 = vld [vmem:[#allocation11 + $0x554] sm:$0xf]  ;;  %v14564_v58 = vld [vmem:[#allocation11 + $0x358] sm:$0xf] }
 0x4c3   :  { %9765 = vmatpush.bf16.msrb.mxu0 %v15361_v57  ;;  %v17899_v57 = vld [vmem:[#allocation11 + $0xe0c] sm:$0xf]  ;;  %9601 = vmatpush.bf16.msrb.mxu3 %v15961_v5  ;;  %v17708_v8 = vld [vmem:[#allocation11 + $0x814] sm:$0xf]  ;;  %v14628_v5 = vld [vmem:[#allocation11 + $0x3d8] sm:$0xf] }
 0x4c4   :  { %v15166_v60 = vld [vmem:[#allocation11 + $0x830] sm:$0xf0] }
 0x4c5   :  { %9778 = vmatpush.bf16.msrb.mxu1 %v15617_v50  ;;  %v15926_v50 = vld [vmem:[#allocation11 + $0xe28] sm:$0xf0]  ;;  %v9528_v43 = vpop.f32.mrf.mxu1  ;;  %9693 = vmatpush.bf16.msrb.mxu2 %v15677_v14  ;;  %v17772_v31 = vld [vmem:[#allocation11 + $0xa14] sm:$0xf]  ;;  %v17680_v14 = vld [vmem:[#allocation11 + $0x72c] sm:$0xf0] }
 0x4c6   :  { %v15929_v25 = vor.u32 %v17899_v57, %v15926_v50  ;;  %v15422_v6 = vld [vmem:[#allocation11 + $0xa30] sm:$0xf0]  ;;  %v14597_v43 = vor.u32 %v17569_v46, %v14596_v22  ;;  %v14908_v22 = vld [vmem:[#allocation11 + $0x610] sm:$0xf] }
 0x4c7   :  { %9766 = vmatpush.bf16.msrb.mxu0 %v15329_v3  ;;  %v9515_v3 = vpop.f32.mrf.mxu0  ;;  %v17612_v55 = vld [vmem:[#allocation11 + $0x514] sm:$0xf]  ;;  %v15425_v57 = vor.u32 %v17772_v31, %v15422_v6  ;;  %v14532_v31 = vld [vmem:[#allocation11 + $0x318] sm:$0xf] }
 0x4c8   :  { %9602 = vmatpush.bf16.msrb.mxu3 %v15929_v25  ;;  %9694 = vmatmul.bf16.vlgmr.msrb.gmra.mxu2 %v18773_v16  ;;  %v9346_v25 = vpop.f32.mrf.mxu3  ;;  %v17604_v13 = vld [vmem:[#allocation11 + $0x4d4] sm:$0xf]  ;;  %v17553_v6 = vld [vmem:[#allocation11 + $0x334] sm:$0xf0] }
 0x4c9   :  { %9779 = vmatpush.bf16.msrb.mxu1 %v15585_v37  ;;  %v15233_v37 = vor.u32 %v17724_v47, %v15230_v7  ;;  %9738 = vmatpush.bf16.msra.mxu2 %v14881_v12  ;;  %v15069_v47 = vor.u32 %v17688_v29, %v15068_v38  ;;  %v14629_v7 = vor.u32 %v17577_v11, %v14628_v5  ;;  %v14750_v3 = vld [vmem:[#allocation11 + $0x4f0] sm:$0xf0]  ;;  %v17656_v5 = vld [vmem:[#allocation11 + $0x66c] sm:$0xf0] }
 0x4ca   :  { %v17596_v26 = vld [vmem:[#allocation11 + $0x494] sm:$0xf] }
 0x4cb   :  { %9767 = vmatpush.bf16.msrb.mxu0 %v15297_v59  ;;  %v14814_v59 = vld [vmem:[#allocation11 + $0x570] sm:$0xf0]  ;;  %9603 = vmatmul.bf16.vlgmr.msrb.gmra.mxu3 %v18802_v32 }
 0x4cc   :  { %9647 = vmatpush.bf16.msra.mxu3 %v15133_v18  ;;  %v14817_v20 = vor.u32 %v17620_v62, %v14814_v59  ;;  %v14753_v18 = vor.u32 %v17604_v13, %v14750_v3  ;;  %v14718_v27 = vld [vmem:[#allocation11 + $0x4b0] sm:$0xf0]  ;;  %v14972_v62 = vld [vmem:[#allocation11 + $0x690] sm:$0xf]  ;;  %v14212_v3 = vld [vmem:[#allocation11 + $0x98] sm:$0xf] }
 0x4cd   :  { %9780 = vmatpush.bf16.msrb.mxu1 %v15553_v17  ;;  %v9345_v17 = vadd.f32 %v9344_v36, %v18840_v24  ;;  %9739 = vmatpush.bf16.msra.mxu2 %v14849_v30  ;;  %v17513_v24 = vld [vmem:[#allocation11 + $0x1f4] sm:$0xf0]  ;;  %v14309_v36 = vor.u32 %v17497_v33, %v14308_v9  ;;  %v17664_v59 = vld [vmem:[#allocation11 + $0x6ac] sm:$0xf0]  ;;  %v17588_v38 = vld [vmem:[#allocation11 + $0x454] sm:$0xf] }
 0x4ce   :  { %v14373_v4 = vor.u32 %v17513_v24, %v14372_v41  ;;  %v14686_v29 = vld [vmem:[#allocation11 + $0x470] sm:$0xf0]  ;;  %v14940_v24 = vld [vmem:[#allocation11 + $0x650] sm:$0xf] }
 0x4cf   :  { %9768 = vmatpush.bf16.msrb.mxu0 %v15265_v51  ;;  %v9358_v52 = vadd.f32 %v18823_v44, %v9345_v17  ;;  %v14782_v51 = vld [vmem:[#allocation11 + $0x530] sm:$0xf0]  ;;  %v15036_v44 = vld [vmem:[#allocation11 + $0x710] sm:$0xf] }
 0x4d0   :  { %9648 = vmatpush.bf16.msra.mxu3 %v15101_v61  ;;  %v14785_v48 = vor.u32 %v17612_v55, %v14782_v51  ;;  %v9396_v61 = vpop.f32.mrf.mxu3  ;;  %v14533_v51 = vor.u32 %v17553_v6, %v14532_v31  ;;  %v17952_v31 = vld [vmem:[#allocation11 + $0xfac] sm:$0xf0] }
 0x4d1   :  { %9781 = vmatpush.bf16.msrb.mxu1 %v15521_v15  ;;  %v15169_v15 = vor.u32 %v17708_v8, %v15166_v60  ;;  %v9371_v50 = vadd.f32 %v18825_v45, %v9358_v52  ;;  %9740 = vmatpush.bf16.msra.mxu2 %v14817_v20  ;;  %v15037_v45 = vor.u32 %v17680_v14, %v15036_v44  ;;  %v14276_v8 = vld [vmem:[#allocation11 + $0x118] sm:$0xf]  ;;  %v17580_v44 = vld [vmem:[#allocation11 + $0x414] sm:$0xf] }
 0x4d2   :  { %v17489_v60 = vld [vmem:[#allocation11 + $0x134] sm:$0xf0]  ;;  %v14973_v20 = vor.u32 %v17664_v59, %v14972_v62  ;;  %v14654_v14 = vld [vmem:[#allocation11 + $0x430] sm:$0xf0] }
 0x4d3   :  { %9769 = vmatpush.bf16.msrb.mxu0 %v15233_v37  ;;  %v9384_v12 = vadd.f32 %v18846_v53, %v9371_v50  ;;  %v14341_v37 = vor.u32 %v17505_v42, %v14340_v19  ;;  %v17561_v53 = vld [vmem:[#allocation11 + $0x374] sm:$0xf0]  ;;  %v14277_v41 = vor.u32 %v17489_v60, %v14276_v8  ;;  %v14941_v19 = vor.u32 %v17656_v5, %v14940_v24  ;;  %v16124_v60 = vld [vmem:[#allocation11 + $0xf90] sm:$0xf] }
 0x4d4   :  { %9649 = vmatpush.bf16.msra.mxu3 %v15069_v47  ;;  %v14565_v17 = vor.u32 %v17561_v53, %v14564_v58  ;;  %v17481_v50 = vld [vmem:[#allocation11 + $0xf4] sm:$0xf0]  ;;  %v14657_v13 = vor.u32 %v17580_v44, %v14654_v14  ;;  %v17884_v53 = vld [vmem:[#allocation11 + $0xd94] sm:$0xf]  ;;  %v16125_v24 = vor.u32 %v17952_v31, %v16124_v60  ;;  %v18885_v31 = vld [vmem:[#allocation13] sm:$0xff] }
 0x4d5   :  { %9782 = vmatpush.bf16.msrb.mxu1 %v15489_v39  ;;  %v15004_v39 = vld [vmem:[#allocation11 + $0x6d0] sm:$0xf]  ;;  %9741 = vmatpush.bf16.msra.mxu2 %v14785_v48  ;;  %v18875_v52 = vadd.f32 %v9396_v61, %v9384_v12  ;;  %v14500_v47 = vld [vmem:[#allocation11 + $0x2d8] sm:$0xf]  ;;  %v15902_v48 = vld [vmem:[#allocation11 + $0xdf0] sm:$0xf0] }
 0x4d6   :  { %v15005_v30 = vor.u32 %v17672_v40, %v15004_v39  ;;  %v17648_v12 = vld [vmem:[#allocation11 + $0x62c] sm:$0xf0]  ;;  %v17537_v40 = vld [vmem:[#allocation11 + $0x2b4] sm:$0xf0] }
 0x4d7   :  { %9770 = vmatpush.bf16.msrb.mxu0 %v15201_v63  ;;  %v18873_v63 = vpop.f32.mrf.mxu2  ;;  %v14909_v33 = vor.u32 %v17648_v12, %v14908_v22  ;;  %v14180_v59 = vld [vmem:[#allocation11 + $0x58] sm:$0xf] }
 0x4d8   :  { %9650 = vmatpush.bf16.msra.mxu3 %v15037_v45  ;;  %v17473_v45 = vld [vmem:[#allocation11 + $0xb4] sm:$0xf0]  ;;  %v9398_v39 = vpop.f32.mrf.mxu3 }
 0x4d9   :  { %9783 = vmatpush.bf16.msrb.mxu1 %v15457_v28  ;;  %9742 = vmatpush.bf16.msra.mxu2 %v14753_v18  ;;  %v14721_v28 = vor.u32 %v17596_v26, %v14718_v27  ;;  %v17960_v18 = vld [vmem:[#allocation11 + $0xfec] sm:$0xf0]  ;;  %v14213_v58 = vor.u32 %v17473_v45, %v14212_v3  ;;  %v15870_v26 = vld [vmem:[#allocation11 + $0xdb0] sm:$0xf0]  ;;  %v17529_v8 = vld [vmem:[#allocation11 + $0x274] sm:$0xf0] }
 0x4da   :  { %v15873_v61 = vor.u32 %v17884_v53, %v15870_v26  ;;  %v17457_v5 = vld [vmem:[#allocation11 + $0x34] sm:$0xf0]  ;;  %v17936_v3 = vld [vmem:[#allocation11 + $0xf2c] sm:$0xf0] }
 0x4db   :  { %9771 = vmatpush.bf16.msrb.mxu0 %v15169_v15  ;;  %v18877_v11 = vpop.f32.mrf.mxu0  ;;  %v14689_v15 = vor.u32 %v17588_v38, %v14686_v29  ;;  %v14148_v38 = vld [vmem:[#allocation11 + $0x18] sm:$0xf]  ;;  %v17876_v29 = vld [vmem:[#allocation11 + $0xd54] sm:$0xf]  ;;  %v16028_v26 = vld [vmem:[#allocation11 + $0xed0] sm:$0xf] }
 0x4dc   :  { %9651 = vmatpush.bf16.msra.mxu3 %v15005_v30  ;;  %v17769_v44 = vld [vmem:[#allocation11 + $0x9f4] sm:$0xf0] }
 0x4dd   :  { %9784 = vmatpush.bf16.msrb.mxu1 %v15425_v57  ;;  %v18879_v55 = vpop.f32.mrf.mxu1  ;;  %9743 = vmatpush.bf16.msra.mxu2 %v14721_v28  ;;  %v14244_v57 = vld [vmem:[#allocation11 + $0xd8] sm:$0xf] }
 0x4de   :  { %9772 = vmatmul.bf16.vlgmr.msrb.gmra.mxu0 %v18731_v10  ;;  %v14245_v42 = vor.u32 %v17481_v50, %v14244_v57  ;;  %v14436_v28 = vld [vmem:[#allocation11 + $0x258] sm:$0xf]  ;;  %v16092_v57 = vld [vmem:[#allocation11 + $0xf50] sm:$0xf] }
 0x4df   :  { %9816 = vmatpush.bf16.msra.mxu0 %v14373_v4  ;;  %v17545_v4 = vld [vmem:[#allocation11 + $0x2f4] sm:$0xf0]  ;;  %v9489_v46 = vpop.f32.mrf.mxu2  ;;  %v17944_v50 = vld [vmem:[#allocation11 + $0xf6c] sm:$0xf0] }
 0x4e0   :  { %9785 = vmatmul.bf16.vlgmr.msrb.gmra.mxu1 %v18743_v2  ;;  %9652 = vmatpush.bf16.msra.mxu3 %v14973_v20  ;;  %v14501_v25 = vor.u32 %v17545_v4, %v14500_v47  ;;  %v15838_v20 = vld [vmem:[#allocation11 + $0xd70] sm:$0xf0]  ;;  %v15396_v47 = vld [vmem:[#allocation11 + $0x9d8] sm:$0xf]  ;;  %v16093_v12 = vor.u32 %v17944_v50, %v16092_v57 }
 0x4e1   :  { %9829 = vmatpush.bf16.msra.mxu1 %v14629_v7  ;;  %v17892_v7 = vld [vmem:[#allocation11 + $0xdd4] sm:$0xf]  ;;  %9744 = vmatpush.bf16.msra.mxu2 %v14689_v15  ;;  %v17521_v15 = vld [vmem:[#allocation11 + $0x234] sm:$0xf0]  ;;  %v15841_v4 = vor.u32 %v17876_v29, %v15838_v20  ;;  %v15996_v29 = vld [vmem:[#allocation11 + $0xe90] sm:$0xf] }
 0x4e2   :  { %v15905_v9 = vor.u32 %v17892_v7, %v15902_v48  ;;  %v15652_v14 = vld [vmem:[#allocation11 + $0xbd8] sm:$0xf]  ;;  %v14149_v48 = vor.u32 %v17457_v5, %v14148_v38  ;;  %v17920_v20 = vld [vmem:[#allocation11 + $0xeac] sm:$0xf0] }
 0x4e3   :  { %9817 = vmatpush.bf16.msra.mxu0 %v14341_v37  ;;  %v14468_v37 = vld [vmem:[#allocation11 + $0x298] sm:$0xf]  ;;  %v9567_v27 = vpop.f32.mrf.mxu0 }
 0x4e4   :  { %9653 = vmatpush.bf16.msra.mxu3 %v14941_v19  ;;  %v17833_v7 = vld [vmem:[#allocation11 + $0xbf4] sm:$0xf0]  ;;  %v17868_v19 = vld [vmem:[#allocation11 + $0xd14] sm:$0xf]  ;;  %v17928_v27 = vld [vmem:[#allocation11 + $0xeec] sm:$0xf0] }
 0x4e5   :  { %9830 = vmatpush.bf16.msra.mxu1 %v14597_v43  ;;  %v16156_v43 = vld [vmem:[#allocation11 + $0xfd0] sm:$0xf]  ;;  %v9580_v30 = vpop.f32.mrf.mxu1  ;;  %9745 = vmatpush.bf16.msra.mxu2 %v14657_v13  ;;  %v15653_v46 = vor.u32 %v17833_v7, %v15652_v14  ;;  %v15364_v45 = vld [vmem:[#allocation11 + $0x998] sm:$0xf]  ;;  %v16029_v60 = vor.u32 %v17928_v27, %v16028_v26  ;;  %v15997_v7 = vor.u32 %v17920_v20, %v15996_v29 }
 0x4e6   :  { %v16157_v62 = vor.u32 %v17960_v18, %v16156_v43  ;;  %v16060_v13 = vld [vmem:[#allocation11 + $0xf10] sm:$0xf]  ;;  %v17761_v39 = vld [vmem:[#allocation11 + $0x9b4] sm:$0xf0]  ;;  %v17860_v18 = vld [vmem:[#allocation11 + $0xcd4] sm:$0xf] }
 0x4e7   :  { %9818 = vmatpush.bf16.msra.mxu0 %v14309_v36  ;;  %v14469_v36 = vor.u32 %v17537_v40, %v14468_v37  ;;  %v15620_v40 = vld [vmem:[#allocation11 + $0xb98] sm:$0xf]  ;;  %v15932_v26 = vld [vmem:[#allocation11 + $0xe10] sm:$0xf] }
 0x4e8   :  { %9654 = vmatpush.bf16.msra.mxu3 %v14909_v33  ;;  %9746 = vmatmul.bf16.vlgmr.msra.gmra.mxu2 %v18726_v54  ;;  %v17825_v43 = vld [vmem:[#allocation11 + $0xbb4] sm:$0xf0]  ;;  %v16061_v33 = vor.u32 %v17936_v3, %v16060_v13  ;;  %v17904_v27 = vld [vmem:[#allocation11 + $0xe2c] sm:$0xf0] }
 0x4e9   :  { %9831 = vmatpush.bf16.msra.mxu1 %v14565_v17  ;;  %v17465_v17 = vld [vmem:[#allocation11 + $0x74] sm:$0xf0]  ;;  %9790 = vmatpush.bf16.msrb.mxu2 %v15905_v9  ;;  %v15774_v9 = vld [vmem:[#allocation11 + $0xcf0] sm:$0xf0]  ;;  %v15621_v53 = vor.u32 %v17825_v43, %v15620_v40 }
 0x4ea   :  { %v14181_v6 = vor.u32 %v17465_v17, %v14180_v59  ;;  %v15332_v30 = vld [vmem:[#allocation11 + $0x958] sm:$0xf]  ;;  %v17836_v40 = vld [vmem:[#allocation11 + $0xc14] sm:$0xf] }
 0x4eb   :  { %9819 = vmatpush.bf16.msra.mxu0 %v14277_v41  ;;  %v14437_v41 = vor.u32 %v17529_v8, %v14436_v28  ;;  %9655 = vmatmul.bf16.vlgmr.msra.gmra.mxu3 %v18747_v56  ;;  %v15588_v59 = vld [vmem:[#allocation11 + $0xb58] sm:$0xf]  ;;  %v17852_v28 = vld [vmem:[#allocation11 + $0xc94] sm:$0xf]  ;;  %v9448_v50 = vpop.f32.mrf.mxu3 }
 0x4ec   :  { %9699 = vmatpush.bf16.msrb.mxu3 %v16157_v62  ;;  %v17753_v62 = vld [vmem:[#allocation11 + $0x974] sm:$0xf0]  ;;  %v15742_v8 = vld [vmem:[#allocation11 + $0xcb0] sm:$0xf0]  ;;  %v9449_v14 = vadd.f32 %v9448_v50, %v18861_v23 }
 0x4ed   :  { %9832 = vmatpush.bf16.msra.mxu1 %v14533_v51  ;;  %v14404_v51 = vld [vmem:[#allocation11 + $0x218] sm:$0xf]  ;;  %9791 = vmatpush.bf16.msrb.mxu2 %v15873_v61  ;;  %v6620_v61 = vperm.slane %v18885_v31, 4  ;;  %v15745_v5 = vor.u32 %v17852_v28, %v15742_v8  ;;  %v15678_v23 = vld [vmem:[#allocation11 + $0xc30] sm:$0xf0] }
 0x4ee   :  { %v14405_v22 = vor.u32 %v17521_v15, %v14404_v51  ;;  %v17817_v17 = vld [vmem:[#allocation11 + $0xb74] sm:$0xf0] }
 0x4ef   :  { %9820 = vmatpush.bf16.msra.mxu0 %v14245_v42  ;;  %v15806_v42 = vld [vmem:[#allocation11 + $0xd30] sm:$0xf0]  ;;  %v15589_v38 = vor.u32 %v17817_v17, %v15588_v59  ;;  %v17745_v51 = vld [vmem:[#allocation11 + $0x934] sm:$0xf0] }
 0x4f0   :  { %9700 = vmatpush.bf16.msrb.mxu3 %v16125_v24  ;;  %v15809_v37 = vor.u32 %v17868_v19, %v15806_v42  ;;  %v9539_v24 = vpop.f32.mrf.mxu2  ;;  %v15556_v15 = vld [vmem:[#allocation11 + $0xb18] sm:$0xf] }
 0x4f1   :  { %9833 = vmatpush.bf16.msra.mxu1 %v14501_v25  ;;  %v15397_v25 = vor.u32 %v17769_v44, %v15396_v47  ;;  %9792 = vmatpush.bf16.msrb.mxu2 %v15841_v4  ;;  %v17809_v57 = vld [vmem:[#allocation11 + $0xb34] sm:$0xf0]  ;;  %v18889_v47 = vadd.f32 %v9539_v24, %v18863_v35  ;;  %v17844_v4 = vld [vmem:[#allocation11 + $0xc54] sm:$0xf] }
 0x4f2   :  { %v15710_v44 = vld [vmem:[#allocation11 + $0xc70] sm:$0xf0]  ;;  %v15557_v42 = vor.u32 %v17809_v57, %v15556_v15  ;;  %v17729_v59 = vld [vmem:[#allocation11 + $0x8b4] sm:$0xf0] }
 0x4f3   :  { %9821 = vmatpush.bf16.msra.mxu0 %v14213_v58  ;;  %v15365_v58 = vor.u32 %v17761_v39, %v15364_v45  ;;  %v15713_v35 = vor.u32 %v17844_v4, %v15710_v44  ;;  %v17737_v45 = vld [vmem:[#allocation11 + $0x8f4] sm:$0xf0]  ;;  %v17692_v44 = vld [vmem:[#allocation11 + $0x794] sm:$0xf] }
 0x4f4   :  { %9701 = vmatpush.bf16.msrb.mxu3 %v16093_v12  ;;  %v17912_v12 = vld [vmem:[#allocation11 + $0xe6c] sm:$0xf0]  ;;  %v17801_v39 = vld [vmem:[#allocation11 + $0xaf4] sm:$0xf0] }
 0x4f5   :  { %9834 = vmatpush.bf16.msra.mxu1 %v14469_v36  ;;  %9793 = vmatpush.bf16.msrb.mxu2 %v15809_v37  ;;  %v15777_v36 = vor.u32 %v17860_v18, %v15774_v9  ;;  %v15524_v37 = vld [vmem:[#allocation11 + $0xad8] sm:$0xf] }
 0x4f6   :  { %v14884_v9 = vld [vmem:[#allocation11 + $0x5d8] sm:$0xf] }
 0x4f7   :  { %9822 = vmatpush.bf16.msra.mxu0 %v14181_v6  ;;  %v15333_v6 = vor.u32 %v17753_v62, %v15332_v30  ;;  %v15236_v30 = vld [vmem:[#allocation11 + $0x898] sm:$0xf]  ;;  %v15681_v62 = vor.u32 %v17836_v40, %v15678_v23  ;;  %v14374_v40 = vld [vmem:[#allocation11 + $0x1f8] sm:$0xf0] }
 0x4f8   :  { %9702 = vmatpush.bf16.msrb.mxu3 %v16061_v33  ;;  %v17641_v33 = vld [vmem:[#allocation11 + $0x5f4] sm:$0xf0]  ;;  %v15237_v24 = vor.u32 %v17729_v59, %v15236_v30  ;;  %v17573_v23 = vld [vmem:[#allocation11 + $0x3dc] sm:$0xf]  ;;  %v15038_v30 = vld [vmem:[#allocation11 + $0x730] sm:$0xf0] }
 0x4f9   :  { %9835 = vmatpush.bf16.msra.mxu1 %v14437_v41  ;;  %v15300_v41 = vld [vmem:[#allocation11 + $0x918] sm:$0xf]  ;;  %9794 = vmatpush.bf16.msrb.mxu2 %v15777_v36  ;;  %v9541_v36 = vpop.f32.mrf.mxu2  ;;  %v17501_v59 = vld [vmem:[#allocation11 + $0x19c] sm:$0xf] }
 0x4fa   :  { %v15301_v19 = vor.u32 %v17745_v51, %v15300_v41  ;;  %v15492_v17 = vld [vmem:[#allocation11 + $0xa98] sm:$0xf] }
 0x4fb   :  { %9823 = vmatpush.bf16.msra.mxu0 %v14149_v48  ;;  %v9617_v48 = vpop.f32.mrf.mxu0  ;;  %v17793_v28 = vld [vmem:[#allocation11 + $0xab4] sm:$0xf0] }
 0x4fc   :  { %9703 = vmatpush.bf16.msrb.mxu3 %v16029_v60  ;;  %v9618_v13 = vadd.f32 %v9617_v48, %v6620_v61  ;;  %v9450_v60 = vpop.f32.mrf.mxu3  ;;  %v17700_v61 = vld [vmem:[#allocation11 + $0x7d4] sm:$0xf]  ;;  %v14852_v29 = vld [vmem:[#allocation11 + $0x598] sm:$0xf] }
 0x4fd   :  { %9836 = vmatpush.bf16.msra.mxu1 %v14405_v22  ;;  %v15964_v22 = vld [vmem:[#allocation11 + $0xe50] sm:$0xf]  ;;  %v9630_v3 = vpop.f32.mrf.mxu1  ;;  %9795 = vmatpush.bf16.msrb.mxu2 %v15745_v5  ;;  %v17633_v20 = vld [vmem:[#allocation11 + $0x5b4] sm:$0xf0]  ;;  %v15493_v5 = vor.u32 %v17793_v28, %v15492_v17  ;;  %v14342_v17 = vld [vmem:[#allocation11 + $0x1b8] sm:$0xf0] }
 0x4fe   :  { %9824 = vmatmul.bf16.vlgmr.msra.gmra.mxu0 %v18706_v0  ;;  %v18893_v43 = vadd.f32 %v9630_v3, %v9618_v13  ;;  %v15965_v18 = vor.u32 %v17912_v12, %v15964_v22  ;;  %v15204_v51 = vld [vmem:[#allocation11 + $0x858] sm:$0xf]  ;;  %v17565_v28 = vld [vmem:[#allocation11 + $0x39c] sm:$0xf] }
 0x4ff   :  { %9868 = vmatpush.bf16.msrb.mxu0 %v15397_v25  ;;  %v15268_v25 = vld [vmem:[#allocation11 + $0x8d8] sm:$0xf]  ;;  %v14598_v60 = vld [vmem:[#allocation11 + $0x3b8] sm:$0xf0] }
 0x500   :  { %9837 = vmatmul.bf16.vlgmr.msra.gmra.mxu1 %v18708_v34  ;;  %9704 = vmatpush.bf16.msrb.mxu3 %v15997_v7  ;;  %v17721_v50 = vld [vmem:[#allocation11 + $0x874] sm:$0xf0]  ;;  %v14853_v7 = vor.u32 %v17633_v20, %v14852_v29  ;;  %v17668_v29 = vld [vmem:[#allocation11 + $0x6d4] sm:$0xf] }
 0x501   :  { %9881 = vmatpush.bf16.msrb.mxu1 %v15653_v46  ;;  %v9462_v46 = vadd.f32 %v18848_v1, %v9449_v14  ;;  %v15269_v1 = vor.u32 %v17737_v45, %v15268_v25  ;;  %9796 = vmatpush.bf16.msrb.mxu2 %v15713_v35  ;;  %v17785_v4 = vld [vmem:[#allocation11 + $0xa74] sm:$0xf0]  ;;  %v15102_v14 = vld [vmem:[#allocation11 + $0x7b0] sm:$0xf0] }
 0x502   :  { %v14820_v48 = vld [vmem:[#allocation11 + $0x558] sm:$0xf]  ;;  %v15105_v13 = vor.u32 %v17692_v44, %v15102_v14  ;;  %v17684_v35 = vld [vmem:[#allocation11 + $0x754] sm:$0xf] }
 0x503   :  { %9869 = vmatpush.bf16.msrb.mxu0 %v15365_v58  ;;  %v9475_v58 = vadd.f32 %v18850_v21, %v9462_v46  ;;  %v14885_v21 = vor.u32 %v17641_v33, %v14884_v9  ;;  %v9619_v41 = vpop.f32.mrf.mxu0  ;;  %v15172_v12 = vld [vmem:[#allocation11 + $0x818] sm:$0xf]  ;;  %v15070_v45 = vld [vmem:[#allocation11 + $0x770] sm:$0xf0] }
 0x504   :  { %9705 = vmatpush.bf16.msrb.mxu3 %v15965_v18  ;;  %v17713_v25 = vld [vmem:[#allocation11 + $0x834] sm:$0xf0]  ;;  %v14630_v18 = vld [vmem:[#allocation11 + $0x3f8] sm:$0xf0]  ;;  %v15006_v20 = vld [vmem:[#allocation11 + $0x6f0] sm:$0xf0]  ;;  %v14601_v41 = vor.u32 %v17565_v28, %v14598_v60 }
 0x505   :  { %9882 = vmatpush.bf16.msrb.mxu1 %v15621_v53  ;;  %v15525_v53 = vor.u32 %v17801_v39, %v15524_v37  ;;  %v18897_v8 = vadd.f32 %v18873_v63, %v9475_v58  ;;  %v9632_v15 = vpop.f32.mrf.mxu1  ;;  %9797 = vmatpush.bf16.msrb.mxu2 %v15681_v62  ;;  %v15460_v63 = vld [vmem:[#allocation11 + $0xa58] sm:$0xf]  ;;  %v17509_v39 = vld [vmem:[#allocation11 + $0x1dc] sm:$0xf]  ;;  %v15173_v58 = vor.u32 %v17713_v25, %v15172_v12  ;;  %v17660_v14 = vld [vmem:[#allocation11 + $0x694] sm:$0xf] }
 0x506   :  { %v15461_v22 = vor.u32 %v17785_v4, %v15460_v63  ;;  %v15428_v46 = vld [vmem:[#allocation11 + $0xa18] sm:$0xf]  ;;  %v14633_v36 = vor.u32 %v17573_v23, %v14630_v18  ;;  %v17557_v15 = vld [vmem:[#allocation11 + $0x35c] sm:$0xf]  ;;  %v15009_v4 = vor.u32 %v17668_v29, %v15006_v20  ;;  %v14942_v23 = vld [vmem:[#allocation11 + $0x670] sm:$0xf0] }
 0x507   :  { %9870 = vmatpush.bf16.msrb.mxu0 %v15333_v6  ;;  %v15134_v6 = vld [vmem:[#allocation11 + $0x7f0] sm:$0xf0]  ;;  %v17777_v3 = vld [vmem:[#allocation11 + $0xa34] sm:$0xf0]  ;;  %v14278_v12 = vld [vmem:[#allocation11 + $0x138] sm:$0xf0] }
 0x508   :  { %v15137_v57 = vor.u32 %v17700_v61, %v15134_v6  ;;  %9798 = vmatmul.bf16.vlgmr.msrb.gmra.mxu2 %v18773_v16  ;;  %v14788_v9 = vld [vmem:[#allocation11 + $0x518] sm:$0xf]  ;;  %v17549_v25 = vld [vmem:[#allocation11 + $0x31c] sm:$0xf]  ;;  %v17644_v28 = vld [vmem:[#allocation11 + $0x614] sm:$0xf] }
 0x509   :  { %9883 = vmatpush.bf16.msrb.mxu1 %v15589_v38  ;;  %v15933_v38 = vor.u32 %v17904_v27, %v15932_v26  ;;  %9842 = vmatpush.bf16.msra.mxu2 %v14885_v21  ;;  %v17617_v33 = vld [vmem:[#allocation11 + $0x534] sm:$0xf0]  ;;  %v14377_v26 = vor.u32 %v17509_v39, %v14374_v40  ;;  %v17676_v27 = vld [vmem:[#allocation11 + $0x714] sm:$0xf]  ;;  %v14214_v29 = vld [vmem:[#allocation11 + $0xb8] sm:$0xf0] }
 0x50a   :  { %v14789_v62 = vor.u32 %v17617_v33, %v14788_v9  ;;  %v14756_v61 = vld [vmem:[#allocation11 + $0x4d8] sm:$0xf]  ;;  %v15041_v21 = vor.u32 %v17676_v27, %v15038_v30  ;;  %v17652_v40 = vld [vmem:[#allocation11 + $0x654] sm:$0xf]  ;;  %v14502_v27 = vld [vmem:[#allocation11 + $0x2f8] sm:$0xf0] }
 0x50b   :  { %9871 = vmatpush.bf16.msrb.mxu0 %v15301_v19  ;;  %9706 = vmatpush.bf16.msrb.mxu3 %v15933_v38  ;;  %v17625_v19 = vld [vmem:[#allocation11 + $0x574] sm:$0xf0]  ;;  %v14345_v38 = vor.u32 %v17501_v59, %v14342_v17  ;;  %v14945_v59 = vor.u32 %v17652_v40, %v14942_v23  ;;  %v14910_v60 = vld [vmem:[#allocation11 + $0x630] sm:$0xf0]  ;;  %v17533_v20 = vld [vmem:[#allocation11 + $0x29c] sm:$0xf] }
 0x50c   :  { %v14821_v37 = vor.u32 %v17625_v19, %v14820_v48  ;;  %v17609_v6 = vld [vmem:[#allocation11 + $0x4f4] sm:$0xf0]  ;;  %v18903_v19 = vpop.f32.mrf.mxu2 }
 0x50d   :  { %9884 = vmatpush.bf16.msrb.mxu1 %v15557_v42  ;;  %v15205_v42 = vor.u32 %v17721_v50, %v15204_v51  ;;  %9843 = vmatpush.bf16.msra.mxu2 %v14853_v7  ;;  %v14310_v51 = vld [vmem:[#allocation11 + $0x178] sm:$0xf0]  ;;  %v14724_v50 = vld [vmem:[#allocation11 + $0x498] sm:$0xf]  ;;  %v14974_v7 = vld [vmem:[#allocation11 + $0x6b0] sm:$0xf0] }
 0x50e   :  { %9707 = vmatmul.bf16.vlgmr.msrb.gmra.mxu3 %v18802_v32  ;;  %v17601_v63 = vld [vmem:[#allocation11 + $0x4b4] sm:$0xf0] }
 0x50f   :  { %9872 = vmatpush.bf16.msrb.mxu0 %v15269_v1  ;;  %9751 = vmatpush.bf16.msra.mxu3 %v15137_v57  ;;  %v15429_v1 = vor.u32 %v17777_v3, %v15428_v46  ;;  %v14566_v57 = vld [vmem:[#allocation11 + $0x378] sm:$0xf0]  ;;  %v9500_v46 = vpop.f32.mrf.mxu3  ;;  %v14692_v3 = vld [vmem:[#allocation11 + $0x458] sm:$0xf] }
 0x510   :  { %v14569_v48 = vor.u32 %v17557_v15, %v14566_v57  ;;  %v17585_v30 = vld [vmem:[#allocation11 + $0x434] sm:$0xf0]  ;;  %v14913_v57 = vor.u32 %v17644_v28, %v14910_v60 }
 0x511   :  { %9885 = vmatpush.bf16.msrb.mxu1 %v15525_v53  ;;  %v15073_v53 = vor.u32 %v17684_v35, %v15070_v45  ;;  %9844 = vmatpush.bf16.msra.mxu2 %v14821_v37  ;;  %v17593_v35 = vld [vmem:[#allocation11 + $0x474] sm:$0xf0]  ;;  %v18906_v45 = vadd.f32 %v9500_v46, %v18897_v8  ;;  %v14977_v37 = vor.u32 %v17660_v14, %v14974_v7  ;;  %v17948_v46 = vld [vmem:[#allocation11 + $0xf94] sm:$0xf] }
 0x512   :  { %v14660_v8 = vld [vmem:[#allocation11 + $0x418] sm:$0xf] }
 0x513   :  { %9873 = vmatpush.bf16.msrb.mxu0 %v15237_v24  ;;  %9752 = vmatpush.bf16.msra.mxu3 %v15105_v13  ;;  %v14757_v24 = vor.u32 %v17609_v6, %v14756_v61  ;;  %v14534_v13 = vld [vmem:[#allocation11 + $0x338] sm:$0xf0]  ;;  %v17881_v40 = vld [vmem:[#allocation11 + $0xd74] sm:$0xf0] }
 0x514   :  { %v14537_v33 = vor.u32 %v17549_v25, %v14534_v13  ;;  %v9593_v6 = vpop.f32.mrf.mxu2  ;;  %v14438_v25 = vld [vmem:[#allocation11 + $0x278] sm:$0xf0]  ;;  %v16126_v13 = vld [vmem:[#allocation11 + $0xfb0] sm:$0xf0]  ;;  %v15812_v28 = vld [vmem:[#allocation11 + $0xd18] sm:$0xf] }
 0x515   :  { %9886 = vmatpush.bf16.msrb.mxu1 %v15493_v5  ;;  %9845 = vmatpush.bf16.msra.mxu2 %v14789_v62  ;;  %v17493_v5 = vld [vmem:[#allocation11 + $0x15c] sm:$0xf]  ;;  %v17897_v62 = vld [vmem:[#allocation11 + $0xdf4] sm:$0xf0] }
 0x516   :  { %v14313_v44 = vor.u32 %v17493_v5, %v14310_v51  ;;  %v17956_v5 = vld [vmem:[#allocation11 + $0xfd4] sm:$0xf]  ;;  %v17873_v60 = vld [vmem:[#allocation11 + $0xd34] sm:$0xf0] }
 0x517   :  { %9874 = vmatpush.bf16.msrb.mxu0 %v15205_v42  ;;  %9753 = vmatpush.bf16.msra.mxu3 %v15073_v53  ;;  %v14725_v42 = vor.u32 %v17601_v63, %v14724_v50  ;;  %v14246_v53 = vld [vmem:[#allocation11 + $0xf8] sm:$0xf0]  ;;  %v16158_v51 = vld [vmem:[#allocation11 + $0xff0] sm:$0xf0]  ;;  %v15876_v63 = vld [vmem:[#allocation11 + $0xd98] sm:$0xf] }
 0x519   :  { %9887 = vmatpush.bf16.msrb.mxu1 %v15461_v22  ;;  %9846 = vmatpush.bf16.msra.mxu2 %v14757_v24  ;;  %v17485_v22 = vld [vmem:[#allocation11 + $0x11c] sm:$0xf] }
 0x51a   :  { %v14281_v39 = vor.u32 %v17485_v22, %v14278_v12  ;;  %v14470_v24 = vld [vmem:[#allocation11 + $0x2b8] sm:$0xf0] }
 0x51b   :  { %9875 = vmatpush.bf16.msrb.mxu0 %v15173_v58  ;;  %9754 = vmatpush.bf16.msra.mxu3 %v15041_v21  ;;  %v18908_v18 = vpop.f32.mrf.mxu0  ;;  %v14693_v58 = vor.u32 %v17593_v35, %v14692_v3  ;;  %v14661_v21 = vor.u32 %v17585_v30, %v14660_v8  ;;  %v14473_v7 = vor.u32 %v17533_v20, %v14470_v24  ;;  %v14182_v22 = vld [vmem:[#allocation11 + $0x78] sm:$0xf0]  ;;  %v16062_v20 = vld [vmem:[#allocation11 + $0xf30] sm:$0xf0] }
 0x51c   :  { %v17525_v12 = vld [vmem:[#allocation11 + $0x25c] sm:$0xf]  ;;  %v15813_v24 = vor.u32 %v17873_v60, %v15812_v28  ;;  %v17908_v28 = vld [vmem:[#allocation11 + $0xe54] sm:$0xf] }
 0x51d   :  { %9888 = vmatpush.bf16.msrb.mxu1 %v15429_v1  ;;  %v18910_v9 = vpop.f32.mrf.mxu1  ;;  %9847 = vmatpush.bf16.msra.mxu2 %v14725_v42  ;;  %v17477_v1 = vld [vmem:[#allocation11 + $0xdc] sm:$0xf]  ;;  %v14441_v23 = vor.u32 %v17525_v12, %v14438_v25  ;;  %v15966_v60 = vld [vmem:[#allocation11 + $0xe70] sm:$0xf0] }
 0x51e   :  { %9876 = vmatmul.bf16.vlgmr.msrb.gmra.mxu0 %v18731_v10  ;;  %v14249_v17 = vor.u32 %v17477_v1, %v14246_v53  ;;  %v17461_v42 = vld [vmem:[#allocation11 + $0x5c] sm:$0xf] }
 0x51f   :  { %9920 = vmatpush.bf16.msra.mxu0 %v14377_v26  ;;  %9755 = vmatpush.bf16.msra.mxu3 %v15009_v4  ;;  %v17541_v26 = vld [vmem:[#allocation11 + $0x2dc] sm:$0xf]  ;;  %v17889_v4 = vld [vmem:[#allocation11 + $0xdb4] sm:$0xf0]  ;;  %v14185_v35 = vor.u32 %v17461_v42, %v14182_v22 }
 0x520   :  { %9889 = vmatmul.bf16.vlgmr.msrb.gmra.mxu1 %v18743_v2  ;;  %v14505_v61 = vor.u32 %v17541_v26, %v14502_v27  ;;  %v15877_v3 = vor.u32 %v17889_v4, %v15876_v63  ;;  %v17517_v1 = vld [vmem:[#allocation11 + $0x21c] sm:$0xf]  ;;  %v17940_v26 = vld [vmem:[#allocation11 + $0xf54] sm:$0xf] }
 0x521   :  { %9933 = vmatpush.bf16.msra.mxu1 %v14633_v36  ;;  %v15908_v36 = vld [vmem:[#allocation11 + $0xdd8] sm:$0xf]  ;;  %9848 = vmatpush.bf16.msra.mxu2 %v14693_v58  ;;  %v14150_v58 = vld [vmem:[#allocation11 + $0x38] sm:$0xf0]  ;;  %v16094_v27 = vld [vmem:[#allocation11 + $0xf70] sm:$0xf0] }
 0x522   :  { %v15909_v15 = vor.u32 %v17897_v62, %v15908_v36  ;;  %v14406_v53 = vld [vmem:[#allocation11 + $0x238] sm:$0xf0]  ;;  %v16097_v6 = vor.u32 %v17940_v26, %v16094_v27 }
 0x523   :  { %9921 = vmatpush.bf16.msra.mxu0 %v14345_v38  ;;  %9756 = vmatpush.bf16.msra.mxu3 %v14977_v37  ;;  %v17469_v38 = vld [vmem:[#allocation11 + $0x9c] sm:$0xf] }
 0x524   :  { %v14217_v50 = vor.u32 %v17469_v38, %v14214_v29  ;;  %v17453_v37 = vld [vmem:[#allocation11 + $0x1c] sm:$0xf]  ;;  %v17932_v29 = vld [vmem:[#allocation11 + $0xf14] sm:$0xf] }
 0x525   :  { %9934 = vmatpush.bf16.msra.mxu1 %v14601_v41  ;;  %v9502_v41 = vpop.f32.mrf.mxu3  ;;  %v9684_v14 = vpop.f32.mrf.mxu1  ;;  %9849 = vmatpush.bf16.msra.mxu2 %v14661_v21  ;;  %v17765_v8 = vld [vmem:[#allocation11 + $0x9dc] sm:$0xf]  ;;  %v16065_v63 = vor.u32 %v17932_v29, %v16062_v20 }
 0x526   :  { %v15398_v36 = vld [vmem:[#allocation11 + $0x9f8] sm:$0xf0]  ;;  %v17924_v14 = vld [vmem:[#allocation11 + $0xed4] sm:$0xf] }
 0x527   :  { %9922 = vmatpush.bf16.msra.mxu0 %v14313_v44  ;;  %9757 = vmatpush.bf16.msra.mxu3 %v14945_v59  ;;  %v9671_v44 = vpop.f32.mrf.mxu0  ;;  %v17829_v62 = vld [vmem:[#allocation11 + $0xbdc] sm:$0xf]  ;;  %v15401_v21 = vor.u32 %v17765_v8, %v15398_v36  ;;  %v15716_v8 = vld [vmem:[#allocation11 + $0xc58] sm:$0xf] }
 0x528   :  { %9850 = vmatmul.bf16.vlgmr.msra.gmra.mxu2 %v18726_v54  ;;  %v15654_v59 = vld [vmem:[#allocation11 + $0xbf8] sm:$0xf0] }
 0x529   :  { %9935 = vmatpush.bf16.msra.mxu1 %v14569_v48  ;;  %v16161_v48 = vor.u32 %v17956_v5, %v16158_v51  ;;  %9894 = vmatpush.bf16.msrb.mxu2 %v15909_v15  ;;  %v15657_v38 = vor.u32 %v17829_v62, %v15654_v59  ;;  %v17757_v41 = vld [vmem:[#allocation11 + $0x99c] sm:$0xf] }
 0x52a   :  { %v15366_v5 = vld [vmem:[#allocation11 + $0x9b8] sm:$0xf0] }
 0x52b   :  { %9923 = vmatpush.bf16.msra.mxu0 %v14281_v39  ;;  %9758 = vmatpush.bf16.msra.mxu3 %v14913_v57  ;;  %v15844_v39 = vld [vmem:[#allocation11 + $0xd58] sm:$0xf]  ;;  %v17821_v51 = vld [vmem:[#allocation11 + $0xb9c] sm:$0xf]  ;;  %v15369_v4 = vor.u32 %v17757_v41, %v15366_v5 }
 0x52c   :  { %v15845_v30 = vor.u32 %v17881_v40, %v15844_v39  ;;  %v15622_v15 = vld [vmem:[#allocation11 + $0xbb8] sm:$0xf0]  ;;  %v15780_v57 = vld [vmem:[#allocation11 + $0xcd8] sm:$0xf]  ;;  %v17916_v40 = vld [vmem:[#allocation11 + $0xe94] sm:$0xf] }
 0x52d   :  { %9936 = vmatpush.bf16.msra.mxu1 %v14537_v33  ;;  %v16129_v33 = vor.u32 %v17948_v46, %v16126_v13  ;;  %9895 = vmatpush.bf16.msrb.mxu2 %v15877_v3  ;;  %v15625_v44 = vor.u32 %v17821_v51, %v15622_v15  ;;  %v15334_v22 = vld [vmem:[#allocation11 + $0x978] sm:$0xf0]  ;;  %v15748_v46 = vld [vmem:[#allocation11 + $0xc98] sm:$0xf]  ;;  %v15969_v51 = vor.u32 %v17908_v28, %v15966_v60 }
 0x52e   :  { %9759 = vmatmul.bf16.vlgmr.msra.gmra.mxu3 %v18747_v56  ;;  %v17813_v12 = vld [vmem:[#allocation11 + $0xb5c] sm:$0xf]  ;;  %v17857_v13 = vld [vmem:[#allocation11 + $0xcb4] sm:$0xf0] }
 0x52f   :  { %9924 = vmatpush.bf16.msra.mxu0 %v14249_v17  ;;  %9803 = vmatpush.bf16.msrb.mxu3 %v16161_v48  ;;  %v14153_v17 = vor.u32 %v17453_v37, %v14150_v58  ;;  %v17749_v48 = vld [vmem:[#allocation11 + $0x95c] sm:$0xf]  ;;  %v15749_v58 = vor.u32 %v17857_v13, %v15748_v46  ;;  %v15140_v13 = vld [vmem:[#allocation11 + $0x7d8] sm:$0xf] }
 0x530   :  { %v15590_v25 = vld [vmem:[#allocation11 + $0xb78] sm:$0xf0]  ;;  %v15337_v37 = vor.u32 %v17749_v48, %v15334_v22 }
 0x531   :  { %9937 = vmatpush.bf16.msra.mxu1 %v14505_v61  ;;  %v14409_v61 = vor.u32 %v17517_v1, %v14406_v53  ;;  %9896 = vmatpush.bf16.msrb.mxu2 %v15845_v30  ;;  %v15593_v39 = vor.u32 %v17813_v12, %v15590_v25  ;;  %v15302_v1 = vld [vmem:[#allocation11 + $0x938] sm:$0xf0]  ;;  %v17849_v30 = vld [vmem:[#allocation11 + $0xc74] sm:$0xf0] }
 0x532   :  { %v17805_v53 = vld [vmem:[#allocation11 + $0xb1c] sm:$0xf] }
 0x533   :  { %9925 = vmatpush.bf16.msra.mxu0 %v14217_v50  ;;  %9804 = vmatpush.bf16.msrb.mxu3 %v16129_v33  ;;  %v17865_v50 = vld [vmem:[#allocation11 + $0xcf4] sm:$0xf0]  ;;  %v9643_v33 = vpop.f32.mrf.mxu2  ;;  %v15558_v26 = vld [vmem:[#allocation11 + $0xb38] sm:$0xf0] }
 0x534   :  { %v15781_v42 = vor.u32 %v17865_v50, %v15780_v57  ;;  %v18918_v27 = vadd.f32 %v9643_v33, %v18893_v43  ;;  %v15717_v43 = vor.u32 %v17849_v30, %v15716_v8  ;;  %v15270_v29 = vld [vmem:[#allocation11 + $0x8f8] sm:$0xf0]  ;;  %v17697_v8 = vld [vmem:[#allocation11 + $0x7b4] sm:$0xf0] }
 0x535   :  { %9938 = vmatpush.bf16.msra.mxu1 %v14473_v7  ;;  %v16030_v7 = vld [vmem:[#allocation11 + $0xef0] sm:$0xf0]  ;;  %9897 = vmatpush.bf16.msrb.mxu2 %v15813_v24  ;;  %v17797_v20 = vld [vmem:[#allocation11 + $0xadc] sm:$0xf]  ;;  %v15684_v24 = vld [vmem:[#allocation11 + $0xc18] sm:$0xf] }
 0x536   :  { %v16033_v3 = vor.u32 %v17924_v14, %v16030_v7  ;;  %v15526_v41 = vld [vmem:[#allocation11 + $0xaf8] sm:$0xf0] }
 0x537   :  { %9926 = vmatpush.bf16.msra.mxu0 %v14185_v35  ;;  %9805 = vmatpush.bf16.msrb.mxu3 %v16097_v6  ;;  %v6621_v35 = vperm.slane %v18885_v31, 5  ;;  %v17637_v15 = vld [vmem:[#allocation11 + $0x5dc] sm:$0xf] }
 0x538   :  { %v14886_v57 = vld [vmem:[#allocation11 + $0x5f8] sm:$0xf0] }
 0x539   :  { %9939 = vmatpush.bf16.msra.mxu1 %v14441_v23  ;;  %v15998_v23 = vld [vmem:[#allocation11 + $0xeb0] sm:$0xf0]  ;;  %9898 = vmatpush.bf16.msrb.mxu2 %v15781_v42  ;;  %v17725_v14 = vld [vmem:[#allocation11 + $0x89c] sm:$0xf] }
 0x53a   :  { %v16001_v36 = vor.u32 %v17916_v40, %v15998_v23  ;;  %v15238_v42 = vld [vmem:[#allocation11 + $0x8b8] sm:$0xf0] }
 0x53b   :  { %9927 = vmatpush.bf16.msra.mxu0 %v14153_v17  ;;  %9806 = vmatpush.bf16.msrb.mxu3 %v16065_v63  ;;  %v9721_v62 = vpop.f32.mrf.mxu0  ;;  %v15561_v17 = vor.u32 %v17805_v53, %v15558_v26  ;;  %v15529_v63 = vor.u32 %v17797_v20, %v15526_v41  ;;  %v9645_v7 = vpop.f32.mrf.mxu2  ;;  %v17789_v22 = vld [vmem:[#allocation11 + $0xa9c] sm:$0xf]  ;;  %v15241_v23 = vor.u32 %v17725_v14, %v15238_v42  ;;  %v17977_v20 = vld [vmem:[#allocation14 + $0x74] sm:$0xf0]  ;;  %v16292_v41 = vld [vmem:[#allocation14 + $0xf0] sm:$0xf] }
 0x53c   :  { %v15494_v12 = vld [vmem:[#allocation11 + $0xab8] sm:$0xf0]  ;;  %v16220_v7 = vld [vmem:[#allocation14 + $0x60] sm:$0xf] }
 0x53d   :  { %9940 = vmatpush.bf16.msra.mxu1 %v14409_v61  ;;  %v17733_v61 = vld [vmem:[#allocation11 + $0x8dc] sm:$0xf]  ;;  %9899 = vmatpush.bf16.msrb.mxu2 %v15749_v58  ;;  %v16284_v42 = vld [vmem:[#allocation14 + $0xe0] sm:$0xf] }
 0x53e   :  { %9928 = vmatmul.bf16.vlgmr.msra.gmra.mxu0 %v18706_v0  ;;  %v17741_v0 = vld [vmem:[#allocation11 + $0x91c] sm:$0xf] }
 0x53f   :  { %9972 = vmatpush.bf16.msrb.mxu0 %v15401_v21  ;;  %9807 = vmatpush.bf16.msrb.mxu3 %v16033_v3  ;;  %v15305_v59 = vor.u32 %v17741_v0, %v15302_v1  ;;  %v9722_v21 = vadd.f32 %v9721_v62, %v6621_v35  ;;  %v17705_v3 = vld [vmem:[#allocation11 + $0x7f4] sm:$0xf0]  ;;  %v15497_v0 = vor.u32 %v17789_v22, %v15494_v12  ;;  %v17717_v33 = vld [vmem:[#allocation11 + $0x85c] sm:$0xf]  ;;  %v17991_v22 = vld [vmem:[#allocation14 + $0xe4] sm:$0xf0] }
 0x540   :  { %9941 = vmatmul.bf16.vlgmr.msra.gmra.mxu1 %v18708_v34  ;;  %v9552_v34 = vpop.f32.mrf.mxu3  ;;  %v15141_v1 = vor.u32 %v17705_v3, %v15140_v13  ;;  %v15206_v53 = vld [vmem:[#allocation11 + $0x878] sm:$0xf0] }
 0x541   :  { %9985 = vmatpush.bf16.msrb.mxu1 %v15657_v38  ;;  %v9553_v31 = vadd.f32 %v9552_v34, %v18889_v47  ;;  %v9734_v38 = vpop.f32.mrf.mxu1  ;;  %v17841_v47 = vld [vmem:[#allocation11 + $0xc34] sm:$0xf0]  ;;  %9900 = vmatpush.bf16.msrb.mxu2 %v15717_v43  ;;  %v15462_v26 = vld [vmem:[#allocation11 + $0xa78] sm:$0xf0]  ;;  %v15209_v62 = vor.u32 %v17717_v33, %v15206_v53  ;;  %v17989_v33 = vld [vmem:[#allocation14 + $0xd4] sm:$0xf0] }
 0x542   :  { %v18922_v5 = vadd.f32 %v9734_v38, %v9722_v21  ;;  %v15685_v48 = vor.u32 %v17841_v47, %v15684_v24  ;;  %v15108_v34 = vld [vmem:[#allocation11 + $0x798] sm:$0xf]  ;;  %v15174_v28 = vld [vmem:[#allocation11 + $0x838] sm:$0xf0]  ;;  %v17993_v24 = vld [vmem:[#allocation14 + $0xf4] sm:$0xf0] }
 0x543   :  { %9973 = vmatpush.bf16.msrb.mxu0 %v15369_v4  ;;  %v9566_v6 = vadd.f32 %v18877_v11, %v9553_v31  ;;  %9808 = vmatpush.bf16.msrb.mxu3 %v16001_v36  ;;  %v15273_v11 = vor.u32 %v17733_v61, %v15270_v29  ;;  %v17900_v4 = vld [vmem:[#allocation11 + $0xe14] sm:$0xf]  ;;  %v9723_v40 = vpop.f32.mrf.mxu0  ;;  %v17621_v31 = vld [vmem:[#allocation11 + $0x55c] sm:$0xf]  ;;  %v15109_v61 = vor.u32 %v17697_v8, %v15108_v34  ;;  %v15076_v21 = vld [vmem:[#allocation11 + $0x758] sm:$0xf] }
 0x544   :  { %v14822_v36 = vld [vmem:[#allocation11 + $0x578] sm:$0xf0]  ;;  %v17689_v38 = vld [vmem:[#allocation11 + $0x774] sm:$0xf0] }
 0x545   :  { %9986 = vmatpush.bf16.msrb.mxu1 %v15625_v44  ;;  %v9579_v50 = vadd.f32 %v18879_v55, %v9566_v6  ;;  %v15934_v44 = vld [vmem:[#allocation11 + $0xe30] sm:$0xf0]  ;;  %v14889_v55 = vor.u32 %v17637_v15, %v14886_v57  ;;  %9901 = vmatpush.bf16.msrb.mxu2 %v15685_v48  ;;  %v17773_v60 = vld [vmem:[#allocation11 + $0xa1c] sm:$0xf]  ;;  %v14825_v43 = vor.u32 %v17621_v31, %v14822_v36  ;;  %v16228_v29 = vld [vmem:[#allocation14 + $0x70] sm:$0xf] }
 0x546   :  { %v15937_v35 = vor.u32 %v17900_v4, %v15934_v44  ;;  %v15430_v6 = vld [vmem:[#allocation11 + $0xa38] sm:$0xf0]  ;;  %v17681_v4 = vld [vmem:[#allocation11 + $0x734] sm:$0xf0]  ;;  %v16293_v44 = vor.u32 %v17993_v24, %v16292_v41  ;;  %v17975_v48 = vld [vmem:[#allocation14 + $0x64] sm:$0xf0] }
 0x547   :  { %9974 = vmatpush.bf16.msrb.mxu0 %v15337_v37  ;;  %v18926_v25 = vadd.f32 %v18903_v19, %v9579_v50  ;;  %9809 = vmatpush.bf16.msrb.mxu3 %v15969_v51  ;;  %v17629_v37 = vld [vmem:[#allocation11 + $0x59c] sm:$0xf]  ;;  %v15433_v57 = vor.u32 %v17773_v60, %v15430_v6  ;;  %v15077_v50 = vor.u32 %v17689_v38, %v15076_v21  ;;  %v16212_v40 = vld [vmem:[#allocation14 + $0x50] sm:$0xf]  ;;  %v16204_v36 = vld [vmem:[#allocation14 + $0x40] sm:$0xf] }
 0x548   :  { %v9554_v46 = vpop.f32.mrf.mxu3  ;;  %v17781_v19 = vld [vmem:[#allocation11 + $0xa5c] sm:$0xf]  ;;  %9902 = vmatmul.bf16.vlgmr.msrb.gmra.mxu2 %v18773_v16  ;;  %v16221_v3 = vor.u32 %v17975_v48, %v16220_v7  ;;  %v17665_v34 = vld [vmem:[#allocation11 + $0x6b4] sm:$0xf0] }
 0x549   :  { %9987 = vmatpush.bf16.msrb.mxu1 %v15593_v39  ;;  %v14854_v39 = vld [vmem:[#allocation11 + $0x5b8] sm:$0xf0]  ;;  %v9736_v58 = vpop.f32.mrf.mxu1  ;;  %9946 = vmatpush.bf16.msra.mxu2 %v14889_v55  ;;  %v15012_v55 = vld [vmem:[#allocation11 + $0x6d8] sm:$0xf] }
 0x54a   :  { %v14857_v30 = vor.u32 %v17629_v37, %v14854_v39  ;;  %v17613_v47 = vld [vmem:[#allocation11 + $0x51c] sm:$0xf]  ;;  %v16285_v37 = vor.u32 %v17991_v22, %v16284_v42  ;;  %v14948_v21 = vld [vmem:[#allocation11 + $0x658] sm:$0xf]  ;;  %v16188_v22 = vld [vmem:[#allocation14 + $0x20] sm:$0xf] }
 0x54b   :  { %9975 = vmatpush.bf16.msrb.mxu0 %v15305_v59  ;;  %9810 = vmatpush.bf16.msrb.mxu3 %v15937_v35  ;;  %v15465_v59 = vor.u32 %v17781_v19, %v15462_v26  ;;  %v14790_v51 = vld [vmem:[#allocation11 + $0x538] sm:$0xf0]  ;;  %v17673_v35 = vld [vmem:[#allocation11 + $0x6f4] sm:$0xf0] }
 0x54c   :  { %v14793_v14 = vor.u32 %v17613_v47, %v14790_v51  ;;  %v17605_v12 = vld [vmem:[#allocation11 + $0x4dc] sm:$0xf]  ;;  %v15013_v53 = vor.u32 %v17673_v35, %v15012_v55  ;;  %v14980_v26 = vld [vmem:[#allocation11 + $0x698] sm:$0xf]  ;;  %v17969_v47 = vld [vmem:[#allocation14 + $0x34] sm:$0xf0] }
 0x54d   :  { %9988 = vmatpush.bf16.msrb.mxu1 %v15561_v17  ;;  %v17709_v17 = vld [vmem:[#allocation11 + $0x81c] sm:$0xf]  ;;  %9947 = vmatpush.bf16.msra.mxu2 %v14857_v30  ;;  %v18932_v30 = vpop.f32.mrf.mxu2  ;;  %v17657_v38 = vld [vmem:[#allocation11 + $0x674] sm:$0xf0] }
 0x54e   :  { %9811 = vmatmul.bf16.vlgmr.msrb.gmra.mxu3 %v18802_v32  ;;  %v15177_v15 = vor.u32 %v17709_v17, %v15174_v28  ;;  %v14758_v46 = vld [vmem:[#allocation11 + $0x4f8] sm:$0xf0]  ;;  %v16196_v24 = vld [vmem:[#allocation14 + $0x30] sm:$0xf] }
 0x54f   :  { %9976 = vmatpush.bf16.msrb.mxu0 %v15273_v11  ;;  %9855 = vmatpush.bf16.msra.mxu3 %v15141_v1  ;;  %v16229_v11 = vor.u32 %v17977_v20, %v16228_v29  ;;  %v14761_v39 = vor.u32 %v17605_v12, %v14758_v46  ;;  %v17597_v58 = vld [vmem:[#allocation11 + $0x49c] sm:$0xf]  ;;  %v16260_v51 = vld [vmem:[#allocation14 + $0xb0] sm:$0xf]  ;;  %v17967_v12 = vld [vmem:[#allocation14 + $0x24] sm:$0xf0] }
 0x550   :  { %v14726_v1 = vld [vmem:[#allocation11 + $0x4b8] sm:$0xf0]  ;;  %v16252_v46 = vld [vmem:[#allocation14 + $0xa0] sm:$0xf]  ;;  %v16164_v55 = vld [vmem:[#allocation11 + $0xfd8] sm:$0xf] }
 0x551   :  { %9989 = vmatpush.bf16.msrb.mxu1 %v15529_v63  ;;  %v15044_v63 = vld [vmem:[#allocation11 + $0x718] sm:$0xf]  ;;  %9948 = vmatpush.bf16.msra.mxu2 %v14825_v43  ;;  %v14729_v31 = vor.u32 %v17597_v58, %v14726_v1  ;;  %v17589_v17 = vld [vmem:[#allocation11 + $0x45c] sm:$0xf] }
 0x552   :  { %v15045_v13 = vor.u32 %v17681_v4, %v15044_v63  ;;  %v14694_v28 = vld [vmem:[#allocation11 + $0x478] sm:$0xf0]  ;;  %v14949_v63 = vor.u32 %v17657_v38, %v14948_v21  ;;  %v16197_v4 = vor.u32 %v17969_v47, %v16196_v24  ;;  %v17961_v35 = vld [vmem:[#allocation11 + $0xff4] sm:$0xf0]  ;;  %v16236_v21 = vld [vmem:[#allocation14 + $0x80] sm:$0xf] }
 0x553   :  { %9977 = vmatpush.bf16.msrb.mxu0 %v15241_v23  ;;  %9856 = vmatpush.bf16.msra.mxu3 %v15109_v61  ;;  %v17973_v23 = vld [vmem:[#allocation14 + $0x54] sm:$0xf0]  ;;  %v14981_v61 = vor.u32 %v17665_v34, %v14980_v26  ;;  %v14697_v41 = vor.u32 %v17589_v17, %v14694_v28  ;;  %v16244_v34 = vld [vmem:[#allocation14 + $0x90] sm:$0xf]  ;;  %v17979_v38 = vld [vmem:[#allocation14 + $0x84] sm:$0xf0] }
 0x554   :  { %v16213_v19 = vor.u32 %v17973_v23, %v16212_v40  ;;  %v16189_v40 = vor.u32 %v17967_v12, %v16188_v22  ;;  %v17885_v23 = vld [vmem:[#allocation11 + $0xd9c] sm:$0xf]  ;;  %v17965_v26 = vld [vmem:[#allocation14 + $0x14] sm:$0xf0]  ;;  %v16484_v47 = vld [vmem:[#allocation14 + $0x270] sm:$0xf] }
 0x555   :  { %9990 = vmatpush.bf16.msrb.mxu1 %v15497_v0  ;;  %9949 = vmatpush.bf16.msra.mxu2 %v14793_v14  ;;  %v16276_v0 = vld [vmem:[#allocation14 + $0xd0] sm:$0xf]  ;;  %v9697_v48 = vpop.f32.mrf.mxu2  ;;  %v17861_v22 = vld [vmem:[#allocation11 + $0xcdc] sm:$0xf] }
 0x556   :  { %v16277_v8 = vor.u32 %v17989_v33, %v16276_v0  ;;  %v17649_v14 = vld [vmem:[#allocation11 + $0x634] sm:$0xf0]  ;;  %v15878_v0 = vld [vmem:[#allocation11 + $0xdb8] sm:$0xf0]  ;;  %v16476_v48 = vld [vmem:[#allocation14 + $0x260] sm:$0xf] }
 0x557   :  { %9978 = vmatpush.bf16.msrb.mxu0 %v15209_v62  ;;  %9857 = vmatpush.bf16.msra.mxu3 %v15077_v50  ;;  %v17971_v62 = vld [vmem:[#allocation14 + $0x44] sm:$0xf0]  ;;  %v17893_v50 = vld [vmem:[#allocation11 + $0xddc] sm:$0xf] }
 0x558   :  { %v16205_v6 = vor.u32 %v17971_v62, %v16204_v36  ;;  %v17953_v36 = vld [vmem:[#allocation11 + $0xfb4] sm:$0xf0]  ;;  %v15881_v62 = vor.u32 %v17885_v23, %v15878_v0  ;;  %v15782_v12 = vld [vmem:[#allocation11 + $0xcf8] sm:$0xf0] }
 0x559   :  { %9991 = vmatpush.bf16.msrb.mxu1 %v15465_v59  ;;  %9950 = vmatpush.bf16.msra.mxu2 %v14761_v39  ;;  %v9604_v59 = vpop.f32.mrf.mxu3  ;;  %v15750_v23 = vld [vmem:[#allocation11 + $0xcb8] sm:$0xf0] }
 0x55a   :  { %v18935_v60 = vadd.f32 %v9604_v59, %v18926_v25  ;;  %v17581_v25 = vld [vmem:[#allocation11 + $0x41c] sm:$0xf] }
 0x55b   :  { %9979 = vmatpush.bf16.msrb.mxu0 %v15177_v15  ;;  %9858 = vmatpush.bf16.msra.mxu3 %v15045_v13  ;;  %v18937_v43 = vpop.f32.mrf.mxu0  ;;  %v17985_v15 = vld [vmem:[#allocation14 + $0xb4] sm:$0xf0]  ;;  %v17877_v59 = vld [vmem:[#allocation11 + $0xd5c] sm:$0xf] }
 0x55c   :  { %v16261_v7 = vor.u32 %v17985_v15, %v16260_v51  ;;  %v18041_v51 = vld [vmem:[#allocation14 + $0x274] sm:$0xf0] }
 0x55d   :  { %9992 = vmatpush.bf16.msrb.mxu1 %v15433_v57  ;;  %v18939_v29 = vpop.f32.mrf.mxu1  ;;  %9951 = vmatpush.bf16.msra.mxu2 %v14729_v31  ;;  %v14662_v57 = vld [vmem:[#allocation11 + $0x438] sm:$0xf0]  ;;  %v16132_v31 = vld [vmem:[#allocation11 + $0xf98] sm:$0xf] }
 0x55e   :  { %9980 = vmatmul.bf16.vlgmr.msrb.gmra.mxu0 %v18731_v10  ;;  %v16268_v10 = vld [vmem:[#allocation14 + $0xc0] sm:$0xf]  ;;  %v14665_v42 = vor.u32 %v17581_v25, %v14662_v57  ;;  %v16133_v28 = vor.u32 %v17953_v36, %v16132_v31  ;;  %v17869_v25 = vld [vmem:[#allocation11 + $0xd1c] sm:$0xf]  ;;  %v18035_v31 = vld [vmem:[#allocation14 + $0x244] sm:$0xf0] }
 0x55f   :  { %10814 = vmatpush.bf16.msra.mxu0 %v16229_v11  ;;  %9859 = vmatpush.bf16.msra.mxu3 %v15013_v53  ;;  %v15910_v11 = vld [vmem:[#allocation11 + $0xdf8] sm:$0xf0]  ;;  %v16165_v53 = vor.u32 %v17961_v35, %v16164_v55  ;;  %v17929_v55 = vld [vmem:[#allocation11 + $0xef4] sm:$0xf0]  ;;  %v15785_v35 = vor.u32 %v17861_v22, %v15782_v12 }
 0x560   :  { %9993 = vmatmul.bf16.vlgmr.msrb.gmra.mxu1 %v18743_v2  ;;  %v17987_v2 = vld [vmem:[#allocation14 + $0xc4] sm:$0xf0]  ;;  %v15814_v57 = vld [vmem:[#allocation11 + $0xd38] sm:$0xf0] }
 0x561   :  { %10827 = vmatpush.bf16.msra.mxu1 %v16293_v44  ;;  %v16269_v20 = vor.u32 %v17987_v2, %v16268_v10  ;;  %v14916_v44 = vld [vmem:[#allocation11 + $0x618] sm:$0xf]  ;;  %9952 = vmatpush.bf16.msra.mxu2 %v14697_v41  ;;  %v9606_v13 = vpop.f32.mrf.mxu3  ;;  %v15846_v2 = vld [vmem:[#allocation11 + $0xd78] sm:$0xf0] }
 0x562   :  { %v14917_v39 = vor.u32 %v17649_v14, %v14916_v44  ;;  %v17945_v41 = vld [vmem:[#allocation11 + $0xf74] sm:$0xf0]  ;;  %v15849_v24 = vor.u32 %v17877_v59, %v15846_v2  ;;  %v15718_v59 = vld [vmem:[#allocation11 + $0xc78] sm:$0xf0] }
 0x563   :  { %10815 = vmatpush.bf16.msra.mxu0 %v16221_v3  ;;  %9860 = vmatpush.bf16.msra.mxu3 %v14981_v61  ;;  %v17983_v3 = vld [vmem:[#allocation14 + $0xa4] sm:$0xf0]  ;;  %v9775_v33 = vpop.f32.mrf.mxu0  ;;  %v16172_v61 = vld [vmem:[#allocation14] sm:$0xf]  ;;  %v16068_v44 = vld [vmem:[#allocation11 + $0xf18] sm:$0xf] }
 0x564   :  { %v16253_v1 = vor.u32 %v17983_v3, %v16252_v46  ;;  %v17937_v14 = vld [vmem:[#allocation11 + $0xf34] sm:$0xf0]  ;;  %v17701_v22 = vld [vmem:[#allocation11 + $0x7dc] sm:$0xf] }
 0x565   :  { %10828 = vmatpush.bf16.msra.mxu1 %v16285_v37  ;;  %v15913_v37 = vor.u32 %v17893_v50, %v15910_v11  ;;  %v9788_v58 = vpop.f32.mrf.mxu1  ;;  %9953 = vmatpush.bf16.msra.mxu2 %v14665_v42  ;;  %v10024_v50 = vmax.f32 %v18858_v49, 0.0  ;;  %v16237_v11 = vor.u32 %v17979_v38, %v16236_v21  ;;  %v18039_v42 = vld [vmem:[#allocation14 + $0x264] sm:$0xf0]  ;;  %v16069_v49 = vor.u32 %v17937_v14, %v16068_v44  ;;  %v16444_v44 = vld [vmem:[#allocation14 + $0x220] sm:$0xf] }
 0x566   :  { %v16477_v3 = vor.u32 %v18039_v42, %v16476_v48  ;;  %v16004_v58 = vld [vmem:[#allocation11 + $0xe98] sm:$0xf]  ;;  %v18031_v42 = vld [vmem:[#allocation14 + $0x224] sm:$0xf0]  ;;  %v15142_v12 = vld [vmem:[#allocation11 + $0x7f8] sm:$0xf0] }
 0x567   :  { %10816 = vmatpush.bf16.msra.mxu0 %v16213_v19  ;;  %9861 = vmatpush.bf16.msra.mxu3 %v14949_v63  ;;  %v16180_v19 = vld [vmem:[#allocation14 + $0x10] sm:$0xf]  ;;  %v18945_v46 = vpack.c.bf16 %v10024_v50, %v10024_v50 }
 0x568   :  { %v16181_v10 = vor.u32 %v17965_v26, %v16180_v19  ;;  %9954 = vmatmul.bf16.vlgmr.msra.gmra.mxu2 %v18726_v54  ;;  %v10025_v54 = vmax.f32 %v18875_v52, 0.0  ;;  %v16036_v52 = vld [vmem:[#allocation11 + $0xed8] sm:$0xf]  ;;  %v18951_v19 = vld [vmem:[#allocation13] sm:$0xff] }
 0x569   :  { %10829 = vmatpush.bf16.msra.mxu1 %v16277_v8  ;;  %9998 = vmatpush.bf16.msrb.mxu2 %v15913_v37  ;;  %v17981_v8 = vld [vmem:[#allocation14 + $0x94] sm:$0xf0]  ;;  %v16468_v37 = vld [vmem:[#allocation14 + $0x250] sm:$0xf]  ;;  %v16037_v0 = vor.u32 %v17929_v55, %v16036_v52  ;;  %v6622_v26 = vperm.slane %v18951_v19, 6 }
 0x56a   :  { %v16245_v17 = vor.u32 %v17981_v8, %v16244_v34  ;;  %v18947_v13 = vpack.c.bf16 %v10025_v54, %v10025_v54  ;;  %v16460_v8 = vld [vmem:[#allocation14 + $0x240] sm:$0xf]  ;;  %v16548_v50 = vld [vmem:[#allocation14 + $0x2f0] sm:$0xf] }
 0x56b   :  { %10817 = vmatpush.bf16.msra.mxu0 %v16205_v6  ;;  %9862 = vmatpush.bf16.msra.mxu3 %v14917_v39  ;;  %v17963_v6 = vld [vmem:[#allocation14 + $0x4] sm:$0xf0]  ;;  %v18037_v39 = vld [vmem:[#allocation14 + $0x254] sm:$0xf0]  ;;  %v15940_v54 = vld [vmem:[#allocation11 + $0xe18] sm:$0xf] }
 0x56c   :  { %v16173_v15 = vor.u32 %v17963_v6, %v16172_v61  ;;  %v16469_v33 = vor.u32 %v18037_v39, %v16468_v37  ;;  %v15972_v61 = vld [vmem:[#allocation11 + $0xe58] sm:$0xf]  ;;  %v16348_v55 = vld [vmem:[#allocation14 + $0x160] sm:$0xf]  ;;  %v16445_v39 = vor.u32 %v18031_v42, %v16444_v44  ;;  %v18001_v42 = vld [vmem:[#allocation14 + $0x134] sm:$0xf0] }
 0x56d   :  { %10830 = vmatpush.bf16.msra.mxu1 %v16269_v20  ;;  %v16100_v20 = vld [vmem:[#allocation11 + $0xf58] sm:$0xf]  ;;  %9999 = vmatpush.bf16.msrb.mxu2 %v15881_v62 }
 0x56e   :  { %9863 = vmatmul.bf16.vlgmr.msra.gmra.mxu3 %v18747_v56  ;;  %v16101_v63 = vor.u32 %v17945_v41, %v16100_v20  ;;  %v18954_v36 = vpop.f32.mrf.mxu3  ;;  %v17913_v6 = vld [vmem:[#allocation11 + $0xe74] sm:$0xf0] }
 0x56f   :  { %10818 = vmatpush.bf16.msra.mxu0 %v16197_v4  ;;  %9907 = vmatpush.bf16.msrb.mxu3 %v16165_v53  ;;  %v16485_v4 = vor.u32 %v18041_v51, %v16484_v47  ;;  %v9747_v53 = vpop.f32.mrf.mxu2  ;;  %v16452_v41 = vld [vmem:[#allocation14 + $0x230] sm:$0xf]  ;;  %v17837_v47 = vld [vmem:[#allocation11 + $0xc1c] sm:$0xf] }
 0x570   :  { %v18957_v62 = vadd.f32 %v9747_v53, %v18922_v5  ;;  %v15686_v51 = vld [vmem:[#allocation11 + $0xc38] sm:$0xf0] }
 0x571   :  { %10831 = vmatpush.bf16.msra.mxu1 %v16261_v7  ;;  %10000 = vmatpush.bf16.msrb.mxu2 %v15849_v24  ;;  %v15817_v7 = vor.u32 %v17869_v25, %v15814_v57  ;;  %v18033_v24 = vld [vmem:[#allocation14 + $0x234] sm:$0xf0]  ;;  %v15973_v25 = vor.u32 %v17913_v6, %v15972_v61  ;;  %v15689_v48 = vor.u32 %v17837_v47, %v15686_v51  ;;  %v15110_v53 = vld [vmem:[#allocation11 + $0x7b8] sm:$0xf0]  ;;  %v18027_v6 = vld [vmem:[#allocation14 + $0x204] sm:$0xf0] }
 0x572   :  { %v18009_v57 = vld [vmem:[#allocation14 + $0x174] sm:$0xf0]  ;;  %v17976_v47 = vld [vmem:[#allocation14 + $0x74] sm:$0xf]  ;;  %v16230_v51 = vld [vmem:[#allocation14 + $0x78] sm:$0xf0] }
 0x573   :  { %10819 = vmatpush.bf16.msra.mxu0 %v16189_v40  ;;  %9908 = vmatpush.bf16.msrb.mxu3 %v16133_v28  ;;  %v17853_v40 = vld [vmem:[#allocation11 + $0xc9c] sm:$0xf]  ;;  %v16461_v28 = vor.u32 %v18035_v31, %v16460_v8  ;;  %v16340_v31 = vld [vmem:[#allocation14 + $0x150] sm:$0xf]  ;;  %v18053_v61 = vld [vmem:[#allocation14 + $0x2d4] sm:$0xf0] }
 0x574   :  { %v15753_v34 = vor.u32 %v17853_v40, %v15750_v23  ;;  %v15145_v40 = vor.u32 %v17701_v22, %v15142_v12  ;;  %v16436_v23 = vld [vmem:[#allocation14 + $0x210] sm:$0xf] }
 0x575   :  { %10832 = vmatpush.bf16.msra.mxu1 %v16253_v1  ;;  %10001 = vmatpush.bf16.msrb.mxu2 %v15817_v7  ;;  %v17921_v1 = vld [vmem:[#allocation11 + $0xeb4] sm:$0xf0] }
 0x576   :  { %v16005_v2 = vor.u32 %v17921_v1, %v16004_v58  ;;  %v17693_v1 = vld [vmem:[#allocation11 + $0x79c] sm:$0xf]  ;;  %v16516_v22 = vld [vmem:[#allocation14 + $0x2b0] sm:$0xf] }
 0x577   :  { %10820 = vmatpush.bf16.msra.mxu0 %v16181_v10  ;;  %9909 = vmatpush.bf16.msrb.mxu3 %v16101_v63  ;;  %v17845_v10 = vld [vmem:[#allocation11 + $0xc5c] sm:$0xf]  ;;  %v16453_v63 = vor.u32 %v18033_v24, %v16452_v41  ;;  %v9749_v7 = vpop.f32.mrf.mxu2  ;;  %v9657_v41 = vadd.f32 %v18954_v36, %v18918_v27 }
 0x578   :  { %v15721_v20 = vor.u32 %v17845_v10, %v15718_v59  ;;  %v18005_v10 = vld [vmem:[#allocation14 + $0x154] sm:$0xf0]  ;;  %v16532_v59 = vld [vmem:[#allocation14 + $0x2d0] sm:$0xf]  ;;  %v16222_v7 = vld [vmem:[#allocation14 + $0x68] sm:$0xf0] }
 0x579   :  { %10833 = vmatpush.bf16.msra.mxu1 %v16245_v17  ;;  %10002 = vmatpush.bf16.msrb.mxu2 %v15785_v35  ;;  %v18007_v35 = vld [vmem:[#allocation14 + $0x164] sm:$0xf0]  ;;  %v16341_v24 = vor.u32 %v18005_v10, %v16340_v31  ;;  %v9670_v27 = vadd.f32 %v18908_v18, %v9657_v41  ;;  %v17972_v18 = vld [vmem:[#allocation14 + $0x54] sm:$0xf] }
 0x57b   :  { %10821 = vmatpush.bf16.msra.mxu0 %v16173_v15  ;;  %9910 = vmatpush.bf16.msrb.mxu3 %v16069_v49  ;;  %v9825_v17 = vpop.f32.mrf.mxu0  ;;  %v16356_v15 = vld [vmem:[#allocation14 + $0x170] sm:$0xf]  ;;  %v9658_v49 = vpop.f32.mrf.mxu3 }
 0x57c   :  { %v9826_v21 = vadd.f32 %v9825_v17, %v6622_v26  ;;  %v18055_v26 = vld [vmem:[#allocation14 + $0x2e4] sm:$0xf0]  ;;  %v15113_v17 = vor.u32 %v17693_v1, %v15110_v53  ;;  %v18049_v49 = vld [vmem:[#allocation14 + $0x2b4] sm:$0xf0] }
 0x57d   :  { %10834 = vmatpush.bf16.msra.mxu1 %v16237_v11  ;;  %v9838_v38 = vpop.f32.mrf.mxu1  ;;  %10003 = vmatpush.bf16.msrb.mxu2 %v15753_v34  ;;  %v18057_v11 = vld [vmem:[#allocation14 + $0x2f4] sm:$0xf0]  ;;  %v16349_v34 = vor.u32 %v18007_v35, %v16348_v55  ;;  %v15014_v55 = vld [vmem:[#allocation11 + $0x6f8] sm:$0xf0]  ;;  %v16517_v35 = vor.u32 %v18049_v49, %v16516_v22  ;;  %v17966_v22 = vld [vmem:[#allocation14 + $0x24] sm:$0xf] }
 0x57e   :  { %10822 = vmatmul.bf16.vlgmr.msra.gmra.mxu0 %v18945_v46  ;;  %v18959_v5 = vadd.f32 %v9838_v38, %v9826_v21  ;;  %v16549_v14 = vor.u32 %v18057_v11, %v16548_v50  ;;  %v17685_v21 = vld [vmem:[#allocation11 + $0x75c] sm:$0xf]  ;;  %v18051_v11 = vld [vmem:[#allocation14 + $0x2c4] sm:$0xf0] }
 0x57f   :  { %10866 = vmatpush.bf16.msrb.mxu0 %v16485_v4  ;;  %9911 = vmatpush.bf16.msrb.mxu3 %v16037_v0  ;;  %v17905_v4 = vld [vmem:[#allocation11 + $0xe34] sm:$0xf0]  ;;  %v18029_v0 = vld [vmem:[#allocation14 + $0x214] sm:$0xf0]  ;;  %v15078_v38 = vld [vmem:[#allocation11 + $0x778] sm:$0xf0] }
 0x580   :  { %10835 = vmatmul.bf16.vlgmr.msra.gmra.mxu1 %v18947_v13  ;;  %v15941_v52 = vor.u32 %v17905_v4, %v15940_v54  ;;  %v15081_v50 = vor.u32 %v17685_v21, %v15078_v38  ;;  %v17677_v54 = vld [vmem:[#allocation11 + $0x71c] sm:$0xf] }
 0x581   :  { %10004 = vmatpush.bf16.msrb.mxu2 %v15721_v20  ;;  %10879 = vmatpush.bf16.msrb.mxu1 %v16549_v14  ;;  %v16533_v20 = vor.u32 %v18053_v61, %v16532_v59  ;;  %v15046_v4 = vld [vmem:[#allocation11 + $0x738] sm:$0xf0]  ;;  %v17974_v14 = vld [vmem:[#allocation14 + $0x64] sm:$0xf]  ;;  %v17997_v61 = vld [vmem:[#allocation14 + $0x114] sm:$0xf0] }
 0x582   :  { %v15049_v12 = vor.u32 %v17677_v54, %v15046_v4  ;;  %v16492_v54 = vld [vmem:[#allocation14 + $0x280] sm:$0xf]  ;;  %v18043_v4 = vld [vmem:[#allocation14 + $0x284] sm:$0xf0] }
 0x583   :  { %10867 = vmatpush.bf16.msrb.mxu0 %v16477_v3  ;;  %9912 = vmatpush.bf16.msrb.mxu3 %v16005_v2  ;;  %v16357_v3 = vor.u32 %v18009_v57, %v16356_v15  ;;  %v9827_v37 = vpop.f32.mrf.mxu0  ;;  %v16437_v2 = vor.u32 %v18029_v0, %v16436_v23  ;;  %v16332_v15 = vld [vmem:[#allocation14 + $0x140] sm:$0xf]  ;;  %v17999_v0 = vld [vmem:[#allocation14 + $0x124] sm:$0xf0] }
 0x584   :  { %v16524_v57 = vld [vmem:[#allocation14 + $0x2c0] sm:$0xf] }
 0x585   :  { %v9840_v58 = vpop.f32.mrf.mxu1  ;;  %10005 = vmatpush.bf16.msrb.mxu2 %v15689_v48  ;;  %v16525_v44 = vor.u32 %v18051_v11, %v16524_v57  ;;  %v16324_v48 = vld [vmem:[#allocation14 + $0x130] sm:$0xf]  ;;  %v16316_v23 = vld [vmem:[#allocation14 + $0x120] sm:$0xf] }
 0x586   :  { %v16325_v37 = vor.u32 %v18001_v42, %v16324_v48  ;;  %v18047_v58 = vld [vmem:[#allocation14 + $0x2a4] sm:$0xf0]  ;;  %v16317_v59 = vor.u32 %v17999_v0, %v16316_v23  ;;  %v16300_v11 = vld [vmem:[#allocation14 + $0x100] sm:$0xf]  ;;  %v17645_v48 = vld [vmem:[#allocation11 + $0x61c] sm:$0xf] }
 0x587   :  { %10868 = vmatpush.bf16.msrb.mxu0 %v16469_v33  ;;  %9913 = vmatpush.bf16.msrb.mxu3 %v15973_v25  ;;  %v16540_v33 = vld [vmem:[#allocation14 + $0x2e0] sm:$0xf]  ;;  %v18003_v25 = vld [vmem:[#allocation14 + $0x144] sm:$0xf0]  ;;  %v14918_v42 = vld [vmem:[#allocation11 + $0x638] sm:$0xf0] }
 0x588   :  { %v16541_v8 = vor.u32 %v18055_v26, %v16540_v33  ;;  %10006 = vmatmul.bf16.vlgmr.msrb.gmra.mxu2 %v18773_v16  ;;  %v16333_v36 = vor.u32 %v18003_v25, %v16332_v15  ;;  %v16508_v33 = vld [vmem:[#allocation14 + $0x2a0] sm:$0xf]  ;;  %v17661_v26 = vld [vmem:[#allocation11 + $0x69c] sm:$0xf] }
 0x589   :  { %10840 = vmatpush.bf16.msra.mxu2 %v16357_v3  ;;  %v16225_v3 = vor.u32 %v17974_v14, %v16222_v7  ;;  %v16294_v14 = vld [vmem:[#allocation14 + $0xf8] sm:$0xf0] }
 0x58a   :  { %10880 = vmatpush.bf16.msrb.mxu1 %v16541_v8  ;;  %v16509_v8 = vor.u32 %v18047_v58, %v16508_v33  ;;  %v17964_v33 = vld [vmem:[#allocation14 + $0x14] sm:$0xf]  ;;  %v17990_v58 = vld [vmem:[#allocation14 + $0xe4] sm:$0xf] }
 0x58b   :  { %10869 = vmatpush.bf16.msrb.mxu0 %v16461_v28  ;;  %9914 = vmatpush.bf16.msrb.mxu3 %v15941_v52  ;;  %v16428_v28 = vld [vmem:[#allocation14 + $0x200] sm:$0xf]  ;;  %v17669_v52 = vld [vmem:[#allocation11 + $0x6dc] sm:$0xf]  ;;  %v18968_v10 = vpop.f32.mrf.mxu2 }
 0x58c   :  { %v16429_v16 = vor.u32 %v18027_v6, %v16428_v28  ;;  %v15017_v1 = vor.u32 %v17669_v52, %v15014_v55  ;;  %v16308_v28 = vld [vmem:[#allocation14 + $0x110] sm:$0xf]  ;;  %v16190_v52 = vld [vmem:[#allocation14 + $0x28] sm:$0xf0]  ;;  %v17957_v55 = vld [vmem:[#allocation11 + $0xfdc] sm:$0xf] }
 0x58d   :  { %10841 = vmatpush.bf16.msra.mxu2 %v16349_v34  ;;  %v14982_v34 = vld [vmem:[#allocation11 + $0x6b8] sm:$0xf0]  ;;  %v16500_v6 = vld [vmem:[#allocation14 + $0x290] sm:$0xf]  ;;  %v16193_v23 = vor.u32 %v17966_v22, %v16190_v52 }
 0x58e   :  { %9915 = vmatmul.bf16.vlgmr.msrb.gmra.mxu3 %v18802_v32  ;;  %10881 = vmatpush.bf16.msrb.mxu1 %v16533_v20  ;;  %v14985_v38 = vor.u32 %v17661_v26, %v14982_v34  ;;  %v18045_v20 = vld [vmem:[#allocation14 + $0x294] sm:$0xf0]  ;;  %v16182_v34 = vld [vmem:[#allocation14 + $0x18] sm:$0xf0]  ;;  %v18036_v22 = vld [vmem:[#allocation14 + $0x254] sm:$0xf] }
 0x58f   :  { %10870 = vmatpush.bf16.msrb.mxu0 %v16453_v63  ;;  %9959 = vmatpush.bf16.msra.mxu3 %v15145_v40  ;;  %v16233_v63 = vor.u32 %v17976_v47, %v16230_v51  ;;  %v9683_v40 = vadd.f32 %v18910_v9, %v9670_v27  ;;  %v16206_v9 = vld [vmem:[#allocation14 + $0x48] sm:$0xf0]  ;;  %v14950_v47 = vld [vmem:[#allocation11 + $0x678] sm:$0xf0] }
 0x590   :  { %v17968_v51 = vld [vmem:[#allocation14 + $0x34] sm:$0xf] }
 0x591   :  { %10842 = vmatpush.bf16.msra.mxu2 %v16341_v24  ;;  %v9696_v31 = vadd.f32 %v18932_v30, %v9683_v40  ;;  %v17653_v24 = vld [vmem:[#allocation11 + $0x65c] sm:$0xf]  ;;  %v16501_v30 = vor.u32 %v18045_v20, %v16500_v6  ;;  %v14921_v40 = vor.u32 %v17645_v48, %v14918_v42  ;;  %v16174_v6 = vld [vmem:[#allocation14 + $0x8] sm:$0xf0] }
 0x592   :  { %10882 = vmatpush.bf16.msrb.mxu1 %v16525_v44  ;;  %v14953_v27 = vor.u32 %v17653_v24, %v14950_v47  ;;  %v16486_v24 = vld [vmem:[#allocation14 + $0x278] sm:$0xf0]  ;;  %v17986_v47 = vld [vmem:[#allocation14 + $0xc4] sm:$0xf]  ;;  %v16038_v48 = vld [vmem:[#allocation11 + $0xef8] sm:$0xf0] }
 0x593   :  { %10871 = vmatpush.bf16.msrb.mxu0 %v16445_v39  ;;  %9960 = vmatpush.bf16.msra.mxu3 %v15113_v17  ;;  %v16214_v39 = vld [vmem:[#allocation14 + $0x58] sm:$0xf0]  ;;  %v9708_v17 = vpop.f32.mrf.mxu3  ;;  %v9801_v49 = vpop.f32.mrf.mxu2 }
 0x594   :  { %v16217_v53 = vor.u32 %v17972_v18, %v16214_v39  ;;  %v9709_v21 = vadd.f32 %v9708_v17, %v9696_v31  ;;  %v10026_v39 = vmax.f32 %v18906_v45, 0.0  ;;  %v16134_v31 = vld [vmem:[#allocation11 + $0xfb8] sm:$0xf0]  ;;  %v17982_v49 = vld [vmem:[#allocation14 + $0xa4] sm:$0xf] }
 0x595   :  { %10843 = vmatpush.bf16.msra.mxu2 %v16333_v36  ;;  %v17992_v36 = vld [vmem:[#allocation14 + $0xf4] sm:$0xf] }
 0x596   :  { %10883 = vmatpush.bf16.msrb.mxu1 %v16517_v35  ;;  %v10028_v15 = vmax.f32 %v9709_v21, 0.0  ;;  %v16166_v35 = vld [vmem:[#allocation11 + $0xff8] sm:$0xf0] }
 0x597   :  { %10872 = vmatpush.bf16.msrb.mxu0 %v16437_v2  ;;  %9961 = vmatpush.bf16.msra.mxu3 %v15081_v50  ;;  %v17970_v2 = vld [vmem:[#allocation14 + $0x44] sm:$0xf]  ;;  %v16198_v50 = vld [vmem:[#allocation14 + $0x38] sm:$0xf0]  ;;  %v16169_v0 = vor.u32 %v17957_v55, %v16166_v35  ;;  %v17988_v45 = vld [vmem:[#allocation14 + $0xd4] sm:$0xf] }
 0x598   :  { %v16209_v41 = vor.u32 %v17970_v2, %v16206_v9  ;;  %v18974_v44 = vpack.c.bf16 %v10028_v15, %v10028_v15  ;;  %v16201_v7 = vor.u32 %v17968_v51, %v16198_v50  ;;  %v18978_v2 = vpack.c.bf16 %v10026_v39, %v10026_v39  ;;  %v17941_v21 = vld [vmem:[#allocation11 + $0xf5c] sm:$0xf]  ;;  %v16270_v15 = vld [vmem:[#allocation14 + $0xc8] sm:$0xf0]  ;;  %v18034_v39 = vld [vmem:[#allocation14 + $0x244] sm:$0xf] }
 0x599   :  { %10844 = vmatpush.bf16.msra.mxu2 %v16325_v37  ;;  %v16297_v37 = vor.u32 %v17992_v36, %v16294_v14  ;;  %v16185_v9 = vor.u32 %v17964_v33, %v16182_v34  ;;  %v17933_v50 = vld [vmem:[#allocation11 + $0xf1c] sm:$0xf] }
 0x59a   :  { %10884 = vmatpush.bf16.msrb.mxu1 %v16509_v8  ;;  %v17949_v8 = vld [vmem:[#allocation11 + $0xf9c] sm:$0xf] }
 0x59b   :  { %10873 = vmatpush.bf16.msrb.mxu0 %v16429_v16  ;;  %9962 = vmatpush.bf16.msra.mxu3 %v15049_v12  ;;  %v18970_v25 = vpop.f32.mrf.mxu0  ;;  %v16309_v16 = vor.u32 %v17997_v61, %v16308_v28  ;;  %v16493_v12 = vor.u32 %v18043_v4, %v16492_v54  ;;  %v9710_v18 = vpop.f32.mrf.mxu3  ;;  %v16137_v17 = vor.u32 %v17949_v8, %v16134_v31  ;;  %v17962_v28 = vld [vmem:[#allocation14 + $0x4] sm:$0xf]  ;;  %v16278_v61 = vld [vmem:[#allocation14 + $0xd8] sm:$0xf0]  ;;  %v16478_v4 = vld [vmem:[#allocation14 + $0x268] sm:$0xf0] }
 0x59c   :  { %v16281_v20 = vor.u32 %v17988_v45, %v16278_v61  ;;  %v16177_v51 = vor.u32 %v17962_v28, %v16174_v6  ;;  %v18038_v54 = vld [vmem:[#allocation14 + $0x264] sm:$0xf]  ;;  %v17917_v35 = vld [vmem:[#allocation11 + $0xe9c] sm:$0xf]  ;;  %v16238_v61 = vld [vmem:[#allocation14 + $0x88] sm:$0xf0] }
 0x59d   :  { %v18972_v57 = vpop.f32.mrf.mxu1  ;;  %10845 = vmatpush.bf16.msra.mxu2 %v16317_v59  ;;  %v16481_v14 = vor.u32 %v18038_v54, %v16478_v4  ;;  %v17980_v33 = vld [vmem:[#allocation14 + $0x94] sm:$0xf]  ;;  %v17978_v28 = vld [vmem:[#allocation14 + $0x84] sm:$0xf]  ;;  %v16604_v4 = vld [vmem:[#allocation14 + $0x360] sm:$0xf] }
 0x59e   :  { %10885 = vmatpush.bf16.msrb.mxu1 %v16501_v30  ;;  %10874 = vmatmul.bf16.vlgmr.msrb.gmra.mxu0 %v18974_v44  ;;  %v15974_v8 = vld [vmem:[#allocation11 + $0xe78] sm:$0xf0] }
 0x59f   :  { %10918 = vmatpush.bf16.msra.mxu0 %v16233_v63  ;;  %9963 = vmatpush.bf16.msra.mxu3 %v15017_v1  ;;  %v17995_v63 = vld [vmem:[#allocation14 + $0x104] sm:$0xf0]  ;;  %v16286_v1 = vld [vmem:[#allocation14 + $0xe8] sm:$0xf0]  ;;  %v18032_v31 = vld [vmem:[#allocation14 + $0x234] sm:$0xf] }
 0x5a0   :  { %v16289_v59 = vor.u32 %v17990_v58, %v16286_v1 }
 0x5a1   :  { %10846 = vmatpush.bf16.msra.mxu2 %v16309_v16 }
 0x5a2   :  { %10886 = vmatpush.bf16.msrb.mxu1 %v16493_v12  ;;  %v16470_v12 = vld [vmem:[#allocation14 + $0x258] sm:$0xf0] }
 0x5a3   :  { %10919 = vmatpush.bf16.msra.mxu0 %v16225_v3  ;;  %9964 = vmatpush.bf16.msra.mxu3 %v14985_v38  ;;  %v16301_v3 = vor.u32 %v17995_v63, %v16300_v11  ;;  %v16102_v38 = vld [vmem:[#allocation11 + $0xf78] sm:$0xf0]  ;;  %v16273_v63 = vor.u32 %v17986_v47, %v16270_v15  ;;  %v16473_v55 = vor.u32 %v18036_v22, %v16470_v12  ;;  %v18030_v47 = vld [vmem:[#allocation14 + $0x224] sm:$0xf]  ;;  %v16446_v15 = vld [vmem:[#allocation14 + $0x228] sm:$0xf0] }
 0x5a4   :  { %v16105_v30 = vor.u32 %v17941_v21, %v16102_v38  ;;  %v16070_v11 = vld [vmem:[#allocation11 + $0xf38] sm:$0xf0]  ;;  %v18073_v38 = vld [vmem:[#allocation14 + $0x374] sm:$0xf0]  ;;  %v16412_v22 = vld [vmem:[#allocation14 + $0x1e0] sm:$0xf] }
 0x5a5   :  { %v9892_v26 = vpop.f32.mrf.mxu1  ;;  %10847 = vmatpush.bf16.msra.mxu2 %v16301_v3  ;;  %v16073_v36 = vor.u32 %v17933_v50, %v16070_v11  ;;  %v16254_v3 = vld [vmem:[#allocation14 + $0xa8] sm:$0xf0]  ;;  %v18025_v50 = vld [vmem:[#allocation14 + $0x1f4] sm:$0xf0]  ;;  %v18023_v12 = vld [vmem:[#allocation14 + $0x1e4] sm:$0xf0] }
 0x5a6   :  { %10931 = vmatpush.bf16.msra.mxu1 %v16297_v37  ;;  %v16006_v37 = vld [vmem:[#allocation11 + $0xeb8] sm:$0xf0]  ;;  %v16257_v18 = vor.u32 %v17982_v49, %v16254_v3  ;;  %v16246_v26 = vld [vmem:[#allocation14 + $0x98] sm:$0xf0]  ;;  %v16596_v3 = vld [vmem:[#allocation14 + $0x350] sm:$0xf] }
 0x5a7   :  { %10920 = vmatpush.bf16.msra.mxu0 %v16217_v53  ;;  %9965 = vmatpush.bf16.msra.mxu3 %v14953_v27  ;;  %v9879_v53 = vpop.f32.mrf.mxu0  ;;  %v17984_v27 = vld [vmem:[#allocation14 + $0xb4] sm:$0xf]  ;;  %v16009_v1 = vor.u32 %v17917_v35, %v16006_v37  ;;  %v16249_v45 = vor.u32 %v17980_v33, %v16246_v26  ;;  %v16413_v35 = vor.u32 %v18023_v12, %v16412_v22  ;;  %v18026_v37 = vld [vmem:[#allocation14 + $0x204] sm:$0xf]  ;;  %v18021_v33 = vld [vmem:[#allocation14 + $0x1d4] sm:$0xf0] }
 0x5a8   :  { %10848 = vmatmul.bf16.vlgmr.msra.gmra.mxu2 %v18978_v2  ;;  %v17909_v53 = vld [vmem:[#allocation11 + $0xe5c] sm:$0xf]  ;;  %v18054_v12 = vld [vmem:[#allocation14 + $0x2e4] sm:$0xf] }
 0x5a9   :  { %v15977_v6 = vor.u32 %v17909_v53, %v15974_v8  ;;  %v16396_v8 = vld [vmem:[#allocation14 + $0x1c0] sm:$0xf] }
 0x5aa   :  { %10932 = vmatpush.bf16.msra.mxu1 %v16289_v59  ;;  %v16454_v59 = vld [vmem:[#allocation14 + $0x238] sm:$0xf0] }
 0x5ab   :  { %10921 = vmatpush.bf16.msra.mxu0 %v16209_v41  ;;  %9966 = vmatpush.bf16.msra.mxu3 %v14921_v40  ;;  %v18040_v41 = vld [vmem:[#allocation14 + $0x274] sm:$0xf]  ;;  %v16462_v40 = vld [vmem:[#allocation14 + $0x248] sm:$0xf0]  ;;  %v16457_v21 = vor.u32 %v18032_v31, %v16454_v59  ;;  %v18019_v31 = vld [vmem:[#allocation14 + $0x1c4] sm:$0xf0] }
 0x5ac   :  { %v16489_v16 = vor.u32 %v18040_v41, %v16486_v24  ;;  %v16465_v34 = vor.u32 %v18034_v39, %v16462_v40  ;;  %v17901_v41 = vld [vmem:[#allocation11 + $0xe1c] sm:$0xf]  ;;  %v16588_v39 = vld [vmem:[#allocation14 + $0x340] sm:$0xf]  ;;  %v18067_v40 = vld [vmem:[#allocation14 + $0x344] sm:$0xf0] }
 0x5ad   :  { %v15942_v24 = vld [vmem:[#allocation11 + $0xe38] sm:$0xf0] }
 0x5ae   :  { %9967 = vmatmul.bf16.vlgmr.msra.gmra.mxu3 %v18747_v56  ;;  %10933 = vmatpush.bf16.msra.mxu1 %v16281_v20  ;;  %v16262_v56 = vld [vmem:[#allocation14 + $0xb8] sm:$0xf0]  ;;  %v15945_v54 = vor.u32 %v17901_v41, %v15942_v24  ;;  %v16564_v24 = vld [vmem:[#allocation14 + $0x310] sm:$0xf] }
 0x5af   :  { %10922 = vmatpush.bf16.msra.mxu0 %v16201_v7  ;;  %10011 = vmatpush.bf16.msrb.mxu3 %v16169_v0  ;;  %v17925_v7 = vld [vmem:[#allocation11 + $0xedc] sm:$0xf]  ;;  %v16265_v42 = vor.u32 %v17984_v27, %v16262_v56  ;;  %v6623_v0 = vperm.slane %v18951_v19, 7  ;;  %v18071_v27 = vld [vmem:[#allocation14 + $0x364] sm:$0xf0] }
 0x5b0   :  { %v16041_v52 = vor.u32 %v17925_v7, %v16038_v48  ;;  %v16605_v7 = vor.u32 %v18071_v27, %v16604_v4  ;;  %v18059_v27 = vld [vmem:[#allocation14 + $0x304] sm:$0xf0] }
 0x5b1   :  { %v18984_v58 = vpop.f32.mrf.mxu3 }
 0x5b2   :  { %10934 = vmatpush.bf16.msra.mxu1 %v16273_v63  ;;  %v9761_v53 = vadd.f32 %v18984_v58, %v18957_v62 }
 0x5b3   :  { %10923 = vmatpush.bf16.msra.mxu0 %v16193_v23  ;;  %10012 = vmatpush.bf16.msrb.mxu3 %v16137_v17  ;;  %v9851_v23 = vpop.f32.mrf.mxu2 }
 0x5b4   :  { %v9774_v59 = vadd.f32 %v18937_v43, %v9761_v53  ;;  %v18015_v43 = vld [vmem:[#allocation14 + $0x1a4] sm:$0xf0]  ;;  %v18004_v53 = vld [vmem:[#allocation14 + $0x154] sm:$0xf] }
 0x5b6   :  { %10935 = vmatpush.bf16.msra.mxu1 %v16265_v42  ;;  %v16438_v42 = vld [vmem:[#allocation14 + $0x218] sm:$0xf0]  ;;  %v9787_v58 = vadd.f32 %v18939_v29, %v9774_v59 }
 0x5b7   :  { %10924 = vmatpush.bf16.msra.mxu0 %v16185_v9  ;;  %10013 = vmatpush.bf16.msrb.mxu3 %v16105_v30  ;;  %v16550_v29 = vld [vmem:[#allocation14 + $0x2f8] sm:$0xf0] }
 0x5b9   :  { %v9762_v63 = vpop.f32.mrf.mxu3 }
 0x5ba   :  { %10936 = vmatpush.bf16.msra.mxu1 %v16257_v18 }
 0x5bb   :  { %10925 = vmatpush.bf16.msra.mxu0 %v16177_v51  ;;  %10014 = vmatpush.bf16.msrb.mxu3 %v16073_v36  ;;  %v9929_v9 = vpop.f32.mrf.mxu0  ;;  %v16241_v51 = vor.u32 %v17978_v28, %v16238_v61  ;;  %v9853_v11 = vpop.f32.mrf.mxu2  ;;  %v16449_v36 = vor.u32 %v18030_v47, %v16446_v15  ;;  %v18063_v28 = vld [vmem:[#allocation14 + $0x324] sm:$0xf0]  ;;  %v16388_v61 = vld [vmem:[#allocation14 + $0x1b0] sm:$0xf]  ;;  %v18061_v47 = vld [vmem:[#allocation14 + $0x314] sm:$0xf0] }
 0x5bc   :  { %v9930_v17 = vadd.f32 %v9929_v9, %v6623_v0  ;;  %v16404_v0 = vld [vmem:[#allocation14 + $0x1d0] sm:$0xf]  ;;  %v18065_v9 = vld [vmem:[#allocation14 + $0x334] sm:$0xf0]  ;;  %v18056_v11 = vld [vmem:[#allocation14 + $0x2f4] sm:$0xf] }
 0x5bd   :  { %v9942_v19 = vpop.f32.mrf.mxu1  ;;  %v16372_v15 = vld [vmem:[#allocation14 + $0x190] sm:$0xf] }
 0x5be   :  { %10926 = vmatmul.bf16.vlgmr.msra.gmra.mxu0 %v18945_v46  ;;  %v18987_v46 = vadd.f32 %v9851_v23, %v18959_v5  ;;  %v16612_v5 = vld [vmem:[#allocation14 + $0x370] sm:$0xf]  ;;  %v18989_v20 = vadd.f32 %v9942_v19, %v9930_v17  ;;  %10937 = vmatpush.bf16.msra.mxu1 %v16249_v45  ;;  %v16430_v23 = vld [vmem:[#allocation14 + $0x208] sm:$0xf0]  ;;  %v16397_v17 = vor.u32 %v18019_v31, %v16396_v8  ;;  %v16572_v19 = vld [vmem:[#allocation14 + $0x320] sm:$0xf] }
 0x5bf   :  { %10970 = vmatpush.bf16.msrb.mxu0 %v16489_v16  ;;  %10015 = vmatpush.bf16.msrb.mxu3 %v16041_v52  ;;  %v16613_v30 = vor.u32 %v18073_v38, %v16612_v5  ;;  %v16420_v16 = vld [vmem:[#allocation14 + $0x1f0] sm:$0xf]  ;;  %v18069_v52 = vld [vmem:[#allocation14 + $0x354] sm:$0xf0]  ;;  %v16433_v26 = vor.u32 %v18026_v37, %v16430_v23  ;;  %v16573_v62 = vor.u32 %v18063_v28, %v16572_v19  ;;  %v16380_v5 = vld [vmem:[#allocation14 + $0x1a0] sm:$0xf] }
 0x5c0   :  { %v16421_v56 = vor.u32 %v18025_v50, %v16420_v16  ;;  %v16597_v18 = vor.u32 %v18069_v52, %v16596_v3  ;;  %v16580_v45 = vld [vmem:[#allocation14 + $0x330] sm:$0xf]  ;;  %v9800_v38 = vadd.f32 %v18968_v10, %v9787_v58  ;;  %v16565_v16 = vor.u32 %v18061_v47, %v16564_v24  ;;  %v16556_v10 = vld [vmem:[#allocation14 + $0x300] sm:$0xf]  ;;  %v16358_v3 = vld [vmem:[#allocation14 + $0x178] sm:$0xf0] }
 0x5c1   :  { %10892 = vmatpush.bf16.msrb.mxu2 %v16613_v30  ;;  %v16381_v30 = vor.u32 %v18015_v43, %v16380_v5  ;;  %v10027_v23 = vmax.f32 %v18935_v60, 0.0  ;;  %v16334_v19 = vld [vmem:[#allocation14 + $0x148] sm:$0xf0]  ;;  %v18048_v28 = vld [vmem:[#allocation14 + $0x2b4] sm:$0xf] }
 0x5c2   :  { %10938 = vmatpush.bf16.msra.mxu1 %v16241_v51  ;;  %v16326_v58 = vld [vmem:[#allocation14 + $0x138] sm:$0xf0]  ;;  %v18046_v5 = vld [vmem:[#allocation14 + $0x2a4] sm:$0xf]  ;;  %v16510_v43 = vld [vmem:[#allocation14 + $0x2a8] sm:$0xf0] }
 0x5c3   :  { %10971 = vmatpush.bf16.msrb.mxu0 %v16481_v14  ;;  %10016 = vmatpush.bf16.msrb.mxu3 %v16009_v1  ;;  %v18028_v14 = vld [vmem:[#allocation14 + $0x214] sm:$0xf]  ;;  %v9931_v48 = vpop.f32.mrf.mxu0  ;;  %v16589_v1 = vor.u32 %v18067_v40, %v16588_v39  ;;  %v18006_v39 = vld [vmem:[#allocation14 + $0x164] sm:$0xf]  ;;  %v16350_v40 = vld [vmem:[#allocation14 + $0x168] sm:$0xf0]  ;;  %v19008_v59 = vpack.c.bf16 %v10027_v23, %v10027_v23 }
 0x5c4   :  { %v16557_v48 = vor.u32 %v18059_v27, %v16556_v10  ;;  %v17998_v24 = vld [vmem:[#allocation14 + $0x124] sm:$0xf]  ;;  %v16318_v47 = vld [vmem:[#allocation14 + $0x128] sm:$0xf0] }
 0x5c5   :  { %v9944_v49 = vpop.f32.mrf.mxu1  ;;  %10893 = vmatpush.bf16.msrb.mxu2 %v16605_v7  ;;  %v18011_v7 = vld [vmem:[#allocation14 + $0x184] sm:$0xf0]  ;;  %v18042_v27 = vld [vmem:[#allocation14 + $0x284] sm:$0xf] }
 0x5c6   :  { %v16542_v49 = vld [vmem:[#allocation14 + $0x2e8] sm:$0xf0] }
 0x5c7   :  { %10972 = vmatpush.bf16.msrb.mxu0 %v16473_v55  ;;  %10017 = vmatpush.bf16.msrb.mxu3 %v15977_v6  ;;  %v16441_v55 = vor.u32 %v18028_v14, %v16438_v42  ;;  %v18017_v6 = vld [vmem:[#allocation14 + $0x1b4] sm:$0xf0]  ;;  %v16364_v14 = vld [vmem:[#allocation14 + $0x180] sm:$0xf]  ;;  %v18008_v42 = vld [vmem:[#allocation14 + $0x174] sm:$0xf] }
 0x5c8   :  { %v16361_v52 = vor.u32 %v18008_v42, %v16358_v3  ;;  %v16365_v37 = vor.u32 %v18011_v7, %v16364_v14  ;;  %v17994_v42 = vld [vmem:[#allocation14 + $0x104] sm:$0xf] }
 0x5c9   :  { %10894 = vmatpush.bf16.msrb.mxu2 %v16597_v18  ;;  %v16545_v18 = vor.u32 %v18054_v12, %v16542_v49  ;;  %v16302_v12 = vld [vmem:[#allocation14 + $0x108] sm:$0xf0] }
 0x5cb   :  { %10973 = vmatpush.bf16.msrb.mxu0 %v16465_v34  ;;  %10018 = vmatpush.bf16.msrb.mxu3 %v15945_v54  ;;  %v16405_v34 = vor.u32 %v18021_v33, %v16404_v0  ;;  %v18998_v41 = vpop.f32.mrf.mxu2  ;;  %v18052_v0 = vld [vmem:[#allocation14 + $0x2d4] sm:$0xf]  ;;  %v16534_v33 = vld [vmem:[#allocation14 + $0x2d8] sm:$0xf0] }
 0x5cc   :  { %v16537_v31 = vor.u32 %v18052_v0, %v16534_v33 }
 0x5cd   :  { %10895 = vmatpush.bf16.msrb.mxu2 %v16589_v1  ;;  %v16353_v1 = vor.u32 %v18006_v39, %v16350_v40  ;;  %v16668_v39 = vld [vmem:[#allocation14 + $0x3e0] sm:$0xf]  ;;  %v18087_v40 = vld [vmem:[#allocation14 + $0x3e4] sm:$0xf0] }
 0x5ce   :  { %10019 = vmatmul.bf16.vlgmr.msrb.gmra.mxu3 %v18802_v32  ;;  %v16581_v32 = vor.u32 %v18065_v9, %v16580_v45  ;;  %v18050_v45 = vld [vmem:[#allocation14 + $0x2c4] sm:$0xf]  ;;  %v16526_v9 = vld [vmem:[#allocation14 + $0x2c8] sm:$0xf0] }
 0x5cf   :  { %10974 = vmatpush.bf16.msrb.mxu0 %v16457_v21  ;;  %10853 = vmatpush.bf16.msra.mxu3 %v16421_v56  ;;  %v16389_v21 = vor.u32 %v18017_v6, %v16388_v61  ;;  %v16553_v56 = vor.u32 %v18056_v11, %v16550_v29  ;;  %v16529_v60 = vor.u32 %v18050_v45, %v16526_v9  ;;  %v16518_v61 = vld [vmem:[#allocation14 + $0x2b8] sm:$0xf0]  ;;  %v17996_v11 = vld [vmem:[#allocation14 + $0x114] sm:$0xf] }
 0x5d0   :  { %v16310_v29 = vld [vmem:[#allocation14 + $0x118] sm:$0xf0] }
 0x5d1   :  { %10896 = vmatpush.bf16.msrb.mxu2 %v16581_v32  ;;  %v9812_v51 = vpop.f32.mrf.mxu3  ;;  %v18002_v32 = vld [vmem:[#allocation14 + $0x144] sm:$0xf] }
 0x5d2   :  { %v9813_v50 = vadd.f32 %v9812_v51, %v9800_v38  ;;  %v16337_v6 = vor.u32 %v18002_v32, %v16334_v19  ;;  %v16513_v51 = vor.u32 %v18046_v5, %v16510_v43  ;;  %v18081_v32 = vld [vmem:[#allocation14 + $0x3b4] sm:$0xf0] }
 0x5d3   :  { %10975 = vmatpush.bf16.msrb.mxu0 %v16449_v36  ;;  %10854 = vmatpush.bf16.msra.mxu3 %v16413_v35 }
 0x5d4   :  { %v10029_v63 = vmax.f32 %v9813_v50, 0.0  ;;  %v19012_v50 = vld [vmem:[#allocation16] sm:$0x3] }
 0x5d5   :  { %10897 = vmatpush.bf16.msrb.mxu2 %v16573_v62  ;;  %v18000_v62 = vld [vmem:[#allocation14 + $0x134] sm:$0xf]  ;;  %v10170_v10 = vperm.slane %v19012_v50, 0 }
 0x5d6   :  { %v19004_v22 = vpack.c.bf16 %v10029_v63, %v10029_v63  ;;  %v16329_v38 = vor.u32 %v18000_v62, %v16326_v58  ;;  %v16628_v62 = vld [vmem:[#allocation14 + $0x390] sm:$0xf]  ;;  %v18077_v58 = vld [vmem:[#allocation14 + $0x394] sm:$0xf0] }
 0x5d7   :  { %10976 = vmatpush.bf16.msrb.mxu0 %v16441_v55  ;;  %10855 = vmatpush.bf16.msra.mxu3 %v16405_v34  ;;  %v9905_v55 = vpop.f32.mrf.mxu2 }
 0x5d8   :  { %10887 = vmatmul.bf16.vlgmr.msrb.gmra.mxu1 %v19004_v22  ;;  %v16676_v55 = vld [vmem:[#allocation14 + $0x3f0] sm:$0xf] }
 0x5d9   :  { %10898 = vmatpush.bf16.msrb.mxu2 %v16565_v16  ;;  %v9814_v35 = vpop.f32.mrf.mxu3  ;;  %10983 = vmatpush.bf16.msrb.mxu1 %v16553_v56  ;;  %v16321_v16 = vor.u32 %v17998_v24, %v16318_v47  ;;  %v16313_v56 = vor.u32 %v17996_v11, %v16310_v29  ;;  %v16614_v47 = vld [vmem:[#allocation14 + $0x378] sm:$0xf0] }
 0x5da   :  { %v18089_v35 = vld [vmem:[#allocation14 + $0x3f4] sm:$0xf0] }
 0x5db   :  { %10977 = vmatpush.bf16.msrb.mxu0 %v16433_v26  ;;  %10856 = vmatpush.bf16.msra.mxu3 %v16397_v17  ;;  %v19000_v54 = vpop.f32.mrf.mxu0  ;;  %v16342_v26 = vld [vmem:[#allocation14 + $0x158] sm:$0xf0] }
 0x5dc   :  { %v16345_v17 = vor.u32 %v18004_v53, %v16342_v26  ;;  %v16660_v53 = vld [vmem:[#allocation14 + $0x3d0] sm:$0xf]  ;;  %v18085_v26 = vld [vmem:[#allocation14 + $0x3d4] sm:$0xf0] }
 0x5dd   :  { %v19002_v4 = vpop.f32.mrf.mxu1  ;;  %10899 = vmatpush.bf16.msrb.mxu2 %v16557_v48  ;;  %10984 = vmatpush.bf16.msrb.mxu1 %v16545_v18 }
 0x5de   :  { %10978 = vmatmul.bf16.vlgmr.msrb.gmra.mxu0 %v18974_v44  ;;  %v18013_v44 = vld [vmem:[#allocation14 + $0x194] sm:$0xf0] }
 0x5df   :  { %10857 = vmatpush.bf16.msra.mxu3 %v16389_v21  ;;  %v16373_v36 = vor.u32 %v18013_v44, %v16372_v15  ;;  %v16521_v21 = vor.u32 %v18048_v28, %v16518_v61  ;;  %v16502_v15 = vld [vmem:[#allocation14 + $0x298] sm:$0xf0]  ;;  %v16636_v28 = vld [vmem:[#allocation14 + $0x3a0] sm:$0xf] }
 0x5e1   :  { %10944 = vmatpush.bf16.msra.mxu2 %v16361_v52  ;;  %10985 = vmatpush.bf16.msrb.mxu1 %v16537_v31  ;;  %v16305_v52 = vor.u32 %v17994_v42, %v16302_v12  ;;  %v18083_v31 = vld [vmem:[#allocation14 + $0x3c4] sm:$0xf0]  ;;  %v16406_v42 = vld [vmem:[#allocation14 + $0x1d8] sm:$0xf0]  ;;  %v18068_v12 = vld [vmem:[#allocation14 + $0x354] sm:$0xf] }
 0x5e3   :  { %10858 = vmatpush.bf16.msra.mxu3 %v16381_v30  ;;  %v9983_v34 = vpop.f32.mrf.mxu0  ;;  %v18044_v30 = vld [vmem:[#allocation14 + $0x294] sm:$0xf] }
 0x5e4   :  { %v16505_v44 = vor.u32 %v18044_v30, %v16502_v15  ;;  %v16661_v34 = vor.u32 %v18085_v26, %v16660_v53  ;;  %v16582_v53 = vld [vmem:[#allocation14 + $0x338] sm:$0xf0] }
 0x5e5   :  { %v9996_v8 = vpop.f32.mrf.mxu1  ;;  %10945 = vmatpush.bf16.msra.mxu2 %v16353_v1  ;;  %10986 = vmatpush.bf16.msrb.mxu1 %v16529_v60 }
 0x5e6   :  { %v16652_v8 = vld [vmem:[#allocation14 + $0x3c0] sm:$0xf] }
 0x5e7   :  { %10859 = vmatpush.bf16.msra.mxu3 %v16373_v36  ;;  %v16494_v36 = vld [vmem:[#allocation14 + $0x288] sm:$0xf0]  ;;  %v16653_v45 = vor.u32 %v18083_v31, %v16652_v8 }
 0x5e8   :  { %10939 = vmatmul.bf16.vlgmr.msra.gmra.mxu1 %v18947_v13  ;;  %v16497_v48 = vor.u32 %v18042_v27, %v16494_v36  ;;  %v18022_v27 = vld [vmem:[#allocation14 + $0x1e4] sm:$0xf]  ;;  %v16414_v36 = vld [vmem:[#allocation14 + $0x1e8] sm:$0xf0] }
 0x5e9   :  { %10946 = vmatpush.bf16.msra.mxu2 %v16345_v17  ;;  %10987 = vmatpush.bf16.msrb.mxu1 %v16521_v21  ;;  %v16644_v17 = vld [vmem:[#allocation14 + $0x3b0] sm:$0xf]  ;;  %v16382_v8 = vld [vmem:[#allocation14 + $0x1a8] sm:$0xf0] }
 0x5ea   :  { %v16645_v60 = vor.u32 %v18081_v32, %v16644_v17 }
 0x5eb   :  { %10860 = vmatpush.bf16.msra.mxu3 %v16365_v37  ;;  %v9955_v63 = vpop.f32.mrf.mxu2  ;;  %v16677_v37 = vor.u32 %v18089_v35, %v16676_v55  ;;  %v16398_v55 = vld [vmem:[#allocation14 + $0x1c8] sm:$0xf0] }
 0x5ec   :  { %v19016_v14 = vadd.f32 %v9955_v63, %v18989_v20  ;;  %v16669_v20 = vor.u32 %v18087_v40, %v16668_v39  ;;  %v18070_v63 = vld [vmem:[#allocation14 + $0x364] sm:$0xf]  ;;  %v16590_v39 = vld [vmem:[#allocation14 + $0x348] sm:$0xf0] }
 0x5ed   :  { %10947 = vmatpush.bf16.msra.mxu2 %v16337_v6  ;;  %10988 = vmatpush.bf16.msrb.mxu1 %v16513_v51  ;;  %v18075_v51 = vld [vmem:[#allocation14 + $0x384] sm:$0xf0] }
 0x5ee   :  { %10861 = vmatmul.bf16.vlgmr.msra.gmra.mxu3 %v19008_v59 }
 0x5ef   :  { %10905 = vmatpush.bf16.msrb.mxu3 %v16677_v37  ;;  %v18066_v37 = vld [vmem:[#allocation14 + $0x344] sm:$0xf] }
 0x5f1   :  { %10948 = vmatpush.bf16.msra.mxu2 %v16329_v38  ;;  %v9864_v13 = vpop.f32.mrf.mxu3  ;;  %10989 = vmatpush.bf16.msrb.mxu1 %v16505_v44  ;;  %v18072_v38 = vld [vmem:[#allocation14 + $0x374] sm:$0xf]  ;;  %v16422_v44 = vld [vmem:[#allocation14 + $0x1f8] sm:$0xf0] }
 0x5f2   :  { %v9865_v9 = vadd.f32 %v9864_v13, %v18987_v46  ;;  %v16629_v46 = vor.u32 %v18077_v58, %v16628_v62 }
 0x5f3   :  { %v9957_v23 = vpop.f32.mrf.mxu2  ;;  %10906 = vmatpush.bf16.msrb.mxu3 %v16669_v20 }
 0x5f4   :  { %v9878_v19 = vadd.f32 %v18970_v25, %v9865_v9  ;;  %v16620_v25 = vld [vmem:[#allocation14 + $0x380] sm:$0xf]  ;;  %v18016_v23 = vld [vmem:[#allocation14 + $0x1b4] sm:$0xf]  ;;  %v16574_v9 = vld [vmem:[#allocation14 + $0x328] sm:$0xf0] }
 0x5f5   :  { %10949 = vmatpush.bf16.msra.mxu2 %v16321_v16  ;;  %10990 = vmatpush.bf16.msrb.mxu1 %v16497_v48  ;;  %v16621_v30 = vor.u32 %v18075_v51, %v16620_v25  ;;  %v18024_v16 = vld [vmem:[#allocation14 + $0x1f4] sm:$0xf] }
 0x5f6   :  { %v9891_v6 = vadd.f32 %v18972_v57, %v9878_v19  ;;  %v16617_v57 = vor.u32 %v18072_v38, %v16614_v47  ;;  %v16425_v11 = vor.u32 %v18024_v16, %v16422_v44  ;;  %v18020_v48 = vld [vmem:[#allocation14 + $0x1d4] sm:$0xf]  ;;  %v16558_v38 = vld [vmem:[#allocation14 + $0x308] sm:$0xf0] }
 0x5f7   :  { %10907 = vmatpush.bf16.msrb.mxu3 %v16661_v34  ;;  %v18014_v34 = vld [vmem:[#allocation14 + $0x1a4] sm:$0xf] }
 0x5f8   :  { %10991 = vmatmul.bf16.vlgmr.msrb.gmra.mxu1 %v19004_v22  ;;  %v18079_v22 = vld [vmem:[#allocation14 + $0x3a4] sm:$0xf0]  ;;  %v9904_v21 = vadd.f32 %v18998_v41, %v9891_v6  ;;  %v16606_v41 = vld [vmem:[#allocation14 + $0x368] sm:$0xf0]  ;;  %v16385_v32 = vor.u32 %v18014_v34, %v16382_v8 }
 0x5f9   :  { %10950 = vmatpush.bf16.msra.mxu2 %v16313_v56  ;;  %v9866_v0 = vpop.f32.mrf.mxu3  ;;  %v16637_v61 = vor.u32 %v18079_v22, %v16636_v28  ;;  %v16609_v13 = vor.u32 %v18070_v63, %v16606_v41  ;;  %v16566_v28 = vld [vmem:[#allocation14 + $0x318] sm:$0xf0]  ;;  %v18012_v22 = vld [vmem:[#allocation14 + $0x194] sm:$0xf] }
 0x5fa   :  { %v16390_v0 = vld [vmem:[#allocation14 + $0x1b8] sm:$0xf0] }
 0x5fb   :  { %v10823_v7 = vpop.f32.mrf.mxu0  ;;  %10908 = vmatpush.bf16.msrb.mxu3 %v16653_v45  ;;  %v16393_v26 = vor.u32 %v18016_v23, %v16390_v0  ;;  %v18062_v45 = vld [vmem:[#allocation14 + $0x324] sm:$0xf]  ;;  %v16638_v23 = vld [vmem:[#allocation14 + $0x3a8] sm:$0xf0] }
 0x5fc   :  { %v10824_v49 = vadd.f32 %v10823_v7, %v10170_v10  ;;  %v16417_v7 = vor.u32 %v18022_v27, %v16414_v36  ;;  %v16577_v19 = vor.u32 %v18062_v45, %v16574_v9  ;;  %v16678_v27 = vld [vmem:[#allocation14 + $0x3f8] sm:$0xf0]  ;;  %v16622_v45 = vld [vmem:[#allocation14 + $0x388] sm:$0xf0] }
 0x5fd   :  { %v10836_v3 = vpop.f32.mrf.mxu1  ;;  %10951 = vmatpush.bf16.msra.mxu2 %v16305_v52  ;;  %v18018_v52 = vld [vmem:[#allocation14 + $0x1c4] sm:$0xf] }
 0x5fe   :  { %v19018_v18 = vadd.f32 %v10836_v3, %v10824_v49  ;;  %v16598_v49 = vld [vmem:[#allocation14 + $0x358] sm:$0xf0]  ;;  %v16409_v3 = vor.u32 %v18020_v48, %v16406_v42  ;;  %v16401_v20 = vor.u32 %v18018_v52, %v16398_v55  ;;  %v18086_v48 = vld [vmem:[#allocation14 + $0x3e4] sm:$0xf] }
 0x5ff   :  { %10909 = vmatpush.bf16.msrb.mxu3 %v16645_v60  ;;  %v16601_v35 = vor.u32 %v18068_v12, %v16598_v49  ;;  %v18060_v60 = vld [vmem:[#allocation14 + $0x314] sm:$0xf]  ;;  %v16662_v12 = vld [vmem:[#allocation14 + $0x3d8] sm:$0xf0]  ;;  %v18082_v49 = vld [vmem:[#allocation14 + $0x3c4] sm:$0xf] }
 0x600   :  { %v16569_v62 = vor.u32 %v18060_v60, %v16566_v28 }
 0x603   :  { %v10825_v33 = vpop.f32.mrf.mxu0  ;;  %10910 = vmatpush.bf16.msrb.mxu3 %v16637_v61  ;;  %v16374_v61 = vld [vmem:[#allocation14 + $0x198] sm:$0xf0] }
 0x604   :  { %v16593_v33 = vor.u32 %v18066_v37, %v16590_v39  ;;  %v16377_v58 = vor.u32 %v18012_v22, %v16374_v61  ;;  %v16646_v37 = vld [vmem:[#allocation14 + $0x3b8] sm:$0xf0] }
 0x605   :  { %v10838_v1 = vpop.f32.mrf.mxu1 }
 0x606   :  { %v18064_v1 = vld [vmem:[#allocation14 + $0x334] sm:$0xf] }
 0x607   :  { %10911 = vmatpush.bf16.msrb.mxu3 %v16629_v46  ;;  %v16585_v31 = vor.u32 %v18064_v1, %v16582_v53  ;;  %v18076_v1 = vld [vmem:[#allocation14 + $0x394] sm:$0xf]  ;;  %v16630_v53 = vld [vmem:[#allocation14 + $0x398] sm:$0xf0] }
 0x608   :  { %v16633_v34 = vor.u32 %v18076_v1, %v16630_v53 }
 0x60b   :  { %v19025_v5 = vpop.f32.mrf.mxu2  ;;  %10912 = vmatpush.bf16.msrb.mxu3 %v16621_v30 }
 0x60f   :  { %10957 = vmatpush.bf16.msra.mxu3 %v16425_v11 }
 0x611   :  { %v9916_v43 = vpop.f32.mrf.mxu3 }
 0x612   :  { %v9917_v24 = vadd.f32 %v9916_v43, %v9904_v21  ;;  %v18058_v43 = vld [vmem:[#allocation14 + $0x304] sm:$0xf] }
 0x613   :  { %v10009_v10 = vpop.f32.mrf.mxu2  ;;  %10958 = vmatpush.bf16.msra.mxu3 %v16417_v7  ;;  %v16561_v25 = vor.u32 %v18058_v43, %v16558_v38 }
 0x614   :  { %v10030_v15 = vmax.f32 %v9917_v24, 0.0  ;;  %v18010_v24 = vld [vmem:[#allocation14 + $0x184] sm:$0xf]  ;;  %v18088_v10 = vld [vmem:[#allocation14 + $0x3f4] sm:$0xf] }
 0x616   :  { %v19027_v29 = vpack.c.bf16 %v10030_v15, %v10030_v15 }
 0x617   :  { %10959 = vmatpush.bf16.msra.mxu3 %v16409_v3  ;;  %v16654_v3 = vld [vmem:[#allocation14 + $0x3c8] sm:$0xf0] }
 0x618   :  { %10900 = vmatmul.bf16.vlgmr.msrb.gmra.mxu2 %v19027_v29  ;;  %v16657_v55 = vor.u32 %v18082_v49, %v16654_v3 }
 0x619   :  { %v9918_v56 = vpop.f32.mrf.mxu3  ;;  %10996 = vmatpush.bf16.msrb.mxu2 %v16617_v57 }
 0x61b   :  { %v19030_v40 = vpop.f32.mrf.mxu0  ;;  %10960 = vmatpush.bf16.msra.mxu3 %v16401_v20  ;;  %v18078_v20 = vld [vmem:[#allocation14 + $0x3a4] sm:$0xf] }
 0x61d   :  { %10997 = vmatpush.bf16.msrb.mxu2 %v16609_v13  ;;  %v16681_v13 = vor.u32 %v18088_v10, %v16678_v27 }
 0x61f   :  { %10961 = vmatpush.bf16.msra.mxu3 %v16393_v26  ;;  %v10171_v26 = vperm.slane %v19012_v50, 1 }
 0x621   :  { %10998 = vmatpush.bf16.msrb.mxu2 %v16601_v35  ;;  %v18080_v35 = vld [vmem:[#allocation14 + $0x3b4] sm:$0xf] }
 0x622   :  { %v16649_v39 = vor.u32 %v18080_v35, %v16646_v37 }
 0x623   :  { %v10877_v17 = vpop.f32.mrf.mxu0  ;;  %10962 = vmatpush.bf16.msra.mxu3 %v16385_v32 }
 0x625   :  { %10999 = vmatpush.bf16.msrb.mxu2 %v16593_v33  ;;  %v16641_v33 = vor.u32 %v18078_v20, %v16638_v23 }
 0x627   :  { %10963 = vmatpush.bf16.msra.mxu3 %v16377_v58 }
 0x628   :  { %10952 = vmatmul.bf16.vlgmr.msra.gmra.mxu2 %v18978_v2  ;;  %v16366_v2 = vld [vmem:[#allocation14 + $0x188] sm:$0xf0] }
 0x629   :  { %11000 = vmatpush.bf16.msrb.mxu2 %v16585_v31  ;;  %v16369_v51 = vor.u32 %v18010_v24, %v16366_v2  ;;  %v18074_v31 = vld [vmem:[#allocation14 + $0x384] sm:$0xf] }
 0x62b   :  { %v10849_v6 = vpop.f32.mrf.mxu2  ;;  %10964 = vmatpush.bf16.msra.mxu3 %v16369_v51 }
 0x62c   :  { %v19034_v46 = vadd.f32 %v10849_v6, %v19018_v18 }
 0x62d   :  { %11001 = vmatpush.bf16.msrb.mxu2 %v16577_v19 }
 0x631   :  { %v9968_v21 = vpop.f32.mrf.mxu3  ;;  %11002 = vmatpush.bf16.msrb.mxu2 %v16569_v62 }
 0x632   :  { %v9969_v44 = vadd.f32 %v9968_v21, %v19016_v14 }
 0x633   :  { %v10851_v30 = vpop.f32.mrf.mxu2 }
 0x634   :  { %v9982_v18 = vadd.f32 %v19000_v54, %v9969_v44  ;;  %v18084_v54 = vld [vmem:[#allocation14 + $0x3d4] sm:$0xf] }
 0x635   :  { %11003 = vmatpush.bf16.msrb.mxu2 %v16561_v25 }
 0x636   :  { %v9995_v57 = vadd.f32 %v19002_v4, %v9982_v18 }
 0x638   :  { %11004 = vmatmul.bf16.vlgmr.msrb.gmra.mxu2 %v19027_v29  ;;  %v10008_v11 = vadd.f32 %v19025_v5, %v9995_v57  ;;  %v16670_v29 = vld [vmem:[#allocation14 + $0x3e8] sm:$0xf0]  ;;  %v16665_v5 = vor.u32 %v18084_v54, %v16662_v12 }
 0x639   :  { %v9970_v15 = vpop.f32.mrf.mxu3  ;;  %v16673_v14 = vor.u32 %v18086_v48, %v16670_v29 }
 0x63b   :  { %v10927_v47 = vpop.f32.mrf.mxu0 }
 0x63c   :  { %v10928_v9 = vadd.f32 %v10927_v47, %v10171_v26 }
 0x643   :  { %v10929_v16 = vpop.f32.mrf.mxu0 }
 0x651   :  { %v10020_v63 = vpop.f32.mrf.mxu3 }
 0x652   :  { %v10021_v41 = vadd.f32 %v10020_v63, %v10008_v11 }
 0x654   :  { %v10031_v36 = vmax.f32 %v10021_v41, 0.0 }
 0x655   :  { %v10888_v52 = vpop.f32.mrf.mxu1 }
 0x656   :  { %v10168_v7 = vpack.c.bf16 %v10031_v36, %v10031_v36 }
 0x658   :  { %10913 = vmatmul.bf16.vlgmr.msrb.gmra.mxu3 %v10168_v7 }
 0x659   :  { %v10022_v42 = vpop.f32.mrf.mxu3  ;;  %11009 = vmatpush.bf16.msrb.mxu3 %v16681_v13 }
 0x65b   :  { %v19041_v56 = vpop.f32.mrf.mxu0 }
 0x65d   :  { %11010 = vmatpush.bf16.msrb.mxu3 %v16673_v14  ;;  %v10890_v0 = vpop.f32.mrf.mxu1 }
 0x661   :  { %11011 = vmatpush.bf16.msrb.mxu3 %v16665_v5 }
 0x663   :  { %v10981_v4 = vpop.f32.mrf.mxu0 }
 0x665   :  { %11012 = vmatpush.bf16.msrb.mxu3 %v16657_v55  ;;  %v10940_v32 = vpop.f32.mrf.mxu1 }
 0x666   :  { %v10941_v60 = vadd.f32 %v10940_v32, %v10928_v9 }
 0x668   :  { %10965 = vmatmul.bf16.vlgmr.msra.gmra.mxu3 %v19008_v59  ;;  %v16625_v59 = vor.u32 %v18074_v31, %v16622_v45 }
 0x669   :  { %11013 = vmatpush.bf16.msrb.mxu3 %v16649_v39 }
 0x66d   :  { %11014 = vmatpush.bf16.msrb.mxu3 %v16641_v33  ;;  %v10942_v61 = vpop.f32.mrf.mxu1 }
 0x671   :  { %v10862_v8 = vpop.f32.mrf.mxu3  ;;  %11015 = vmatpush.bf16.msrb.mxu3 %v16633_v34 }
 0x672   :  { %v10863_v17 = vadd.f32 %v10862_v8, %v19034_v46 }
 0x674   :  { %v10876_v19 = vadd.f32 %v19030_v40, %v10863_v17 }
 0x675   :  { %11016 = vmatpush.bf16.msrb.mxu3 %v16625_v59  ;;  %v10992_v50 = vpop.f32.mrf.mxu1 }
 0x676   :  { %v10889_v28 = vadd.f32 %v10888_v52, %v10876_v19 }
 0x678   :  { %11017 = vmatmul.bf16.vlgmr.msrb.gmra.mxu3 %v10168_v7 }
 0x679   :  { %v10864_v22 = vpop.f32.mrf.mxu3 }
 0x67d   :  { %v10994_v6 = vpop.f32.mrf.mxu1 }
 0x69b   :  { %v10901_v62 = vpop.f32.mrf.mxu2 }
 0x69c   :  { %v10902_v58 = vadd.f32 %v10901_v62, %v10889_v28 }
 0x6a3   :  { %v10903_v21 = vpop.f32.mrf.mxu2 }
 0x6ab   :  { %v10953_v43 = vpop.f32.mrf.mxu2 }
 0x6ac   :  { %v10954_v38 = vadd.f32 %v10953_v43, %v10941_v60 }
 0x6b3   :  { %v10955_v24 = vpop.f32.mrf.mxu2 }
 0x6bb   :  { %v11005_v46 = vpop.f32.mrf.mxu2 }
 0x6c3   :  { %v11007_v2 = vpop.f32.mrf.mxu2 }
 0x6db   :  { %v10914_v47 = vpop.f32.mrf.mxu3 }
 0x6dc   :  { %v10915_v11 = vadd.f32 %v10914_v47, %v10902_v58 }
 0x6e3   :  { %v10916_v40 = vpop.f32.mrf.mxu3 }
 0x6eb   :  { %v10966_v25 = vpop.f32.mrf.mxu3 }
 0x6ec   :  { %v10967_v51 = vadd.f32 %v10966_v25, %v10954_v38 }
 0x6ee   :  { %v10980_v30 = vadd.f32 %v19041_v56, %v10967_v51 }
 0x6f0   :  { %v10993_v16 = vadd.f32 %v10992_v50, %v10980_v30 }
 0x6f2   :  { %v11006_v44 = vadd.f32 %v11005_v46, %v10993_v16 }
 0x6f3   :  { %v10968_v15 = vpop.f32.mrf.mxu3 }
 0x6fb   :  { %v11018_v18 = vpop.f32.mrf.mxu3 }
 0x6fc   :  { %v11019_v57 = vadd.f32 %v11018_v18, %v11006_v44 }
 0x6fe   :  { %v11024_v63 = vrot.slane %v11019_v57, 6 }
 0x700   :  { %v11026_v41 = vsel %vm11025_vm0, %v10915_v11, %v11024_v63 }
 0x701   :  { %11028 = vst [vmem:[#allocation17] sm:$0xf] %v11026_v41 }
 0x702   :  { %11039 = dma.vmem_to_hbm [thread:$0]  %s11035_s8, 64, %s11037_s30, [#allocation4]  }
 0x703   :  { %v11020_v10 = vpop.f32.mrf.mxu3 }
 0x704   :  { %18361 = dma.done.wait [#allocation4], 64  }
 0x705   :  { %18362 = vsyncadd [#allocation4], 4294967232 }
 0x706   :  { %11044 = vsyncpa [#allocation3], 1 }
 0x707   :  { %11045 = vsyncpa [#allocation6], 1 }
 0x708   :  { %11046 = vsyncpa [#allocation9], 1 }
 0x709   :  { %11047 = vsyncpa [#allocation12], 1 }
 0x70a   :  { %11048 = vsyncpa [#allocation15], 1 }
 0x70b   :  { %11049 = vsyncpa [#allocation4], 1 }

</bundles_post_ra>
